<compile_context>
chip_gen: v5e
topology: v5e:2x2
jax: 0.10.0
libtpu: 0.0.40
codegen_flags: <defaults>
</compile_context>

<pallas_src>
import jax
import jax.numpy as jnp
from jax.experimental import pallas as pl
from jax.experimental.pallas import tpu as pltpu


_VMEM_LIMIT = 32 * 1024 * 1024  # right-sized for all of v5e/v6e/v7x


# ----------------------------------------------------------------------------
# Pallas kernel 1: fused   fc1 (+ReLU)  ->  deconv1-as-matmul (+bias, +ReLU)
# deconv1 acts on a 1x1 spatial input, so it is exactly a linear layer with
# output columns ordered (cout, kh, kw).
# ----------------------------------------------------------------------------
def _fc1_d1_kernel(z_ref, w1_ref, b1_ref, w2_ref, b2_ref, o_ref, h_ref):
    # z_ref:(Bp,L) w1_ref:(L,1024) b1_ref:(1,1024)
    # w2_ref:(1024,tn) b2_ref:(1,tn) o_ref:(Bp,tn) h_ref:(Bp,1024) scratch
    @pl.when(pl.program_id(0) == 0)
    def _():
        h = jnp.dot(z_ref[...], w1_ref[...], preferred_element_type=jnp.float32)
        h_ref[...] = jnp.maximum(h + b1_ref[...], 0.0)

    y = jnp.dot(h_ref[...], w2_ref[...], preferred_element_type=jnp.float32)
    o_ref[...] = jnp.maximum(y + b2_ref[...], 0.0)


def fc1_deconv1_pallas(z, fc1_w, fc1_b, d1_w, d1_b, tn=640):
    """relu(fc1) followed by relu(deconv1) on a 1x1 spatial input.

    Returns the deconv1 output in NHWC layout: (B, 5, 5, 128).
    """
    B, L = z.shape
    Lh = fc1_w.shape[1]                       # 1024
    Cin, Cout, kH, kW = d1_w.shape            # (1024, 128, 5, 5)
    N = Cout * kH * kW                        # 3200
    assert N % tn == 0 and tn % 128 == 0

    Bp = 8                                    # sublane-friendly row padding
    zp = jnp.pad(z.astype(jnp.float32), ((0, Bp - B), (0, 0)))
    w1 = fc1_w.astype(jnp.float32)
    b1 = fc1_b.reshape(1, Lh).astype(jnp.float32)
    w2 = d1_w.reshape(Cin, N).astype(jnp.float32)         # columns: (co, kh, kw)
    b2 = jnp.repeat(d1_b, kH * kW).reshape(1, N).astype(jnp.float32)

    out = pl.pallas_call(
        _fc1_d1_kernel,
        out_shape=jax.ShapeDtypeStruct((Bp, N), jnp.float32),
        grid=(N // tn,),
        in_specs=[
            pl.BlockSpec((Bp, L), lambda i: (0, 0)),
            pl.BlockSpec((L, Lh), lambda i: (0, 0)),
            pl.BlockSpec((1, Lh), lambda i: (0, 0)),
            pl.BlockSpec((Cin, tn), lambda i: (0, i)),
            pl.BlockSpec((1, tn), lambda i: (0, i)),
        ],
        out_specs=pl.BlockSpec((Bp, tn), lambda i: (0, i)),
        scratch_shapes=[pltpu.VMEM((Bp, Lh), jnp.float32)],
        compiler_params=pltpu.CompilerParams(
            # Scratch h carries across grid steps -> must stay sequential.
            dimension_semantics=("arbitrary",),
            vmem_limit_bytes=_VMEM_LIMIT,
        ),
    )(zp, w1, b1, w2, b2)

    out = out[:B]                                            # (B, 3200)
    return out.reshape(B, Cout, kH, kW).transpose(0, 2, 3, 1)  # NHWC (B,5,5,128)


# ----------------------------------------------------------------------------
# Pallas kernel 2: plain row-tiled matmul (the FLOP core of deconv2/3/4).
# ----------------------------------------------------------------------------
def _matmul_kernel(x_ref, w_ref, o_ref):
    # x_ref: (tm, K)   w_ref: (K, N)   o_ref: (tm, N)
    o_ref[...] = jnp.dot(x_ref[...], w_ref[...],
                         preferred_element_type=jnp.float32)


def matmul_pallas(x, w, tm_max=512):
    """x @ w via a Pallas kernel, tiled over rows of x ("parallel" grid)."""
    M, K = x.shape
    Kw, N = w.shape
    assert K == Kw

    Mp8 = -(-M // 8) * 8                      # round rows up to sublane multiple
    n_tiles = -(-Mp8 // tm_max)
    rows_per_tile = -(-Mp8 // n_tiles)
    tm = -(-rows_per_tile // 8) * 8
    Mp = n_tiles * tm
    if Mp != M:
        x = jnp.pad(x, ((0, Mp - M), (0, 0)))

    out = pl.pallas_call(
        _matmul_kernel,
        out_shape=jax.ShapeDtypeStruct((Mp, N), jnp.float32),
        grid=(n_tiles,),
        in_specs=[
            pl.BlockSpec((tm, K), lambda i: (i, 0)),
            pl.BlockSpec((K, N), lambda i: (0, 0)),
        ],
        out_specs=pl.BlockSpec((tm, N), lambda i: (i, 0)),
        compiler_params=pltpu.CompilerParams(
            dimension_semantics=("parallel",),   # row tiles are independent
            vmem_limit_bytes=_VMEM_LIMIT,
        ),
    )(x.astype(jnp.float32), w.astype(jnp.float32))
    return out[:M]


# ----------------------------------------------------------------------------
# ConvTranspose2d (stride s, padding 0) on NHWC input:
#   Pallas matmul (all FLOPs)  +  overlap-add / bias / activation epilogue
#   (pure data movement on sub-MB tensors, left to XLA).
# ----------------------------------------------------------------------------
def conv_transpose2d_nhwc(x, w_t, b, stride, act):
    """x: (B,H,W,Cin), w_t: (Cin,Cout,kH,kW) [PyTorch layout], b: (Cout,)."""
    B, H, W, Cin = x.shape
    Cin2, Cout, kH, kW = w_t.shape
    assert Cin == Cin2
    Ho = (H - 1) * stride + kH
    Wo = (W - 1) * stride + kW

    # Hot path: lane-dense MXU matmul, K = Cin (no dilation zeros, no im2col).
    x_flat = x.reshape(B * H * W, Cin)
    w_flat = w_t.reshape(Cin, Cout * kH * kW)          # columns: (co, kh, kw)
    y = matmul_pallas(x_flat, w_flat)                  # (B*H*W, Cout*kH*kW)
    y = y.reshape(B, H, W, Cout, kH, kW)

    # Glue: overlap-add the kH*kW taps into the strided output grid, then
    # add bias once per output pixel and apply the activation.
    out = jnp.zeros((B, Ho, Wo, Cout), jnp.float32)
    for kh in range(kH):
        for kw in range(kW):
            out = out.at[:, kh:kh + (H - 1) * stride + 1:stride,
                         kw:kw + (W - 1) * stride + 1:stride, :].add(
                             y[:, :, :, :, kh, kw])
    return act(out + b[None, None, None, :])


# ----------------------------------------------------------------------------
# Decoder forward (Pallas)
# ----------------------------------------------------------------------------
def decoder_forward_pallas(params, z):
    # fc1 + ReLU + deconv1 + ReLU, fused in one pallas_call -> NHWC (B,5,5,128)
    x = fc1_deconv1_pallas(z, params["fc1_w"], params["fc1_b"],
                           params["d1_w"], params["d1_b"])

    x = conv_transpose2d_nhwc(x, params["d2_w"], params["d2_b"], 2, jax.nn.relu)     # (B,13,13,64)
    x = conv_transpose2d_nhwc(x, params["d3_w"], params["d3_b"], 2, jax.nn.relu)     # (B,30,30,32)
    x = conv_transpose2d_nhwc(x, params["d4_w"], params["d4_b"], 2, jax.nn.sigmoid)  # (B,64,64,C)

    return x.transpose(0, 3, 1, 2)                # NCHW (B, img_channels, 64, 64)


# ----------------------------------------------------------------------------
# Pure-JAX reference (definitional ConvTranspose2d, NCHW) for validation.
# ----------------------------------------------------------------------------
def _ref_conv_transpose_nchw(x, w, b, s):
    B, Cin, H, W = x.shape
    _, Cout, kH, kW = w.shape
    Ho, Wo = (H - 1) * s + kH, (W - 1) * s + kW
    out = jnp.zeros((B, Cout, Ho, Wo), jnp.float32)
    for kh in range(kH):
        for kw in range(kW):
            contrib = jnp.einsum("bchw,cd->bdhw", x, w[:, :, kh, kw],
                                 precision=jax.lax.Precision.HIGHEST)
            out = out.at[:, :, kh:kh + (H - 1) * s + 1:s,
                         kw:kw + (W - 1) * s + 1:s].add(contrib)
    return out + b[None, :, None, None]


@jax.jit
def decoder_forward_ref(params, z):
    h = jax.nn.relu(jnp.dot(z, params["fc1_w"],
                            precision=jax.lax.Precision.HIGHEST) + params["fc1_b"])
    x = h[:, :, None, None]
    x = jax.nn.relu(_ref_conv_transpose_nchw(x, params["d1_w"], params["d1_b"], 2))
    x = jax.nn.relu(_ref_conv_transpose_nchw(x, params["d2_w"], params["d2_b"], 2))
    x = jax.nn.relu(_ref_conv_transpose_nchw(x, params["d3_w"], params["d3_b"], 2))
    x = jax.nn.sigmoid(_ref_conv_transpose_nchw(x, params["d4_w"], params["d4_b"], 2))
    return x


# ----------------------------------------------------------------------------
# Deterministic parameter init (shapes follow the PyTorch module __init__).
# ----------------------------------------------------------------------------
def init_params(key, img_channels, latent_size):
    ks = jax.random.split(key, 10)

    def w_init(k, shape, fan_in):
        return jax.random.normal(k, shape, jnp.float32) / jnp.sqrt(fan_in)

    def b_init(k, shape):
        return 0.01 * jax.random.normal(k, shape, jnp.float32)

    return {
        # nn.Linear(latent, 1024) — stored as (in, out)
        "fc1_w": w_init(ks[0], (latent_size, 1024), latent_size),
        "fc1_b": b_init(ks[1], (1024,)),
        # nn.ConvTranspose2d weights keep the PyTorch (Cin, Cout, kH, kW) layout
        "d1_w": w_init(ks[2], (1024, 128, 5, 5), 1024 * 25),
        "d1_b": b_init(ks[3], (128,)),
        "d2_w": w_init(ks[4], (128, 64, 5, 5), 128 * 25),
        "d2_b": b_init(ks[5], (64,)),
        "d3_w": w_init(ks[6], (64, 32, 6, 6), 64 * 36),
        "d3_b": b_init(ks[7], (32,)),
        "d4_w": w_init(ks[8], (32, img_channels, 6, 6), 32 * 36),
        "d4_b": b_init(ks[9], (img_channels,)),
    }


if __name__ == "__main__":
    IMG_CHANNELS = 3
    LATENT = 32
    BATCH = 2

    key = jax.random.PRNGKey(0)
    pkey, zkey = jax.random.split(key)
    params = init_params(pkey, IMG_CHANNELS, LATENT)
    z = jax.random.normal(zkey, (BATCH, LATENT), jnp.float32)

    fwd = jax.jit(decoder_forward_pallas)
    out = jax.block_until_ready(fwd(params, z))
    assert out.shape == (BATCH, IMG_CHANNELS, 64, 64), out.shape

    ref = jax.block_until_ready(decoder_forward_ref(params, z))
    err = float(jnp.max(jnp.abs(out - ref)))
    if err > 2e-3:
        raise AssertionError(f"Pallas decoder mismatch vs reference: max abs err = {err}")

    print("KERNEL_OK")
</pallas_src>

<mosaic_0001>
module attributes {stable_mosaic.version = 11 : i64} {
  func.func @_fc1_d1_kernel(%arg0: i32, %arg1: memref<8x32xf32, #tpu.memory_space<vmem>>, %arg2: memref<32x1024xf32, #tpu.memory_space<vmem>>, %arg3: memref<1x1024xf32, #tpu.memory_space<vmem>>, %arg4: memref<1024x640xf32, #tpu.memory_space<vmem>>, %arg5: memref<1x640xf32, #tpu.memory_space<vmem>>, %arg6: memref<8x640xf32, #tpu.memory_space<vmem>>, %arg7: memref<8x1024xf32, #tpu.memory_space<vmem>>) attributes {dimension_semantics = [#tpu.dimension_semantics<arbitrary>], iteration_bounds = array<i64: 5>, scalar_prefetch = 0 : i64, scratch_operands = 1 : i64, tpu.core_type = #tpu.core_type<tc>, window_params = [{pipeline_mode = #tpu.pipeline_mode<synchronous>, transform_indices = @transform_0, window_bounds = array<i64: 8, 32>}, {pipeline_mode = #tpu.pipeline_mode<synchronous>, transform_indices = @transform_1, window_bounds = array<i64: 32, 1024>}, {pipeline_mode = #tpu.pipeline_mode<synchronous>, transform_indices = @transform_2, window_bounds = array<i64: 1, 1024>}, {transform_indices = @transform_3, window_bounds = array<i64: 1024, 640>}, {transform_indices = @transform_4, window_bounds = array<i64: 1, 640>}, {transform_indices = @transform_5, window_bounds = array<i64: 8, 640>}]} {
    %c0_i32 = arith.constant 0 : i32
    %0 = arith.cmpi eq, %arg0, %c0_i32 : i32
    %1 = arith.extui %0 : i1 to i32
    %c0_i32_0 = arith.constant 0 : i32
    %2 = arith.cmpi ne, %1, %c0_i32_0 : i32
    scf.if %2 {
      %c0_9 = arith.constant 0 : index
      %c0_10 = arith.constant 0 : index
      %12 = vector.load %arg1[%c0_9, %c0_10] : memref<8x32xf32, #tpu.memory_space<vmem>>, vector<8x32xf32>
      %c0_11 = arith.constant 0 : index
      %c0_12 = arith.constant 0 : index
      %13 = vector.load %arg2[%c0_11, %c0_12] : memref<32x1024xf32, #tpu.memory_space<vmem>>, vector<32x1024xf32>
      %cst_13 = arith.constant dense<0.000000e+00> : vector<8x1024xf32>
      %14 = tpu.matmul %12, %13, %cst_13 {dimension_numbers = #tpu.dot_dimension_numbers<[1], [0], [0], [1], [0, 0, 1, 1], [], []>} : vector<8x32xf32>, vector<32x1024xf32>, vector<8x1024xf32> -> vector<8x1024xf32>
      %c0_14 = arith.constant 0 : index
      %c0_15 = arith.constant 0 : index
      %15 = vector.load %arg3[%c0_14, %c0_15] : memref<1x1024xf32, #tpu.memory_space<vmem>>, vector<1x1024xf32>
      %16 = vector.broadcast %15 : vector<1x1024xf32> to vector<8x1024xf32>
      %17 = arith.addf %14, %16 : vector<8x1024xf32>
      %cst_16 = arith.constant 0.000000e+00 : f32
      %18 = vector.broadcast %cst_16 : f32 to vector<8x1024xf32>
      %19 = arith.maximumf %17, %18 : vector<8x1024xf32>
      %c0_17 = arith.constant 0 : index
      %c0_18 = arith.constant 0 : index
      %20 = vector.load %arg7[%c0_17, %c0_18] : memref<8x1024xf32, #tpu.memory_space<vmem>>, vector<8x1024xf32>
      tpu.vector_store %arg7[%c0_17, %c0_18], %19 {strides = array<i32>} : memref<8x1024xf32, #tpu.memory_space<vmem>>, vector<8x1024xf32>,
    } else {
    }
    %c0 = arith.constant 0 : index
    %c0_1 = arith.constant 0 : index
    %3 = vector.load %arg7[%c0, %c0_1] : memref<8x1024xf32, #tpu.memory_space<vmem>>, vector<8x1024xf32>
    %c0_2 = arith.constant 0 : index
    %c0_3 = arith.constant 0 : index
    %4 = vector.load %arg4[%c0_2, %c0_3] : memref<1024x640xf32, #tpu.memory_space<vmem>>, vector<1024x640xf32>
    %cst = arith.constant dense<0.000000e+00> : vector<8x640xf32>
    %5 = tpu.matmul %3, %4, %cst {dimension_numbers = #tpu.dot_dimension_numbers<[1], [0], [0], [1], [0, 0, 1, 1], [], []>} : vector<8x1024xf32>, vector<1024x640xf32>, vector<8x640xf32> -> vector<8x640xf32>
    %c0_4 = arith.constant 0 : index
    %c0_5 = arith.constant 0 : index
    %6 = vector.load %arg5[%c0_4, %c0_5] : memref<1x640xf32, #tpu.memory_space<vmem>>, vector<1x640xf32>
    %7 = vector.broadcast %6 : vector<1x640xf32> to vector<8x640xf32>
    %8 = arith.addf %5, %7 : vector<8x640xf32>
    %cst_6 = arith.constant 0.000000e+00 : f32
    %9 = vector.broadcast %cst_6 : f32 to vector<8x640xf32>
    %10 = arith.maximumf %8, %9 : vector<8x640xf32>
    %c0_7 = arith.constant 0 : index
    %c0_8 = arith.constant 0 : index
    %11 = vector.load %arg6[%c0_7, %c0_8] : memref<8x640xf32, #tpu.memory_space<vmem>>, vector<8x640xf32>
    tpu.vector_store %arg6[%c0_7, %c0_8], %10 {strides = array<i32>} : memref<8x640xf32, #tpu.memory_space<vmem>>, vector<8x640xf32>,
    return
  }
  func.func @transform_0(%arg0: i32) -> (i32, i32) {
    %c0_i32 = arith.constant 0 : i32
    %c0_i32_0 = arith.constant 0 : i32
    %c0_i32_1 = arith.constant 0 : i32
    return %c0_i32, %c0_i32_0 : i32, i32
  }
  func.func @transform_1(%arg0: i32) -> (i32, i32) {
    %c0_i32 = arith.constant 0 : i32
    %c0_i32_0 = arith.constant 0 : i32
    %c0_i32_1 = arith.constant 0 : i32
    return %c0_i32, %c0_i32_0 : i32, i32
  }
  func.func @transform_2(%arg0: i32) -> (i32, i32) {
    %c0_i32 = arith.constant 0 : i32
    %c0_i32_0 = arith.constant 0 : i32
    %c0_i32_1 = arith.constant 0 : i32
    return %c0_i32, %c0_i32_0 : i32, i32
  }
  func.func @transform_3(%arg0: i32) -> (i32, i32) {
    %c0_i32 = arith.constant 0 : i32
    %c0_i32_0 = arith.constant 0 : i32
    return %c0_i32, %arg0 : i32, i32
  }
  func.func @transform_4(%arg0: i32) -> (i32, i32) {
    %c0_i32 = arith.constant 0 : i32
    %c0_i32_0 = arith.constant 0 : i32
    return %c0_i32, %arg0 : i32, i32
  }
  func.func @transform_5(%arg0: i32) -> (i32, i32) {
    %c0_i32 = arith.constant 0 : i32
    %c0_i32_0 = arith.constant 0 : i32
    return %c0_i32, %arg0 : i32, i32
  }
}

module attributes {stable_mosaic.version = 11 : i64} {
  func.func @_matmul_kernel(%arg0: i32, %arg1: memref<56x128xf32, #tpu.memory_space<vmem>>, %arg2: memref<128x1600xf32, #tpu.memory_space<vmem>>, %arg3: memref<56x1600xf32, #tpu.memory_space<vmem>>) attributes {dimension_semantics = [#tpu.dimension_semantics<parallel>], iteration_bounds = array<i64: 1>, scalar_prefetch = 0 : i64, scratch_operands = 0 : i64, tpu.core_type = #tpu.core_type<tc>, window_params = [{transform_indices = @transform_0, window_bounds = array<i64: 56, 128>}, {pipeline_mode = #tpu.pipeline_mode<synchronous>, transform_indices = @transform_1, window_bounds = array<i64: 128, 1600>}, {transform_indices = @transform_2, window_bounds = array<i64: 56, 1600>}]} {
    %c0 = arith.constant 0 : index
    %c0_0 = arith.constant 0 : index
    %0 = vector.load %arg1[%c0, %c0_0] : memref<56x128xf32, #tpu.memory_space<vmem>>, vector<56x128xf32>
    %c0_1 = arith.constant 0 : index
    %c0_2 = arith.constant 0 : index
    %1 = vector.load %arg2[%c0_1, %c0_2] : memref<128x1600xf32, #tpu.memory_space<vmem>>, vector<128x1600xf32>
    %cst = arith.constant dense<0.000000e+00> : vector<56x1600xf32>
    %2 = tpu.matmul %0, %1, %cst {dimension_numbers = #tpu.dot_dimension_numbers<[1], [0], [0], [1], [0, 0, 1, 1], [], []>} : vector<56x128xf32>, vector<128x1600xf32>, vector<56x1600xf32> -> vector<56x1600xf32>
    %c0_3 = arith.constant 0 : index
    %c0_4 = arith.constant 0 : index
    %3 = vector.load %arg3[%c0_3, %c0_4] : memref<56x1600xf32, #tpu.memory_space<vmem>>, vector<56x1600xf32>
    tpu.vector_store %arg3[%c0_3, %c0_4], %2 {strides = array<i32>} : memref<56x1600xf32, #tpu.memory_space<vmem>>, vector<56x1600xf32>,
    return
  }
  func.func @transform_0(%arg0: i32) -> (i32, i32) {
    %c0_i32 = arith.constant 0 : i32
    %c0_i32_0 = arith.constant 0 : i32
    return %arg0, %c0_i32 : i32, i32
  }
  func.func @transform_1(%arg0: i32) -> (i32, i32) {
    %c0_i32 = arith.constant 0 : i32
    %c0_i32_0 = arith.constant 0 : i32
    %c0_i32_1 = arith.constant 0 : i32
    return %c0_i32, %c0_i32_0 : i32, i32
  }
  func.func @transform_2(%arg0: i32) -> (i32, i32) {
    %c0_i32 = arith.constant 0 : i32
    %c0_i32_0 = arith.constant 0 : i32
    return %arg0, %c0_i32 : i32, i32
  }
}

module attributes {stable_mosaic.version = 11 : i64} {
  func.func @_matmul_kernel(%arg0: i32, %arg1: memref<344x64xf32, #tpu.memory_space<vmem>>, %arg2: memref<64x1152xf32, #tpu.memory_space<vmem>>, %arg3: memref<344x1152xf32, #tpu.memory_space<vmem>>) attributes {dimension_semantics = [#tpu.dimension_semantics<parallel>], iteration_bounds = array<i64: 1>, scalar_prefetch = 0 : i64, scratch_operands = 0 : i64, tpu.core_type = #tpu.core_type<tc>, window_params = [{transform_indices = @transform_0, window_bounds = array<i64: 344, 64>}, {pipeline_mode = #tpu.pipeline_mode<synchronous>, transform_indices = @transform_1, window_bounds = array<i64: 64, 1152>}, {transform_indices = @transform_2, window_bounds = array<i64: 344, 1152>}]} {
    %c0 = arith.constant 0 : index
    %c0_0 = arith.constant 0 : index
    %0 = vector.load %arg1[%c0, %c0_0] : memref<344x64xf32, #tpu.memory_space<vmem>>, vector<344x64xf32>
    %c0_1 = arith.constant 0 : index
    %c0_2 = arith.constant 0 : index
    %1 = vector.load %arg2[%c0_1, %c0_2] : memref<64x1152xf32, #tpu.memory_space<vmem>>, vector<64x1152xf32>
    %cst = arith.constant dense<0.000000e+00> : vector<344x1152xf32>
    %2 = tpu.matmul %0, %1, %cst {dimension_numbers = #tpu.dot_dimension_numbers<[1], [0], [0], [1], [0, 0, 1, 1], [], []>} : vector<344x64xf32>, vector<64x1152xf32>, vector<344x1152xf32> -> vector<344x1152xf32>
    %c0_3 = arith.constant 0 : index
    %c0_4 = arith.constant 0 : index
    %3 = vector.load %arg3[%c0_3, %c0_4] : memref<344x1152xf32, #tpu.memory_space<vmem>>, vector<344x1152xf32>
    tpu.vector_store %arg3[%c0_3, %c0_4], %2 {strides = array<i32>} : memref<344x1152xf32, #tpu.memory_space<vmem>>, vector<344x1152xf32>,
    return
  }
  func.func @transform_0(%arg0: i32) -> (i32, i32) {
    %c0_i32 = arith.constant 0 : i32
    %c0_i32_0 = arith.constant 0 : i32
    return %arg0, %c0_i32 : i32, i32
  }
  func.func @transform_1(%arg0: i32) -> (i32, i32) {
    %c0_i32 = arith.constant 0 : i32
    %c0_i32_0 = arith.constant 0 : i32
    %c0_i32_1 = arith.constant 0 : i32
    return %c0_i32, %c0_i32_0 : i32, i32
  }
  func.func @transform_2(%arg0: i32) -> (i32, i32) {
    %c0_i32 = arith.constant 0 : i32
    %c0_i32_0 = arith.constant 0 : i32
    return %arg0, %c0_i32 : i32, i32
  }
}

module attributes {stable_mosaic.version = 11 : i64} {
  func.func @_matmul_kernel(%arg0: i32, %arg1: memref<456x32xf32, #tpu.memory_space<vmem>>, %arg2: memref<32x108xf32, #tpu.memory_space<vmem>>, %arg3: memref<456x108xf32, #tpu.memory_space<vmem>>) attributes {dimension_semantics = [#tpu.dimension_semantics<parallel>], iteration_bounds = array<i64: 4>, scalar_prefetch = 0 : i64, scratch_operands = 0 : i64, tpu.core_type = #tpu.core_type<tc>, window_params = [{transform_indices = @transform_0, window_bounds = array<i64: 456, 32>}, {pipeline_mode = #tpu.pipeline_mode<synchronous>, transform_indices = @transform_1, window_bounds = array<i64: 32, 108>}, {transform_indices = @transform_2, window_bounds = array<i64: 456, 108>}]} {
    %c0 = arith.constant 0 : index
    %c0_0 = arith.constant 0 : index
    %0 = vector.load %arg1[%c0, %c0_0] : memref<456x32xf32, #tpu.memory_space<vmem>>, vector<456x32xf32>
    %c0_1 = arith.constant 0 : index
    %c0_2 = arith.constant 0 : index
    %1 = vector.load %arg2[%c0_1, %c0_2] : memref<32x108xf32, #tpu.memory_space<vmem>>, vector<32x108xf32>
    %cst = arith.constant dense<0.000000e+00> : vector<456x108xf32>
    %2 = tpu.matmul %0, %1, %cst {dimension_numbers = #tpu.dot_dimension_numbers<[1], [0], [0], [1], [0, 0, 1, 1], [], []>} : vector<456x32xf32>, vector<32x108xf32>, vector<456x108xf32> -> vector<456x108xf32>
    %c0_3 = arith.constant 0 : index
    %c0_4 = arith.constant 0 : index
    %3 = vector.load %arg3[%c0_3, %c0_4] : memref<456x108xf32, #tpu.memory_space<vmem>>, vector<456x108xf32>
    tpu.vector_store %arg3[%c0_3, %c0_4], %2 {strides = array<i32>} : memref<456x108xf32, #tpu.memory_space<vmem>>, vector<456x108xf32>,
    return
  }
  func.func @transform_0(%arg0: i32) -> (i32, i32) {
    %c0_i32 = arith.constant 0 : i32
    %c0_i32_0 = arith.constant 0 : i32
    return %arg0, %c0_i32 : i32, i32
  }
  func.func @transform_1(%arg0: i32) -> (i32, i32) {
    %c0_i32 = arith.constant 0 : i32
    %c0_i32_0 = arith.constant 0 : i32
    %c0_i32_1 = arith.constant 0 : i32
    return %c0_i32, %c0_i32_0 : i32, i32
  }
  func.func @transform_2(%arg0: i32) -> (i32, i32) {
    %c0_i32 = arith.constant 0 : i32
    %c0_i32_0 = arith.constant 0 : i32
    return %arg0, %c0_i32 : i32, i32
  }
}

</mosaic_0001>

<bundles_post_ra>
// kernel: decoder_forward_pallas.4
= control target key start
LH: loop header
LB: loop body
LE: loop exit
PB: predicated region body
PF: predicated region fallthrough
CT: control target
= control target key end

     0   :  { %s3436_s18 = smov 0   ;;  %s3438_s19 = smov 0   ;;  %s5613_s0 = inlined_call_operand.vmem [shape: f32[8,32], index: 0, kind: input, shape index: {}]   ;;  %s5614_s1 = inlined_call_operand.vmem [shape: f32[32,1024], index: 1, kind: input, shape index: {}]   ;;  %s5615_s2 = inlined_call_operand.vmem [shape: f32[1,1024], index: 2, kind: input, shape index: {}]   ;;  %s5616_s3 = inlined_call_operand.vmem [shape: f32[1024,3200], index: 3, kind: input, shape index: {}]   ;;  %s5617_s4 = inlined_call_operand.vmem [shape: f32[1,3200], index: 4, kind: input, shape index: {}]   ;;  %s5618_s5 = inlined_call_operand.vmem [shape: f32[8,3200], index: 5, kind: output, shape index: {}]  }
   0x1   :  { %s3440_s20 = smov 0  }
   0x2 LB: > { %s3320_s21 = sadd.s32 4294967295, %s3404_s20   ;;  %s3453_s22 = sadd.s32 1, %s3404_s20   ;;  %s3404_s20 = sphi %s3440_s20, %s5621_s20   ;;  %s3400_s19 = sphi %s3438_s19, %s5620_s19   ;;  %s3396_s18 = sphi %s3436_s18, %s5619_s18  }
   0x3   : > { %s82_s23 = ssub.s32 %s3404_s20, %s3453_s22  ;;  %s85_s24 = sadd.s32 1, %s3400_s19 }
   0x4   : > { %p83_p0 = scmp.eq.s32.totalorder %s82_s23, 0  ;;  %p92_p1 = scmp.ne.s32.totalorder %s3400_s19, %s3396_s18 }
   0x5   : > { %p93_p2 = scmp.eq.s32.totalorder %s3404_s20, 0  ;;  %p3323_p4 = scmp.ge.s32.totalorder %s3404_s20, 5 }
   0x6   : > { %s3462_s25 = scalar_select %p83_p0, %s3400_s19, %s85_s24  }
   0x7   : > { %p94_p3 = por %p93_p2, %p92_p1  ;;  %179 = sbr.rel (%p3323_p4) target bundleno = 657 (0x291), region = 28 }
   0xc   : > { %182 = sbr.rel (!%p94_p3) target bundleno = 657 (0x291), region = 32  ;;  %s184_s26 = sand.u32 (%p94_p3), 1, %s3400_s19  }
   0xd   : > { %s3338_s27 = smul.u32 (%p94_p3), 40, %s3404_s20 }
   0xe   : > { %s3339_s28 = smul.u32 (%p94_p3), 5120, %s184_s26 }
   0xf   : > { %s3470_s6 = scalar_lea.vmem (%p94_p3), %s5616_s3, %s3338_s27 }
  0x10   : > { %v202_v0 = vld [vmem:[%s3470_s6] sm:$0xff] (%p94_p3)  ;;  %v204_v1 = vld [vmem:[%s3470_s6 + $0x8] sm:$0xff] (%p94_p3)  ;;  %v206_v2 = vld [vmem:[%s3470_s6 + $0x10] sm:$0xff] (%p94_p3)  ;;  %s3475_s7 = scalar_lea.vmem (%p94_p3), [#allocation3], %s3339_s28 }
  0x11   : > { %203 = vst [vmem:[%s3475_s7] sm:$0xff] %v202_v0  ;;  %v208_v3 = vld [vmem:[%s3470_s6 + $0x18] sm:$0xff]  ;;  %v210_v4 = vld [vmem:[%s3470_s6 + $0x20] sm:$0xff]  ;;  %v212_v5 = vld [vmem:[%s3470_s6 + $0xc8] sm:$0xff] }
  0x12   : > { %205 = vst [vmem:[%s3475_s7 + $0x8] sm:$0xff] %v204_v1  ;;  %v214_v6 = vld [vmem:[%s3470_s6 + $0xd0] sm:$0xff]  ;;  %v216_v7 = vld [vmem:[%s3470_s6 + $0xd8] sm:$0xff]  ;;  %v218_v8 = vld [vmem:[%s3470_s6 + $0xe0] sm:$0xff] }
  0x13   : > { %207 = vst [vmem:[%s3475_s7 + $0x10] sm:$0xff] %v206_v2  ;;  %v220_v9 = vld [vmem:[%s3470_s6 + $0xe8] sm:$0xff]  ;;  %v222_v10 = vld [vmem:[%s3470_s6 + $0x190] sm:$0xff]  ;;  %v224_v11 = vld [vmem:[%s3470_s6 + $0x198] sm:$0xff] }
  0x14   : > { %209 = vst [vmem:[%s3475_s7 + $0x18] sm:$0xff] %v208_v3  ;;  %v226_v12 = vld [vmem:[%s3470_s6 + $0x1a0] sm:$0xff]  ;;  %v228_v13 = vld [vmem:[%s3470_s6 + $0x1a8] sm:$0xff]  ;;  %v230_v14 = vld [vmem:[%s3470_s6 + $0x1b0] sm:$0xff] }
  0x15   : > { %211 = vst [vmem:[%s3475_s7 + $0x20] sm:$0xff] %v210_v4  ;;  %v232_v15 = vld [vmem:[%s3470_s6 + $0x258] sm:$0xff]  ;;  %v234_v16 = vld [vmem:[%s3470_s6 + $0x260] sm:$0xff]  ;;  %v236_v17 = vld [vmem:[%s3470_s6 + $0x268] sm:$0xff] }
  0x16   : > { %213 = vst [vmem:[%s3475_s7 + $0x28] sm:$0xff] %v212_v5  ;;  %v238_v18 = vld [vmem:[%s3470_s6 + $0x270] sm:$0xff]  ;;  %v240_v19 = vld [vmem:[%s3470_s6 + $0x278] sm:$0xff]  ;;  %v242_v20 = vld [vmem:[%s3470_s6 + $0x320] sm:$0xff] }
  0x17   : > { %215 = vst [vmem:[%s3475_s7 + $0x30] sm:$0xff] %v214_v6  ;;  %v244_v21 = vld [vmem:[%s3470_s6 + $0x328] sm:$0xff]  ;;  %v246_v22 = vld [vmem:[%s3470_s6 + $0x330] sm:$0xff]  ;;  %v248_v23 = vld [vmem:[%s3470_s6 + $0x338] sm:$0xff] }
  0x18   : > { %217 = vst [vmem:[%s3475_s7 + $0x38] sm:$0xff] %v216_v7  ;;  %v250_v24 = vld [vmem:[%s3470_s6 + $0x340] sm:$0xff]  ;;  %v252_v25 = vld [vmem:[%s3470_s6 + $0x3e8] sm:$0xff]  ;;  %v254_v26 = vld [vmem:[%s3470_s6 + $0x3f0] sm:$0xff] }
  0x19   : > { %219 = vst [vmem:[%s3475_s7 + $0x40] sm:$0xff] %v218_v8  ;;  %v256_v27 = vld [vmem:[%s3470_s6 + $0x3f8] sm:$0xff]  ;;  %v258_v28 = vld [vmem:[%s3470_s6 + $0x400] sm:$0xff]  ;;  %v260_v29 = vld [vmem:[%s3470_s6 + $0x408] sm:$0xff] }
  0x1a   : > { %221 = vst [vmem:[%s3475_s7 + $0x48] sm:$0xff] %v220_v9  ;;  %v262_v30 = vld [vmem:[%s3470_s6 + $0x4b0] sm:$0xff]  ;;  %v264_v31 = vld [vmem:[%s3470_s6 + $0x4b8] sm:$0xff]  ;;  %v266_v32 = vld [vmem:[%s3470_s6 + $0x4c0] sm:$0xff] }
  0x1b   : > { %223 = vst [vmem:[%s3475_s7 + $0x50] sm:$0xff] %v222_v10  ;;  %v268_v33 = vld [vmem:[%s3470_s6 + $0x4c8] sm:$0xff]  ;;  %v270_v34 = vld [vmem:[%s3470_s6 + $0x4d0] sm:$0xff]  ;;  %v272_v35 = vld [vmem:[%s3470_s6 + $0x578] sm:$0xff] }
  0x1c   : > { %225 = vst [vmem:[%s3475_s7 + $0x58] sm:$0xff] %v224_v11  ;;  %v274_v36 = vld [vmem:[%s3470_s6 + $0x580] sm:$0xff]  ;;  %v276_v37 = vld [vmem:[%s3470_s6 + $0x588] sm:$0xff]  ;;  %v278_v38 = vld [vmem:[%s3470_s6 + $0x590] sm:$0xff] }
  0x1d   : > { %227 = vst [vmem:[%s3475_s7 + $0x60] sm:$0xff] %v226_v12  ;;  %v280_v39 = vld [vmem:[%s3470_s6 + $0x598] sm:$0xff]  ;;  %v282_v40 = vld [vmem:[%s3470_s6 + $0x640] sm:$0xff]  ;;  %v284_v41 = vld [vmem:[%s3470_s6 + $0x648] sm:$0xff] }
  0x1e   : > { %229 = vst [vmem:[%s3475_s7 + $0x68] sm:$0xff] %v228_v13  ;;  %v286_v42 = vld [vmem:[%s3470_s6 + $0x650] sm:$0xff]  ;;  %v288_v43 = vld [vmem:[%s3470_s6 + $0x658] sm:$0xff]  ;;  %v290_v44 = vld [vmem:[%s3470_s6 + $0x660] sm:$0xff] }
  0x1f   : > { %231 = vst [vmem:[%s3475_s7 + $0x70] sm:$0xff] %v230_v14  ;;  %v292_v45 = vld [vmem:[%s3470_s6 + $0x708] sm:$0xff]  ;;  %v294_v46 = vld [vmem:[%s3470_s6 + $0x710] sm:$0xff]  ;;  %v296_v47 = vld [vmem:[%s3470_s6 + $0x718] sm:$0xff] }
  0x20   : > { %233 = vst [vmem:[%s3475_s7 + $0x78] sm:$0xff] %v232_v15  ;;  %v298_v48 = vld [vmem:[%s3470_s6 + $0x720] sm:$0xff]  ;;  %v300_v49 = vld [vmem:[%s3470_s6 + $0x728] sm:$0xff]  ;;  %v302_v50 = vld [vmem:[%s3470_s6 + $0x7d0] sm:$0xff] }
  0x21   : > { %235 = vst [vmem:[%s3475_s7 + $0x80] sm:$0xff] %v234_v16  ;;  %v304_v51 = vld [vmem:[%s3470_s6 + $0x7d8] sm:$0xff]  ;;  %v306_v52 = vld [vmem:[%s3470_s6 + $0x7e0] sm:$0xff]  ;;  %v308_v53 = vld [vmem:[%s3470_s6 + $0x7e8] sm:$0xff] }
  0x22   : > { %237 = vst [vmem:[%s3475_s7 + $0x88] sm:$0xff] %v236_v17  ;;  %v310_v54 = vld [vmem:[%s3470_s6 + $0x7f0] sm:$0xff]  ;;  %v312_v55 = vld [vmem:[%s3470_s6 + $0x898] sm:$0xff]  ;;  %v314_v56 = vld [vmem:[%s3470_s6 + $0x8a0] sm:$0xff] }
  0x23   : > { %239 = vst [vmem:[%s3475_s7 + $0x90] sm:$0xff] %v238_v18  ;;  %v316_v57 = vld [vmem:[%s3470_s6 + $0x8a8] sm:$0xff]  ;;  %v318_v58 = vld [vmem:[%s3470_s6 + $0x8b0] sm:$0xff]  ;;  %v320_v59 = vld [vmem:[%s3470_s6 + $0x8b8] sm:$0xff] }
  0x24   : > { %241 = vst [vmem:[%s3475_s7 + $0x98] sm:$0xff] %v240_v19  ;;  %v322_v60 = vld [vmem:[%s3470_s6 + $0x960] sm:$0xff]  ;;  %v324_v61 = vld [vmem:[%s3470_s6 + $0x968] sm:$0xff]  ;;  %v326_v62 = vld [vmem:[%s3470_s6 + $0x970] sm:$0xff] }
  0x25   : > { %243 = vst [vmem:[%s3475_s7 + $0xa0] sm:$0xff] %v242_v20  ;;  %v328_v63 = vld [vmem:[%s3470_s6 + $0x978] sm:$0xff]  ;;  %v330_v0 = vld [vmem:[%s3470_s6 + $0x980] sm:$0xff]  ;;  %v332_v1 = vld [vmem:[%s3470_s6 + $0xa28] sm:$0xff] }
  0x26   : > { %245 = vst [vmem:[%s3475_s7 + $0xa8] sm:$0xff] %v244_v21  ;;  %v334_v2 = vld [vmem:[%s3470_s6 + $0xa30] sm:$0xff]  ;;  %v336_v3 = vld [vmem:[%s3470_s6 + $0xa38] sm:$0xff]  ;;  %v338_v4 = vld [vmem:[%s3470_s6 + $0xa40] sm:$0xff] }
  0x27   : > { %247 = vst [vmem:[%s3475_s7 + $0xb0] sm:$0xff] %v246_v22  ;;  %v340_v5 = vld [vmem:[%s3470_s6 + $0xa48] sm:$0xff]  ;;  %v342_v6 = vld [vmem:[%s3470_s6 + $0xaf0] sm:$0xff]  ;;  %v344_v7 = vld [vmem:[%s3470_s6 + $0xaf8] sm:$0xff] }
  0x28   : > { %249 = vst [vmem:[%s3475_s7 + $0xb8] sm:$0xff] %v248_v23  ;;  %v346_v8 = vld [vmem:[%s3470_s6 + $0xb00] sm:$0xff]  ;;  %v348_v9 = vld [vmem:[%s3470_s6 + $0xb08] sm:$0xff]  ;;  %v350_v10 = vld [vmem:[%s3470_s6 + $0xb10] sm:$0xff] }
  0x29   : > { %251 = vst [vmem:[%s3475_s7 + $0xc0] sm:$0xff] %v250_v24  ;;  %v352_v11 = vld [vmem:[%s3470_s6 + $0xbb8] sm:$0xff]  ;;  %v354_v12 = vld [vmem:[%s3470_s6 + $0xbc0] sm:$0xff]  ;;  %v356_v13 = vld [vmem:[%s3470_s6 + $0xbc8] sm:$0xff] }
  0x2a   : > { %253 = vst [vmem:[%s3475_s7 + $0xc8] sm:$0xff] %v252_v25  ;;  %v358_v14 = vld [vmem:[%s3470_s6 + $0xbd0] sm:$0xff]  ;;  %v360_v15 = vld [vmem:[%s3470_s6 + $0xbd8] sm:$0xff]  ;;  %v362_v16 = vld [vmem:[%s3470_s6 + $0xc80] sm:$0xff] }
  0x2b   : > { %255 = vst [vmem:[%s3475_s7 + $0xd0] sm:$0xff] %v254_v26  ;;  %v364_v17 = vld [vmem:[%s3470_s6 + $0xc88] sm:$0xff]  ;;  %v366_v18 = vld [vmem:[%s3470_s6 + $0xc90] sm:$0xff]  ;;  %v368_v19 = vld [vmem:[%s3470_s6 + $0xc98] sm:$0xff] }
  0x2c   : > { %257 = vst [vmem:[%s3475_s7 + $0xd8] sm:$0xff] %v256_v27  ;;  %v370_v20 = vld [vmem:[%s3470_s6 + $0xca0] sm:$0xff]  ;;  %v372_v21 = vld [vmem:[%s3470_s6 + $0xd48] sm:$0xff]  ;;  %v374_v22 = vld [vmem:[%s3470_s6 + $0xd50] sm:$0xff] }
  0x2d   : > { %259 = vst [vmem:[%s3475_s7 + $0xe0] sm:$0xff] %v258_v28  ;;  %v376_v23 = vld [vmem:[%s3470_s6 + $0xd58] sm:$0xff]  ;;  %v378_v24 = vld [vmem:[%s3470_s6 + $0xd60] sm:$0xff]  ;;  %v380_v25 = vld [vmem:[%s3470_s6 + $0xd68] sm:$0xff] }
  0x2e   : > { %261 = vst [vmem:[%s3475_s7 + $0xe8] sm:$0xff] %v260_v29  ;;  %v382_v26 = vld [vmem:[%s3470_s6 + $0xe10] sm:$0xff]  ;;  %v384_v27 = vld [vmem:[%s3470_s6 + $0xe18] sm:$0xff]  ;;  %v386_v28 = vld [vmem:[%s3470_s6 + $0xe20] sm:$0xff] }
  0x2f   : > { %263 = vst [vmem:[%s3475_s7 + $0xf0] sm:$0xff] %v262_v30  ;;  %v388_v29 = vld [vmem:[%s3470_s6 + $0xe28] sm:$0xff]  ;;  %v390_v30 = vld [vmem:[%s3470_s6 + $0xe30] sm:$0xff] }
  0x30   : > { %265 = vst [vmem:[%s3475_s7 + $0xf8] sm:$0xff] %v264_v31  ;;  %v392_v31 = vld [vmem:[%s3470_s6 + $0xed8] sm:$0xff] }
  0x31   : > { %267 = vst [vmem:[%s3475_s7 + $0x100] sm:$0xff] %v266_v32  ;;  %v394_v32 = vld [vmem:[%s3470_s6 + $0xee0] sm:$0xff] }
  0x32   : > { %269 = vst [vmem:[%s3475_s7 + $0x108] sm:$0xff] %v268_v33  ;;  %v396_v33 = vld [vmem:[%s3470_s6 + $0xee8] sm:$0xff] }
  0x33   : > { %271 = vst [vmem:[%s3475_s7 + $0x110] sm:$0xff] %v270_v34  ;;  %v398_v34 = vld [vmem:[%s3470_s6 + $0xef0] sm:$0xff] }
  0x34   : > { %273 = vst [vmem:[%s3475_s7 + $0x118] sm:$0xff] %v272_v35  ;;  %v400_v35 = vld [vmem:[%s3470_s6 + $0xef8] sm:$0xff] }
  0x35   : > { %275 = vst [vmem:[%s3475_s7 + $0x120] sm:$0xff] %v274_v36  ;;  %v402_v36 = vld [vmem:[%s3470_s6 + $0xfa0] sm:$0xff] }
  0x36   : > { %277 = vst [vmem:[%s3475_s7 + $0x128] sm:$0xff] %v276_v37  ;;  %v404_v37 = vld [vmem:[%s3470_s6 + $0xfa8] sm:$0xff] }
  0x37   : > { %279 = vst [vmem:[%s3475_s7 + $0x130] sm:$0xff] %v278_v38  ;;  %v406_v38 = vld [vmem:[%s3470_s6 + $0xfb0] sm:$0xff] }
  0x38   : > { %281 = vst [vmem:[%s3475_s7 + $0x138] sm:$0xff] %v280_v39  ;;  %v408_v39 = vld [vmem:[%s3470_s6 + $0xfb8] sm:$0xff] }
  0x39   : > { %283 = vst [vmem:[%s3475_s7 + $0x140] sm:$0xff] %v282_v40  ;;  %v410_v40 = vld [vmem:[%s3470_s6 + $0xfc0] sm:$0xff] }
  0x3a   : > { %285 = vst [vmem:[%s3475_s7 + $0x148] sm:$0xff] %v284_v41  ;;  %v412_v41 = vld [vmem:[%s3470_s6 + $0x1068] sm:$0xff] }
  0x3b   : > { %287 = vst [vmem:[%s3475_s7 + $0x150] sm:$0xff] %v286_v42  ;;  %v414_v42 = vld [vmem:[%s3470_s6 + $0x1070] sm:$0xff] }
  0x3c   : > { %289 = vst [vmem:[%s3475_s7 + $0x158] sm:$0xff] %v288_v43  ;;  %v416_v43 = vld [vmem:[%s3470_s6 + $0x1078] sm:$0xff] }
  0x3d   : > { %291 = vst [vmem:[%s3475_s7 + $0x160] sm:$0xff] %v290_v44  ;;  %v418_v44 = vld [vmem:[%s3470_s6 + $0x1080] sm:$0xff] }
  0x3e   : > { %293 = vst [vmem:[%s3475_s7 + $0x168] sm:$0xff] %v292_v45  ;;  %v420_v45 = vld [vmem:[%s3470_s6 + $0x1088] sm:$0xff] }
  0x3f   : > { %295 = vst [vmem:[%s3475_s7 + $0x170] sm:$0xff] %v294_v46  ;;  %v422_v46 = vld [vmem:[%s3470_s6 + $0x1130] sm:$0xff] }
  0x40   : > { %297 = vst [vmem:[%s3475_s7 + $0x178] sm:$0xff] %v296_v47  ;;  %v424_v47 = vld [vmem:[%s3470_s6 + $0x1138] sm:$0xff] }
  0x41   : > { %299 = vst [vmem:[%s3475_s7 + $0x180] sm:$0xff] %v298_v48  ;;  %v426_v48 = vld [vmem:[%s3470_s6 + $0x1140] sm:$0xff] }
  0x42   : > { %301 = vst [vmem:[%s3475_s7 + $0x188] sm:$0xff] %v300_v49  ;;  %v428_v49 = vld [vmem:[%s3470_s6 + $0x1148] sm:$0xff] }
  0x43   : > { %303 = vst [vmem:[%s3475_s7 + $0x190] sm:$0xff] %v302_v50  ;;  %v430_v50 = vld [vmem:[%s3470_s6 + $0x1150] sm:$0xff] }
  0x44   : > { %305 = vst [vmem:[%s3475_s7 + $0x198] sm:$0xff] %v304_v51  ;;  %v432_v51 = vld [vmem:[%s3470_s6 + $0x11f8] sm:$0xff] }
  0x45   : > { %307 = vst [vmem:[%s3475_s7 + $0x1a0] sm:$0xff] %v306_v52  ;;  %v434_v52 = vld [vmem:[%s3470_s6 + $0x1200] sm:$0xff] }
  0x46   : > { %309 = vst [vmem:[%s3475_s7 + $0x1a8] sm:$0xff] %v308_v53  ;;  %v436_v53 = vld [vmem:[%s3470_s6 + $0x1208] sm:$0xff] }
  0x47   : > { %311 = vst [vmem:[%s3475_s7 + $0x1b0] sm:$0xff] %v310_v54  ;;  %v438_v54 = vld [vmem:[%s3470_s6 + $0x1210] sm:$0xff] }
  0x48   : > { %313 = vst [vmem:[%s3475_s7 + $0x1b8] sm:$0xff] %v312_v55  ;;  %v440_v55 = vld [vmem:[%s3470_s6 + $0x1218] sm:$0xff] }
  0x49   : > { %315 = vst [vmem:[%s3475_s7 + $0x1c0] sm:$0xff] %v314_v56  ;;  %v442_v56 = vld [vmem:[%s3470_s6 + $0x12c0] sm:$0xff] }
  0x4a   : > { %317 = vst [vmem:[%s3475_s7 + $0x1c8] sm:$0xff] %v316_v57  ;;  %v444_v57 = vld [vmem:[%s3470_s6 + $0x12c8] sm:$0xff] }
  0x4b   : > { %319 = vst [vmem:[%s3475_s7 + $0x1d0] sm:$0xff] %v318_v58  ;;  %v446_v58 = vld [vmem:[%s3470_s6 + $0x12d0] sm:$0xff] }
  0x4c   : > { %321 = vst [vmem:[%s3475_s7 + $0x1d8] sm:$0xff] %v320_v59  ;;  %v448_v59 = vld [vmem:[%s3470_s6 + $0x12d8] sm:$0xff] }
  0x4d   : > { %323 = vst [vmem:[%s3475_s7 + $0x1e0] sm:$0xff] %v322_v60  ;;  %v450_v60 = vld [vmem:[%s3470_s6 + $0x12e0] sm:$0xff] }
  0x4e   : > { %325 = vst [vmem:[%s3475_s7 + $0x1e8] sm:$0xff] %v324_v61  ;;  %v452_v61 = vld [vmem:[%s3470_s6 + $0x1388] sm:$0xff] }
  0x4f   : > { %327 = vst [vmem:[%s3475_s7 + $0x1f0] sm:$0xff] %v326_v62  ;;  %v454_v62 = vld [vmem:[%s3470_s6 + $0x1390] sm:$0xff] }
  0x50   : > { %329 = vst [vmem:[%s3475_s7 + $0x1f8] sm:$0xff] %v328_v63  ;;  %v456_v63 = vld [vmem:[%s3470_s6 + $0x1398] sm:$0xff] }
  0x51   : > { %331 = vst [vmem:[%s3475_s7 + $0x200] sm:$0xff] %v330_v0  ;;  %v458_v0 = vld [vmem:[%s3470_s6 + $0x13a0] sm:$0xff] }
  0x52   : > { %333 = vst [vmem:[%s3475_s7 + $0x208] sm:$0xff] %v332_v1  ;;  %v460_v1 = vld [vmem:[%s3470_s6 + $0x13a8] sm:$0xff] }
  0x53   : > { %335 = vst [vmem:[%s3475_s7 + $0x210] sm:$0xff] %v334_v2  ;;  %v462_v2 = vld [vmem:[%s3470_s6 + $0x1450] sm:$0xff] }
  0x54   : > { %337 = vst [vmem:[%s3475_s7 + $0x218] sm:$0xff] %v336_v3  ;;  %v464_v3 = vld [vmem:[%s3470_s6 + $0x1458] sm:$0xff] }
  0x55   : > { %339 = vst [vmem:[%s3475_s7 + $0x220] sm:$0xff] %v338_v4  ;;  %v466_v4 = vld [vmem:[%s3470_s6 + $0x1460] sm:$0xff] }
  0x56   : > { %341 = vst [vmem:[%s3475_s7 + $0x228] sm:$0xff] %v340_v5  ;;  %v468_v5 = vld [vmem:[%s3470_s6 + $0x1468] sm:$0xff] }
  0x57   : > { %343 = vst [vmem:[%s3475_s7 + $0x230] sm:$0xff] %v342_v6  ;;  %v470_v6 = vld [vmem:[%s3470_s6 + $0x1470] sm:$0xff] }
  0x58   : > { %345 = vst [vmem:[%s3475_s7 + $0x238] sm:$0xff] %v344_v7  ;;  %v472_v7 = vld [vmem:[%s3470_s6 + $0x1518] sm:$0xff] }
  0x59   : > { %347 = vst [vmem:[%s3475_s7 + $0x240] sm:$0xff] %v346_v8  ;;  %v474_v8 = vld [vmem:[%s3470_s6 + $0x1520] sm:$0xff] }
  0x5a   : > { %349 = vst [vmem:[%s3475_s7 + $0x248] sm:$0xff] %v348_v9  ;;  %v476_v9 = vld [vmem:[%s3470_s6 + $0x1528] sm:$0xff] }
  0x5b   : > { %351 = vst [vmem:[%s3475_s7 + $0x250] sm:$0xff] %v350_v10  ;;  %v478_v10 = vld [vmem:[%s3470_s6 + $0x1530] sm:$0xff] }
  0x5c   : > { %353 = vst [vmem:[%s3475_s7 + $0x258] sm:$0xff] %v352_v11  ;;  %v480_v11 = vld [vmem:[%s3470_s6 + $0x1538] sm:$0xff] }
  0x5d   : > { %355 = vst [vmem:[%s3475_s7 + $0x260] sm:$0xff] %v354_v12  ;;  %v482_v12 = vld [vmem:[%s3470_s6 + $0x15e0] sm:$0xff] }
  0x5e   : > { %357 = vst [vmem:[%s3475_s7 + $0x268] sm:$0xff] %v356_v13  ;;  %v484_v13 = vld [vmem:[%s3470_s6 + $0x15e8] sm:$0xff] }
  0x5f   : > { %359 = vst [vmem:[%s3475_s7 + $0x270] sm:$0xff] %v358_v14  ;;  %v486_v14 = vld [vmem:[%s3470_s6 + $0x15f0] sm:$0xff] }
  0x60   : > { %361 = vst [vmem:[%s3475_s7 + $0x278] sm:$0xff] %v360_v15  ;;  %v488_v15 = vld [vmem:[%s3470_s6 + $0x15f8] sm:$0xff] }
  0x61   : > { %363 = vst [vmem:[%s3475_s7 + $0x280] sm:$0xff] %v362_v16  ;;  %v490_v16 = vld [vmem:[%s3470_s6 + $0x1600] sm:$0xff] }
  0x62   : > { %365 = vst [vmem:[%s3475_s7 + $0x288] sm:$0xff] %v364_v17  ;;  %v492_v17 = vld [vmem:[%s3470_s6 + $0x16a8] sm:$0xff] }
  0x63   : > { %367 = vst [vmem:[%s3475_s7 + $0x290] sm:$0xff] %v366_v18  ;;  %v494_v18 = vld [vmem:[%s3470_s6 + $0x16b0] sm:$0xff] }
  0x64   : > { %369 = vst [vmem:[%s3475_s7 + $0x298] sm:$0xff] %v368_v19  ;;  %v496_v19 = vld [vmem:[%s3470_s6 + $0x16b8] sm:$0xff] }
  0x65   : > { %371 = vst [vmem:[%s3475_s7 + $0x2a0] sm:$0xff] %v370_v20  ;;  %v498_v20 = vld [vmem:[%s3470_s6 + $0x16c0] sm:$0xff] }
  0x66   : > { %373 = vst [vmem:[%s3475_s7 + $0x2a8] sm:$0xff] %v372_v21  ;;  %v500_v21 = vld [vmem:[%s3470_s6 + $0x16c8] sm:$0xff] }
  0x67   : > { %375 = vst [vmem:[%s3475_s7 + $0x2b0] sm:$0xff] %v374_v22  ;;  %v502_v22 = vld [vmem:[%s3470_s6 + $0x1770] sm:$0xff] }
  0x68   : > { %377 = vst [vmem:[%s3475_s7 + $0x2b8] sm:$0xff] %v376_v23  ;;  %v504_v23 = vld [vmem:[%s3470_s6 + $0x1778] sm:$0xff] }
  0x69   : > { %379 = vst [vmem:[%s3475_s7 + $0x2c0] sm:$0xff] %v378_v24  ;;  %v506_v24 = vld [vmem:[%s3470_s6 + $0x1780] sm:$0xff] }
  0x6a   : > { %381 = vst [vmem:[%s3475_s7 + $0x2c8] sm:$0xff] %v380_v25  ;;  %v508_v25 = vld [vmem:[%s3470_s6 + $0x1788] sm:$0xff] }
  0x6b   : > { %383 = vst [vmem:[%s3475_s7 + $0x2d0] sm:$0xff] %v382_v26  ;;  %v510_v26 = vld [vmem:[%s3470_s6 + $0x1790] sm:$0xff] }
  0x6c   : > { %385 = vst [vmem:[%s3475_s7 + $0x2d8] sm:$0xff] %v384_v27  ;;  %v512_v27 = vld [vmem:[%s3470_s6 + $0x1838] sm:$0xff] }
  0x6d   : > { %387 = vst [vmem:[%s3475_s7 + $0x2e0] sm:$0xff] %v386_v28  ;;  %v514_v28 = vld [vmem:[%s3470_s6 + $0x1840] sm:$0xff] }
  0x6e   : > { %389 = vst [vmem:[%s3475_s7 + $0x2e8] sm:$0xff] %v388_v29  ;;  %v516_v29 = vld [vmem:[%s3470_s6 + $0x1848] sm:$0xff] }
  0x6f   : > { %391 = vst [vmem:[%s3475_s7 + $0x2f0] sm:$0xff] %v390_v30  ;;  %v518_v30 = vld [vmem:[%s3470_s6 + $0x1850] sm:$0xff] }
  0x70   : > { %393 = vst [vmem:[%s3475_s7 + $0x2f8] sm:$0xff] %v392_v31  ;;  %v520_v31 = vld [vmem:[%s3470_s6 + $0x1858] sm:$0xff] }
  0x71   : > { %395 = vst [vmem:[%s3475_s7 + $0x300] sm:$0xff] %v394_v32  ;;  %v522_v32 = vld [vmem:[%s3470_s6 + $0x1900] sm:$0xff] }
  0x72   : > { %397 = vst [vmem:[%s3475_s7 + $0x308] sm:$0xff] %v396_v33  ;;  %v524_v33 = vld [vmem:[%s3470_s6 + $0x1908] sm:$0xff] }
  0x73   : > { %399 = vst [vmem:[%s3475_s7 + $0x310] sm:$0xff] %v398_v34  ;;  %v526_v34 = vld [vmem:[%s3470_s6 + $0x1910] sm:$0xff] }
  0x74   : > { %401 = vst [vmem:[%s3475_s7 + $0x318] sm:$0xff] %v400_v35  ;;  %v528_v35 = vld [vmem:[%s3470_s6 + $0x1918] sm:$0xff] }
  0x75   : > { %403 = vst [vmem:[%s3475_s7 + $0x320] sm:$0xff] %v402_v36  ;;  %v530_v36 = vld [vmem:[%s3470_s6 + $0x1920] sm:$0xff] }
  0x76   : > { %405 = vst [vmem:[%s3475_s7 + $0x328] sm:$0xff] %v404_v37  ;;  %v532_v37 = vld [vmem:[%s3470_s6 + $0x19c8] sm:$0xff] }
  0x77   : > { %407 = vst [vmem:[%s3475_s7 + $0x330] sm:$0xff] %v406_v38  ;;  %v534_v38 = vld [vmem:[%s3470_s6 + $0x19d0] sm:$0xff] }
  0x78   : > { %409 = vst [vmem:[%s3475_s7 + $0x338] sm:$0xff] %v408_v39  ;;  %v536_v39 = vld [vmem:[%s3470_s6 + $0x19d8] sm:$0xff] }
  0x79   : > { %411 = vst [vmem:[%s3475_s7 + $0x340] sm:$0xff] %v410_v40  ;;  %v538_v40 = vld [vmem:[%s3470_s6 + $0x19e0] sm:$0xff] }
  0x7a   : > { %413 = vst [vmem:[%s3475_s7 + $0x348] sm:$0xff] %v412_v41  ;;  %v540_v41 = vld [vmem:[%s3470_s6 + $0x19e8] sm:$0xff] }
  0x7b   : > { %415 = vst [vmem:[%s3475_s7 + $0x350] sm:$0xff] %v414_v42  ;;  %v542_v42 = vld [vmem:[%s3470_s6 + $0x1a90] sm:$0xff] }
  0x7c   : > { %417 = vst [vmem:[%s3475_s7 + $0x358] sm:$0xff] %v416_v43  ;;  %v544_v43 = vld [vmem:[%s3470_s6 + $0x1a98] sm:$0xff] }
  0x7d   : > { %419 = vst [vmem:[%s3475_s7 + $0x360] sm:$0xff] %v418_v44  ;;  %v546_v44 = vld [vmem:[%s3470_s6 + $0x1aa0] sm:$0xff] }
  0x7e   : > { %421 = vst [vmem:[%s3475_s7 + $0x368] sm:$0xff] %v420_v45  ;;  %v548_v45 = vld [vmem:[%s3470_s6 + $0x1aa8] sm:$0xff] }
  0x7f   : > { %423 = vst [vmem:[%s3475_s7 + $0x370] sm:$0xff] %v422_v46  ;;  %v550_v46 = vld [vmem:[%s3470_s6 + $0x1ab0] sm:$0xff] }
  0x80   : > { %425 = vst [vmem:[%s3475_s7 + $0x378] sm:$0xff] %v424_v47  ;;  %v552_v47 = vld [vmem:[%s3470_s6 + $0x1b58] sm:$0xff] }
  0x81   : > { %427 = vst [vmem:[%s3475_s7 + $0x380] sm:$0xff] %v426_v48  ;;  %v554_v48 = vld [vmem:[%s3470_s6 + $0x1b60] sm:$0xff] }
  0x82   : > { %429 = vst [vmem:[%s3475_s7 + $0x388] sm:$0xff] %v428_v49  ;;  %v556_v49 = vld [vmem:[%s3470_s6 + $0x1b68] sm:$0xff] }
  0x83   : > { %431 = vst [vmem:[%s3475_s7 + $0x390] sm:$0xff] %v430_v50  ;;  %v558_v50 = vld [vmem:[%s3470_s6 + $0x1b70] sm:$0xff] }
  0x84   : > { %433 = vst [vmem:[%s3475_s7 + $0x398] sm:$0xff] %v432_v51  ;;  %v560_v51 = vld [vmem:[%s3470_s6 + $0x1b78] sm:$0xff] }
  0x85   : > { %435 = vst [vmem:[%s3475_s7 + $0x3a0] sm:$0xff] %v434_v52  ;;  %v562_v52 = vld [vmem:[%s3470_s6 + $0x1c20] sm:$0xff] }
  0x86   : > { %437 = vst [vmem:[%s3475_s7 + $0x3a8] sm:$0xff] %v436_v53  ;;  %v564_v53 = vld [vmem:[%s3470_s6 + $0x1c28] sm:$0xff] }
  0x87   : > { %439 = vst [vmem:[%s3475_s7 + $0x3b0] sm:$0xff] %v438_v54  ;;  %v566_v54 = vld [vmem:[%s3470_s6 + $0x1c30] sm:$0xff] }
  0x88   : > { %441 = vst [vmem:[%s3475_s7 + $0x3b8] sm:$0xff] %v440_v55  ;;  %v568_v55 = vld [vmem:[%s3470_s6 + $0x1c38] sm:$0xff] }
  0x89   : > { %443 = vst [vmem:[%s3475_s7 + $0x3c0] sm:$0xff] %v442_v56  ;;  %v570_v56 = vld [vmem:[%s3470_s6 + $0x1c40] sm:$0xff] }
  0x8a   : > { %445 = vst [vmem:[%s3475_s7 + $0x3c8] sm:$0xff] %v444_v57  ;;  %v572_v57 = vld [vmem:[%s3470_s6 + $0x1ce8] sm:$0xff] }
  0x8b   : > { %447 = vst [vmem:[%s3475_s7 + $0x3d0] sm:$0xff] %v446_v58  ;;  %v574_v58 = vld [vmem:[%s3470_s6 + $0x1cf0] sm:$0xff] }
  0x8c   : > { %449 = vst [vmem:[%s3475_s7 + $0x3d8] sm:$0xff] %v448_v59  ;;  %v576_v59 = vld [vmem:[%s3470_s6 + $0x1cf8] sm:$0xff] }
  0x8d   : > { %451 = vst [vmem:[%s3475_s7 + $0x3e0] sm:$0xff] %v450_v60  ;;  %v578_v60 = vld [vmem:[%s3470_s6 + $0x1d00] sm:$0xff] }
  0x8e   : > { %453 = vst [vmem:[%s3475_s7 + $0x3e8] sm:$0xff] %v452_v61  ;;  %v580_v61 = vld [vmem:[%s3470_s6 + $0x1d08] sm:$0xff] }
  0x8f   : > { %455 = vst [vmem:[%s3475_s7 + $0x3f0] sm:$0xff] %v454_v62  ;;  %v582_v62 = vld [vmem:[%s3470_s6 + $0x1db0] sm:$0xff] }
  0x90   : > { %457 = vst [vmem:[%s3475_s7 + $0x3f8] sm:$0xff] %v456_v63  ;;  %v584_v63 = vld [vmem:[%s3470_s6 + $0x1db8] sm:$0xff] }
  0x91   : > { %459 = vst [vmem:[%s3475_s7 + $0x400] sm:$0xff] %v458_v0  ;;  %v586_v0 = vld [vmem:[%s3470_s6 + $0x1dc0] sm:$0xff] }
  0x92   : > { %461 = vst [vmem:[%s3475_s7 + $0x408] sm:$0xff] %v460_v1  ;;  %v588_v1 = vld [vmem:[%s3470_s6 + $0x1dc8] sm:$0xff] }
  0x93   : > { %463 = vst [vmem:[%s3475_s7 + $0x410] sm:$0xff] %v462_v2  ;;  %v590_v2 = vld [vmem:[%s3470_s6 + $0x1dd0] sm:$0xff] }
  0x94   : > { %465 = vst [vmem:[%s3475_s7 + $0x418] sm:$0xff] %v464_v3  ;;  %v592_v3 = vld [vmem:[%s3470_s6 + $0x1e78] sm:$0xff] }
  0x95   : > { %467 = vst [vmem:[%s3475_s7 + $0x420] sm:$0xff] %v466_v4  ;;  %v594_v4 = vld [vmem:[%s3470_s6 + $0x1e80] sm:$0xff] }
  0x96   : > { %469 = vst [vmem:[%s3475_s7 + $0x428] sm:$0xff] %v468_v5  ;;  %v596_v5 = vld [vmem:[%s3470_s6 + $0x1e88] sm:$0xff] }
  0x97   : > { %471 = vst [vmem:[%s3475_s7 + $0x430] sm:$0xff] %v470_v6  ;;  %v598_v6 = vld [vmem:[%s3470_s6 + $0x1e90] sm:$0xff] }
  0x98   : > { %473 = vst [vmem:[%s3475_s7 + $0x438] sm:$0xff] %v472_v7  ;;  %v600_v7 = vld [vmem:[%s3470_s6 + $0x1e98] sm:$0xff] }
  0x99   : > { %475 = vst [vmem:[%s3475_s7 + $0x440] sm:$0xff] %v474_v8  ;;  %v602_v8 = vld [vmem:[%s3470_s6 + $0x1f40] sm:$0xff] }
  0x9a   : > { %477 = vst [vmem:[%s3475_s7 + $0x448] sm:$0xff] %v476_v9  ;;  %v604_v9 = vld [vmem:[%s3470_s6 + $0x1f48] sm:$0xff] }
  0x9b   : > { %479 = vst [vmem:[%s3475_s7 + $0x450] sm:$0xff] %v478_v10  ;;  %v606_v10 = vld [vmem:[%s3470_s6 + $0x1f50] sm:$0xff] }
  0x9c   : > { %481 = vst [vmem:[%s3475_s7 + $0x458] sm:$0xff] %v480_v11  ;;  %v608_v11 = vld [vmem:[%s3470_s6 + $0x1f58] sm:$0xff] }
  0x9d   : > { %483 = vst [vmem:[%s3475_s7 + $0x460] sm:$0xff] %v482_v12  ;;  %v610_v12 = vld [vmem:[%s3470_s6 + $0x1f60] sm:$0xff] }
  0x9e   : > { %485 = vst [vmem:[%s3475_s7 + $0x468] sm:$0xff] %v484_v13  ;;  %v612_v13 = vld [vmem:[%s3470_s6 + $0x2008] sm:$0xff] }
  0x9f   : > { %487 = vst [vmem:[%s3475_s7 + $0x470] sm:$0xff] %v486_v14  ;;  %v614_v14 = vld [vmem:[%s3470_s6 + $0x2010] sm:$0xff] }
  0xa0   : > { %489 = vst [vmem:[%s3475_s7 + $0x478] sm:$0xff] %v488_v15  ;;  %v616_v15 = vld [vmem:[%s3470_s6 + $0x2018] sm:$0xff] }
  0xa1   : > { %491 = vst [vmem:[%s3475_s7 + $0x480] sm:$0xff] %v490_v16  ;;  %v618_v16 = vld [vmem:[%s3470_s6 + $0x2020] sm:$0xff] }
  0xa2   : > { %493 = vst [vmem:[%s3475_s7 + $0x488] sm:$0xff] %v492_v17  ;;  %v620_v17 = vld [vmem:[%s3470_s6 + $0x2028] sm:$0xff] }
  0xa3   : > { %495 = vst [vmem:[%s3475_s7 + $0x490] sm:$0xff] %v494_v18  ;;  %v622_v18 = vld [vmem:[%s3470_s6 + $0x20d0] sm:$0xff] }
  0xa4   : > { %497 = vst [vmem:[%s3475_s7 + $0x498] sm:$0xff] %v496_v19  ;;  %v624_v19 = vld [vmem:[%s3470_s6 + $0x20d8] sm:$0xff] }
  0xa5   : > { %499 = vst [vmem:[%s3475_s7 + $0x4a0] sm:$0xff] %v498_v20  ;;  %v626_v20 = vld [vmem:[%s3470_s6 + $0x20e0] sm:$0xff] }
  0xa6   : > { %501 = vst [vmem:[%s3475_s7 + $0x4a8] sm:$0xff] %v500_v21  ;;  %v628_v21 = vld [vmem:[%s3470_s6 + $0x20e8] sm:$0xff] }
  0xa7   : > { %503 = vst [vmem:[%s3475_s7 + $0x4b0] sm:$0xff] %v502_v22  ;;  %v630_v22 = vld [vmem:[%s3470_s6 + $0x20f0] sm:$0xff] }
  0xa8   : > { %505 = vst [vmem:[%s3475_s7 + $0x4b8] sm:$0xff] %v504_v23  ;;  %v632_v23 = vld [vmem:[%s3470_s6 + $0x2198] sm:$0xff] }
  0xa9   : > { %507 = vst [vmem:[%s3475_s7 + $0x4c0] sm:$0xff] %v506_v24  ;;  %v634_v24 = vld [vmem:[%s3470_s6 + $0x21a0] sm:$0xff] }
  0xaa   : > { %509 = vst [vmem:[%s3475_s7 + $0x4c8] sm:$0xff] %v508_v25  ;;  %v636_v25 = vld [vmem:[%s3470_s6 + $0x21a8] sm:$0xff] }
  0xab   : > { %511 = vst [vmem:[%s3475_s7 + $0x4d0] sm:$0xff] %v510_v26  ;;  %v638_v26 = vld [vmem:[%s3470_s6 + $0x21b0] sm:$0xff] }
  0xac   : > { %513 = vst [vmem:[%s3475_s7 + $0x4d8] sm:$0xff] %v512_v27  ;;  %v640_v27 = vld [vmem:[%s3470_s6 + $0x21b8] sm:$0xff] }
  0xad   : > { %515 = vst [vmem:[%s3475_s7 + $0x4e0] sm:$0xff] %v514_v28  ;;  %v642_v28 = vld [vmem:[%s3470_s6 + $0x2260] sm:$0xff] }
  0xae   : > { %517 = vst [vmem:[%s3475_s7 + $0x4e8] sm:$0xff] %v516_v29  ;;  %v644_v29 = vld [vmem:[%s3470_s6 + $0x2268] sm:$0xff] }
  0xaf   : > { %519 = vst [vmem:[%s3475_s7 + $0x4f0] sm:$0xff] %v518_v30  ;;  %v646_v30 = vld [vmem:[%s3470_s6 + $0x2270] sm:$0xff] }
  0xb0   : > { %521 = vst [vmem:[%s3475_s7 + $0x4f8] sm:$0xff] %v520_v31  ;;  %v648_v31 = vld [vmem:[%s3470_s6 + $0x2278] sm:$0xff] }
  0xb1   : > { %523 = vst [vmem:[%s3475_s7 + $0x500] sm:$0xff] %v522_v32  ;;  %v650_v32 = vld [vmem:[%s3470_s6 + $0x2280] sm:$0xff] }
  0xb2   : > { %525 = vst [vmem:[%s3475_s7 + $0x508] sm:$0xff] %v524_v33  ;;  %v652_v33 = vld [vmem:[%s3470_s6 + $0x2328] sm:$0xff] }
  0xb3   : > { %527 = vst [vmem:[%s3475_s7 + $0x510] sm:$0xff] %v526_v34  ;;  %v654_v34 = vld [vmem:[%s3470_s6 + $0x2330] sm:$0xff] }
  0xb4   : > { %529 = vst [vmem:[%s3475_s7 + $0x518] sm:$0xff] %v528_v35  ;;  %v656_v35 = vld [vmem:[%s3470_s6 + $0x2338] sm:$0xff] }
  0xb5   : > { %531 = vst [vmem:[%s3475_s7 + $0x520] sm:$0xff] %v530_v36  ;;  %v658_v36 = vld [vmem:[%s3470_s6 + $0x2340] sm:$0xff] }
  0xb6   : > { %533 = vst [vmem:[%s3475_s7 + $0x528] sm:$0xff] %v532_v37  ;;  %v660_v37 = vld [vmem:[%s3470_s6 + $0x2348] sm:$0xff] }
  0xb7   : > { %535 = vst [vmem:[%s3475_s7 + $0x530] sm:$0xff] %v534_v38  ;;  %v662_v38 = vld [vmem:[%s3470_s6 + $0x23f0] sm:$0xff] }
  0xb8   : > { %537 = vst [vmem:[%s3475_s7 + $0x538] sm:$0xff] %v536_v39  ;;  %v664_v39 = vld [vmem:[%s3470_s6 + $0x23f8] sm:$0xff] }
  0xb9   : > { %539 = vst [vmem:[%s3475_s7 + $0x540] sm:$0xff] %v538_v40  ;;  %v666_v40 = vld [vmem:[%s3470_s6 + $0x2400] sm:$0xff] }
  0xba   : > { %541 = vst [vmem:[%s3475_s7 + $0x548] sm:$0xff] %v540_v41  ;;  %v668_v41 = vld [vmem:[%s3470_s6 + $0x2408] sm:$0xff] }
  0xbb   : > { %543 = vst [vmem:[%s3475_s7 + $0x550] sm:$0xff] %v542_v42  ;;  %v670_v42 = vld [vmem:[%s3470_s6 + $0x2410] sm:$0xff] }
  0xbc   : > { %545 = vst [vmem:[%s3475_s7 + $0x558] sm:$0xff] %v544_v43  ;;  %v672_v43 = vld [vmem:[%s3470_s6 + $0x24b8] sm:$0xff] }
  0xbd   : > { %547 = vst [vmem:[%s3475_s7 + $0x560] sm:$0xff] %v546_v44  ;;  %v674_v44 = vld [vmem:[%s3470_s6 + $0x24c0] sm:$0xff] }
  0xbe   : > { %549 = vst [vmem:[%s3475_s7 + $0x568] sm:$0xff] %v548_v45  ;;  %v676_v45 = vld [vmem:[%s3470_s6 + $0x24c8] sm:$0xff] }
  0xbf   : > { %551 = vst [vmem:[%s3475_s7 + $0x570] sm:$0xff] %v550_v46  ;;  %v678_v46 = vld [vmem:[%s3470_s6 + $0x24d0] sm:$0xff] }
  0xc0   : > { %553 = vst [vmem:[%s3475_s7 + $0x578] sm:$0xff] %v552_v47  ;;  %v680_v47 = vld [vmem:[%s3470_s6 + $0x24d8] sm:$0xff] }
  0xc1   : > { %555 = vst [vmem:[%s3475_s7 + $0x580] sm:$0xff] %v554_v48  ;;  %v682_v48 = vld [vmem:[%s3470_s6 + $0x2580] sm:$0xff] }
  0xc2   : > { %557 = vst [vmem:[%s3475_s7 + $0x588] sm:$0xff] %v556_v49  ;;  %v684_v49 = vld [vmem:[%s3470_s6 + $0x2588] sm:$0xff] }
  0xc3   : > { %559 = vst [vmem:[%s3475_s7 + $0x590] sm:$0xff] %v558_v50  ;;  %v686_v50 = vld [vmem:[%s3470_s6 + $0x2590] sm:$0xff] }
  0xc4   : > { %561 = vst [vmem:[%s3475_s7 + $0x598] sm:$0xff] %v560_v51  ;;  %v688_v51 = vld [vmem:[%s3470_s6 + $0x2598] sm:$0xff] }
  0xc5   : > { %563 = vst [vmem:[%s3475_s7 + $0x5a0] sm:$0xff] %v562_v52  ;;  %v690_v52 = vld [vmem:[%s3470_s6 + $0x25a0] sm:$0xff] }
  0xc6   : > { %565 = vst [vmem:[%s3475_s7 + $0x5a8] sm:$0xff] %v564_v53  ;;  %v692_v53 = vld [vmem:[%s3470_s6 + $0x2648] sm:$0xff] }
  0xc7   : > { %567 = vst [vmem:[%s3475_s7 + $0x5b0] sm:$0xff] %v566_v54  ;;  %v694_v54 = vld [vmem:[%s3470_s6 + $0x2650] sm:$0xff] }
  0xc8   : > { %569 = vst [vmem:[%s3475_s7 + $0x5b8] sm:$0xff] %v568_v55  ;;  %v696_v55 = vld [vmem:[%s3470_s6 + $0x2658] sm:$0xff] }
  0xc9   : > { %571 = vst [vmem:[%s3475_s7 + $0x5c0] sm:$0xff] %v570_v56  ;;  %v698_v56 = vld [vmem:[%s3470_s6 + $0x2660] sm:$0xff] }
  0xca   : > { %573 = vst [vmem:[%s3475_s7 + $0x5c8] sm:$0xff] %v572_v57  ;;  %v700_v57 = vld [vmem:[%s3470_s6 + $0x2668] sm:$0xff] }
  0xcb   : > { %575 = vst [vmem:[%s3475_s7 + $0x5d0] sm:$0xff] %v574_v58  ;;  %v702_v58 = vld [vmem:[%s3470_s6 + $0x2710] sm:$0xff] }
  0xcc   : > { %577 = vst [vmem:[%s3475_s7 + $0x5d8] sm:$0xff] %v576_v59  ;;  %v704_v59 = vld [vmem:[%s3470_s6 + $0x2718] sm:$0xff] }
  0xcd   : > { %579 = vst [vmem:[%s3475_s7 + $0x5e0] sm:$0xff] %v578_v60  ;;  %v706_v60 = vld [vmem:[%s3470_s6 + $0x2720] sm:$0xff] }
  0xce   : > { %581 = vst [vmem:[%s3475_s7 + $0x5e8] sm:$0xff] %v580_v61  ;;  %v708_v61 = vld [vmem:[%s3470_s6 + $0x2728] sm:$0xff] }
  0xcf   : > { %583 = vst [vmem:[%s3475_s7 + $0x5f0] sm:$0xff] %v582_v62  ;;  %v710_v62 = vld [vmem:[%s3470_s6 + $0x2730] sm:$0xff] }
  0xd0   : > { %585 = vst [vmem:[%s3475_s7 + $0x5f8] sm:$0xff] %v584_v63  ;;  %v712_v63 = vld [vmem:[%s3470_s6 + $0x27d8] sm:$0xff] }
  0xd1   : > { %587 = vst [vmem:[%s3475_s7 + $0x600] sm:$0xff] %v586_v0  ;;  %v714_v0 = vld [vmem:[%s3470_s6 + $0x27e0] sm:$0xff] }
  0xd2   : > { %589 = vst [vmem:[%s3475_s7 + $0x608] sm:$0xff] %v588_v1  ;;  %v716_v1 = vld [vmem:[%s3470_s6 + $0x27e8] sm:$0xff] }
  0xd3   : > { %591 = vst [vmem:[%s3475_s7 + $0x610] sm:$0xff] %v590_v2  ;;  %v718_v2 = vld [vmem:[%s3470_s6 + $0x27f0] sm:$0xff] }
  0xd4   : > { %593 = vst [vmem:[%s3475_s7 + $0x618] sm:$0xff] %v592_v3  ;;  %v720_v3 = vld [vmem:[%s3470_s6 + $0x27f8] sm:$0xff] }
  0xd5   : > { %595 = vst [vmem:[%s3475_s7 + $0x620] sm:$0xff] %v594_v4  ;;  %v722_v4 = vld [vmem:[%s3470_s6 + $0x28a0] sm:$0xff] }
  0xd6   : > { %597 = vst [vmem:[%s3475_s7 + $0x628] sm:$0xff] %v596_v5  ;;  %v724_v5 = vld [vmem:[%s3470_s6 + $0x28a8] sm:$0xff] }
  0xd7   : > { %599 = vst [vmem:[%s3475_s7 + $0x630] sm:$0xff] %v598_v6  ;;  %v726_v6 = vld [vmem:[%s3470_s6 + $0x28b0] sm:$0xff] }
  0xd8   : > { %601 = vst [vmem:[%s3475_s7 + $0x638] sm:$0xff] %v600_v7  ;;  %v728_v7 = vld [vmem:[%s3470_s6 + $0x28b8] sm:$0xff] }
  0xd9   : > { %603 = vst [vmem:[%s3475_s7 + $0x640] sm:$0xff] %v602_v8  ;;  %v730_v8 = vld [vmem:[%s3470_s6 + $0x28c0] sm:$0xff] }
  0xda   : > { %605 = vst [vmem:[%s3475_s7 + $0x648] sm:$0xff] %v604_v9  ;;  %v732_v9 = vld [vmem:[%s3470_s6 + $0x2968] sm:$0xff] }
  0xdb   : > { %607 = vst [vmem:[%s3475_s7 + $0x650] sm:$0xff] %v606_v10  ;;  %v734_v10 = vld [vmem:[%s3470_s6 + $0x2970] sm:$0xff] }
  0xdc   : > { %609 = vst [vmem:[%s3475_s7 + $0x658] sm:$0xff] %v608_v11  ;;  %v736_v11 = vld [vmem:[%s3470_s6 + $0x2978] sm:$0xff] }
  0xdd   : > { %611 = vst [vmem:[%s3475_s7 + $0x660] sm:$0xff] %v610_v12  ;;  %v738_v12 = vld [vmem:[%s3470_s6 + $0x2980] sm:$0xff] }
  0xde   : > { %613 = vst [vmem:[%s3475_s7 + $0x668] sm:$0xff] %v612_v13  ;;  %v740_v13 = vld [vmem:[%s3470_s6 + $0x2988] sm:$0xff] }
  0xdf   : > { %615 = vst [vmem:[%s3475_s7 + $0x670] sm:$0xff] %v614_v14  ;;  %v742_v14 = vld [vmem:[%s3470_s6 + $0x2a30] sm:$0xff] }
  0xe0   : > { %617 = vst [vmem:[%s3475_s7 + $0x678] sm:$0xff] %v616_v15  ;;  %v744_v15 = vld [vmem:[%s3470_s6 + $0x2a38] sm:$0xff] }
  0xe1   : > { %619 = vst [vmem:[%s3475_s7 + $0x680] sm:$0xff] %v618_v16  ;;  %v746_v16 = vld [vmem:[%s3470_s6 + $0x2a40] sm:$0xff] }
  0xe2   : > { %621 = vst [vmem:[%s3475_s7 + $0x688] sm:$0xff] %v620_v17  ;;  %v748_v17 = vld [vmem:[%s3470_s6 + $0x2a48] sm:$0xff] }
  0xe3   : > { %623 = vst [vmem:[%s3475_s7 + $0x690] sm:$0xff] %v622_v18  ;;  %v750_v18 = vld [vmem:[%s3470_s6 + $0x2a50] sm:$0xff] }
  0xe4   : > { %625 = vst [vmem:[%s3475_s7 + $0x698] sm:$0xff] %v624_v19  ;;  %v752_v19 = vld [vmem:[%s3470_s6 + $0x2af8] sm:$0xff] }
  0xe5   : > { %627 = vst [vmem:[%s3475_s7 + $0x6a0] sm:$0xff] %v626_v20  ;;  %v754_v20 = vld [vmem:[%s3470_s6 + $0x2b00] sm:$0xff] }
  0xe6   : > { %629 = vst [vmem:[%s3475_s7 + $0x6a8] sm:$0xff] %v628_v21  ;;  %v756_v21 = vld [vmem:[%s3470_s6 + $0x2b08] sm:$0xff] }
  0xe7   : > { %631 = vst [vmem:[%s3475_s7 + $0x6b0] sm:$0xff] %v630_v22  ;;  %v758_v22 = vld [vmem:[%s3470_s6 + $0x2b10] sm:$0xff] }
  0xe8   : > { %633 = vst [vmem:[%s3475_s7 + $0x6b8] sm:$0xff] %v632_v23  ;;  %v760_v23 = vld [vmem:[%s3470_s6 + $0x2b18] sm:$0xff] }
  0xe9   : > { %635 = vst [vmem:[%s3475_s7 + $0x6c0] sm:$0xff] %v634_v24  ;;  %v762_v24 = vld [vmem:[%s3470_s6 + $0x2bc0] sm:$0xff] }
  0xea   : > { %637 = vst [vmem:[%s3475_s7 + $0x6c8] sm:$0xff] %v636_v25  ;;  %v764_v25 = vld [vmem:[%s3470_s6 + $0x2bc8] sm:$0xff] }
  0xeb   : > { %639 = vst [vmem:[%s3475_s7 + $0x6d0] sm:$0xff] %v638_v26  ;;  %v766_v26 = vld [vmem:[%s3470_s6 + $0x2bd0] sm:$0xff] }
  0xec   : > { %641 = vst [vmem:[%s3475_s7 + $0x6d8] sm:$0xff] %v640_v27  ;;  %v768_v27 = vld [vmem:[%s3470_s6 + $0x2bd8] sm:$0xff] }
  0xed   : > { %643 = vst [vmem:[%s3475_s7 + $0x6e0] sm:$0xff] %v642_v28  ;;  %v770_v28 = vld [vmem:[%s3470_s6 + $0x2be0] sm:$0xff] }
  0xee   : > { %645 = vst [vmem:[%s3475_s7 + $0x6e8] sm:$0xff] %v644_v29  ;;  %v772_v29 = vld [vmem:[%s3470_s6 + $0x2c88] sm:$0xff] }
  0xef   : > { %647 = vst [vmem:[%s3475_s7 + $0x6f0] sm:$0xff] %v646_v30  ;;  %v774_v30 = vld [vmem:[%s3470_s6 + $0x2c90] sm:$0xff] }
  0xf0   : > { %649 = vst [vmem:[%s3475_s7 + $0x6f8] sm:$0xff] %v648_v31  ;;  %v776_v31 = vld [vmem:[%s3470_s6 + $0x2c98] sm:$0xff] }
  0xf1   : > { %651 = vst [vmem:[%s3475_s7 + $0x700] sm:$0xff] %v650_v32  ;;  %v778_v32 = vld [vmem:[%s3470_s6 + $0x2ca0] sm:$0xff] }
  0xf2   : > { %653 = vst [vmem:[%s3475_s7 + $0x708] sm:$0xff] %v652_v33  ;;  %v780_v33 = vld [vmem:[%s3470_s6 + $0x2ca8] sm:$0xff] }
  0xf3   : > { %655 = vst [vmem:[%s3475_s7 + $0x710] sm:$0xff] %v654_v34  ;;  %v782_v34 = vld [vmem:[%s3470_s6 + $0x2d50] sm:$0xff] }
  0xf4   : > { %657 = vst [vmem:[%s3475_s7 + $0x718] sm:$0xff] %v656_v35  ;;  %v784_v35 = vld [vmem:[%s3470_s6 + $0x2d58] sm:$0xff] }
  0xf5   : > { %659 = vst [vmem:[%s3475_s7 + $0x720] sm:$0xff] %v658_v36  ;;  %v786_v36 = vld [vmem:[%s3470_s6 + $0x2d60] sm:$0xff] }
  0xf6   : > { %661 = vst [vmem:[%s3475_s7 + $0x728] sm:$0xff] %v660_v37  ;;  %v788_v37 = vld [vmem:[%s3470_s6 + $0x2d68] sm:$0xff] }
  0xf7   : > { %663 = vst [vmem:[%s3475_s7 + $0x730] sm:$0xff] %v662_v38  ;;  %v790_v38 = vld [vmem:[%s3470_s6 + $0x2d70] sm:$0xff] }
  0xf8   : > { %665 = vst [vmem:[%s3475_s7 + $0x738] sm:$0xff] %v664_v39  ;;  %v792_v39 = vld [vmem:[%s3470_s6 + $0x2e18] sm:$0xff] }
  0xf9   : > { %667 = vst [vmem:[%s3475_s7 + $0x740] sm:$0xff] %v666_v40  ;;  %v794_v40 = vld [vmem:[%s3470_s6 + $0x2e20] sm:$0xff] }
  0xfa   : > { %669 = vst [vmem:[%s3475_s7 + $0x748] sm:$0xff] %v668_v41  ;;  %v796_v41 = vld [vmem:[%s3470_s6 + $0x2e28] sm:$0xff] }
  0xfb   : > { %671 = vst [vmem:[%s3475_s7 + $0x750] sm:$0xff] %v670_v42  ;;  %v798_v42 = vld [vmem:[%s3470_s6 + $0x2e30] sm:$0xff] }
  0xfc   : > { %673 = vst [vmem:[%s3475_s7 + $0x758] sm:$0xff] %v672_v43  ;;  %v800_v43 = vld [vmem:[%s3470_s6 + $0x2e38] sm:$0xff] }
  0xfd   : > { %675 = vst [vmem:[%s3475_s7 + $0x760] sm:$0xff] %v674_v44  ;;  %v802_v44 = vld [vmem:[%s3470_s6 + $0x2ee0] sm:$0xff] }
  0xfe   : > { %677 = vst [vmem:[%s3475_s7 + $0x768] sm:$0xff] %v676_v45  ;;  %v804_v45 = vld [vmem:[%s3470_s6 + $0x2ee8] sm:$0xff] }
  0xff   : > { %679 = vst [vmem:[%s3475_s7 + $0x770] sm:$0xff] %v678_v46  ;;  %v806_v46 = vld [vmem:[%s3470_s6 + $0x2ef0] sm:$0xff] }
 0x100   : > { %681 = vst [vmem:[%s3475_s7 + $0x778] sm:$0xff] %v680_v47  ;;  %v808_v47 = vld [vmem:[%s3470_s6 + $0x2ef8] sm:$0xff] }
 0x101   : > { %683 = vst [vmem:[%s3475_s7 + $0x780] sm:$0xff] %v682_v48  ;;  %v810_v48 = vld [vmem:[%s3470_s6 + $0x2f00] sm:$0xff] }
 0x102   : > { %685 = vst [vmem:[%s3475_s7 + $0x788] sm:$0xff] %v684_v49  ;;  %v812_v49 = vld [vmem:[%s3470_s6 + $0x2fa8] sm:$0xff] }
 0x103   : > { %687 = vst [vmem:[%s3475_s7 + $0x790] sm:$0xff] %v686_v50  ;;  %v814_v50 = vld [vmem:[%s3470_s6 + $0x2fb0] sm:$0xff] }
 0x104   : > { %689 = vst [vmem:[%s3475_s7 + $0x798] sm:$0xff] %v688_v51  ;;  %v816_v51 = vld [vmem:[%s3470_s6 + $0x2fb8] sm:$0xff] }
 0x105   : > { %691 = vst [vmem:[%s3475_s7 + $0x7a0] sm:$0xff] %v690_v52  ;;  %v818_v52 = vld [vmem:[%s3470_s6 + $0x2fc0] sm:$0xff] }
 0x106   : > { %693 = vst [vmem:[%s3475_s7 + $0x7a8] sm:$0xff] %v692_v53  ;;  %v820_v53 = vld [vmem:[%s3470_s6 + $0x2fc8] sm:$0xff] }
 0x107   : > { %695 = vst [vmem:[%s3475_s7 + $0x7b0] sm:$0xff] %v694_v54  ;;  %v822_v54 = vld [vmem:[%s3470_s6 + $0x3070] sm:$0xff] }
 0x108   : > { %697 = vst [vmem:[%s3475_s7 + $0x7b8] sm:$0xff] %v696_v55  ;;  %v824_v55 = vld [vmem:[%s3470_s6 + $0x3078] sm:$0xff] }
 0x109   : > { %699 = vst [vmem:[%s3475_s7 + $0x7c0] sm:$0xff] %v698_v56  ;;  %v826_v56 = vld [vmem:[%s3470_s6 + $0x3080] sm:$0xff] }
 0x10a   : > { %701 = vst [vmem:[%s3475_s7 + $0x7c8] sm:$0xff] %v700_v57  ;;  %v828_v57 = vld [vmem:[%s3470_s6 + $0x3088] sm:$0xff] }
 0x10b   : > { %703 = vst [vmem:[%s3475_s7 + $0x7d0] sm:$0xff] %v702_v58  ;;  %v830_v58 = vld [vmem:[%s3470_s6 + $0x3090] sm:$0xff] }
 0x10c   : > { %705 = vst [vmem:[%s3475_s7 + $0x7d8] sm:$0xff] %v704_v59  ;;  %v832_v59 = vld [vmem:[%s3470_s6 + $0x3138] sm:$0xff] }
 0x10d   : > { %707 = vst [vmem:[%s3475_s7 + $0x7e0] sm:$0xff] %v706_v60  ;;  %v834_v60 = vld [vmem:[%s3470_s6 + $0x3140] sm:$0xff] }
 0x10e   : > { %709 = vst [vmem:[%s3475_s7 + $0x7e8] sm:$0xff] %v708_v61  ;;  %v836_v61 = vld [vmem:[%s3470_s6 + $0x3148] sm:$0xff] }
 0x10f   : > { %711 = vst [vmem:[%s3475_s7 + $0x7f0] sm:$0xff] %v710_v62  ;;  %v838_v62 = vld [vmem:[%s3470_s6 + $0x3150] sm:$0xff] }
 0x110   : > { %713 = vst [vmem:[%s3475_s7 + $0x7f8] sm:$0xff] %v712_v63  ;;  %v840_v63 = vld [vmem:[%s3470_s6 + $0x3158] sm:$0xff] }
 0x111   : > { %715 = vst [vmem:[%s3475_s7 + $0x800] sm:$0xff] %v714_v0  ;;  %v842_v0 = vld [vmem:[%s3470_s6 + $0x3200] sm:$0xff] }
 0x112   : > { %717 = vst [vmem:[%s3475_s7 + $0x808] sm:$0xff] %v716_v1  ;;  %v844_v1 = vld [vmem:[%s3470_s6 + $0x3208] sm:$0xff] }
 0x113   : > { %719 = vst [vmem:[%s3475_s7 + $0x810] sm:$0xff] %v718_v2  ;;  %v846_v2 = vld [vmem:[%s3470_s6 + $0x3210] sm:$0xff] }
 0x114   : > { %721 = vst [vmem:[%s3475_s7 + $0x818] sm:$0xff] %v720_v3  ;;  %v848_v3 = vld [vmem:[%s3470_s6 + $0x3218] sm:$0xff] }
 0x115   : > { %723 = vst [vmem:[%s3475_s7 + $0x820] sm:$0xff] %v722_v4  ;;  %v850_v4 = vld [vmem:[%s3470_s6 + $0x3220] sm:$0xff] }
 0x116   : > { %725 = vst [vmem:[%s3475_s7 + $0x828] sm:$0xff] %v724_v5  ;;  %v852_v5 = vld [vmem:[%s3470_s6 + $0x32c8] sm:$0xff] }
 0x117   : > { %727 = vst [vmem:[%s3475_s7 + $0x830] sm:$0xff] %v726_v6  ;;  %v854_v6 = vld [vmem:[%s3470_s6 + $0x32d0] sm:$0xff] }
 0x118   : > { %729 = vst [vmem:[%s3475_s7 + $0x838] sm:$0xff] %v728_v7  ;;  %v856_v7 = vld [vmem:[%s3470_s6 + $0x32d8] sm:$0xff] }
 0x119   : > { %731 = vst [vmem:[%s3475_s7 + $0x840] sm:$0xff] %v730_v8  ;;  %v858_v8 = vld [vmem:[%s3470_s6 + $0x32e0] sm:$0xff] }
 0x11a   : > { %733 = vst [vmem:[%s3475_s7 + $0x848] sm:$0xff] %v732_v9  ;;  %v860_v9 = vld [vmem:[%s3470_s6 + $0x32e8] sm:$0xff] }
 0x11b   : > { %735 = vst [vmem:[%s3475_s7 + $0x850] sm:$0xff] %v734_v10  ;;  %v862_v10 = vld [vmem:[%s3470_s6 + $0x3390] sm:$0xff] }
 0x11c   : > { %737 = vst [vmem:[%s3475_s7 + $0x858] sm:$0xff] %v736_v11  ;;  %v864_v11 = vld [vmem:[%s3470_s6 + $0x3398] sm:$0xff] }
 0x11d   : > { %739 = vst [vmem:[%s3475_s7 + $0x860] sm:$0xff] %v738_v12  ;;  %v866_v12 = vld [vmem:[%s3470_s6 + $0x33a0] sm:$0xff] }
 0x11e   : > { %741 = vst [vmem:[%s3475_s7 + $0x868] sm:$0xff] %v740_v13  ;;  %v868_v13 = vld [vmem:[%s3470_s6 + $0x33a8] sm:$0xff] }
 0x11f   : > { %743 = vst [vmem:[%s3475_s7 + $0x870] sm:$0xff] %v742_v14  ;;  %v870_v14 = vld [vmem:[%s3470_s6 + $0x33b0] sm:$0xff] }
 0x120   : > { %745 = vst [vmem:[%s3475_s7 + $0x878] sm:$0xff] %v744_v15  ;;  %v872_v15 = vld [vmem:[%s3470_s6 + $0x3458] sm:$0xff] }
 0x121   : > { %747 = vst [vmem:[%s3475_s7 + $0x880] sm:$0xff] %v746_v16  ;;  %v874_v16 = vld [vmem:[%s3470_s6 + $0x3460] sm:$0xff] }
 0x122   : > { %749 = vst [vmem:[%s3475_s7 + $0x888] sm:$0xff] %v748_v17  ;;  %v876_v17 = vld [vmem:[%s3470_s6 + $0x3468] sm:$0xff] }
 0x123   : > { %751 = vst [vmem:[%s3475_s7 + $0x890] sm:$0xff] %v750_v18  ;;  %v878_v18 = vld [vmem:[%s3470_s6 + $0x3470] sm:$0xff] }
 0x124   : > { %753 = vst [vmem:[%s3475_s7 + $0x898] sm:$0xff] %v752_v19  ;;  %v880_v19 = vld [vmem:[%s3470_s6 + $0x3478] sm:$0xff] }
 0x125   : > { %755 = vst [vmem:[%s3475_s7 + $0x8a0] sm:$0xff] %v754_v20  ;;  %v882_v20 = vld [vmem:[%s3470_s6 + $0x3520] sm:$0xff] }
 0x126   : > { %757 = vst [vmem:[%s3475_s7 + $0x8a8] sm:$0xff] %v756_v21  ;;  %v884_v21 = vld [vmem:[%s3470_s6 + $0x3528] sm:$0xff] }
 0x127   : > { %759 = vst [vmem:[%s3475_s7 + $0x8b0] sm:$0xff] %v758_v22  ;;  %v886_v22 = vld [vmem:[%s3470_s6 + $0x3530] sm:$0xff] }
 0x128   : > { %761 = vst [vmem:[%s3475_s7 + $0x8b8] sm:$0xff] %v760_v23  ;;  %v888_v23 = vld [vmem:[%s3470_s6 + $0x3538] sm:$0xff] }
 0x129   : > { %763 = vst [vmem:[%s3475_s7 + $0x8c0] sm:$0xff] %v762_v24  ;;  %v890_v24 = vld [vmem:[%s3470_s6 + $0x3540] sm:$0xff] }
 0x12a   : > { %765 = vst [vmem:[%s3475_s7 + $0x8c8] sm:$0xff] %v764_v25  ;;  %v892_v25 = vld [vmem:[%s3470_s6 + $0x35e8] sm:$0xff] }
 0x12b   : > { %767 = vst [vmem:[%s3475_s7 + $0x8d0] sm:$0xff] %v766_v26  ;;  %v894_v26 = vld [vmem:[%s3470_s6 + $0x35f0] sm:$0xff] }
 0x12c   : > { %769 = vst [vmem:[%s3475_s7 + $0x8d8] sm:$0xff] %v768_v27  ;;  %v896_v27 = vld [vmem:[%s3470_s6 + $0x35f8] sm:$0xff] }
 0x12d   : > { %771 = vst [vmem:[%s3475_s7 + $0x8e0] sm:$0xff] %v770_v28  ;;  %v898_v28 = vld [vmem:[%s3470_s6 + $0x3600] sm:$0xff] }
 0x12e   : > { %773 = vst [vmem:[%s3475_s7 + $0x8e8] sm:$0xff] %v772_v29  ;;  %v900_v29 = vld [vmem:[%s3470_s6 + $0x3608] sm:$0xff] }
 0x12f   : > { %775 = vst [vmem:[%s3475_s7 + $0x8f0] sm:$0xff] %v774_v30  ;;  %v902_v30 = vld [vmem:[%s3470_s6 + $0x36b0] sm:$0xff] }
 0x130   : > { %777 = vst [vmem:[%s3475_s7 + $0x8f8] sm:$0xff] %v776_v31  ;;  %v904_v31 = vld [vmem:[%s3470_s6 + $0x36b8] sm:$0xff] }
 0x131   : > { %779 = vst [vmem:[%s3475_s7 + $0x900] sm:$0xff] %v778_v32  ;;  %v906_v32 = vld [vmem:[%s3470_s6 + $0x36c0] sm:$0xff] }
 0x132   : > { %781 = vst [vmem:[%s3475_s7 + $0x908] sm:$0xff] %v780_v33  ;;  %v908_v33 = vld [vmem:[%s3470_s6 + $0x36c8] sm:$0xff] }
 0x133   : > { %783 = vst [vmem:[%s3475_s7 + $0x910] sm:$0xff] %v782_v34  ;;  %v910_v34 = vld [vmem:[%s3470_s6 + $0x36d0] sm:$0xff] }
 0x134   : > { %785 = vst [vmem:[%s3475_s7 + $0x918] sm:$0xff] %v784_v35  ;;  %v912_v35 = vld [vmem:[%s3470_s6 + $0x3778] sm:$0xff] }
 0x135   : > { %787 = vst [vmem:[%s3475_s7 + $0x920] sm:$0xff] %v786_v36  ;;  %v914_v36 = vld [vmem:[%s3470_s6 + $0x3780] sm:$0xff] }
 0x136   : > { %789 = vst [vmem:[%s3475_s7 + $0x928] sm:$0xff] %v788_v37  ;;  %v916_v37 = vld [vmem:[%s3470_s6 + $0x3788] sm:$0xff] }
 0x137   : > { %791 = vst [vmem:[%s3475_s7 + $0x930] sm:$0xff] %v790_v38  ;;  %v918_v38 = vld [vmem:[%s3470_s6 + $0x3790] sm:$0xff] }
 0x138   : > { %793 = vst [vmem:[%s3475_s7 + $0x938] sm:$0xff] %v792_v39  ;;  %v920_v39 = vld [vmem:[%s3470_s6 + $0x3798] sm:$0xff] }
 0x139   : > { %795 = vst [vmem:[%s3475_s7 + $0x940] sm:$0xff] %v794_v40  ;;  %v922_v40 = vld [vmem:[%s3470_s6 + $0x3840] sm:$0xff] }
 0x13a   : > { %797 = vst [vmem:[%s3475_s7 + $0x948] sm:$0xff] %v796_v41  ;;  %v924_v41 = vld [vmem:[%s3470_s6 + $0x3848] sm:$0xff] }
 0x13b   : > { %799 = vst [vmem:[%s3475_s7 + $0x950] sm:$0xff] %v798_v42  ;;  %v926_v42 = vld [vmem:[%s3470_s6 + $0x3850] sm:$0xff] }
 0x13c   : > { %801 = vst [vmem:[%s3475_s7 + $0x958] sm:$0xff] %v800_v43  ;;  %v928_v43 = vld [vmem:[%s3470_s6 + $0x3858] sm:$0xff] }
 0x13d   : > { %803 = vst [vmem:[%s3475_s7 + $0x960] sm:$0xff] %v802_v44  ;;  %v930_v44 = vld [vmem:[%s3470_s6 + $0x3860] sm:$0xff] }
 0x13e   : > { %805 = vst [vmem:[%s3475_s7 + $0x968] sm:$0xff] %v804_v45  ;;  %v932_v45 = vld [vmem:[%s3470_s6 + $0x3908] sm:$0xff] }
 0x13f   : > { %807 = vst [vmem:[%s3475_s7 + $0x970] sm:$0xff] %v806_v46  ;;  %v934_v46 = vld [vmem:[%s3470_s6 + $0x3910] sm:$0xff] }
 0x140   : > { %809 = vst [vmem:[%s3475_s7 + $0x978] sm:$0xff] %v808_v47  ;;  %v936_v47 = vld [vmem:[%s3470_s6 + $0x3918] sm:$0xff] }
 0x141   : > { %811 = vst [vmem:[%s3475_s7 + $0x980] sm:$0xff] %v810_v48  ;;  %v938_v48 = vld [vmem:[%s3470_s6 + $0x3920] sm:$0xff] }
 0x142   : > { %813 = vst [vmem:[%s3475_s7 + $0x988] sm:$0xff] %v812_v49  ;;  %v940_v49 = vld [vmem:[%s3470_s6 + $0x3928] sm:$0xff] }
 0x143   : > { %815 = vst [vmem:[%s3475_s7 + $0x990] sm:$0xff] %v814_v50  ;;  %v942_v50 = vld [vmem:[%s3470_s6 + $0x39d0] sm:$0xff] }
 0x144   : > { %817 = vst [vmem:[%s3475_s7 + $0x998] sm:$0xff] %v816_v51  ;;  %v944_v51 = vld [vmem:[%s3470_s6 + $0x39d8] sm:$0xff] }
 0x145   : > { %819 = vst [vmem:[%s3475_s7 + $0x9a0] sm:$0xff] %v818_v52  ;;  %v946_v52 = vld [vmem:[%s3470_s6 + $0x39e0] sm:$0xff] }
 0x146   : > { %821 = vst [vmem:[%s3475_s7 + $0x9a8] sm:$0xff] %v820_v53  ;;  %v948_v53 = vld [vmem:[%s3470_s6 + $0x39e8] sm:$0xff] }
 0x147   : > { %823 = vst [vmem:[%s3475_s7 + $0x9b0] sm:$0xff] %v822_v54  ;;  %v950_v54 = vld [vmem:[%s3470_s6 + $0x39f0] sm:$0xff] }
 0x148   : > { %825 = vst [vmem:[%s3475_s7 + $0x9b8] sm:$0xff] %v824_v55  ;;  %v952_v55 = vld [vmem:[%s3470_s6 + $0x3a98] sm:$0xff] }
 0x149   : > { %827 = vst [vmem:[%s3475_s7 + $0x9c0] sm:$0xff] %v826_v56  ;;  %v954_v56 = vld [vmem:[%s3470_s6 + $0x3aa0] sm:$0xff] }
 0x14a   : > { %829 = vst [vmem:[%s3475_s7 + $0x9c8] sm:$0xff] %v828_v57  ;;  %v956_v57 = vld [vmem:[%s3470_s6 + $0x3aa8] sm:$0xff] }
 0x14b   : > { %831 = vst [vmem:[%s3475_s7 + $0x9d0] sm:$0xff] %v830_v58  ;;  %v958_v58 = vld [vmem:[%s3470_s6 + $0x3ab0] sm:$0xff] }
 0x14c   : > { %833 = vst [vmem:[%s3475_s7 + $0x9d8] sm:$0xff] %v832_v59  ;;  %v960_v59 = vld [vmem:[%s3470_s6 + $0x3ab8] sm:$0xff] }
 0x14d   : > { %835 = vst [vmem:[%s3475_s7 + $0x9e0] sm:$0xff] %v834_v60  ;;  %v962_v60 = vld [vmem:[%s3470_s6 + $0x3b60] sm:$0xff] }
 0x14e   : > { %837 = vst [vmem:[%s3475_s7 + $0x9e8] sm:$0xff] %v836_v61  ;;  %v964_v61 = vld [vmem:[%s3470_s6 + $0x3b68] sm:$0xff] }
 0x14f   : > { %839 = vst [vmem:[%s3475_s7 + $0x9f0] sm:$0xff] %v838_v62  ;;  %v966_v62 = vld [vmem:[%s3470_s6 + $0x3b70] sm:$0xff] }
 0x150   : > { %841 = vst [vmem:[%s3475_s7 + $0x9f8] sm:$0xff] %v840_v63  ;;  %v968_v63 = vld [vmem:[%s3470_s6 + $0x3b78] sm:$0xff] }
 0x151   : > { %843 = vst [vmem:[%s3475_s7 + $0xa00] sm:$0xff] %v842_v0  ;;  %v970_v0 = vld [vmem:[%s3470_s6 + $0x3b80] sm:$0xff] }
 0x152   : > { %845 = vst [vmem:[%s3475_s7 + $0xa08] sm:$0xff] %v844_v1  ;;  %v972_v1 = vld [vmem:[%s3470_s6 + $0x3c28] sm:$0xff] }
 0x153   : > { %847 = vst [vmem:[%s3475_s7 + $0xa10] sm:$0xff] %v846_v2  ;;  %v974_v2 = vld [vmem:[%s3470_s6 + $0x3c30] sm:$0xff] }
 0x154   : > { %849 = vst [vmem:[%s3475_s7 + $0xa18] sm:$0xff] %v848_v3  ;;  %v976_v3 = vld [vmem:[%s3470_s6 + $0x3c38] sm:$0xff] }
 0x155   : > { %851 = vst [vmem:[%s3475_s7 + $0xa20] sm:$0xff] %v850_v4  ;;  %v978_v4 = vld [vmem:[%s3470_s6 + $0x3c40] sm:$0xff] }
 0x156   : > { %853 = vst [vmem:[%s3475_s7 + $0xa28] sm:$0xff] %v852_v5  ;;  %v980_v5 = vld [vmem:[%s3470_s6 + $0x3c48] sm:$0xff] }
 0x157   : > { %855 = vst [vmem:[%s3475_s7 + $0xa30] sm:$0xff] %v854_v6  ;;  %v982_v6 = vld [vmem:[%s3470_s6 + $0x3cf0] sm:$0xff] }
 0x158   : > { %857 = vst [vmem:[%s3475_s7 + $0xa38] sm:$0xff] %v856_v7  ;;  %v984_v7 = vld [vmem:[%s3470_s6 + $0x3cf8] sm:$0xff] }
 0x159   : > { %859 = vst [vmem:[%s3475_s7 + $0xa40] sm:$0xff] %v858_v8  ;;  %v986_v8 = vld [vmem:[%s3470_s6 + $0x3d00] sm:$0xff] }
 0x15a   : > { %861 = vst [vmem:[%s3475_s7 + $0xa48] sm:$0xff] %v860_v9  ;;  %v988_v9 = vld [vmem:[%s3470_s6 + $0x3d08] sm:$0xff] }
 0x15b   : > { %863 = vst [vmem:[%s3475_s7 + $0xa50] sm:$0xff] %v862_v10  ;;  %v990_v10 = vld [vmem:[%s3470_s6 + $0x3d10] sm:$0xff] }
 0x15c   : > { %865 = vst [vmem:[%s3475_s7 + $0xa58] sm:$0xff] %v864_v11  ;;  %v992_v11 = vld [vmem:[%s3470_s6 + $0x3db8] sm:$0xff] }
 0x15d   : > { %867 = vst [vmem:[%s3475_s7 + $0xa60] sm:$0xff] %v866_v12  ;;  %v994_v12 = vld [vmem:[%s3470_s6 + $0x3dc0] sm:$0xff] }
 0x15e   : > { %869 = vst [vmem:[%s3475_s7 + $0xa68] sm:$0xff] %v868_v13  ;;  %v996_v13 = vld [vmem:[%s3470_s6 + $0x3dc8] sm:$0xff] }
 0x15f   : > { %871 = vst [vmem:[%s3475_s7 + $0xa70] sm:$0xff] %v870_v14  ;;  %v998_v14 = vld [vmem:[%s3470_s6 + $0x3dd0] sm:$0xff] }
 0x160   : > { %873 = vst [vmem:[%s3475_s7 + $0xa78] sm:$0xff] %v872_v15  ;;  %v1000_v15 = vld [vmem:[%s3470_s6 + $0x3dd8] sm:$0xff] }
 0x161   : > { %875 = vst [vmem:[%s3475_s7 + $0xa80] sm:$0xff] %v874_v16  ;;  %v1002_v16 = vld [vmem:[%s3470_s6 + $0x3e80] sm:$0xff] }
 0x162   : > { %877 = vst [vmem:[%s3475_s7 + $0xa88] sm:$0xff] %v876_v17  ;;  %v1004_v17 = vld [vmem:[%s3470_s6 + $0x3e88] sm:$0xff] }
 0x163   : > { %879 = vst [vmem:[%s3475_s7 + $0xa90] sm:$0xff] %v878_v18  ;;  %v1006_v18 = vld [vmem:[%s3470_s6 + $0x3e90] sm:$0xff] }
 0x164   : > { %881 = vst [vmem:[%s3475_s7 + $0xa98] sm:$0xff] %v880_v19  ;;  %v1008_v19 = vld [vmem:[%s3470_s6 + $0x3e98] sm:$0xff] }
 0x165   : > { %883 = vst [vmem:[%s3475_s7 + $0xaa0] sm:$0xff] %v882_v20  ;;  %v1010_v20 = vld [vmem:[%s3470_s6 + $0x3ea0] sm:$0xff] }
 0x166   : > { %885 = vst [vmem:[%s3475_s7 + $0xaa8] sm:$0xff] %v884_v21  ;;  %v1012_v21 = vld [vmem:[%s3470_s6 + $0x3f48] sm:$0xff] }
 0x167   : > { %887 = vst [vmem:[%s3475_s7 + $0xab0] sm:$0xff] %v886_v22  ;;  %v1014_v22 = vld [vmem:[%s3470_s6 + $0x3f50] sm:$0xff] }
 0x168   : > { %889 = vst [vmem:[%s3475_s7 + $0xab8] sm:$0xff] %v888_v23  ;;  %v1016_v23 = vld [vmem:[%s3470_s6 + $0x3f58] sm:$0xff] }
 0x169   : > { %891 = vst [vmem:[%s3475_s7 + $0xac0] sm:$0xff] %v890_v24  ;;  %v1018_v24 = vld [vmem:[%s3470_s6 + $0x3f60] sm:$0xff] }
 0x16a   : > { %893 = vst [vmem:[%s3475_s7 + $0xac8] sm:$0xff] %v892_v25  ;;  %v1020_v25 = vld [vmem:[%s3470_s6 + $0x3f68] sm:$0xff] }
 0x16b   : > { %895 = vst [vmem:[%s3475_s7 + $0xad0] sm:$0xff] %v894_v26  ;;  %v1022_v26 = vld [vmem:[%s3470_s6 + $0x4010] sm:$0xff] }
 0x16c   : > { %897 = vst [vmem:[%s3475_s7 + $0xad8] sm:$0xff] %v896_v27  ;;  %v1024_v27 = vld [vmem:[%s3470_s6 + $0x4018] sm:$0xff] }
 0x16d   : > { %899 = vst [vmem:[%s3475_s7 + $0xae0] sm:$0xff] %v898_v28  ;;  %v1026_v28 = vld [vmem:[%s3470_s6 + $0x4020] sm:$0xff] }
 0x16e   : > { %901 = vst [vmem:[%s3475_s7 + $0xae8] sm:$0xff] %v900_v29  ;;  %v1028_v29 = vld [vmem:[%s3470_s6 + $0x4028] sm:$0xff] }
 0x16f   : > { %903 = vst [vmem:[%s3475_s7 + $0xaf0] sm:$0xff] %v902_v30  ;;  %v1030_v30 = vld [vmem:[%s3470_s6 + $0x4030] sm:$0xff] }
 0x170   : > { %905 = vst [vmem:[%s3475_s7 + $0xaf8] sm:$0xff] %v904_v31  ;;  %v1032_v31 = vld [vmem:[%s3470_s6 + $0x40d8] sm:$0xff] }
 0x171   : > { %907 = vst [vmem:[%s3475_s7 + $0xb00] sm:$0xff] %v906_v32  ;;  %v1034_v32 = vld [vmem:[%s3470_s6 + $0x40e0] sm:$0xff] }
 0x172   : > { %909 = vst [vmem:[%s3475_s7 + $0xb08] sm:$0xff] %v908_v33  ;;  %v1036_v33 = vld [vmem:[%s3470_s6 + $0x40e8] sm:$0xff] }
 0x173   : > { %911 = vst [vmem:[%s3475_s7 + $0xb10] sm:$0xff] %v910_v34  ;;  %v1038_v34 = vld [vmem:[%s3470_s6 + $0x40f0] sm:$0xff] }
 0x174   : > { %913 = vst [vmem:[%s3475_s7 + $0xb18] sm:$0xff] %v912_v35  ;;  %v1040_v35 = vld [vmem:[%s3470_s6 + $0x40f8] sm:$0xff] }
 0x175   : > { %915 = vst [vmem:[%s3475_s7 + $0xb20] sm:$0xff] %v914_v36  ;;  %v1042_v36 = vld [vmem:[%s3470_s6 + $0x41a0] sm:$0xff] }
 0x176   : > { %917 = vst [vmem:[%s3475_s7 + $0xb28] sm:$0xff] %v916_v37  ;;  %v1044_v37 = vld [vmem:[%s3470_s6 + $0x41a8] sm:$0xff] }
 0x177   : > { %919 = vst [vmem:[%s3475_s7 + $0xb30] sm:$0xff] %v918_v38  ;;  %v1046_v38 = vld [vmem:[%s3470_s6 + $0x41b0] sm:$0xff] }
 0x178   : > { %921 = vst [vmem:[%s3475_s7 + $0xb38] sm:$0xff] %v920_v39  ;;  %v1048_v39 = vld [vmem:[%s3470_s6 + $0x41b8] sm:$0xff] }
 0x179   : > { %923 = vst [vmem:[%s3475_s7 + $0xb40] sm:$0xff] %v922_v40  ;;  %v1050_v40 = vld [vmem:[%s3470_s6 + $0x41c0] sm:$0xff] }
 0x17a   : > { %925 = vst [vmem:[%s3475_s7 + $0xb48] sm:$0xff] %v924_v41  ;;  %v1052_v41 = vld [vmem:[%s3470_s6 + $0x4268] sm:$0xff] }
 0x17b   : > { %927 = vst [vmem:[%s3475_s7 + $0xb50] sm:$0xff] %v926_v42  ;;  %v1054_v42 = vld [vmem:[%s3470_s6 + $0x4270] sm:$0xff] }
 0x17c   : > { %929 = vst [vmem:[%s3475_s7 + $0xb58] sm:$0xff] %v928_v43  ;;  %v1056_v43 = vld [vmem:[%s3470_s6 + $0x4278] sm:$0xff] }
 0x17d   : > { %931 = vst [vmem:[%s3475_s7 + $0xb60] sm:$0xff] %v930_v44  ;;  %v1058_v44 = vld [vmem:[%s3470_s6 + $0x4280] sm:$0xff] }
 0x17e   : > { %933 = vst [vmem:[%s3475_s7 + $0xb68] sm:$0xff] %v932_v45  ;;  %v1060_v45 = vld [vmem:[%s3470_s6 + $0x4288] sm:$0xff] }
 0x17f   : > { %935 = vst [vmem:[%s3475_s7 + $0xb70] sm:$0xff] %v934_v46  ;;  %v1062_v46 = vld [vmem:[%s3470_s6 + $0x4330] sm:$0xff] }
 0x180   : > { %937 = vst [vmem:[%s3475_s7 + $0xb78] sm:$0xff] %v936_v47  ;;  %v1064_v47 = vld [vmem:[%s3470_s6 + $0x4338] sm:$0xff] }
 0x181   : > { %939 = vst [vmem:[%s3475_s7 + $0xb80] sm:$0xff] %v938_v48  ;;  %v1066_v48 = vld [vmem:[%s3470_s6 + $0x4340] sm:$0xff] }
 0x182   : > { %941 = vst [vmem:[%s3475_s7 + $0xb88] sm:$0xff] %v940_v49  ;;  %v1068_v49 = vld [vmem:[%s3470_s6 + $0x4348] sm:$0xff] }
 0x183   : > { %943 = vst [vmem:[%s3475_s7 + $0xb90] sm:$0xff] %v942_v50  ;;  %v1070_v50 = vld [vmem:[%s3470_s6 + $0x4350] sm:$0xff] }
 0x184   : > { %945 = vst [vmem:[%s3475_s7 + $0xb98] sm:$0xff] %v944_v51  ;;  %v1072_v51 = vld [vmem:[%s3470_s6 + $0x43f8] sm:$0xff] }
 0x185   : > { %947 = vst [vmem:[%s3475_s7 + $0xba0] sm:$0xff] %v946_v52  ;;  %v1074_v52 = vld [vmem:[%s3470_s6 + $0x4400] sm:$0xff] }
 0x186   : > { %949 = vst [vmem:[%s3475_s7 + $0xba8] sm:$0xff] %v948_v53  ;;  %v1076_v53 = vld [vmem:[%s3470_s6 + $0x4408] sm:$0xff] }
 0x187   : > { %951 = vst [vmem:[%s3475_s7 + $0xbb0] sm:$0xff] %v950_v54  ;;  %v1078_v54 = vld [vmem:[%s3470_s6 + $0x4410] sm:$0xff] }
 0x188   : > { %953 = vst [vmem:[%s3475_s7 + $0xbb8] sm:$0xff] %v952_v55  ;;  %v1080_v55 = vld [vmem:[%s3470_s6 + $0x4418] sm:$0xff] }
 0x189   : > { %955 = vst [vmem:[%s3475_s7 + $0xbc0] sm:$0xff] %v954_v56  ;;  %v1082_v56 = vld [vmem:[%s3470_s6 + $0x44c0] sm:$0xff] }
 0x18a   : > { %957 = vst [vmem:[%s3475_s7 + $0xbc8] sm:$0xff] %v956_v57  ;;  %v1084_v57 = vld [vmem:[%s3470_s6 + $0x44c8] sm:$0xff] }
 0x18b   : > { %959 = vst [vmem:[%s3475_s7 + $0xbd0] sm:$0xff] %v958_v58  ;;  %v1086_v58 = vld [vmem:[%s3470_s6 + $0x44d0] sm:$0xff] }
 0x18c   : > { %961 = vst [vmem:[%s3475_s7 + $0xbd8] sm:$0xff] %v960_v59  ;;  %v1088_v59 = vld [vmem:[%s3470_s6 + $0x44d8] sm:$0xff] }
 0x18d   : > { %963 = vst [vmem:[%s3475_s7 + $0xbe0] sm:$0xff] %v962_v60  ;;  %v1090_v60 = vld [vmem:[%s3470_s6 + $0x44e0] sm:$0xff] }
 0x18e   : > { %965 = vst [vmem:[%s3475_s7 + $0xbe8] sm:$0xff] %v964_v61  ;;  %v1092_v61 = vld [vmem:[%s3470_s6 + $0x4588] sm:$0xff] }
 0x18f   : > { %967 = vst [vmem:[%s3475_s7 + $0xbf0] sm:$0xff] %v966_v62  ;;  %v1094_v62 = vld [vmem:[%s3470_s6 + $0x4590] sm:$0xff] }
 0x190   : > { %969 = vst [vmem:[%s3475_s7 + $0xbf8] sm:$0xff] %v968_v63  ;;  %v1096_v63 = vld [vmem:[%s3470_s6 + $0x4598] sm:$0xff] }
 0x191   : > { %971 = vst [vmem:[%s3475_s7 + $0xc00] sm:$0xff] %v970_v0  ;;  %v1098_v0 = vld [vmem:[%s3470_s6 + $0x45a0] sm:$0xff] }
 0x192   : > { %973 = vst [vmem:[%s3475_s7 + $0xc08] sm:$0xff] %v972_v1  ;;  %v1100_v1 = vld [vmem:[%s3470_s6 + $0x45a8] sm:$0xff] }
 0x193   : > { %975 = vst [vmem:[%s3475_s7 + $0xc10] sm:$0xff] %v974_v2  ;;  %v1102_v2 = vld [vmem:[%s3470_s6 + $0x4650] sm:$0xff] }
 0x194   : > { %977 = vst [vmem:[%s3475_s7 + $0xc18] sm:$0xff] %v976_v3  ;;  %v1104_v3 = vld [vmem:[%s3470_s6 + $0x4658] sm:$0xff] }
 0x195   : > { %979 = vst [vmem:[%s3475_s7 + $0xc20] sm:$0xff] %v978_v4  ;;  %v1106_v4 = vld [vmem:[%s3470_s6 + $0x4660] sm:$0xff] }
 0x196   : > { %981 = vst [vmem:[%s3475_s7 + $0xc28] sm:$0xff] %v980_v5  ;;  %v1108_v5 = vld [vmem:[%s3470_s6 + $0x4668] sm:$0xff] }
 0x197   : > { %983 = vst [vmem:[%s3475_s7 + $0xc30] sm:$0xff] %v982_v6  ;;  %v1110_v6 = vld [vmem:[%s3470_s6 + $0x4670] sm:$0xff] }
 0x198   : > { %985 = vst [vmem:[%s3475_s7 + $0xc38] sm:$0xff] %v984_v7  ;;  %v1112_v7 = vld [vmem:[%s3470_s6 + $0x4718] sm:$0xff] }
 0x199   : > { %987 = vst [vmem:[%s3475_s7 + $0xc40] sm:$0xff] %v986_v8  ;;  %v1114_v8 = vld [vmem:[%s3470_s6 + $0x4720] sm:$0xff] }
 0x19a   : > { %989 = vst [vmem:[%s3475_s7 + $0xc48] sm:$0xff] %v988_v9  ;;  %v1116_v9 = vld [vmem:[%s3470_s6 + $0x4728] sm:$0xff] }
 0x19b   : > { %991 = vst [vmem:[%s3475_s7 + $0xc50] sm:$0xff] %v990_v10  ;;  %v1118_v10 = vld [vmem:[%s3470_s6 + $0x4730] sm:$0xff] }
 0x19c   : > { %993 = vst [vmem:[%s3475_s7 + $0xc58] sm:$0xff] %v992_v11  ;;  %v1120_v11 = vld [vmem:[%s3470_s6 + $0x4738] sm:$0xff] }
 0x19d   : > { %995 = vst [vmem:[%s3475_s7 + $0xc60] sm:$0xff] %v994_v12  ;;  %v1122_v12 = vld [vmem:[%s3470_s6 + $0x47e0] sm:$0xff] }
 0x19e   : > { %997 = vst [vmem:[%s3475_s7 + $0xc68] sm:$0xff] %v996_v13  ;;  %v1124_v13 = vld [vmem:[%s3470_s6 + $0x47e8] sm:$0xff] }
 0x19f   : > { %999 = vst [vmem:[%s3475_s7 + $0xc70] sm:$0xff] %v998_v14  ;;  %v1126_v14 = vld [vmem:[%s3470_s6 + $0x47f0] sm:$0xff] }
 0x1a0   : > { %1001 = vst [vmem:[%s3475_s7 + $0xc78] sm:$0xff] %v1000_v15  ;;  %v1128_v15 = vld [vmem:[%s3470_s6 + $0x47f8] sm:$0xff] }
 0x1a1   : > { %1003 = vst [vmem:[%s3475_s7 + $0xc80] sm:$0xff] %v1002_v16  ;;  %v1130_v16 = vld [vmem:[%s3470_s6 + $0x4800] sm:$0xff] }
 0x1a2   : > { %1005 = vst [vmem:[%s3475_s7 + $0xc88] sm:$0xff] %v1004_v17  ;;  %v1132_v17 = vld [vmem:[%s3470_s6 + $0x48a8] sm:$0xff] }
 0x1a3   : > { %1007 = vst [vmem:[%s3475_s7 + $0xc90] sm:$0xff] %v1006_v18  ;;  %v1134_v18 = vld [vmem:[%s3470_s6 + $0x48b0] sm:$0xff] }
 0x1a4   : > { %1009 = vst [vmem:[%s3475_s7 + $0xc98] sm:$0xff] %v1008_v19  ;;  %v1136_v19 = vld [vmem:[%s3470_s6 + $0x48b8] sm:$0xff] }
 0x1a5   : > { %1011 = vst [vmem:[%s3475_s7 + $0xca0] sm:$0xff] %v1010_v20  ;;  %v1138_v20 = vld [vmem:[%s3470_s6 + $0x48c0] sm:$0xff] }
 0x1a6   : > { %1013 = vst [vmem:[%s3475_s7 + $0xca8] sm:$0xff] %v1012_v21  ;;  %v1140_v21 = vld [vmem:[%s3470_s6 + $0x48c8] sm:$0xff] }
 0x1a7   : > { %1015 = vst [vmem:[%s3475_s7 + $0xcb0] sm:$0xff] %v1014_v22  ;;  %v1142_v22 = vld [vmem:[%s3470_s6 + $0x4970] sm:$0xff] }
 0x1a8   : > { %1017 = vst [vmem:[%s3475_s7 + $0xcb8] sm:$0xff] %v1016_v23  ;;  %v1144_v23 = vld [vmem:[%s3470_s6 + $0x4978] sm:$0xff] }
 0x1a9   : > { %1019 = vst [vmem:[%s3475_s7 + $0xcc0] sm:$0xff] %v1018_v24  ;;  %v1146_v24 = vld [vmem:[%s3470_s6 + $0x4980] sm:$0xff] }
 0x1aa   : > { %1021 = vst [vmem:[%s3475_s7 + $0xcc8] sm:$0xff] %v1020_v25  ;;  %v1148_v25 = vld [vmem:[%s3470_s6 + $0x4988] sm:$0xff] }
 0x1ab   : > { %1023 = vst [vmem:[%s3475_s7 + $0xcd0] sm:$0xff] %v1022_v26  ;;  %v1150_v26 = vld [vmem:[%s3470_s6 + $0x4990] sm:$0xff] }
 0x1ac   : > { %1025 = vst [vmem:[%s3475_s7 + $0xcd8] sm:$0xff] %v1024_v27  ;;  %v1152_v27 = vld [vmem:[%s3470_s6 + $0x4a38] sm:$0xff] }
 0x1ad   : > { %1027 = vst [vmem:[%s3475_s7 + $0xce0] sm:$0xff] %v1026_v28  ;;  %v1154_v28 = vld [vmem:[%s3470_s6 + $0x4a40] sm:$0xff] }
 0x1ae   : > { %1029 = vst [vmem:[%s3475_s7 + $0xce8] sm:$0xff] %v1028_v29  ;;  %v1156_v29 = vld [vmem:[%s3470_s6 + $0x4a48] sm:$0xff] }
 0x1af   : > { %1031 = vst [vmem:[%s3475_s7 + $0xcf0] sm:$0xff] %v1030_v30  ;;  %v1158_v30 = vld [vmem:[%s3470_s6 + $0x4a50] sm:$0xff] }
 0x1b0   : > { %1033 = vst [vmem:[%s3475_s7 + $0xcf8] sm:$0xff] %v1032_v31  ;;  %v1160_v31 = vld [vmem:[%s3470_s6 + $0x4a58] sm:$0xff] }
 0x1b1   : > { %1035 = vst [vmem:[%s3475_s7 + $0xd00] sm:$0xff] %v1034_v32  ;;  %v1162_v32 = vld [vmem:[%s3470_s6 + $0x4b00] sm:$0xff] }
 0x1b2   : > { %1037 = vst [vmem:[%s3475_s7 + $0xd08] sm:$0xff] %v1036_v33  ;;  %v1164_v33 = vld [vmem:[%s3470_s6 + $0x4b08] sm:$0xff] }
 0x1b3   : > { %1039 = vst [vmem:[%s3475_s7 + $0xd10] sm:$0xff] %v1038_v34  ;;  %v1166_v34 = vld [vmem:[%s3470_s6 + $0x4b10] sm:$0xff] }
 0x1b4   : > { %1041 = vst [vmem:[%s3475_s7 + $0xd18] sm:$0xff] %v1040_v35  ;;  %v1168_v35 = vld [vmem:[%s3470_s6 + $0x4b18] sm:$0xff] }
 0x1b5   : > { %1043 = vst [vmem:[%s3475_s7 + $0xd20] sm:$0xff] %v1042_v36  ;;  %v1170_v36 = vld [vmem:[%s3470_s6 + $0x4b20] sm:$0xff] }
 0x1b6   : > { %1045 = vst [vmem:[%s3475_s7 + $0xd28] sm:$0xff] %v1044_v37  ;;  %v1172_v37 = vld [vmem:[%s3470_s6 + $0x4bc8] sm:$0xff] }
 0x1b7   : > { %1047 = vst [vmem:[%s3475_s7 + $0xd30] sm:$0xff] %v1046_v38  ;;  %v1174_v38 = vld [vmem:[%s3470_s6 + $0x4bd0] sm:$0xff] }
 0x1b8   : > { %1049 = vst [vmem:[%s3475_s7 + $0xd38] sm:$0xff] %v1048_v39  ;;  %v1176_v39 = vld [vmem:[%s3470_s6 + $0x4bd8] sm:$0xff] }
 0x1b9   : > { %1051 = vst [vmem:[%s3475_s7 + $0xd40] sm:$0xff] %v1050_v40  ;;  %v1178_v40 = vld [vmem:[%s3470_s6 + $0x4be0] sm:$0xff] }
 0x1ba   : > { %1053 = vst [vmem:[%s3475_s7 + $0xd48] sm:$0xff] %v1052_v41  ;;  %v1180_v41 = vld [vmem:[%s3470_s6 + $0x4be8] sm:$0xff] }
 0x1bb   : > { %1055 = vst [vmem:[%s3475_s7 + $0xd50] sm:$0xff] %v1054_v42  ;;  %v1182_v42 = vld [vmem:[%s3470_s6 + $0x4c90] sm:$0xff] }
 0x1bc   : > { %1057 = vst [vmem:[%s3475_s7 + $0xd58] sm:$0xff] %v1056_v43  ;;  %v1184_v43 = vld [vmem:[%s3470_s6 + $0x4c98] sm:$0xff] }
 0x1bd   : > { %1059 = vst [vmem:[%s3475_s7 + $0xd60] sm:$0xff] %v1058_v44  ;;  %v1186_v44 = vld [vmem:[%s3470_s6 + $0x4ca0] sm:$0xff] }
 0x1be   : > { %1061 = vst [vmem:[%s3475_s7 + $0xd68] sm:$0xff] %v1060_v45  ;;  %v1188_v45 = vld [vmem:[%s3470_s6 + $0x4ca8] sm:$0xff] }
 0x1bf   : > { %1063 = vst [vmem:[%s3475_s7 + $0xd70] sm:$0xff] %v1062_v46  ;;  %v1190_v46 = vld [vmem:[%s3470_s6 + $0x4cb0] sm:$0xff] }
 0x1c0   : > { %1065 = vst [vmem:[%s3475_s7 + $0xd78] sm:$0xff] %v1064_v47  ;;  %v1192_v47 = vld [vmem:[%s3470_s6 + $0x4d58] sm:$0xff] }
 0x1c1   : > { %1067 = vst [vmem:[%s3475_s7 + $0xd80] sm:$0xff] %v1066_v48  ;;  %v1194_v48 = vld [vmem:[%s3470_s6 + $0x4d60] sm:$0xff] }
 0x1c2   : > { %1069 = vst [vmem:[%s3475_s7 + $0xd88] sm:$0xff] %v1068_v49  ;;  %v1196_v49 = vld [vmem:[%s3470_s6 + $0x4d68] sm:$0xff] }
 0x1c3   : > { %1071 = vst [vmem:[%s3475_s7 + $0xd90] sm:$0xff] %v1070_v50  ;;  %v1198_v50 = vld [vmem:[%s3470_s6 + $0x4d70] sm:$0xff] }
 0x1c4   : > { %1073 = vst [vmem:[%s3475_s7 + $0xd98] sm:$0xff] %v1072_v51  ;;  %v1200_v51 = vld [vmem:[%s3470_s6 + $0x4d78] sm:$0xff] }
 0x1c5   : > { %1075 = vst [vmem:[%s3475_s7 + $0xda0] sm:$0xff] %v1074_v52  ;;  %v1202_v52 = vld [vmem:[%s3470_s6 + $0x4e20] sm:$0xff] }
 0x1c6   : > { %1077 = vst [vmem:[%s3475_s7 + $0xda8] sm:$0xff] %v1076_v53  ;;  %v1204_v53 = vld [vmem:[%s3470_s6 + $0x4e28] sm:$0xff] }
 0x1c7   : > { %1079 = vst [vmem:[%s3475_s7 + $0xdb0] sm:$0xff] %v1078_v54  ;;  %v1206_v54 = vld [vmem:[%s3470_s6 + $0x4e30] sm:$0xff] }
 0x1c8   : > { %1081 = vst [vmem:[%s3475_s7 + $0xdb8] sm:$0xff] %v1080_v55  ;;  %v1208_v55 = vld [vmem:[%s3470_s6 + $0x4e38] sm:$0xff] }
 0x1c9   : > { %1083 = vst [vmem:[%s3475_s7 + $0xdc0] sm:$0xff] %v1082_v56  ;;  %v1210_v56 = vld [vmem:[%s3470_s6 + $0x4e40] sm:$0xff] }
 0x1ca   : > { %1085 = vst [vmem:[%s3475_s7 + $0xdc8] sm:$0xff] %v1084_v57  ;;  %v1212_v57 = vld [vmem:[%s3470_s6 + $0x4ee8] sm:$0xff] }
 0x1cb   : > { %1087 = vst [vmem:[%s3475_s7 + $0xdd0] sm:$0xff] %v1086_v58  ;;  %v1214_v58 = vld [vmem:[%s3470_s6 + $0x4ef0] sm:$0xff] }
 0x1cc   : > { %1089 = vst [vmem:[%s3475_s7 + $0xdd8] sm:$0xff] %v1088_v59  ;;  %v1216_v59 = vld [vmem:[%s3470_s6 + $0x4ef8] sm:$0xff] }
 0x1cd   : > { %1091 = vst [vmem:[%s3475_s7 + $0xde0] sm:$0xff] %v1090_v60  ;;  %v1218_v60 = vld [vmem:[%s3470_s6 + $0x4f00] sm:$0xff] }
 0x1ce   : > { %1093 = vst [vmem:[%s3475_s7 + $0xde8] sm:$0xff] %v1092_v61  ;;  %v1220_v61 = vld [vmem:[%s3470_s6 + $0x4f08] sm:$0xff] }
 0x1cf   : > { %1095 = vst [vmem:[%s3475_s7 + $0xdf0] sm:$0xff] %v1094_v62  ;;  %v1222_v62 = vld [vmem:[%s3470_s6 + $0x4fb0] sm:$0xff] }
 0x1d0   : > { %1097 = vst [vmem:[%s3475_s7 + $0xdf8] sm:$0xff] %v1096_v63  ;;  %v1224_v63 = vld [vmem:[%s3470_s6 + $0x4fb8] sm:$0xff] }
 0x1d1   : > { %1099 = vst [vmem:[%s3475_s7 + $0xe00] sm:$0xff] %v1098_v0  ;;  %v1226_v0 = vld [vmem:[%s3470_s6 + $0x4fc0] sm:$0xff] }
 0x1d2   : > { %1101 = vst [vmem:[%s3475_s7 + $0xe08] sm:$0xff] %v1100_v1  ;;  %v1228_v1 = vld [vmem:[%s3470_s6 + $0x4fc8] sm:$0xff] }
 0x1d3   : > { %1103 = vst [vmem:[%s3475_s7 + $0xe10] sm:$0xff] %v1102_v2  ;;  %v1230_v2 = vld [vmem:[%s3470_s6 + $0x4fd0] sm:$0xff] }
 0x1d4   : > { %1105 = vst [vmem:[%s3475_s7 + $0xe18] sm:$0xff] %v1104_v3  ;;  %v1232_v3 = vld [vmem:[%s3470_s6 + $0x5078] sm:$0xff] }
 0x1d5   : > { %1107 = vst [vmem:[%s3475_s7 + $0xe20] sm:$0xff] %v1106_v4  ;;  %v1234_v4 = vld [vmem:[%s3470_s6 + $0x5080] sm:$0xff] }
 0x1d6   : > { %1109 = vst [vmem:[%s3475_s7 + $0xe28] sm:$0xff] %v1108_v5  ;;  %v1236_v5 = vld [vmem:[%s3470_s6 + $0x5088] sm:$0xff] }
 0x1d7   : > { %1111 = vst [vmem:[%s3475_s7 + $0xe30] sm:$0xff] %v1110_v6  ;;  %v1238_v6 = vld [vmem:[%s3470_s6 + $0x5090] sm:$0xff] }
 0x1d8   : > { %1113 = vst [vmem:[%s3475_s7 + $0xe38] sm:$0xff] %v1112_v7  ;;  %v1240_v7 = vld [vmem:[%s3470_s6 + $0x5098] sm:$0xff] }
 0x1d9   : > { %1115 = vst [vmem:[%s3475_s7 + $0xe40] sm:$0xff] %v1114_v8  ;;  %v1242_v8 = vld [vmem:[%s3470_s6 + $0x5140] sm:$0xff] }
 0x1da   : > { %1117 = vst [vmem:[%s3475_s7 + $0xe48] sm:$0xff] %v1116_v9  ;;  %v1244_v9 = vld [vmem:[%s3470_s6 + $0x5148] sm:$0xff] }
 0x1db   : > { %1119 = vst [vmem:[%s3475_s7 + $0xe50] sm:$0xff] %v1118_v10  ;;  %v1246_v10 = vld [vmem:[%s3470_s6 + $0x5150] sm:$0xff] }
 0x1dc   : > { %1121 = vst [vmem:[%s3475_s7 + $0xe58] sm:$0xff] %v1120_v11  ;;  %v1248_v11 = vld [vmem:[%s3470_s6 + $0x5158] sm:$0xff] }
 0x1dd   : > { %1123 = vst [vmem:[%s3475_s7 + $0xe60] sm:$0xff] %v1122_v12  ;;  %v1250_v12 = vld [vmem:[%s3470_s6 + $0x5160] sm:$0xff] }
 0x1de   : > { %1125 = vst [vmem:[%s3475_s7 + $0xe68] sm:$0xff] %v1124_v13  ;;  %v1252_v13 = vld [vmem:[%s3470_s6 + $0x5208] sm:$0xff] }
 0x1df   : > { %1127 = vst [vmem:[%s3475_s7 + $0xe70] sm:$0xff] %v1126_v14  ;;  %v1254_v14 = vld [vmem:[%s3470_s6 + $0x5210] sm:$0xff] }
 0x1e0   : > { %1129 = vst [vmem:[%s3475_s7 + $0xe78] sm:$0xff] %v1128_v15  ;;  %v1256_v15 = vld [vmem:[%s3470_s6 + $0x5218] sm:$0xff] }
 0x1e1   : > { %1131 = vst [vmem:[%s3475_s7 + $0xe80] sm:$0xff] %v1130_v16  ;;  %v1258_v16 = vld [vmem:[%s3470_s6 + $0x5220] sm:$0xff] }
 0x1e2   : > { %1133 = vst [vmem:[%s3475_s7 + $0xe88] sm:$0xff] %v1132_v17  ;;  %v1260_v17 = vld [vmem:[%s3470_s6 + $0x5228] sm:$0xff] }
 0x1e3   : > { %1135 = vst [vmem:[%s3475_s7 + $0xe90] sm:$0xff] %v1134_v18  ;;  %v1262_v18 = vld [vmem:[%s3470_s6 + $0x52d0] sm:$0xff] }
 0x1e4   : > { %1137 = vst [vmem:[%s3475_s7 + $0xe98] sm:$0xff] %v1136_v19  ;;  %v1264_v19 = vld [vmem:[%s3470_s6 + $0x52d8] sm:$0xff] }
 0x1e5   : > { %1139 = vst [vmem:[%s3475_s7 + $0xea0] sm:$0xff] %v1138_v20  ;;  %v1266_v20 = vld [vmem:[%s3470_s6 + $0x52e0] sm:$0xff] }
 0x1e6   : > { %1141 = vst [vmem:[%s3475_s7 + $0xea8] sm:$0xff] %v1140_v21  ;;  %v1268_v21 = vld [vmem:[%s3470_s6 + $0x52e8] sm:$0xff] }
 0x1e7   : > { %1143 = vst [vmem:[%s3475_s7 + $0xeb0] sm:$0xff] %v1142_v22  ;;  %v1270_v22 = vld [vmem:[%s3470_s6 + $0x52f0] sm:$0xff] }
 0x1e8   : > { %1145 = vst [vmem:[%s3475_s7 + $0xeb8] sm:$0xff] %v1144_v23  ;;  %v1272_v23 = vld [vmem:[%s3470_s6 + $0x5398] sm:$0xff] }
 0x1e9   : > { %1147 = vst [vmem:[%s3475_s7 + $0xec0] sm:$0xff] %v1146_v24  ;;  %v1274_v24 = vld [vmem:[%s3470_s6 + $0x53a0] sm:$0xff] }
 0x1ea   : > { %1149 = vst [vmem:[%s3475_s7 + $0xec8] sm:$0xff] %v1148_v25  ;;  %v1276_v25 = vld [vmem:[%s3470_s6 + $0x53a8] sm:$0xff] }
 0x1eb   : > { %1151 = vst [vmem:[%s3475_s7 + $0xed0] sm:$0xff] %v1150_v26  ;;  %v1278_v26 = vld [vmem:[%s3470_s6 + $0x53b0] sm:$0xff] }
 0x1ec   : > { %1153 = vst [vmem:[%s3475_s7 + $0xed8] sm:$0xff] %v1152_v27  ;;  %v1280_v27 = vld [vmem:[%s3470_s6 + $0x53b8] sm:$0xff] }
 0x1ed   : > { %1155 = vst [vmem:[%s3475_s7 + $0xee0] sm:$0xff] %v1154_v28  ;;  %v1282_v28 = vld [vmem:[%s3470_s6 + $0x5460] sm:$0xff] }
 0x1ee   : > { %1157 = vst [vmem:[%s3475_s7 + $0xee8] sm:$0xff] %v1156_v29  ;;  %v1284_v29 = vld [vmem:[%s3470_s6 + $0x5468] sm:$0xff] }
 0x1ef   : > { %1159 = vst [vmem:[%s3475_s7 + $0xef0] sm:$0xff] %v1158_v30  ;;  %v1286_v30 = vld [vmem:[%s3470_s6 + $0x5470] sm:$0xff] }
 0x1f0   : > { %1161 = vst [vmem:[%s3475_s7 + $0xef8] sm:$0xff] %v1160_v31  ;;  %v1288_v31 = vld [vmem:[%s3470_s6 + $0x5478] sm:$0xff] }
 0x1f1   : > { %1163 = vst [vmem:[%s3475_s7 + $0xf00] sm:$0xff] %v1162_v32  ;;  %v1290_v32 = vld [vmem:[%s3470_s6 + $0x5480] sm:$0xff] }
 0x1f2   : > { %1165 = vst [vmem:[%s3475_s7 + $0xf08] sm:$0xff] %v1164_v33  ;;  %v1292_v33 = vld [vmem:[%s3470_s6 + $0x5528] sm:$0xff] }
 0x1f3   : > { %1167 = vst [vmem:[%s3475_s7 + $0xf10] sm:$0xff] %v1166_v34  ;;  %v1294_v34 = vld [vmem:[%s3470_s6 + $0x5530] sm:$0xff] }
 0x1f4   : > { %1169 = vst [vmem:[%s3475_s7 + $0xf18] sm:$0xff] %v1168_v35  ;;  %v1296_v35 = vld [vmem:[%s3470_s6 + $0x5538] sm:$0xff] }
 0x1f5   : > { %1171 = vst [vmem:[%s3475_s7 + $0xf20] sm:$0xff] %v1170_v36  ;;  %v1298_v36 = vld [vmem:[%s3470_s6 + $0x5540] sm:$0xff] }
 0x1f6   : > { %1173 = vst [vmem:[%s3475_s7 + $0xf28] sm:$0xff] %v1172_v37  ;;  %v1300_v37 = vld [vmem:[%s3470_s6 + $0x5548] sm:$0xff] }
 0x1f7   : > { %1175 = vst [vmem:[%s3475_s7 + $0xf30] sm:$0xff] %v1174_v38  ;;  %v1302_v38 = vld [vmem:[%s3470_s6 + $0x55f0] sm:$0xff] }
 0x1f8   : > { %1177 = vst [vmem:[%s3475_s7 + $0xf38] sm:$0xff] %v1176_v39  ;;  %v1304_v39 = vld [vmem:[%s3470_s6 + $0x55f8] sm:$0xff] }
 0x1f9   : > { %1179 = vst [vmem:[%s3475_s7 + $0xf40] sm:$0xff] %v1178_v40  ;;  %v1306_v40 = vld [vmem:[%s3470_s6 + $0x5600] sm:$0xff] }
 0x1fa   : > { %1181 = vst [vmem:[%s3475_s7 + $0xf48] sm:$0xff] %v1180_v41  ;;  %v1308_v41 = vld [vmem:[%s3470_s6 + $0x5608] sm:$0xff] }
 0x1fb   : > { %1183 = vst [vmem:[%s3475_s7 + $0xf50] sm:$0xff] %v1182_v42  ;;  %v1310_v42 = vld [vmem:[%s3470_s6 + $0x5610] sm:$0xff] }
 0x1fc   : > { %1185 = vst [vmem:[%s3475_s7 + $0xf58] sm:$0xff] %v1184_v43  ;;  %v1312_v43 = vld [vmem:[%s3470_s6 + $0x56b8] sm:$0xff] }
 0x1fd   : > { %1187 = vst [vmem:[%s3475_s7 + $0xf60] sm:$0xff] %v1186_v44  ;;  %v1314_v44 = vld [vmem:[%s3470_s6 + $0x56c0] sm:$0xff] }
 0x1fe   : > { %1189 = vst [vmem:[%s3475_s7 + $0xf68] sm:$0xff] %v1188_v45  ;;  %v1316_v45 = vld [vmem:[%s3470_s6 + $0x56c8] sm:$0xff] }
 0x1ff   : > { %1191 = vst [vmem:[%s3475_s7 + $0xf70] sm:$0xff] %v1190_v46  ;;  %v1318_v46 = vld [vmem:[%s3470_s6 + $0x56d0] sm:$0xff] }
 0x200   : > { %1193 = vst [vmem:[%s3475_s7 + $0xf78] sm:$0xff] %v1192_v47  ;;  %v1320_v47 = vld [vmem:[%s3470_s6 + $0x56d8] sm:$0xff] }
 0x201   : > { %1195 = vst [vmem:[%s3475_s7 + $0xf80] sm:$0xff] %v1194_v48  ;;  %v1322_v48 = vld [vmem:[%s3470_s6 + $0x5780] sm:$0xff] }
 0x202   : > { %1197 = vst [vmem:[%s3475_s7 + $0xf88] sm:$0xff] %v1196_v49  ;;  %v1324_v49 = vld [vmem:[%s3470_s6 + $0x5788] sm:$0xff] }
 0x203   : > { %1199 = vst [vmem:[%s3475_s7 + $0xf90] sm:$0xff] %v1198_v50  ;;  %v1326_v50 = vld [vmem:[%s3470_s6 + $0x5790] sm:$0xff] }
 0x204   : > { %1201 = vst [vmem:[%s3475_s7 + $0xf98] sm:$0xff] %v1200_v51  ;;  %v1328_v51 = vld [vmem:[%s3470_s6 + $0x5798] sm:$0xff] }
 0x205   : > { %1203 = vst [vmem:[%s3475_s7 + $0xfa0] sm:$0xff] %v1202_v52  ;;  %v1330_v52 = vld [vmem:[%s3470_s6 + $0x57a0] sm:$0xff] }
 0x206   : > { %1205 = vst [vmem:[%s3475_s7 + $0xfa8] sm:$0xff] %v1204_v53  ;;  %v1332_v53 = vld [vmem:[%s3470_s6 + $0x5848] sm:$0xff] }
 0x207   : > { %1207 = vst [vmem:[%s3475_s7 + $0xfb0] sm:$0xff] %v1206_v54  ;;  %v1334_v54 = vld [vmem:[%s3470_s6 + $0x5850] sm:$0xff] }
 0x208   : > { %1209 = vst [vmem:[%s3475_s7 + $0xfb8] sm:$0xff] %v1208_v55  ;;  %v1336_v55 = vld [vmem:[%s3470_s6 + $0x5858] sm:$0xff] }
 0x209   : > { %1211 = vst [vmem:[%s3475_s7 + $0xfc0] sm:$0xff] %v1210_v56  ;;  %v1338_v56 = vld [vmem:[%s3470_s6 + $0x5860] sm:$0xff] }
 0x20a   : > { %1213 = vst [vmem:[%s3475_s7 + $0xfc8] sm:$0xff] %v1212_v57  ;;  %v1340_v57 = vld [vmem:[%s3470_s6 + $0x5868] sm:$0xff] }
 0x20b   : > { %1215 = vst [vmem:[%s3475_s7 + $0xfd0] sm:$0xff] %v1214_v58  ;;  %v1342_v58 = vld [vmem:[%s3470_s6 + $0x5910] sm:$0xff] }
 0x20c   : > { %1217 = vst [vmem:[%s3475_s7 + $0xfd8] sm:$0xff] %v1216_v59  ;;  %v1344_v59 = vld [vmem:[%s3470_s6 + $0x5918] sm:$0xff] }
 0x20d   : > { %1219 = vst [vmem:[%s3475_s7 + $0xfe0] sm:$0xff] %v1218_v60  ;;  %v1346_v60 = vld [vmem:[%s3470_s6 + $0x5920] sm:$0xff] }
 0x20e   : > { %1221 = vst [vmem:[%s3475_s7 + $0xfe8] sm:$0xff] %v1220_v61  ;;  %v1348_v61 = vld [vmem:[%s3470_s6 + $0x5928] sm:$0xff] }
 0x20f   : > { %1223 = vst [vmem:[%s3475_s7 + $0xff0] sm:$0xff] %v1222_v62  ;;  %v1350_v62 = vld [vmem:[%s3470_s6 + $0x5930] sm:$0xff] }
 0x210   : > { %1225 = vst [vmem:[%s3475_s7 + $0xff8] sm:$0xff] %v1224_v63  ;;  %v1352_v63 = vld [vmem:[%s3470_s6 + $0x59d8] sm:$0xff] }
 0x211   : > { %1227 = vst [vmem:[%s3475_s7 + $0x1000] sm:$0xff] %v1226_v0  ;;  %v1354_v0 = vld [vmem:[%s3470_s6 + $0x59e0] sm:$0xff] }
 0x212   : > { %1229 = vst [vmem:[%s3475_s7 + $0x1008] sm:$0xff] %v1228_v1  ;;  %v1356_v1 = vld [vmem:[%s3470_s6 + $0x59e8] sm:$0xff] }
 0x213   : > { %1231 = vst [vmem:[%s3475_s7 + $0x1010] sm:$0xff] %v1230_v2  ;;  %v1358_v2 = vld [vmem:[%s3470_s6 + $0x59f0] sm:$0xff] }
 0x214   : > { %1233 = vst [vmem:[%s3475_s7 + $0x1018] sm:$0xff] %v1232_v3  ;;  %v1360_v3 = vld [vmem:[%s3470_s6 + $0x59f8] sm:$0xff] }
 0x215   : > { %1235 = vst [vmem:[%s3475_s7 + $0x1020] sm:$0xff] %v1234_v4  ;;  %v1362_v4 = vld [vmem:[%s3470_s6 + $0x5aa0] sm:$0xff] }
 0x216   : > { %1237 = vst [vmem:[%s3475_s7 + $0x1028] sm:$0xff] %v1236_v5  ;;  %v1364_v5 = vld [vmem:[%s3470_s6 + $0x5aa8] sm:$0xff] }
 0x217   : > { %1239 = vst [vmem:[%s3475_s7 + $0x1030] sm:$0xff] %v1238_v6  ;;  %v1366_v6 = vld [vmem:[%s3470_s6 + $0x5ab0] sm:$0xff] }
 0x218   : > { %1241 = vst [vmem:[%s3475_s7 + $0x1038] sm:$0xff] %v1240_v7  ;;  %v1368_v7 = vld [vmem:[%s3470_s6 + $0x5ab8] sm:$0xff] }
 0x219   : > { %1243 = vst [vmem:[%s3475_s7 + $0x1040] sm:$0xff] %v1242_v8  ;;  %v1370_v8 = vld [vmem:[%s3470_s6 + $0x5ac0] sm:$0xff] }
 0x21a   : > { %1245 = vst [vmem:[%s3475_s7 + $0x1048] sm:$0xff] %v1244_v9  ;;  %v1372_v9 = vld [vmem:[%s3470_s6 + $0x5b68] sm:$0xff] }
 0x21b   : > { %1247 = vst [vmem:[%s3475_s7 + $0x1050] sm:$0xff] %v1246_v10  ;;  %v1374_v10 = vld [vmem:[%s3470_s6 + $0x5b70] sm:$0xff] }
 0x21c   : > { %1249 = vst [vmem:[%s3475_s7 + $0x1058] sm:$0xff] %v1248_v11  ;;  %v1376_v11 = vld [vmem:[%s3470_s6 + $0x5b78] sm:$0xff] }
 0x21d   : > { %1251 = vst [vmem:[%s3475_s7 + $0x1060] sm:$0xff] %v1250_v12  ;;  %v1378_v12 = vld [vmem:[%s3470_s6 + $0x5b80] sm:$0xff] }
 0x21e   : > { %1253 = vst [vmem:[%s3475_s7 + $0x1068] sm:$0xff] %v1252_v13  ;;  %v1380_v13 = vld [vmem:[%s3470_s6 + $0x5b88] sm:$0xff] }
 0x21f   : > { %1255 = vst [vmem:[%s3475_s7 + $0x1070] sm:$0xff] %v1254_v14  ;;  %v1382_v14 = vld [vmem:[%s3470_s6 + $0x5c30] sm:$0xff] }
 0x220   : > { %1257 = vst [vmem:[%s3475_s7 + $0x1078] sm:$0xff] %v1256_v15  ;;  %v1384_v15 = vld [vmem:[%s3470_s6 + $0x5c38] sm:$0xff] }
 0x221   : > { %1259 = vst [vmem:[%s3475_s7 + $0x1080] sm:$0xff] %v1258_v16  ;;  %v1386_v16 = vld [vmem:[%s3470_s6 + $0x5c40] sm:$0xff] }
 0x222   : > { %1261 = vst [vmem:[%s3475_s7 + $0x1088] sm:$0xff] %v1260_v17  ;;  %v1388_v17 = vld [vmem:[%s3470_s6 + $0x5c48] sm:$0xff] }
 0x223   : > { %1263 = vst [vmem:[%s3475_s7 + $0x1090] sm:$0xff] %v1262_v18  ;;  %v1390_v18 = vld [vmem:[%s3470_s6 + $0x5c50] sm:$0xff] }
 0x224   : > { %1265 = vst [vmem:[%s3475_s7 + $0x1098] sm:$0xff] %v1264_v19  ;;  %v1392_v19 = vld [vmem:[%s3470_s6 + $0x5cf8] sm:$0xff] }
 0x225   : > { %1267 = vst [vmem:[%s3475_s7 + $0x10a0] sm:$0xff] %v1266_v20  ;;  %v1394_v20 = vld [vmem:[%s3470_s6 + $0x5d00] sm:$0xff] }
 0x226   : > { %1269 = vst [vmem:[%s3475_s7 + $0x10a8] sm:$0xff] %v1268_v21  ;;  %v1396_v21 = vld [vmem:[%s3470_s6 + $0x5d08] sm:$0xff] }
 0x227   : > { %1271 = vst [vmem:[%s3475_s7 + $0x10b0] sm:$0xff] %v1270_v22  ;;  %v1398_v22 = vld [vmem:[%s3470_s6 + $0x5d10] sm:$0xff] }
 0x228   : > { %1273 = vst [vmem:[%s3475_s7 + $0x10b8] sm:$0xff] %v1272_v23  ;;  %v1400_v23 = vld [vmem:[%s3470_s6 + $0x5d18] sm:$0xff] }
 0x229   : > { %1275 = vst [vmem:[%s3475_s7 + $0x10c0] sm:$0xff] %v1274_v24  ;;  %v1402_v24 = vld [vmem:[%s3470_s6 + $0x5dc0] sm:$0xff] }
 0x22a   : > { %1277 = vst [vmem:[%s3475_s7 + $0x10c8] sm:$0xff] %v1276_v25  ;;  %v1404_v25 = vld [vmem:[%s3470_s6 + $0x5dc8] sm:$0xff] }
 0x22b   : > { %1279 = vst [vmem:[%s3475_s7 + $0x10d0] sm:$0xff] %v1278_v26  ;;  %v1406_v26 = vld [vmem:[%s3470_s6 + $0x5dd0] sm:$0xff] }
 0x22c   : > { %1281 = vst [vmem:[%s3475_s7 + $0x10d8] sm:$0xff] %v1280_v27  ;;  %v1408_v27 = vld [vmem:[%s3470_s6 + $0x5dd8] sm:$0xff] }
 0x22d   : > { %1283 = vst [vmem:[%s3475_s7 + $0x10e0] sm:$0xff] %v1282_v28  ;;  %v1410_v28 = vld [vmem:[%s3470_s6 + $0x5de0] sm:$0xff] }
 0x22e   : > { %1285 = vst [vmem:[%s3475_s7 + $0x10e8] sm:$0xff] %v1284_v29  ;;  %v1412_v29 = vld [vmem:[%s3470_s6 + $0x5e88] sm:$0xff] }
 0x22f   : > { %1287 = vst [vmem:[%s3475_s7 + $0x10f0] sm:$0xff] %v1286_v30  ;;  %v1414_v30 = vld [vmem:[%s3470_s6 + $0x5e90] sm:$0xff] }
 0x230   : > { %1289 = vst [vmem:[%s3475_s7 + $0x10f8] sm:$0xff] %v1288_v31  ;;  %v1416_v31 = vld [vmem:[%s3470_s6 + $0x5e98] sm:$0xff] }
 0x231   : > { %1291 = vst [vmem:[%s3475_s7 + $0x1100] sm:$0xff] %v1290_v32  ;;  %v1418_v32 = vld [vmem:[%s3470_s6 + $0x5ea0] sm:$0xff] }
 0x232   : > { %1293 = vst [vmem:[%s3475_s7 + $0x1108] sm:$0xff] %v1292_v33  ;;  %v1420_v33 = vld [vmem:[%s3470_s6 + $0x5ea8] sm:$0xff] }
 0x233   : > { %1295 = vst [vmem:[%s3475_s7 + $0x1110] sm:$0xff] %v1294_v34  ;;  %v1422_v34 = vld [vmem:[%s3470_s6 + $0x5f50] sm:$0xff] }
 0x234   : > { %1297 = vst [vmem:[%s3475_s7 + $0x1118] sm:$0xff] %v1296_v35  ;;  %v1424_v35 = vld [vmem:[%s3470_s6 + $0x5f58] sm:$0xff] }
 0x235   : > { %1299 = vst [vmem:[%s3475_s7 + $0x1120] sm:$0xff] %v1298_v36  ;;  %v1426_v36 = vld [vmem:[%s3470_s6 + $0x5f60] sm:$0xff] }
 0x236   : > { %1301 = vst [vmem:[%s3475_s7 + $0x1128] sm:$0xff] %v1300_v37  ;;  %v1428_v37 = vld [vmem:[%s3470_s6 + $0x5f68] sm:$0xff] }
 0x237   : > { %1303 = vst [vmem:[%s3475_s7 + $0x1130] sm:$0xff] %v1302_v38  ;;  %v1430_v38 = vld [vmem:[%s3470_s6 + $0x5f70] sm:$0xff] }
 0x238   : > { %1305 = vst [vmem:[%s3475_s7 + $0x1138] sm:$0xff] %v1304_v39  ;;  %v1432_v39 = vld [vmem:[%s3470_s6 + $0x6018] sm:$0xff] }
 0x239   : > { %1307 = vst [vmem:[%s3475_s7 + $0x1140] sm:$0xff] %v1306_v40  ;;  %v1434_v40 = vld [vmem:[%s3470_s6 + $0x6020] sm:$0xff] }
 0x23a   : > { %1309 = vst [vmem:[%s3475_s7 + $0x1148] sm:$0xff] %v1308_v41  ;;  %v1436_v41 = vld [vmem:[%s3470_s6 + $0x6028] sm:$0xff] }
 0x23b   : > { %1311 = vst [vmem:[%s3475_s7 + $0x1150] sm:$0xff] %v1310_v42  ;;  %v1438_v42 = vld [vmem:[%s3470_s6 + $0x6030] sm:$0xff] }
 0x23c   : > { %1313 = vst [vmem:[%s3475_s7 + $0x1158] sm:$0xff] %v1312_v43  ;;  %v1440_v43 = vld [vmem:[%s3470_s6 + $0x6038] sm:$0xff] }
 0x23d   : > { %1315 = vst [vmem:[%s3475_s7 + $0x1160] sm:$0xff] %v1314_v44  ;;  %v1442_v44 = vld [vmem:[%s3470_s6 + $0x60e0] sm:$0xff] }
 0x23e   : > { %1317 = vst [vmem:[%s3475_s7 + $0x1168] sm:$0xff] %v1316_v45  ;;  %v1444_v45 = vld [vmem:[%s3470_s6 + $0x60e8] sm:$0xff] }
 0x23f   : > { %1319 = vst [vmem:[%s3475_s7 + $0x1170] sm:$0xff] %v1318_v46  ;;  %v1446_v46 = vld [vmem:[%s3470_s6 + $0x60f0] sm:$0xff] }
 0x240   : > { %1321 = vst [vmem:[%s3475_s7 + $0x1178] sm:$0xff] %v1320_v47  ;;  %v1448_v47 = vld [vmem:[%s3470_s6 + $0x60f8] sm:$0xff] }
 0x241   : > { %1323 = vst [vmem:[%s3475_s7 + $0x1180] sm:$0xff] %v1322_v48  ;;  %v1450_v48 = vld [vmem:[%s3470_s6 + $0x6100] sm:$0xff] }
 0x242   : > { %1325 = vst [vmem:[%s3475_s7 + $0x1188] sm:$0xff] %v1324_v49  ;;  %v1452_v49 = vld [vmem:[%s3470_s6 + $0x61a8] sm:$0xff] }
 0x243   : > { %1327 = vst [vmem:[%s3475_s7 + $0x1190] sm:$0xff] %v1326_v50  ;;  %v1454_v50 = vld [vmem:[%s3470_s6 + $0x61b0] sm:$0xff] }
 0x244   : > { %1329 = vst [vmem:[%s3475_s7 + $0x1198] sm:$0xff] %v1328_v51  ;;  %v1456_v51 = vld [vmem:[%s3470_s6 + $0x61b8] sm:$0xff] }
 0x245   : > { %1331 = vst [vmem:[%s3475_s7 + $0x11a0] sm:$0xff] %v1330_v52  ;;  %v1458_v52 = vld [vmem:[%s3470_s6 + $0x61c0] sm:$0xff] }
 0x246   : > { %1333 = vst [vmem:[%s3475_s7 + $0x11a8] sm:$0xff] %v1332_v53  ;;  %v1460_v53 = vld [vmem:[%s3470_s6 + $0x61c8] sm:$0xff] }
 0x247   : > { %1335 = vst [vmem:[%s3475_s7 + $0x11b0] sm:$0xff] %v1334_v54  ;;  %v1462_v54 = vld [vmem:[%s3470_s6 + $0x6270] sm:$0xff] }
 0x248   : > { %1337 = vst [vmem:[%s3475_s7 + $0x11b8] sm:$0xff] %v1336_v55  ;;  %v1464_v55 = vld [vmem:[%s3470_s6 + $0x6278] sm:$0xff] }
 0x249   : > { %1339 = vst [vmem:[%s3475_s7 + $0x11c0] sm:$0xff] %v1338_v56  ;;  %v1466_v56 = vld [vmem:[%s3470_s6 + $0x6280] sm:$0xff] }
 0x24a   : > { %1341 = vst [vmem:[%s3475_s7 + $0x11c8] sm:$0xff] %v1340_v57  ;;  %v1468_v57 = vld [vmem:[%s3470_s6 + $0x6288] sm:$0xff] }
 0x24b   : > { %1343 = vst [vmem:[%s3475_s7 + $0x11d0] sm:$0xff] %v1342_v58  ;;  %v1470_v58 = vld [vmem:[%s3470_s6 + $0x6290] sm:$0xff] }
 0x24c   : > { %1345 = vst [vmem:[%s3475_s7 + $0x11d8] sm:$0xff] %v1344_v59  ;;  %v1472_v59 = vld [vmem:[%s3470_s6 + $0x6338] sm:$0xff] }
 0x24d   : > { %1347 = vst [vmem:[%s3475_s7 + $0x11e0] sm:$0xff] %v1346_v60  ;;  %v1474_v60 = vld [vmem:[%s3470_s6 + $0x6340] sm:$0xff] }
 0x24e   : > { %1349 = vst [vmem:[%s3475_s7 + $0x11e8] sm:$0xff] %v1348_v61  ;;  %v1476_v61 = vld [vmem:[%s3470_s6 + $0x6348] sm:$0xff] }
 0x24f   : > { %1351 = vst [vmem:[%s3475_s7 + $0x11f0] sm:$0xff] %v1350_v62  ;;  %v1478_v62 = vld [vmem:[%s3470_s6 + $0x6350] sm:$0xff] }
 0x250   : > { %1353 = vst [vmem:[%s3475_s7 + $0x11f8] sm:$0xff] %v1352_v63  ;;  %v1480_v63 = vld [vmem:[%s3470_s6 + $0x6358] sm:$0xff] }
 0x251   : > { %1355 = vst [vmem:[%s3475_s7 + $0x1200] sm:$0xff] %v1354_v0 }
 0x252   : > { %1357 = vst [vmem:[%s3475_s7 + $0x1208] sm:$0xff] %v1356_v1 }
 0x253   : > { %1359 = vst [vmem:[%s3475_s7 + $0x1210] sm:$0xff] %v1358_v2 }
 0x254   : > { %1361 = vst [vmem:[%s3475_s7 + $0x1218] sm:$0xff] %v1360_v3 }
 0x255   : > { %1363 = vst [vmem:[%s3475_s7 + $0x1220] sm:$0xff] %v1362_v4 }
 0x256   : > { %1365 = vst [vmem:[%s3475_s7 + $0x1228] sm:$0xff] %v1364_v5 }
 0x257   : > { %1367 = vst [vmem:[%s3475_s7 + $0x1230] sm:$0xff] %v1366_v6 }
 0x258   : > { %1369 = vst [vmem:[%s3475_s7 + $0x1238] sm:$0xff] %v1368_v7 }
 0x259   : > { %1371 = vst [vmem:[%s3475_s7 + $0x1240] sm:$0xff] %v1370_v8 }
 0x25a   : > { %1373 = vst [vmem:[%s3475_s7 + $0x1248] sm:$0xff] %v1372_v9 }
 0x25b   : > { %1375 = vst [vmem:[%s3475_s7 + $0x1250] sm:$0xff] %v1374_v10 }
 0x25c   : > { %1377 = vst [vmem:[%s3475_s7 + $0x1258] sm:$0xff] %v1376_v11 }
 0x25d   : > { %1379 = vst [vmem:[%s3475_s7 + $0x1260] sm:$0xff] %v1378_v12 }
 0x25e   : > { %1381 = vst [vmem:[%s3475_s7 + $0x1268] sm:$0xff] %v1380_v13 }
 0x25f   : > { %1383 = vst [vmem:[%s3475_s7 + $0x1270] sm:$0xff] %v1382_v14 }
 0x260   : > { %1385 = vst [vmem:[%s3475_s7 + $0x1278] sm:$0xff] %v1384_v15 }
 0x261   : > { %1387 = vst [vmem:[%s3475_s7 + $0x1280] sm:$0xff] %v1386_v16 }
 0x262   : > { %1389 = vst [vmem:[%s3475_s7 + $0x1288] sm:$0xff] %v1388_v17 }
 0x263   : > { %1391 = vst [vmem:[%s3475_s7 + $0x1290] sm:$0xff] %v1390_v18 }
 0x264   : > { %1393 = vst [vmem:[%s3475_s7 + $0x1298] sm:$0xff] %v1392_v19 }
 0x265   : > { %1395 = vst [vmem:[%s3475_s7 + $0x12a0] sm:$0xff] %v1394_v20 }
 0x266   : > { %1397 = vst [vmem:[%s3475_s7 + $0x12a8] sm:$0xff] %v1396_v21 }
 0x267   : > { %1399 = vst [vmem:[%s3475_s7 + $0x12b0] sm:$0xff] %v1398_v22 }
 0x268   : > { %1401 = vst [vmem:[%s3475_s7 + $0x12b8] sm:$0xff] %v1400_v23 }
 0x269   : > { %1403 = vst [vmem:[%s3475_s7 + $0x12c0] sm:$0xff] %v1402_v24 }
 0x26a   : > { %1405 = vst [vmem:[%s3475_s7 + $0x12c8] sm:$0xff] %v1404_v25 }
 0x26b   : > { %1407 = vst [vmem:[%s3475_s7 + $0x12d0] sm:$0xff] %v1406_v26 }
 0x26c   : > { %1409 = vst [vmem:[%s3475_s7 + $0x12d8] sm:$0xff] %v1408_v27 }
 0x26d   : > { %1411 = vst [vmem:[%s3475_s7 + $0x12e0] sm:$0xff] %v1410_v28 }
 0x26e   : > { %1413 = vst [vmem:[%s3475_s7 + $0x12e8] sm:$0xff] %v1412_v29 }
 0x26f   : > { %1415 = vst [vmem:[%s3475_s7 + $0x12f0] sm:$0xff] %v1414_v30 }
 0x270   : > { %1417 = vst [vmem:[%s3475_s7 + $0x12f8] sm:$0xff] %v1416_v31 }
 0x271   : > { %1419 = vst [vmem:[%s3475_s7 + $0x1300] sm:$0xff] %v1418_v32 }
 0x272   : > { %1421 = vst [vmem:[%s3475_s7 + $0x1308] sm:$0xff] %v1420_v33 }
 0x273   : > { %1423 = vst [vmem:[%s3475_s7 + $0x1310] sm:$0xff] %v1422_v34 }
 0x274   : > { %1425 = vst [vmem:[%s3475_s7 + $0x1318] sm:$0xff] %v1424_v35 }
 0x275   : > { %1427 = vst [vmem:[%s3475_s7 + $0x1320] sm:$0xff] %v1426_v36 }
 0x276   : > { %1429 = vst [vmem:[%s3475_s7 + $0x1328] sm:$0xff] %v1428_v37 }
 0x277   : > { %1431 = vst [vmem:[%s3475_s7 + $0x1330] sm:$0xff] %v1430_v38 }
 0x278   : > { %1433 = vst [vmem:[%s3475_s7 + $0x1338] sm:$0xff] %v1432_v39 }
 0x279   : > { %1435 = vst [vmem:[%s3475_s7 + $0x1340] sm:$0xff] %v1434_v40 }
 0x27a   : > { %1437 = vst [vmem:[%s3475_s7 + $0x1348] sm:$0xff] %v1436_v41 }
 0x27b   : > { %1439 = vst [vmem:[%s3475_s7 + $0x1350] sm:$0xff] %v1438_v42 }
 0x27c   : > { %1441 = vst [vmem:[%s3475_s7 + $0x1358] sm:$0xff] %v1440_v43 }
 0x27d   : > { %1443 = vst [vmem:[%s3475_s7 + $0x1360] sm:$0xff] %v1442_v44 }
 0x27e   : > { %1445 = vst [vmem:[%s3475_s7 + $0x1368] sm:$0xff] %v1444_v45 }
 0x27f   : > { %1447 = vst [vmem:[%s3475_s7 + $0x1370] sm:$0xff] %v1446_v46 }
 0x280   : > { %1449 = vst [vmem:[%s3475_s7 + $0x1378] sm:$0xff] %v1448_v47 }
 0x281   : > { %1451 = vst [vmem:[%s3475_s7 + $0x1380] sm:$0xff] %v1450_v48 }
 0x282   : > { %1453 = vst [vmem:[%s3475_s7 + $0x1388] sm:$0xff] %v1452_v49 }
 0x283   : > { %1455 = vst [vmem:[%s3475_s7 + $0x1390] sm:$0xff] %v1454_v50 }
 0x284   : > { %1457 = vst [vmem:[%s3475_s7 + $0x1398] sm:$0xff] %v1456_v51 }
 0x285   : > { %1459 = vst [vmem:[%s3475_s7 + $0x13a0] sm:$0xff] %v1458_v52 }
 0x286   : > { %1461 = vst [vmem:[%s3475_s7 + $0x13a8] sm:$0xff] %v1460_v53 }
 0x287   : > { %1463 = vst [vmem:[%s3475_s7 + $0x13b0] sm:$0xff] %v1462_v54 }
 0x288   : > { %1465 = vst [vmem:[%s3475_s7 + $0x13b8] sm:$0xff] %v1464_v55 }
 0x289   : > { %1467 = vst [vmem:[%s3475_s7 + $0x13c0] sm:$0xff] %v1466_v56 }
 0x28a   : > { %1469 = vst [vmem:[%s3475_s7 + $0x13c8] sm:$0xff] %v1468_v57 }
 0x28b   : > { %1471 = vst [vmem:[%s3475_s7 + $0x13d0] sm:$0xff] %v1470_v58 }
 0x28c   : > { %1473 = vst [vmem:[%s3475_s7 + $0x13d8] sm:$0xff] %v1472_v59 }
 0x28d   : > { %1475 = vst [vmem:[%s3475_s7 + $0x13e0] sm:$0xff] %v1474_v60 }
 0x28e   : > { %1477 = vst [vmem:[%s3475_s7 + $0x13e8] sm:$0xff] %v1476_v61 }
 0x28f   : > { %1479 = vst [vmem:[%s3475_s7 + $0x13f0] sm:$0xff] %v1478_v62 }
 0x290   : > { %1481 = vst [vmem:[%s3475_s7 + $0x13f8] sm:$0xff] %v1480_v63 }
 0x291 PF: > { %p3325_p5 = scmp.ge.s32.totalorder %s3404_s20, 1  ;;  %p1494_p6 = scmp.lt.s32.totalorder %s3404_s20, 6 }
 0x293   : > { %p1495_p7 = pnand %p3325_p5, %p1494_p6 }
 0x294   : > { %s1501_s8 = sand.u32 (!%p1495_p7), 1, %s3396_s18   ;;  %s1533_s9 = smul.u32 (!%p1495_p7), 5, %s3320_s21 }
 0x295   : > { %1498 = sbr.rel (%p1495_p7) target bundleno = 1303 (0x517), region = 59  ;;  %p3327_p9 = scmp.ne.s32.totalorder (!%p1495_p7), %s3320_s21, 0 }
 0x296   : > { %s3340_s10 = smul.u32 (!%p1495_p7), 5120, %s1501_s8  ;;  %p1534_p8 = scmp.lt.s32.totalorder (!%p1495_p7), %s1533_s9, 24 }
 0x298   : > { %s4769_s23 = scalar_lea.vmem (!%p1495_p7), [#allocation3], %s3340_s10 }
 0x29a   : > { %s5623_s9 = smov (!%p1534_p8, %s1533_s9), 24  ;;  %1547 = sbr.rel (%p3327_p9) target bundleno = 826 (0x33a), region = 67 }
 0x29b   : > { %s4762_s13 = scalar_lea.vmem %s5617_s4, %s5623_s9  ;;  %s3326_s14 = sshll.u32 %s5623_s9, 3 }
 0x29c   : > { %s4767_s17 = scalar_lea.vmem %s5618_s5, %s3326_s14 }
 0x29f   : > { %v1575_v0 = vld [vmem:[%s5614_s1 + $0xd0] sm:$0xff]  ;;  %v1576_v1 = vld [vmem:[%s5614_s1 + $0xd8] sm:$0xff]  ;;  %v1573_v6 = vld [vmem:[%s5614_s1 + $0xc0] sm:$0xff]  ;;  %vm1599_vm0 = vcmask 261120  }
 0x2a0   : > { %v1567_v2 = vld [vmem:[%s5614_s1 + $0x90] sm:$0xff]  ;;  %1655 = vmatpush.msra.mxu2 %v1575_v0  ;;  %1675 = vmatpush.msra.mxu3 %v1576_v1  ;;  %v1568_v3 = vld [vmem:[%s5614_s1 + $0x98] sm:$0xff]  ;;  %v1574_v7 = vld [vmem:[%s5614_s1 + $0xc8] sm:$0xff] }
 0x2a1   : > { %v1559_v4 = vld [vmem:[%s5614_s1 + $0x50] sm:$0xff]  ;;  %v1560_v5 = vld [vmem:[%s5614_s1 + $0x58] sm:$0xff]  ;;  %1615 = vmatpush.msra.mxu0 %v1573_v6  ;;  %1635 = vmatpush.msra.mxu1 %v1574_v7  ;;  %v1565_v10 = vld [vmem:[%s5614_s1 + $0x80] sm:$0xff] }
 0x2a2   : > { %1656 = vmatpush.msra.mxu2 %v1567_v2  ;;  %1676 = vmatpush.msra.mxu3 %v1568_v3  ;;  %v1551_v8 = vld [vmem:[%s5614_s1 + $0x10] sm:$0xff]  ;;  %v1552_v9 = vld [vmem:[%s5614_s1 + $0x18] sm:$0xff]  ;;  %v1566_v11 = vld [vmem:[%s5614_s1 + $0x88] sm:$0xff] }
 0x2a3   : > { %v1548_v12 = vld [vmem:[%s5613_s0] sm:$0xff]  ;;  %v1579_v13 = vld [vmem:[%s5614_s1 + $0xf0] sm:$0xff]  ;;  %v1580_v14 = vld [vmem:[%s5614_s1 + $0xf8] sm:$0xff]  ;;  %1616 = vmatpush.msra.mxu0 %v1565_v10  ;;  %1636 = vmatpush.msra.mxu1 %v1566_v11 }
 0x2a4   : > { %1657 = vmatpush.msra.mxu2 %v1559_v4  ;;  %1677 = vmatpush.msra.mxu3 %v1560_v5  ;;  %v1557_v15 = vld [vmem:[%s5614_s1 + $0x40] sm:$0xff]  ;;  %v1558_v16 = vld [vmem:[%s5614_s1 + $0x48] sm:$0xff]  ;;  %v1571_v17 = vld [vmem:[%s5614_s1 + $0xb0] sm:$0xff] }
 0x2a5   : > { %v1572_v18 = vld [vmem:[%s5614_s1 + $0xb8] sm:$0xff]  ;;  %v1549_v19 = vld [vmem:[%s5614_s1] sm:$0xff]  ;;  %v1550_v20 = vld [vmem:[%s5614_s1 + $0x8] sm:$0xff]  ;;  %1617 = vmatpush.msra.mxu0 %v1557_v15  ;;  %1637 = vmatpush.msra.mxu1 %v1558_v16 }
 0x2a6   : > { %1658 = vmatpush.msra.mxu2 %v1551_v8  ;;  %1678 = vmatpush.msra.mxu3 %v1552_v9  ;;  %v1563_v21 = vld [vmem:[%s5614_s1 + $0x70] sm:$0xff]  ;;  %v1564_v22 = vld [vmem:[%s5614_s1 + $0x78] sm:$0xff]  ;;  %v1577_v23 = vld [vmem:[%s5614_s1 + $0xe0] sm:$0xff] }
 0x2a7   : > { %3330 = vmatmul.msk.f32.vlgmr.msra.gmra.mxu2 %vm1599_vm0, %v1548_v12  ;;  %3331 = vmatmul.msk.f32.vlgmr.msra.gmra.mxu3 %vm1599_vm0, %v1548_v12  ;;  %v1578_v24 = vld [vmem:[%s5614_s1 + $0xe8] sm:$0xff]  ;;  %v1555_v25 = vld [vmem:[%s5614_s1 + $0x30] sm:$0xff]  ;;  %v1556_v26 = vld [vmem:[%s5614_s1 + $0x38] sm:$0xff] }
 0x2a8   : > { %1735 = vmatpush.msrb.mxu2 %v1579_v13  ;;  %1755 = vmatpush.msrb.mxu3 %v1580_v14  ;;  %v1569_v27 = vld [vmem:[%s5614_s1 + $0xa0] sm:$0xff]  ;;  %v1570_v28 = vld [vmem:[%s5614_s1 + $0xa8] sm:$0xff] }
 0x2a9   : > { %1618 = vmatpush.msra.mxu0 %v1549_v19  ;;  %1638 = vmatpush.msra.mxu1 %v1550_v20  ;;  %v1561_v29 = vld [vmem:[%s5614_s1 + $0x60] sm:$0xff]  ;;  %v1562_v30 = vld [vmem:[%s5614_s1 + $0x68] sm:$0xff] }
 0x2aa   : > { %1736 = vmatpush.msrb.mxu2 %v1571_v17  ;;  %1756 = vmatpush.msrb.mxu3 %v1572_v18  ;;  %v1553_v31 = vld [vmem:[%s5614_s1 + $0x20] sm:$0xff]  ;;  %v1554_v32 = vld [vmem:[%s5614_s1 + $0x28] sm:$0xff] }
 0x2ab   : > { %3328 = vmatmul.msk.f32.vlgmr.msra.gmra.mxu0 %vm1599_vm0, %v1548_v12  ;;  %3329 = vmatmul.msk.f32.vlgmr.msra.gmra.mxu1 %vm1599_vm0, %v1548_v12  ;;  %v1581_v33 = vld [vmem:[%s5615_s2] sm:$0xff] }
 0x2ac   : > { %1737 = vmatpush.msrb.mxu2 %v1563_v21  ;;  %1757 = vmatpush.msrb.mxu3 %v1564_v22  ;;  %v1583_v34 = vperm.slane %v1581_v33, 0  ;;  %v1584_v35 = vperm.slane %v1581_v33, 1  ;;  %v1585_v36 = vperm.slane %v1581_v33, 2  ;;  %v1586_v37 = vperm.slane %v1581_v33, 3 }
 0x2ad   : > { %1695 = vmatpush.msrb.mxu0 %v1577_v23  ;;  %1715 = vmatpush.msrb.mxu1 %v1578_v24  ;;  %v1587_v50 = vperm.slane %v1581_v33, 4  ;;  %v1588_v51 = vperm.slane %v1581_v33, 5  ;;  %v1589_v52 = vperm.slane %v1581_v33, 6  ;;  %v1590_v53 = vperm.slane %v1581_v33, 7 }
 0x2ae   : > { %1738 = vmatpush.msrb.mxu2 %v1555_v25  ;;  %1758 = vmatpush.msrb.mxu3 %v1556_v26 }
 0x2af   : > { %1696 = vmatpush.msrb.mxu0 %v1569_v27  ;;  %1716 = vmatpush.msrb.mxu1 %v1570_v28 }
 0x2b0   : > { %3334 = vmatmul.msk.f32.vlgmr.msrb.gmra.mxu2 %vm1599_vm0, %v1548_v12  ;;  %3335 = vmatmul.msk.f32.vlgmr.msrb.gmra.mxu3 %vm1599_vm0, %v1548_v12 }
 0x2b1   : > { %1697 = vmatpush.msrb.mxu0 %v1561_v29  ;;  %1717 = vmatpush.msrb.mxu1 %v1562_v30 }
 0x2b3   : > { %1698 = vmatpush.msrb.mxu0 %v1553_v31  ;;  %1718 = vmatpush.msrb.mxu1 %v1554_v32 }
 0x2b4   : > { %3332 = vmatmul.msk.f32.vlgmr.msrb.gmra.mxu0 %vm1599_vm0, %v1548_v12  ;;  %3333 = vmatmul.msk.f32.vlgmr.msrb.gmra.mxu1 %vm1599_vm0, %v1548_v12 }
 0x328   : > { %v1620_v38 = vpop.f32.mrf.mxu0  ;;  %v1640_v39 = vpop.f32.mrf.mxu1 }
 0x329   : > { %v1621_v40 = vadd.f32 %v1620_v38, %v1583_v34  ;;  %v1641_v41 = vadd.f32 %v1640_v39, %v1584_v35 }
 0x32a   : > { %v1660_v42 = vpop.f32.mrf.mxu2  ;;  %v1680_v43 = vpop.f32.mrf.mxu3 }
 0x32b   : > { %v1661_v44 = vadd.f32 %v1660_v42, %v1585_v36  ;;  %v1681_v45 = vadd.f32 %v1680_v43, %v1586_v37  ;;  %v1763_v46 = vmax.f32 %v1621_v40, 0.0  ;;  %v1764_v47 = vmax.f32 %v1641_v41, 0.0 }
 0x32d   : > { %v1765_v48 = vmax.f32 %v1661_v44, 0.0  ;;  %v1766_v49 = vmax.f32 %v1681_v45, 0.0  ;;  %1771 = vst [vmem:[#allocation2 + $0x30] sm:$0xff] %v1763_v46 }
 0x32e   : > { %1772 = vst [vmem:[#allocation2] sm:$0xff] %v1764_v47 }
 0x32f   : > { %1773 = vst [vmem:[#allocation2 + $0x18] sm:$0xff] %v1765_v48 }
 0x330   : > { %1774 = vst [vmem:[#allocation2 + $0x10] sm:$0xff] %v1766_v49 }
 0x331   : > { %v1700_v54 = vpop.f32.mrf.mxu0  ;;  %v1720_v55 = vpop.f32.mrf.mxu1 }
 0x332   : > { %v1701_v56 = vadd.f32 %v1700_v54, %v1587_v50  ;;  %v1721_v57 = vadd.f32 %v1720_v55, %v1588_v51 }
 0x333   : > { %v1740_v58 = vpop.f32.mrf.mxu2  ;;  %v1760_v59 = vpop.f32.mrf.mxu3 }
 0x334   : > { %v1767_v60 = vmax.f32 %v1701_v56, 0.0  ;;  %v1768_v61 = vmax.f32 %v1721_v57, 0.0  ;;  %v1741_v62 = vadd.f32 %v1740_v58, %v1589_v52  ;;  %v1761_v63 = vadd.f32 %v1760_v59, %v1590_v53 }
 0x336   : > { %1775 = vst [vmem:[#allocation2 + $0x8] sm:$0xff] %v1767_v60  ;;  %v1769_v0 = vmax.f32 %v1741_v62, 0.0  ;;  %v1770_v1 = vmax.f32 %v1761_v63, 0.0 }
 0x337   : > { %1776 = vst [vmem:[#allocation2 + $0x20] sm:$0xff] %v1768_v61 }
 0x338   : > { %1777 = vst [vmem:[#allocation2 + $0x28] sm:$0xff] %v1769_v0 }
 0x339   : > { %1778 = vst [vmem:[#allocation2 + $0x38] sm:$0xff] %v1770_v1 }
 0x33a PF: > { %v2022_v2 = vld [vmem:[%s4769_s23 + $0x758] sm:$0xff]  ;;  %v2017_v4 = vld [vmem:[%s4769_s23 + $0x730] sm:$0xff]  ;;  %v2012_v8 = vld [vmem:[%s4769_s23 + $0x708] sm:$0xff] }
 0x33b   : > { %v1862_v3 = vld [vmem:[%s4769_s23 + $0x258] sm:$0xff]  ;;  %2479 = vmatpush.msra.mxu2 %v2022_v2  ;;  %v1857_v6 = vld [vmem:[%s4769_s23 + $0x230] sm:$0xff]  ;;  %v1852_v10 = vld [vmem:[%s4769_s23 + $0x208] sm:$0xff] }
 0x33c   : > { %2439 = vmatpush.msra.mxu0 %v1862_v3  ;;  %v2102_v5 = vld [vmem:[%s4769_s23 + $0x9d8] sm:$0xff]  ;;  %v2097_v9 = vld [vmem:[%s4769_s23 + $0x9b0] sm:$0xff]  ;;  %v2092_v12 = vld [vmem:[%s4769_s23 + $0x988] sm:$0xff] }
 0x33d   : > { %v1942_v7 = vld [vmem:[%s4769_s23 + $0x4d8] sm:$0xff]  ;;  %2499 = vmatpush.msra.mxu3 %v2102_v5  ;;  %2480 = vmatpush.msra.mxu2 %v2017_v4  ;;  %v1937_v11 = vld [vmem:[%s4769_s23 + $0x4b0] sm:$0xff]  ;;  %v2007_v13 = vld [vmem:[%s4769_s23 + $0x6e0] sm:$0xff] }
 0x33e   : > { %2459 = vmatpush.msra.mxu1 %v1942_v7  ;;  %2440 = vmatpush.msra.mxu0 %v1857_v6  ;;  %v1847_v14 = vld [vmem:[%s4769_s23 + $0x1e0] sm:$0xff]  ;;  %v1932_v15 = vld [vmem:[%s4769_s23 + $0x488] sm:$0xff]  ;;  %v2002_v18 = vld [vmem:[%s4769_s23 + $0x6b8] sm:$0xff] }
 0x33f   : > { %2500 = vmatpush.msra.mxu3 %v2097_v9  ;;  %2481 = vmatpush.msra.mxu2 %v2012_v8  ;;  %v2087_v16 = vld [vmem:[%s4769_s23 + $0x960] sm:$0xff]  ;;  %v1842_v19 = vld [vmem:[%s4769_s23 + $0x1b8] sm:$0xff]  ;;  %v1997_v22 = vld [vmem:[%s4769_s23 + $0x690] sm:$0xff] }
 0x340   : > { %2460 = vmatpush.msra.mxu1 %v1937_v11  ;;  %2441 = vmatpush.msra.mxu0 %v1852_v10  ;;  %v1927_v17 = vld [vmem:[%s4769_s23 + $0x460] sm:$0xff]  ;;  %v2082_v20 = vld [vmem:[%s4769_s23 + $0x938] sm:$0xff]  ;;  %v1837_v23 = vld [vmem:[%s4769_s23 + $0x190] sm:$0xff] }
 0x341   : > { %2501 = vmatpush.msra.mxu3 %v2092_v12  ;;  %2482 = vmatpush.msra.mxu2 %v2007_v13  ;;  %v1922_v21 = vld [vmem:[%s4769_s23 + $0x438] sm:$0xff]  ;;  %v2077_v24 = vld [vmem:[%s4769_s23 + $0x910] sm:$0xff]  ;;  %v1992_v26 = vld [vmem:[%s4769_s23 + $0x668] sm:$0xff] }
 0x342   : > { %2461 = vmatpush.msra.mxu1 %v1932_v15  ;;  %2442 = vmatpush.msra.mxu0 %v1847_v14  ;;  %v1917_v25 = vld [vmem:[%s4769_s23 + $0x410] sm:$0xff]  ;;  %v1832_v27 = vld [vmem:[%s4769_s23 + $0x168] sm:$0xff]  ;;  %v1987_v30 = vld [vmem:[%s4769_s23 + $0x640] sm:$0xff] }
 0x343   : > { %2502 = vmatpush.msra.mxu3 %v2087_v16  ;;  %2483 = vmatpush.msra.mxu2 %v2002_v18  ;;  %v2072_v28 = vld [vmem:[%s4769_s23 + $0x8e8] sm:$0xff]  ;;  %v1827_v31 = vld [vmem:[%s4769_s23 + $0x140] sm:$0xff]  ;;  %v1982_v34 = vld [vmem:[%s4769_s23 + $0x618] sm:$0xff] }
 0x344   : > { %2462 = vmatpush.msra.mxu1 %v1927_v17  ;;  %2443 = vmatpush.msra.mxu0 %v1842_v19  ;;  %v1912_v29 = vld [vmem:[%s4769_s23 + $0x3e8] sm:$0xff]  ;;  %v2067_v32 = vld [vmem:[%s4769_s23 + $0x8c0] sm:$0xff]  ;;  %v1822_v35 = vld [vmem:[%s4769_s23 + $0x118] sm:$0xff] }
 0x345   : > { %2503 = vmatpush.msra.mxu3 %v2082_v20  ;;  %2484 = vmatpush.msra.mxu2 %v1997_v22  ;;  %v1907_v33 = vld [vmem:[%s4769_s23 + $0x3c0] sm:$0xff]  ;;  %v2062_v36 = vld [vmem:[%s4769_s23 + $0x898] sm:$0xff]  ;;  %v1977_v38 = vld [vmem:[%s4769_s23 + $0x5f0] sm:$0xff] }
 0x346   : > { %2463 = vmatpush.msra.mxu1 %v1922_v21  ;;  %2444 = vmatpush.msra.mxu0 %v1837_v23  ;;  %v1902_v37 = vld [vmem:[%s4769_s23 + $0x398] sm:$0xff]  ;;  %v1817_v39 = vld [vmem:[%s4769_s23 + $0xf0] sm:$0xff]  ;;  %v1972_v42 = vld [vmem:[%s4769_s23 + $0x5c8] sm:$0xff] }
 0x347   : > { %2504 = vmatpush.msra.mxu3 %v2077_v24  ;;  %2485 = vmatpush.msra.mxu2 %v1992_v26  ;;  %v2057_v40 = vld [vmem:[%s4769_s23 + $0x870] sm:$0xff]  ;;  %v1812_v43 = vld [vmem:[%s4769_s23 + $0xc8] sm:$0xff]  ;;  %v1967_v46 = vld [vmem:[%s4769_s23 + $0x5a0] sm:$0xff] }
 0x348   : > { %2464 = vmatpush.msra.mxu1 %v1917_v25  ;;  %2445 = vmatpush.msra.mxu0 %v1832_v27  ;;  %v1897_v41 = vld [vmem:[%s4769_s23 + $0x370] sm:$0xff]  ;;  %v2052_v44 = vld [vmem:[%s4769_s23 + $0x848] sm:$0xff]  ;;  %v1807_v47 = vld [vmem:[%s4769_s23 + $0xa0] sm:$0xff] }
 0x349   : > { %2505 = vmatpush.msra.mxu3 %v2072_v28  ;;  %2486 = vmatpush.msra.mxu2 %v1987_v30  ;;  %v1892_v45 = vld [vmem:[%s4769_s23 + $0x348] sm:$0xff]  ;;  %v2047_v48 = vld [vmem:[%s4769_s23 + $0x820] sm:$0xff]  ;;  %v1962_v50 = vld [vmem:[%s4769_s23 + $0x578] sm:$0xff] }
 0x34a   : > { %2465 = vmatpush.msra.mxu1 %v1912_v29  ;;  %2446 = vmatpush.msra.mxu0 %v1827_v31  ;;  %v1887_v49 = vld [vmem:[%s4769_s23 + $0x320] sm:$0xff]  ;;  %v1802_v51 = vld [vmem:[%s4769_s23 + $0x78] sm:$0xff]  ;;  %v1957_v54 = vld [vmem:[%s4769_s23 + $0x550] sm:$0xff] }
 0x34b   : > { %2506 = vmatpush.msra.mxu3 %v2067_v32  ;;  %2487 = vmatpush.msra.mxu2 %v1982_v34  ;;  %v2042_v52 = vld [vmem:[%s4769_s23 + $0x7f8] sm:$0xff]  ;;  %v1797_v55 = vld [vmem:[%s4769_s23 + $0x50] sm:$0xff]  ;;  %v1952_v58 = vld [vmem:[%s4769_s23 + $0x528] sm:$0xff] }
 0x34c   : > { %2466 = vmatpush.msra.mxu1 %v1907_v33  ;;  %2447 = vmatpush.msra.mxu0 %v1822_v35  ;;  %v1882_v53 = vld [vmem:[%s4769_s23 + $0x2f8] sm:$0xff]  ;;  %v2037_v56 = vld [vmem:[%s4769_s23 + $0x7d0] sm:$0xff]  ;;  %v1792_v59 = vld [vmem:[%s4769_s23 + $0x28] sm:$0xff] }
 0x34d   : > { %2507 = vmatpush.msra.mxu3 %v2062_v36  ;;  %2488 = vmatpush.msra.mxu2 %v1977_v38  ;;  %v1877_v57 = vld [vmem:[%s4769_s23 + $0x2d0] sm:$0xff]  ;;  %v2032_v60 = vld [vmem:[%s4769_s23 + $0x7a8] sm:$0xff]  ;;  %v1947_v62 = vld [vmem:[%s4769_s23 + $0x500] sm:$0xff] }
 0x34e   : > { %2467 = vmatpush.msra.mxu1 %v1902_v37  ;;  %2448 = vmatpush.msra.mxu0 %v1817_v39  ;;  %v1872_v61 = vld [vmem:[%s4769_s23 + $0x2a8] sm:$0xff]  ;;  %v1787_v63 = vld [vmem:[%s4769_s23] sm:$0xff]  ;;  %v2342_v0 = vld [vmem:[%s4769_s23 + $0x1158] sm:$0xff] }
 0x34f   : > { %2508 = vmatpush.msra.mxu3 %v2057_v40  ;;  %2489 = vmatpush.msra.mxu2 %v1972_v42  ;;  %v2027_v1 = vld [vmem:[%s4769_s23 + $0x780] sm:$0xff]  ;;  %v2182_v2 = vld [vmem:[%s4769_s23 + $0xc58] sm:$0xff]  ;;  %v2337_v4 = vld [vmem:[%s4769_s23 + $0x1130] sm:$0xff] }
 0x350   : > { %2468 = vmatpush.msra.mxu1 %v1897_v41  ;;  %2449 = vmatpush.msra.mxu0 %v1812_v43  ;;  %v2422_v3 = vld [vmem:[%s4769_s23 + $0x13d8] sm:$0xff]  ;;  %v1867_v5 = vld [vmem:[%s4769_s23 + $0x280] sm:$0xff]  ;;  %v2177_v6 = vld [vmem:[%s4769_s23 + $0xc30] sm:$0xff] }
 0x351   : > { %2509 = vmatpush.msra.mxu3 %v2052_v44  ;;  %2490 = vmatpush.msra.mxu2 %v1967_v46  ;;  %v2262_v7 = vld [vmem:[%s4769_s23 + $0xed8] sm:$0xff]  ;;  %v2332_v8 = vld [vmem:[%s4769_s23 + $0x1108] sm:$0xff]  ;;  %v2417_v9 = vld [vmem:[%s4769_s23 + $0x13b0] sm:$0xff] }
 0x352   : > { %2469 = vmatpush.msra.mxu1 %v1892_v45  ;;  %2450 = vmatpush.msra.mxu0 %v1807_v47  ;;  %v2172_v10 = vld [vmem:[%s4769_s23 + $0xc08] sm:$0xff]  ;;  %v2257_v11 = vld [vmem:[%s4769_s23 + $0xeb0] sm:$0xff]  ;;  %v2327_v12 = vld [vmem:[%s4769_s23 + $0x10e0] sm:$0xff] }
 0x353   : > { %2510 = vmatpush.msra.mxu3 %v2047_v48  ;;  %2491 = vmatpush.msra.mxu2 %v1962_v50  ;;  %v2412_v13 = vld [vmem:[%s4769_s23 + $0x1388] sm:$0xff]  ;;  %v2167_v14 = vld [vmem:[%s4769_s23 + $0xbe0] sm:$0xff]  ;;  %v2322_v16 = vld [vmem:[%s4769_s23 + $0x10b8] sm:$0xff] }
 0x354   : > { %2470 = vmatpush.msra.mxu1 %v1887_v49  ;;  %2451 = vmatpush.msra.mxu0 %v1802_v51  ;;  %v2252_v15 = vld [vmem:[%s4769_s23 + $0xe88] sm:$0xff]  ;;  %v2407_v17 = vld [vmem:[%s4769_s23 + $0x1360] sm:$0xff]  ;;  %v2162_v18 = vld [vmem:[%s4769_s23 + $0xbb8] sm:$0xff] }
 0x355   : > { %2511 = vmatpush.msra.mxu3 %v2042_v52  ;;  %2492 = vmatpush.msra.mxu2 %v1957_v54  ;;  %v2247_v19 = vld [vmem:[%s4769_s23 + $0xe60] sm:$0xff]  ;;  %v2317_v20 = vld [vmem:[%s4769_s23 + $0x1090] sm:$0xff]  ;;  %v2402_v21 = vld [vmem:[%s4769_s23 + $0x1338] sm:$0xff] }
 0x356   : > { %2471 = vmatpush.msra.mxu1 %v1882_v53  ;;  %2452 = vmatpush.msra.mxu0 %v1797_v55  ;;  %v2157_v22 = vld [vmem:[%s4769_s23 + $0xb90] sm:$0xff]  ;;  %v2242_v23 = vld [vmem:[%s4769_s23 + $0xe38] sm:$0xff]  ;;  %v2312_v24 = vld [vmem:[%s4769_s23 + $0x1068] sm:$0xff] }
 0x357   : > { %2512 = vmatpush.msra.mxu3 %v2037_v56  ;;  %2493 = vmatpush.msra.mxu2 %v1952_v58  ;;  %v2397_v25 = vld [vmem:[%s4769_s23 + $0x1310] sm:$0xff]  ;;  %v2152_v26 = vld [vmem:[%s4769_s23 + $0xb68] sm:$0xff]  ;;  %v2307_v28 = vld [vmem:[%s4769_s23 + $0x1040] sm:$0xff] }
 0x358   : > { %2472 = vmatpush.msra.mxu1 %v1877_v57  ;;  %2453 = vmatpush.msra.mxu0 %v1792_v59  ;;  %v2237_v27 = vld [vmem:[%s4769_s23 + $0xe10] sm:$0xff]  ;;  %v2392_v29 = vld [vmem:[%s4769_s23 + $0x12e8] sm:$0xff]  ;;  %v2147_v30 = vld [vmem:[%s4769_s23 + $0xb40] sm:$0xff] }
 0x359   : > { %2513 = vmatpush.msra.mxu3 %v2032_v60  ;;  %2494 = vmatpush.msra.mxu2 %v1947_v62  ;;  %v2232_v31 = vld [vmem:[%s4769_s23 + $0xde8] sm:$0xff]  ;;  %v2302_v32 = vld [vmem:[%s4769_s23 + $0x1018] sm:$0xff]  ;;  %v2387_v33 = vld [vmem:[%s4769_s23 + $0x12c0] sm:$0xff] }
 0x35a   : > { %2473 = vmatpush.msra.mxu1 %v1872_v61  ;;  %2454 = vmatpush.msra.mxu0 %v1787_v63  ;;  %v2142_v34 = vld [vmem:[%s4769_s23 + $0xb18] sm:$0xff]  ;;  %v2227_v35 = vld [vmem:[%s4769_s23 + $0xdc0] sm:$0xff]  ;;  %v2297_v36 = vld [vmem:[%s4769_s23 + $0xff0] sm:$0xff] }
 0x35b   : > { %2559 = vmatpush.msrb.mxu2 %v2342_v0  ;;  %2514 = vmatpush.msra.mxu3 %v2027_v1  ;;  %v2382_v37 = vld [vmem:[%s4769_s23 + $0x1298] sm:$0xff]  ;;  %v2137_v38 = vld [vmem:[%s4769_s23 + $0xaf0] sm:$0xff]  ;;  %v2292_v40 = vld [vmem:[%s4769_s23 + $0xfc8] sm:$0xff] }
 0x35c   : > { %2519 = vmatpush.msrb.mxu0 %v2182_v2  ;;  %2474 = vmatpush.msra.mxu1 %v1867_v5  ;;  %v2222_v39 = vld [vmem:[%s4769_s23 + $0xd98] sm:$0xff]  ;;  %v2377_v41 = vld [vmem:[%s4769_s23 + $0x1270] sm:$0xff]  ;;  %v2132_v42 = vld [vmem:[%s4769_s23 + $0xac8] sm:$0xff] }
 0x35d   : > { %2579 = vmatpush.msrb.mxu3 %v2422_v3  ;;  %2560 = vmatpush.msrb.mxu2 %v2337_v4  ;;  %v2217_v43 = vld [vmem:[%s4769_s23 + $0xd70] sm:$0xff]  ;;  %v2287_v44 = vld [vmem:[%s4769_s23 + $0xfa0] sm:$0xff]  ;;  %v2372_v45 = vld [vmem:[%s4769_s23 + $0x1248] sm:$0xff] }
 0x35e   : > { %2520 = vmatpush.msrb.mxu0 %v2177_v6  ;;  %2539 = vmatpush.msrb.mxu1 %v2262_v7  ;;  %v2127_v46 = vld [vmem:[%s4769_s23 + $0xaa0] sm:$0xff]  ;;  %v2212_v47 = vld [vmem:[%s4769_s23 + $0xd48] sm:$0xff]  ;;  %v2282_v48 = vld [vmem:[%s4769_s23 + $0xf78] sm:$0xff] }
 0x35f   : > { %2561 = vmatpush.msrb.mxu2 %v2332_v8  ;;  %2580 = vmatpush.msrb.mxu3 %v2417_v9  ;;  %v2367_v49 = vld [vmem:[%s4769_s23 + $0x1220] sm:$0xff]  ;;  %v2122_v50 = vld [vmem:[%s4769_s23 + $0xa78] sm:$0xff]  ;;  %v2277_v52 = vld [vmem:[%s4769_s23 + $0xf50] sm:$0xff] }
 0x360   : > { %2521 = vmatpush.msrb.mxu0 %v2172_v10  ;;  %2540 = vmatpush.msrb.mxu1 %v2257_v11  ;;  %v2207_v51 = vld [vmem:[%s4769_s23 + $0xd20] sm:$0xff]  ;;  %v2362_v53 = vld [vmem:[%s4769_s23 + $0x11f8] sm:$0xff]  ;;  %v2117_v54 = vld [vmem:[%s4769_s23 + $0xa50] sm:$0xff] }
 0x361   : > { %2562 = vmatpush.msrb.mxu2 %v2327_v12  ;;  %2581 = vmatpush.msrb.mxu3 %v2412_v13  ;;  %v2202_v55 = vld [vmem:[%s4769_s23 + $0xcf8] sm:$0xff]  ;;  %v2272_v56 = vld [vmem:[%s4769_s23 + $0xf28] sm:$0xff]  ;;  %v2357_v57 = vld [vmem:[%s4769_s23 + $0x11d0] sm:$0xff] }
 0x362   : > { %2522 = vmatpush.msrb.mxu0 %v2167_v14  ;;  %2541 = vmatpush.msrb.mxu1 %v2252_v15  ;;  %v2112_v58 = vld [vmem:[%s4769_s23 + $0xa28] sm:$0xff]  ;;  %v2197_v59 = vld [vmem:[%s4769_s23 + $0xcd0] sm:$0xff]  ;;  %v2267_v60 = vld [vmem:[%s4769_s23 + $0xf00] sm:$0xff] }
 0x363   : > { %2563 = vmatpush.msrb.mxu2 %v2322_v16  ;;  %2582 = vmatpush.msrb.mxu3 %v2407_v17  ;;  %v2352_v61 = vld [vmem:[%s4769_s23 + $0x11a8] sm:$0xff]  ;;  %v5007_v62 = vld [vmem:[#allocation2 + $0x18] sm:$0xff]  ;;  %v2107_v63 = vld [vmem:[%s4769_s23 + $0xa00] sm:$0xff] }
 0x364   : > { %2523 = vmatpush.msrb.mxu0 %v2162_v18  ;;  %2542 = vmatpush.msrb.mxu1 %v2247_v19  ;;  %v2023_v0 = vld [vmem:[%s4769_s23 + $0x760] sm:$0xff]  ;;  %v2192_v1 = vld [vmem:[%s4769_s23 + $0xca8] sm:$0xff]  ;;  %v5013_v3 = vld [vmem:[#allocation2 + $0x30] sm:$0xff] }
 0x365   : > { %2564 = vmatpush.msrb.mxu2 %v2317_v20  ;;  %2583 = vmatpush.msrb.mxu3 %v2402_v21  ;;  %v2347_v2 = vld [vmem:[%s4769_s23 + $0x1180] sm:$0xff]  ;;  %v5016_v4 = vld [vmem:[#allocation2 + $0x10] sm:$0xff]  ;;  %v2018_v6 = vld [vmem:[%s4769_s23 + $0x738] sm:$0xff] }
 0x366   : > { %2524 = vmatpush.msrb.mxu0 %v2157_v22  ;;  %2543 = vmatpush.msrb.mxu1 %v2242_v23  ;;  %v1863_v5 = vld [vmem:[%s4769_s23 + $0x260] sm:$0xff]  ;;  %v1858_v9 = vld [vmem:[%s4769_s23 + $0x238] sm:$0xff]  ;;  %v2013_v11 = vld [vmem:[%s4769_s23 + $0x710] sm:$0xff] }
 0x367   : > { %2565 = vmatpush.msrb.mxu2 %v2312_v24  ;;  %2584 = vmatpush.msrb.mxu3 %v2397_v25  ;;  %v2103_v7 = vld [vmem:[%s4769_s23 + $0x9e0] sm:$0xff]  ;;  %v2098_v13 = vld [vmem:[%s4769_s23 + $0x9b8] sm:$0xff]  ;;  %v1853_v14 = vld [vmem:[%s4769_s23 + $0x210] sm:$0xff] }
 0x368   : > { %2525 = vmatpush.msrb.mxu0 %v2152_v26  ;;  %2544 = vmatpush.msrb.mxu1 %v2237_v27  ;;  %v2187_v8 = vld [vmem:[%s4769_s23 + $0xc80] sm:$0xff]  ;;  %v2008_v15 = vld [vmem:[%s4769_s23 + $0x6e8] sm:$0xff]  ;;  %v1938_v16 = vld [vmem:[%s4769_s23 + $0x4b8] sm:$0xff] }
 0x369   : > { %2566 = vmatpush.msrb.mxu2 %v2307_v28  ;;  %2585 = vmatpush.msrb.mxu3 %v2392_v29  ;;  %v5025_v10 = vld [vmem:[#allocation2] sm:$0xff]  ;;  %v2093_v17 = vld [vmem:[%s4769_s23 + $0x990] sm:$0xff]  ;;  %v5035_v18 = vld [vmem:[#allocation2 + $0x28] sm:$0xff] }
 0x36a   : > { %2526 = vmatpush.msrb.mxu0 %v2147_v30  ;;  %2545 = vmatpush.msrb.mxu1 %v2232_v31  ;;  %v1943_v12 = vld [vmem:[%s4769_s23 + $0x4e0] sm:$0xff]  ;;  %v1848_v19 = vld [vmem:[%s4769_s23 + $0x1e8] sm:$0xff]  ;;  %v1933_v20 = vld [vmem:[%s4769_s23 + $0x490] sm:$0xff] }
 0x36b   : > { %2567 = vmatpush.msrb.mxu2 %v2302_v32  ;;  %2586 = vmatpush.msrb.mxu3 %v2387_v33  ;;  %v2003_v21 = vld [vmem:[%s4769_s23 + $0x6c0] sm:$0xff]  ;;  %v2088_v22 = vld [vmem:[%s4769_s23 + $0x968] sm:$0xff]  ;;  %v5044_v24 = vld [vmem:[#allocation2 + $0x38] sm:$0xff] }
 0x36c   : > { %2527 = vmatpush.msrb.mxu0 %v2142_v34  ;;  %2546 = vmatpush.msrb.mxu1 %v2227_v35  ;;  %v5041_v23 = vld [vmem:[#allocation2 + $0x8] sm:$0xff]  ;;  %v1843_v25 = vld [vmem:[%s4769_s23 + $0x1c0] sm:$0xff]  ;;  %v1998_v27 = vld [vmem:[%s4769_s23 + $0x698] sm:$0xff] }
 0x36d   : > { %2568 = vmatpush.msrb.mxu2 %v2297_v36  ;;  %2587 = vmatpush.msrb.mxu3 %v2382_v37  ;;  %v1928_v26 = vld [vmem:[%s4769_s23 + $0x468] sm:$0xff]  ;;  %v2083_v28 = vld [vmem:[%s4769_s23 + $0x940] sm:$0xff]  ;;  %v1838_v30 = vld [vmem:[%s4769_s23 + $0x198] sm:$0xff] }
 0x36e   : > { %2528 = vmatpush.msrb.mxu0 %v2137_v38  ;;  %2547 = vmatpush.msrb.mxu1 %v2222_v39  ;;  %v5051_v29 = vld [vmem:[#allocation2 + $0x20] sm:$0xff]  ;;  %v1993_v32 = vld [vmem:[%s4769_s23 + $0x670] sm:$0xff]  ;;  %v2078_v33 = vld [vmem:[%s4769_s23 + $0x918] sm:$0xff] }
 0x36f   : > { %2569 = vmatpush.msrb.mxu2 %v2292_v40  ;;  %2588 = vmatpush.msrb.mxu3 %v2377_v41  ;;  %v1923_v31 = vld [vmem:[%s4769_s23 + $0x440] sm:$0xff]  ;;  %v1833_v34 = vld [vmem:[%s4769_s23 + $0x170] sm:$0xff]  ;;  %v1918_v35 = vld [vmem:[%s4769_s23 + $0x418] sm:$0xff] }
 0x370   : > { %2529 = vmatpush.msrb.mxu0 %v2132_v42  ;;  %2548 = vmatpush.msrb.mxu1 %v2217_v43  ;;  %v1988_v36 = vld [vmem:[%s4769_s23 + $0x648] sm:$0xff]  ;;  %v2073_v37 = vld [vmem:[%s4769_s23 + $0x8f0] sm:$0xff]  ;;  %v1983_v40 = vld [vmem:[%s4769_s23 + $0x620] sm:$0xff] }
 0x371   : > { %2570 = vmatpush.msrb.mxu2 %v2287_v44  ;;  %2589 = vmatpush.msrb.mxu3 %v2372_v45  ;;  %v1828_v38 = vld [vmem:[%s4769_s23 + $0x148] sm:$0xff]  ;;  %v1913_v39 = vld [vmem:[%s4769_s23 + $0x3f0] sm:$0xff]  ;;  %v1823_v42 = vld [vmem:[%s4769_s23 + $0x120] sm:$0xff] }
 0x372   : > { %2530 = vmatpush.msrb.mxu0 %v2127_v46  ;;  %2549 = vmatpush.msrb.mxu1 %v2212_v47  ;;  %v2068_v41 = vld [vmem:[%s4769_s23 + $0x8c8] sm:$0xff]  ;;  %v1978_v44 = vld [vmem:[%s4769_s23 + $0x5f8] sm:$0xff]  ;;  %v2063_v45 = vld [vmem:[%s4769_s23 + $0x8a0] sm:$0xff] }
 0x373   : > { %2571 = vmatpush.msrb.mxu2 %v2282_v48  ;;  %2590 = vmatpush.msrb.mxu3 %v2367_v49  ;;  %v1908_v43 = vld [vmem:[%s4769_s23 + $0x3c8] sm:$0xff]  ;;  %v1818_v46 = vld [vmem:[%s4769_s23 + $0xf8] sm:$0xff]  ;;  %v1903_v47 = vld [vmem:[%s4769_s23 + $0x3a0] sm:$0xff] }
 0x374   : > { %2531 = vmatpush.msrb.mxu0 %v2122_v50  ;;  %2550 = vmatpush.msrb.mxu1 %v2207_v51  ;;  %v1973_v48 = vld [vmem:[%s4769_s23 + $0x5d0] sm:$0xff]  ;;  %v2058_v49 = vld [vmem:[%s4769_s23 + $0x878] sm:$0xff] }
 0x375   : > { %2572 = vmatpush.msrb.mxu2 %v2277_v52  ;;  %2591 = vmatpush.msrb.mxu3 %v2362_v53  ;;  %v1813_v50 = vld [vmem:[%s4769_s23 + $0xd0] sm:$0xff]  ;;  %v1898_v51 = vld [vmem:[%s4769_s23 + $0x378] sm:$0xff]  ;;  %v1968_v52 = vld [vmem:[%s4769_s23 + $0x5a8] sm:$0xff] }
 0x376   : > { %2532 = vmatpush.msrb.mxu0 %v2117_v54  ;;  %2551 = vmatpush.msrb.mxu1 %v2202_v55  ;;  %v2053_v53 = vld [vmem:[%s4769_s23 + $0x850] sm:$0xff]  ;;  %v1808_v54 = vld [vmem:[%s4769_s23 + $0xa8] sm:$0xff] }
 0x377   : > { %2573 = vmatpush.msrb.mxu2 %v2272_v56  ;;  %2592 = vmatpush.msrb.mxu3 %v2357_v57  ;;  %v1893_v55 = vld [vmem:[%s4769_s23 + $0x350] sm:$0xff]  ;;  %v1963_v56 = vld [vmem:[%s4769_s23 + $0x580] sm:$0xff]  ;;  %v2048_v57 = vld [vmem:[%s4769_s23 + $0x828] sm:$0xff] }
 0x378   : > { %2533 = vmatpush.msrb.mxu0 %v2112_v58  ;;  %2552 = vmatpush.msrb.mxu1 %v2197_v59  ;;  %v1803_v58 = vld [vmem:[%s4769_s23 + $0x80] sm:$0xff]  ;;  %v1888_v59 = vld [vmem:[%s4769_s23 + $0x328] sm:$0xff] }
 0x379   : > { %2574 = vmatpush.msrb.mxu2 %v2267_v60  ;;  %2593 = vmatpush.msrb.mxu3 %v2352_v61  ;;  %v1958_v60 = vld [vmem:[%s4769_s23 + $0x558] sm:$0xff]  ;;  %v2043_v61 = vld [vmem:[%s4769_s23 + $0x800] sm:$0xff] }
 0x37a   : > { %2495 = vmatmul.f32.vlgmr.msra.gmra.mxu2 %v5007_v62  ;;  %2534 = vmatpush.msrb.mxu0 %v2107_v63  ;;  %v1798_v63 = vld [vmem:[%s4769_s23 + $0x58] sm:$0xff] }
 0x37b   : > { %2639 = vmatpush.msra.mxu2 %v2023_v0  ;;  %2553 = vmatpush.msrb.mxu1 %v2192_v1  ;;  %v1883_v0 = vld [vmem:[%s4769_s23 + $0x300] sm:$0xff]  ;;  %v1953_v1 = vld [vmem:[%s4769_s23 + $0x530] sm:$0xff] }
 0x37c   : > { %2594 = vmatpush.msrb.mxu3 %v2347_v2  ;;  %2455 = vmatmul.f32.vlgmr.msra.gmra.mxu0 %v5013_v3  ;;  %v2038_v2 = vld [vmem:[%s4769_s23 + $0x7d8] sm:$0xff] }
 0x37d   : > { %2515 = vmatmul.f32.vlgmr.msra.gmra.mxu3 %v5016_v4  ;;  %2599 = vmatpush.msra.mxu0 %v1863_v5  ;;  %v1793_v5 = vld [vmem:[%s4769_s23 + $0x30] sm:$0xff] }
 0x37e   : > { %2640 = vmatpush.msra.mxu2 %v2018_v6  ;;  %2659 = vmatpush.msra.mxu3 %v2103_v7  ;;  %v1878_v6 = vld [vmem:[%s4769_s23 + $0x2d8] sm:$0xff]  ;;  %v1948_v7 = vld [vmem:[%s4769_s23 + $0x508] sm:$0xff] }
 0x37f   : > { %2554 = vmatpush.msrb.mxu1 %v2187_v8  ;;  %2600 = vmatpush.msra.mxu0 %v1858_v9  ;;  %v2033_v8 = vld [vmem:[%s4769_s23 + $0x7b0] sm:$0xff]  ;;  %v2343_v9 = vld [vmem:[%s4769_s23 + $0x1160] sm:$0xff] }
 0x380   : > { %2475 = vmatmul.f32.vlgmr.msra.gmra.mxu1 %v5025_v10  ;;  %2641 = vmatpush.msra.mxu2 %v2013_v11  ;;  %v1788_v11 = vld [vmem:[%s4769_s23 + $0x8] sm:$0xff] }
 0x381   : > { %2619 = vmatpush.msra.mxu1 %v1943_v12  ;;  %2660 = vmatpush.msra.mxu3 %v2098_v13  ;;  %v1873_v12 = vld [vmem:[%s4769_s23 + $0x2b0] sm:$0xff]  ;;  %v2028_v13 = vld [vmem:[%s4769_s23 + $0x788] sm:$0xff] }
 0x382   : > { %2601 = vmatpush.msra.mxu0 %v1853_v14  ;;  %2642 = vmatpush.msra.mxu2 %v2008_v15  ;;  %v2183_v14 = vld [vmem:[%s4769_s23 + $0xc60] sm:$0xff]  ;;  %v2338_v15 = vld [vmem:[%s4769_s23 + $0x1138] sm:$0xff] }
 0x383   : > { %2620 = vmatpush.msra.mxu1 %v1938_v16  ;;  %2661 = vmatpush.msra.mxu3 %v2093_v17  ;;  %v2423_v16 = vld [vmem:[%s4769_s23 + $0x13e0] sm:$0xff]  ;;  %v1868_v17 = vld [vmem:[%s4769_s23 + $0x288] sm:$0xff] }
 0x384   : > { %2575 = vmatmul.f32.vlgmr.msrb.gmra.mxu2 %v5035_v18  ;;  %2602 = vmatpush.msra.mxu0 %v1848_v19  ;;  %v2178_v19 = vld [vmem:[%s4769_s23 + $0xc38] sm:$0xff] }
 0x385   : > { %2621 = vmatpush.msra.mxu1 %v1933_v20  ;;  %2643 = vmatpush.msra.mxu2 %v2003_v21  ;;  %v2263_v20 = vld [vmem:[%s4769_s23 + $0xee0] sm:$0xff]  ;;  %v2333_v21 = vld [vmem:[%s4769_s23 + $0x1110] sm:$0xff] }
 0x386   : > { %2662 = vmatpush.msra.mxu3 %v2088_v22  ;;  %2535 = vmatmul.f32.vlgmr.msrb.gmra.mxu0 %v5041_v23  ;;  %v2418_v22 = vld [vmem:[%s4769_s23 + $0x13b8] sm:$0xff] }
 0x387   : > { %2595 = vmatmul.f32.vlgmr.msrb.gmra.mxu3 %v5044_v24  ;;  %2603 = vmatpush.msra.mxu0 %v1843_v25  ;;  %v2173_v25 = vld [vmem:[%s4769_s23 + $0xc10] sm:$0xff] }
 0x388   : > { %2622 = vmatpush.msra.mxu1 %v1928_v26  ;;  %2644 = vmatpush.msra.mxu2 %v1998_v27  ;;  %v2258_v26 = vld [vmem:[%s4769_s23 + $0xeb8] sm:$0xff]  ;;  %v2328_v27 = vld [vmem:[%s4769_s23 + $0x10e8] sm:$0xff] }
 0x389   : > { %2663 = vmatpush.msra.mxu3 %v2083_v28  ;;  %2555 = vmatmul.f32.vlgmr.msrb.gmra.mxu1 %v5051_v29  ;;  %v2413_v28 = vld [vmem:[%s4769_s23 + $0x1390] sm:$0xff] }
 0x38a   : > { %2604 = vmatpush.msra.mxu0 %v1838_v30  ;;  %2623 = vmatpush.msra.mxu1 %v1923_v31  ;;  %v2168_v30 = vld [vmem:[%s4769_s23 + $0xbe8] sm:$0xff]  ;;  %v2253_v31 = vld [vmem:[%s4769_s23 + $0xe90] sm:$0xff] }
 0x38b   : > { %2645 = vmatpush.msra.mxu2 %v1993_v32  ;;  %2664 = vmatpush.msra.mxu3 %v2078_v33  ;;  %v2323_v32 = vld [vmem:[%s4769_s23 + $0x10c0] sm:$0xff]  ;;  %v2408_v33 = vld [vmem:[%s4769_s23 + $0x1368] sm:$0xff] }
 0x38c   : > { %2605 = vmatpush.msra.mxu0 %v1833_v34  ;;  %2624 = vmatpush.msra.mxu1 %v1918_v35  ;;  %v2163_v34 = vld [vmem:[%s4769_s23 + $0xbc0] sm:$0xff]  ;;  %v2248_v35 = vld [vmem:[%s4769_s23 + $0xe68] sm:$0xff] }
 0x38d   : > { %2646 = vmatpush.msra.mxu2 %v1988_v36  ;;  %2665 = vmatpush.msra.mxu3 %v2073_v37  ;;  %v2318_v36 = vld [vmem:[%s4769_s23 + $0x1098] sm:$0xff]  ;;  %v2403_v37 = vld [vmem:[%s4769_s23 + $0x1340] sm:$0xff] }
 0x38e   : > { %2606 = vmatpush.msra.mxu0 %v1828_v38  ;;  %2625 = vmatpush.msra.mxu1 %v1913_v39  ;;  %v2158_v38 = vld [vmem:[%s4769_s23 + $0xb98] sm:$0xff]  ;;  %v2243_v39 = vld [vmem:[%s4769_s23 + $0xe40] sm:$0xff] }
 0x38f   : > { %2647 = vmatpush.msra.mxu2 %v1983_v40  ;;  %2666 = vmatpush.msra.mxu3 %v2068_v41  ;;  %v2313_v40 = vld [vmem:[%s4769_s23 + $0x1070] sm:$0xff]  ;;  %v2398_v41 = vld [vmem:[%s4769_s23 + $0x1318] sm:$0xff] }
 0x390   : > { %2607 = vmatpush.msra.mxu0 %v1823_v42  ;;  %2626 = vmatpush.msra.mxu1 %v1908_v43  ;;  %v2153_v42 = vld [vmem:[%s4769_s23 + $0xb70] sm:$0xff]  ;;  %v2238_v43 = vld [vmem:[%s4769_s23 + $0xe18] sm:$0xff] }
 0x391   : > { %2648 = vmatpush.msra.mxu2 %v1978_v44  ;;  %2667 = vmatpush.msra.mxu3 %v2063_v45  ;;  %v2308_v44 = vld [vmem:[%s4769_s23 + $0x1048] sm:$0xff]  ;;  %v2393_v45 = vld [vmem:[%s4769_s23 + $0x12f0] sm:$0xff] }
 0x392   : > { %2608 = vmatpush.msra.mxu0 %v1818_v46  ;;  %2627 = vmatpush.msra.mxu1 %v1903_v47  ;;  %v2148_v46 = vld [vmem:[%s4769_s23 + $0xb48] sm:$0xff]  ;;  %v2233_v47 = vld [vmem:[%s4769_s23 + $0xdf0] sm:$0xff] }
 0x393   : > { %2649 = vmatpush.msra.mxu2 %v1973_v48  ;;  %2668 = vmatpush.msra.mxu3 %v2058_v49  ;;  %v2303_v48 = vld [vmem:[%s4769_s23 + $0x1020] sm:$0xff]  ;;  %v2388_v49 = vld [vmem:[%s4769_s23 + $0x12c8] sm:$0xff] }
 0x394   : > { %2609 = vmatpush.msra.mxu0 %v1813_v50  ;;  %2628 = vmatpush.msra.mxu1 %v1898_v51  ;;  %v2143_v50 = vld [vmem:[%s4769_s23 + $0xb20] sm:$0xff]  ;;  %v2228_v51 = vld [vmem:[%s4769_s23 + $0xdc8] sm:$0xff] }
 0x395   : > { %2650 = vmatpush.msra.mxu2 %v1968_v52  ;;  %2669 = vmatpush.msra.mxu3 %v2053_v53  ;;  %v2298_v52 = vld [vmem:[%s4769_s23 + $0xff8] sm:$0xff]  ;;  %v2383_v53 = vld [vmem:[%s4769_s23 + $0x12a0] sm:$0xff] }
 0x396   : > { %2610 = vmatpush.msra.mxu0 %v1808_v54  ;;  %2629 = vmatpush.msra.mxu1 %v1893_v55  ;;  %v2138_v54 = vld [vmem:[%s4769_s23 + $0xaf8] sm:$0xff]  ;;  %v2223_v55 = vld [vmem:[%s4769_s23 + $0xda0] sm:$0xff] }
 0x397   : > { %2651 = vmatpush.msra.mxu2 %v1963_v56  ;;  %2670 = vmatpush.msra.mxu3 %v2048_v57  ;;  %v2293_v56 = vld [vmem:[%s4769_s23 + $0xfd0] sm:$0xff]  ;;  %v2378_v57 = vld [vmem:[%s4769_s23 + $0x1278] sm:$0xff] }
 0x398   : > { %2611 = vmatpush.msra.mxu0 %v1803_v58  ;;  %2630 = vmatpush.msra.mxu1 %v1888_v59  ;;  %v2133_v58 = vld [vmem:[%s4769_s23 + $0xad0] sm:$0xff]  ;;  %v2218_v59 = vld [vmem:[%s4769_s23 + $0xd78] sm:$0xff] }
 0x399   : > { %2652 = vmatpush.msra.mxu2 %v1958_v60  ;;  %2671 = vmatpush.msra.mxu3 %v2043_v61  ;;  %v2288_v60 = vld [vmem:[%s4769_s23 + $0xfa8] sm:$0xff]  ;;  %v2373_v61 = vld [vmem:[%s4769_s23 + $0x1250] sm:$0xff] }
 0x39a   : > { %2612 = vmatpush.msra.mxu0 %v1798_v63  ;;  %2631 = vmatpush.msra.mxu1 %v1883_v0  ;;  %v2128_v63 = vld [vmem:[%s4769_s23 + $0xaa8] sm:$0xff]  ;;  %v2213_v0 = vld [vmem:[%s4769_s23 + $0xd50] sm:$0xff] }
 0x39b   : > { %2653 = vmatpush.msra.mxu2 %v1953_v1  ;;  %2672 = vmatpush.msra.mxu3 %v2038_v2  ;;  %v2283_v1 = vld [vmem:[%s4769_s23 + $0xf80] sm:$0xff]  ;;  %v2368_v2 = vld [vmem:[%s4769_s23 + $0x1228] sm:$0xff] }
 0x39c   : > { %2613 = vmatpush.msra.mxu0 %v1793_v5  ;;  %2632 = vmatpush.msra.mxu1 %v1878_v6  ;;  %v2123_v5 = vld [vmem:[%s4769_s23 + $0xa80] sm:$0xff]  ;;  %v2208_v6 = vld [vmem:[%s4769_s23 + $0xd28] sm:$0xff] }
 0x39d   : > { %2654 = vmatpush.msra.mxu2 %v1948_v7  ;;  %2673 = vmatpush.msra.mxu3 %v2033_v8  ;;  %v2278_v7 = vld [vmem:[%s4769_s23 + $0xf58] sm:$0xff]  ;;  %v2363_v8 = vld [vmem:[%s4769_s23 + $0x1200] sm:$0xff] }
 0x39e   : > { %2614 = vmatpush.msra.mxu0 %v1788_v11  ;;  %2633 = vmatpush.msra.mxu1 %v1873_v12  ;;  %v2203_v11 = vld [vmem:[%s4769_s23 + $0xd00] sm:$0xff]  ;;  %v2273_v12 = vld [vmem:[%s4769_s23 + $0xf30] sm:$0xff] }
 0x39f   : > { %2719 = vmatpush.msrb.mxu2 %v2343_v9  ;;  %2674 = vmatpush.msra.mxu3 %v2028_v13  ;;  %v2118_v9 = vld [vmem:[%s4769_s23 + $0xa58] sm:$0xff] }
 0x3a0   : > { %2679 = vmatpush.msrb.mxu0 %v2183_v14  ;;  %2634 = vmatpush.msra.mxu1 %v1868_v17  ;;  %v2358_v13 = vld [vmem:[%s4769_s23 + $0x11d8] sm:$0xff]  ;;  %v2113_v14 = vld [vmem:[%s4769_s23 + $0xa30] sm:$0xff] }
 0x3a1   : > { %2720 = vmatpush.msrb.mxu2 %v2338_v15  ;;  %2739 = vmatpush.msrb.mxu3 %v2423_v16  ;;  %v2198_v15 = vld [vmem:[%s4769_s23 + $0xcd8] sm:$0xff]  ;;  %v2268_v16 = vld [vmem:[%s4769_s23 + $0xf08] sm:$0xff]  ;;  %v2353_v17 = vld [vmem:[%s4769_s23 + $0x11b0] sm:$0xff] }
 0x3a2   : > { %2680 = vmatpush.msrb.mxu0 %v2178_v19  ;;  %2699 = vmatpush.msrb.mxu1 %v2263_v20  ;;  %v2108_v19 = vld [vmem:[%s4769_s23 + $0xa08] sm:$0xff] }
 0x3a3   : > { %2721 = vmatpush.msrb.mxu2 %v2333_v21  ;;  %2740 = vmatpush.msrb.mxu3 %v2418_v22  ;;  %v2024_v20 = vld [vmem:[%s4769_s23 + $0x768] sm:$0xff]  ;;  %v2193_v21 = vld [vmem:[%s4769_s23 + $0xcb0] sm:$0xff] }
 0x3a4   : > { %2681 = vmatpush.msrb.mxu0 %v2173_v25  ;;  %2700 = vmatpush.msrb.mxu1 %v2258_v26  ;;  %v2348_v22 = vld [vmem:[%s4769_s23 + $0x1188] sm:$0xff]  ;;  %v2019_v26 = vld [vmem:[%s4769_s23 + $0x740] sm:$0xff] }
 0x3a5   : > { %2722 = vmatpush.msrb.mxu2 %v2328_v27  ;;  %2741 = vmatpush.msrb.mxu3 %v2413_v28  ;;  %v1864_v25 = vld [vmem:[%s4769_s23 + $0x268] sm:$0xff] }
 0x3a6   : > { %2682 = vmatpush.msrb.mxu0 %v2168_v30  ;;  %2701 = vmatpush.msrb.mxu1 %v2253_v31  ;;  %v2104_v27 = vld [vmem:[%s4769_s23 + $0x9e8] sm:$0xff]  ;;  %v1859_v30 = vld [vmem:[%s4769_s23 + $0x240] sm:$0xff] }
 0x3a7   : > { %2723 = vmatpush.msrb.mxu2 %v2323_v32  ;;  %2742 = vmatpush.msrb.mxu3 %v2408_v33  ;;  %v2188_v28 = vld [vmem:[%s4769_s23 + $0xc88] sm:$0xff]  ;;  %v2099_v32 = vld [vmem:[%s4769_s23 + $0x9c0] sm:$0xff]  ;;  %v1854_v33 = vld [vmem:[%s4769_s23 + $0x218] sm:$0xff] }
 0x3a8   : > { %2683 = vmatpush.msrb.mxu0 %v2163_v34  ;;  %2702 = vmatpush.msrb.mxu1 %v2248_v35  ;;  %v1944_v31 = vld [vmem:[%s4769_s23 + $0x4e8] sm:$0xff]  ;;  %v1939_v34 = vld [vmem:[%s4769_s23 + $0x4c0] sm:$0xff]  ;;  %v1849_v35 = vld [vmem:[%s4769_s23 + $0x1f0] sm:$0xff] }
 0x3a9   : > { %2724 = vmatpush.msrb.mxu2 %v2318_v36  ;;  %2743 = vmatpush.msrb.mxu3 %v2403_v37  ;;  %v1934_v36 = vld [vmem:[%s4769_s23 + $0x498] sm:$0xff]  ;;  %v2004_v37 = vld [vmem:[%s4769_s23 + $0x6c8] sm:$0xff] }
 0x3aa   : > { %2684 = vmatpush.msrb.mxu0 %v2158_v38  ;;  %2703 = vmatpush.msrb.mxu1 %v2243_v39  ;;  %v2089_v38 = vld [vmem:[%s4769_s23 + $0x970] sm:$0xff] }
 0x3ab   : > { %2725 = vmatpush.msrb.mxu2 %v2313_v40  ;;  %2744 = vmatpush.msrb.mxu3 %v2398_v41  ;;  %v1929_v39 = vld [vmem:[%s4769_s23 + $0x470] sm:$0xff]  ;;  %v1999_v40 = vld [vmem:[%s4769_s23 + $0x6a0] sm:$0xff]  ;;  %v2084_v41 = vld [vmem:[%s4769_s23 + $0x948] sm:$0xff] }
 0x3ac   : > { %2685 = vmatpush.msrb.mxu0 %v2153_v42  ;;  %2704 = vmatpush.msrb.mxu1 %v2238_v43  ;;  %v1924_v42 = vld [vmem:[%s4769_s23 + $0x448] sm:$0xff]  ;;  %v1994_v43 = vld [vmem:[%s4769_s23 + $0x678] sm:$0xff] }
 0x3ad   : > { %2726 = vmatpush.msrb.mxu2 %v2308_v44  ;;  %2745 = vmatpush.msrb.mxu3 %v2393_v45  ;;  %v2079_v44 = vld [vmem:[%s4769_s23 + $0x920] sm:$0xff] }
 0x3ae   : > { %2686 = vmatpush.msrb.mxu0 %v2148_v46  ;;  %2705 = vmatpush.msrb.mxu1 %v2233_v47  ;;  %v1919_v45 = vld [vmem:[%s4769_s23 + $0x420] sm:$0xff]  ;;  %v2074_v46 = vld [vmem:[%s4769_s23 + $0x8f8] sm:$0xff]  ;;  %v1829_v47 = vld [vmem:[%s4769_s23 + $0x150] sm:$0xff] }
 0x3af   : > { %2727 = vmatpush.msrb.mxu2 %v2303_v48  ;;  %2746 = vmatpush.msrb.mxu3 %v2388_v49  ;;  %v1914_v48 = vld [vmem:[%s4769_s23 + $0x3f8] sm:$0xff]  ;;  %v1984_v49 = vld [vmem:[%s4769_s23 + $0x628] sm:$0xff] }
 0x3b0   : > { %2687 = vmatpush.msrb.mxu0 %v2143_v50  ;;  %2706 = vmatpush.msrb.mxu1 %v2228_v51  ;;  %v1824_v50 = vld [vmem:[%s4769_s23 + $0x128] sm:$0xff]  ;;  %v1909_v51 = vld [vmem:[%s4769_s23 + $0x3d0] sm:$0xff] }
 0x3b1   : > { %2728 = vmatpush.msrb.mxu2 %v2298_v52  ;;  %2747 = vmatpush.msrb.mxu3 %v2383_v53  ;;  %v1979_v52 = vld [vmem:[%s4769_s23 + $0x600] sm:$0xff]  ;;  %v2064_v53 = vld [vmem:[%s4769_s23 + $0x8a8] sm:$0xff] }
 0x3b2   : > { %2688 = vmatpush.msrb.mxu0 %v2138_v54  ;;  %2707 = vmatpush.msrb.mxu1 %v2223_v55  ;;  %v1819_v54 = vld [vmem:[%s4769_s23 + $0x100] sm:$0xff]  ;;  %v1904_v55 = vld [vmem:[%s4769_s23 + $0x3a8] sm:$0xff] }
 0x3b3   : > { %2729 = vmatpush.msrb.mxu2 %v2293_v56  ;;  %2748 = vmatpush.msrb.mxu3 %v2378_v57  ;;  %v1974_v56 = vld [vmem:[%s4769_s23 + $0x5d8] sm:$0xff]  ;;  %v2059_v57 = vld [vmem:[%s4769_s23 + $0x880] sm:$0xff] }
 0x3b4   : > { %2689 = vmatpush.msrb.mxu0 %v2133_v58  ;;  %2708 = vmatpush.msrb.mxu1 %v2218_v59  ;;  %v1814_v58 = vld [vmem:[%s4769_s23 + $0xd8] sm:$0xff]  ;;  %v1899_v59 = vld [vmem:[%s4769_s23 + $0x380] sm:$0xff] }
 0x3b5   : > { %2730 = vmatpush.msrb.mxu2 %v2288_v60  ;;  %2749 = vmatpush.msrb.mxu3 %v2373_v61  ;;  %v1969_v60 = vld [vmem:[%s4769_s23 + $0x5b0] sm:$0xff]  ;;  %v2054_v61 = vld [vmem:[%s4769_s23 + $0x858] sm:$0xff] }
 0x3b6   : > { %2690 = vmatpush.msrb.mxu0 %v2128_v63  ;;  %2709 = vmatpush.msrb.mxu1 %v2213_v0  ;;  %v1809_v63 = vld [vmem:[%s4769_s23 + $0xb0] sm:$0xff]  ;;  %v1894_v0 = vld [vmem:[%s4769_s23 + $0x358] sm:$0xff] }
 0x3b7   : > { %2731 = vmatpush.msrb.mxu2 %v2283_v1  ;;  %2750 = vmatpush.msrb.mxu3 %v2368_v2  ;;  %v1964_v1 = vld [vmem:[%s4769_s23 + $0x588] sm:$0xff]  ;;  %v2049_v2 = vld [vmem:[%s4769_s23 + $0x830] sm:$0xff] }
 0x3b8   : > { %2691 = vmatpush.msrb.mxu0 %v2123_v5  ;;  %2710 = vmatpush.msrb.mxu1 %v2208_v6  ;;  %v1804_v5 = vld [vmem:[%s4769_s23 + $0x88] sm:$0xff]  ;;  %v1889_v6 = vld [vmem:[%s4769_s23 + $0x330] sm:$0xff] }
 0x3b9   : > { %2732 = vmatpush.msrb.mxu2 %v2278_v7  ;;  %2751 = vmatpush.msrb.mxu3 %v2363_v8  ;;  %v1959_v7 = vld [vmem:[%s4769_s23 + $0x560] sm:$0xff]  ;;  %v2044_v8 = vld [vmem:[%s4769_s23 + $0x808] sm:$0xff] }
 0x3ba   : > { %2692 = vmatpush.msrb.mxu0 %v2118_v9  ;;  %2711 = vmatpush.msrb.mxu1 %v2203_v11  ;;  %v1799_v9 = vld [vmem:[%s4769_s23 + $0x60] sm:$0xff]  ;;  %v1884_v11 = vld [vmem:[%s4769_s23 + $0x308] sm:$0xff] }
 0x3bb   : > { %2733 = vmatpush.msrb.mxu2 %v2273_v12  ;;  %2752 = vmatpush.msrb.mxu3 %v2358_v13  ;;  %v1954_v12 = vld [vmem:[%s4769_s23 + $0x538] sm:$0xff]  ;;  %v2039_v13 = vld [vmem:[%s4769_s23 + $0x7e0] sm:$0xff] }
 0x3bc   : > { %2693 = vmatpush.msrb.mxu0 %v2113_v14  ;;  %2712 = vmatpush.msrb.mxu1 %v2198_v15  ;;  %v1794_v14 = vld [vmem:[%s4769_s23 + $0x38] sm:$0xff]  ;;  %v1879_v15 = vld [vmem:[%s4769_s23 + $0x2e0] sm:$0xff] }
 0x3bd   : > { %2734 = vmatpush.msrb.mxu2 %v2268_v16  ;;  %2753 = vmatpush.msrb.mxu3 %v2353_v17  ;;  %v1949_v16 = vld [vmem:[%s4769_s23 + $0x510] sm:$0xff]  ;;  %v2034_v17 = vld [vmem:[%s4769_s23 + $0x7b8] sm:$0xff] }
 0x3be   : > { %2655 = vmatmul.f32.vlgmr.msra.gmra.mxu2 %v5007_v62  ;;  %2694 = vmatpush.msrb.mxu0 %v2108_v19  ;;  %v2014_v62 = vld [vmem:[%s4769_s23 + $0x718] sm:$0xff]  ;;  %v2344_v19 = vld [vmem:[%s4769_s23 + $0x1168] sm:$0xff] }
 0x3bf   : > { %2799 = vmatpush.msra.mxu2 %v2024_v20  ;;  %2713 = vmatpush.msrb.mxu1 %v2193_v21  ;;  %v1789_v20 = vld [vmem:[%s4769_s23 + $0x10] sm:$0xff]  ;;  %v1874_v21 = vld [vmem:[%s4769_s23 + $0x2b8] sm:$0xff] }
 0x3c0   : > { %2754 = vmatpush.msrb.mxu3 %v2348_v22  ;;  %2615 = vmatmul.f32.vlgmr.msra.gmra.mxu0 %v5013_v3  ;;  %v2009_v3 = vld [vmem:[%s4769_s23 + $0x6f0] sm:$0xff] }
 0x3c1   : > { %2675 = vmatmul.f32.vlgmr.msra.gmra.mxu3 %v5016_v4  ;;  %2759 = vmatpush.msra.mxu0 %v1864_v25  ;;  %v2094_v4 = vld [vmem:[%s4769_s23 + $0x998] sm:$0xff]  ;;  %v2029_v22 = vld [vmem:[%s4769_s23 + $0x790] sm:$0xff]  ;;  %v2184_v25 = vld [vmem:[%s4769_s23 + $0xc68] sm:$0xff] }
 0x3c2   : > { %2800 = vmatpush.msra.mxu2 %v2019_v26  ;;  %2819 = vmatpush.msra.mxu3 %v2104_v27  ;;  %v2339_v26 = vld [vmem:[%s4769_s23 + $0x1140] sm:$0xff]  ;;  %v2424_v27 = vld [vmem:[%s4769_s23 + $0x13e8] sm:$0xff] }
 0x3c3   : > { %2714 = vmatpush.msrb.mxu1 %v2188_v28  ;;  %2760 = vmatpush.msra.mxu0 %v1859_v30  ;;  %v1869_v28 = vld [vmem:[%s4769_s23 + $0x290] sm:$0xff]  ;;  %v2179_v30 = vld [vmem:[%s4769_s23 + $0xc40] sm:$0xff] }
 0x3c4   : > { %2635 = vmatmul.f32.vlgmr.msra.gmra.mxu1 %v5025_v10  ;;  %2801 = vmatpush.msra.mxu2 %v2014_v62  ;;  %v1844_v10 = vld [vmem:[%s4769_s23 + $0x1c8] sm:$0xff] }
 0x3c5   : > { %2779 = vmatpush.msra.mxu1 %v1944_v31  ;;  %2820 = vmatpush.msra.mxu3 %v2099_v32  ;;  %v2264_v62 = vld [vmem:[%s4769_s23 + $0xee8] sm:$0xff]  ;;  %v2334_v31 = vld [vmem:[%s4769_s23 + $0x1118] sm:$0xff]  ;;  %v2419_v32 = vld [vmem:[%s4769_s23 + $0x13c0] sm:$0xff] }
 0x3c6   : > { %2761 = vmatpush.msra.mxu0 %v1854_v33  ;;  %2802 = vmatpush.msra.mxu2 %v2009_v3  ;;  %v2174_v33 = vld [vmem:[%s4769_s23 + $0xc18] sm:$0xff]  ;;  %v2259_v3 = vld [vmem:[%s4769_s23 + $0xec0] sm:$0xff] }
 0x3c7   : > { %2780 = vmatpush.msra.mxu1 %v1939_v34  ;;  %2821 = vmatpush.msra.mxu3 %v2094_v4  ;;  %v2329_v34 = vld [vmem:[%s4769_s23 + $0x10f0] sm:$0xff]  ;;  %v2414_v4 = vld [vmem:[%s4769_s23 + $0x1398] sm:$0xff] }
 0x3c8   : > { %2735 = vmatmul.f32.vlgmr.msrb.gmra.mxu2 %v5035_v18  ;;  %2762 = vmatpush.msra.mxu0 %v1849_v35  ;;  %v1839_v18 = vld [vmem:[%s4769_s23 + $0x1a0] sm:$0xff]  ;;  %v2169_v35 = vld [vmem:[%s4769_s23 + $0xbf0] sm:$0xff] }
 0x3c9   : > { %2781 = vmatpush.msra.mxu1 %v1934_v36  ;;  %2803 = vmatpush.msra.mxu2 %v2004_v37  ;;  %v2254_v36 = vld [vmem:[%s4769_s23 + $0xe98] sm:$0xff]  ;;  %v2324_v37 = vld [vmem:[%s4769_s23 + $0x10c8] sm:$0xff] }
 0x3ca   : > { %2822 = vmatpush.msra.mxu3 %v2089_v38  ;;  %2695 = vmatmul.f32.vlgmr.msrb.gmra.mxu0 %v5041_v23  ;;  %v1834_v23 = vld [vmem:[%s4769_s23 + $0x178] sm:$0xff]  ;;  %v2409_v38 = vld [vmem:[%s4769_s23 + $0x1370] sm:$0xff] }
 0x3cb   : > { %2755 = vmatmul.f32.vlgmr.msrb.gmra.mxu3 %v5044_v24  ;;  %2763 = vmatpush.msra.mxu0 %v1844_v10  ;;  %v1989_v24 = vld [vmem:[%s4769_s23 + $0x650] sm:$0xff]  ;;  %v2164_v10 = vld [vmem:[%s4769_s23 + $0xbc8] sm:$0xff] }
 0x3cc   : > { %2782 = vmatpush.msra.mxu1 %v1929_v39  ;;  %2804 = vmatpush.msra.mxu2 %v1999_v40  ;;  %v2249_v39 = vld [vmem:[%s4769_s23 + $0xe70] sm:$0xff]  ;;  %v2319_v40 = vld [vmem:[%s4769_s23 + $0x10a0] sm:$0xff] }
 0x3cd   : > { %2823 = vmatpush.msra.mxu3 %v2084_v41  ;;  %2715 = vmatmul.f32.vlgmr.msrb.gmra.mxu1 %v5051_v29  ;;  %v2069_v29 = vld [vmem:[%s4769_s23 + $0x8d0] sm:$0xff]  ;;  %v2404_v41 = vld [vmem:[%s4769_s23 + $0x1348] sm:$0xff] }
 0x3ce   : > { %2764 = vmatpush.msra.mxu0 %v1839_v18  ;;  %2783 = vmatpush.msra.mxu1 %v1924_v42  ;;  %v2159_v18 = vld [vmem:[%s4769_s23 + $0xba0] sm:$0xff]  ;;  %v2244_v42 = vld [vmem:[%s4769_s23 + $0xe48] sm:$0xff] }
 0x3cf   : > { %2805 = vmatpush.msra.mxu2 %v1994_v43  ;;  %2824 = vmatpush.msra.mxu3 %v2079_v44  ;;  %v2314_v43 = vld [vmem:[%s4769_s23 + $0x1078] sm:$0xff]  ;;  %v2399_v44 = vld [vmem:[%s4769_s23 + $0x1320] sm:$0xff] }
 0x3d0   : > { %2765 = vmatpush.msra.mxu0 %v1834_v23  ;;  %2784 = vmatpush.msra.mxu1 %v1919_v45  ;;  %v2154_v23 = vld [vmem:[%s4769_s23 + $0xb78] sm:$0xff]  ;;  %v2239_v45 = vld [vmem:[%s4769_s23 + $0xe20] sm:$0xff] }
 0x3d1   : > { %2806 = vmatpush.msra.mxu2 %v1989_v24  ;;  %2825 = vmatpush.msra.mxu3 %v2074_v46  ;;  %v2309_v24 = vld [vmem:[%s4769_s23 + $0x1050] sm:$0xff]  ;;  %v2394_v46 = vld [vmem:[%s4769_s23 + $0x12f8] sm:$0xff] }
 0x3d2   : > { %2766 = vmatpush.msra.mxu0 %v1829_v47  ;;  %2785 = vmatpush.msra.mxu1 %v1914_v48  ;;  %v2149_v47 = vld [vmem:[%s4769_s23 + $0xb50] sm:$0xff]  ;;  %v2234_v48 = vld [vmem:[%s4769_s23 + $0xdf8] sm:$0xff] }
 0x3d3   : > { %2807 = vmatpush.msra.mxu2 %v1984_v49  ;;  %2826 = vmatpush.msra.mxu3 %v2069_v29  ;;  %v2304_v49 = vld [vmem:[%s4769_s23 + $0x1028] sm:$0xff]  ;;  %v2389_v29 = vld [vmem:[%s4769_s23 + $0x12d0] sm:$0xff] }
 0x3d4   : > { %2767 = vmatpush.msra.mxu0 %v1824_v50  ;;  %2786 = vmatpush.msra.mxu1 %v1909_v51  ;;  %v2144_v50 = vld [vmem:[%s4769_s23 + $0xb28] sm:$0xff]  ;;  %v2229_v51 = vld [vmem:[%s4769_s23 + $0xdd0] sm:$0xff] }
 0x3d5   : > { %2808 = vmatpush.msra.mxu2 %v1979_v52  ;;  %2827 = vmatpush.msra.mxu3 %v2064_v53  ;;  %v2299_v52 = vld [vmem:[%s4769_s23 + $0x1000] sm:$0xff]  ;;  %v2384_v53 = vld [vmem:[%s4769_s23 + $0x12a8] sm:$0xff] }
 0x3d6   : > { %2768 = vmatpush.msra.mxu0 %v1819_v54  ;;  %2787 = vmatpush.msra.mxu1 %v1904_v55  ;;  %v2139_v54 = vld [vmem:[%s4769_s23 + $0xb00] sm:$0xff]  ;;  %v2224_v55 = vld [vmem:[%s4769_s23 + $0xda8] sm:$0xff] }
 0x3d7   : > { %2809 = vmatpush.msra.mxu2 %v1974_v56  ;;  %2828 = vmatpush.msra.mxu3 %v2059_v57  ;;  %v5274_v56 = vld [vmem:[%s4762_s13] sm:$0x1f]  ;;  %v2294_v57 = vld [vmem:[%s4769_s23 + $0xfd8] sm:$0xff] }
 0x3d8   : > { %2769 = vmatpush.msra.mxu0 %v1814_v58  ;;  %2788 = vmatpush.msra.mxu1 %v1899_v59  ;;  %v2379_v58 = vld [vmem:[%s4769_s23 + $0x1280] sm:$0xff]  ;;  %v2134_v59 = vld [vmem:[%s4769_s23 + $0xad8] sm:$0xff] }
 0x3d9   : > { %2810 = vmatpush.msra.mxu2 %v1969_v60  ;;  %2829 = vmatpush.msra.mxu3 %v2054_v61  ;;  %v2219_v60 = vld [vmem:[%s4769_s23 + $0xd80] sm:$0xff]  ;;  %v2289_v61 = vld [vmem:[%s4769_s23 + $0xfb0] sm:$0xff] }
 0x3da   : > { %2770 = vmatpush.msra.mxu0 %v1809_v63  ;;  %2789 = vmatpush.msra.mxu1 %v1894_v0  ;;  %v2374_v63 = vld [vmem:[%s4769_s23 + $0x1258] sm:$0xff]  ;;  %v2429_v0 = vperm.slane %v5274_v56, 0 }
 0x3db   : > { %2811 = vmatpush.msra.mxu2 %v1964_v1  ;;  %2830 = vmatpush.msra.mxu3 %v2049_v2  ;;  %v2129_v1 = vld [vmem:[%s4769_s23 + $0xab0] sm:$0xff]  ;;  %v2214_v2 = vld [vmem:[%s4769_s23 + $0xd58] sm:$0xff] }
 0x3dc   : > { %2771 = vmatpush.msra.mxu0 %v1804_v5  ;;  %2790 = vmatpush.msra.mxu1 %v1889_v6  ;;  %v2284_v5 = vld [vmem:[%s4769_s23 + $0xf88] sm:$0xff]  ;;  %v2369_v6 = vld [vmem:[%s4769_s23 + $0x1230] sm:$0xff] }
 0x3dd   : > { %2812 = vmatpush.msra.mxu2 %v1959_v7  ;;  %2831 = vmatpush.msra.mxu3 %v2044_v8  ;;  %v2124_v7 = vld [vmem:[%s4769_s23 + $0xa88] sm:$0xff]  ;;  %v2209_v8 = vld [vmem:[%s4769_s23 + $0xd30] sm:$0xff] }
 0x3de   : > { %2772 = vmatpush.msra.mxu0 %v1799_v9  ;;  %2791 = vmatpush.msra.mxu1 %v1884_v11  ;;  %v2279_v11 = vld [vmem:[%s4769_s23 + $0xf60] sm:$0xff] }
 0x3df   : > { %2813 = vmatpush.msra.mxu2 %v1954_v12  ;;  %2832 = vmatpush.msra.mxu3 %v2039_v13  ;;  %v2364_v12 = vld [vmem:[%s4769_s23 + $0x1208] sm:$0xff] }
 0x3e0   : > { %2773 = vmatpush.msra.mxu0 %v1794_v14  ;;  %2792 = vmatpush.msra.mxu1 %v1879_v15  ;;  %v2119_v14 = vld [vmem:[%s4769_s23 + $0xa60] sm:$0xff]  ;;  %v2204_v15 = vld [vmem:[%s4769_s23 + $0xd08] sm:$0xff] }
 0x3e1   : > { %2814 = vmatpush.msra.mxu2 %v1949_v16  ;;  %2833 = vmatpush.msra.mxu3 %v2034_v17  ;;  %v2274_v16 = vld [vmem:[%s4769_s23 + $0xf38] sm:$0xff]  ;;  %v2359_v17 = vld [vmem:[%s4769_s23 + $0x11e0] sm:$0xff] }
 0x3e2   : > { %2774 = vmatpush.msra.mxu0 %v1789_v20  ;;  %2793 = vmatpush.msra.mxu1 %v1874_v21  ;;  %v2199_v20 = vld [vmem:[%s4769_s23 + $0xce0] sm:$0xff] }
 0x3e3   : > { %2879 = vmatpush.msrb.mxu2 %v2344_v19  ;;  %2834 = vmatpush.msra.mxu3 %v2029_v22  ;;  %v2114_v19 = vld [vmem:[%s4769_s23 + $0xa38] sm:$0xff] }
 0x3e4   : > { %2839 = vmatpush.msrb.mxu0 %v2184_v25  ;;  %2794 = vmatpush.msra.mxu1 %v1869_v28  ;;  %v2269_v25 = vld [vmem:[%s4769_s23 + $0xf10] sm:$0xff] }
 0x3e5   : > { %2880 = vmatpush.msrb.mxu2 %v2339_v26  ;;  %2899 = vmatpush.msrb.mxu3 %v2424_v27  ;;  %v2354_v26 = vld [vmem:[%s4769_s23 + $0x11b8] sm:$0xff]  ;;  %v2109_v28 = vld [vmem:[%s4769_s23 + $0xa10] sm:$0xff] }
 0x3e6   : > { %2840 = vmatpush.msrb.mxu0 %v2179_v30  ;;  %2859 = vmatpush.msrb.mxu1 %v2264_v62  ;;  %v2025_v30 = vld [vmem:[%s4769_s23 + $0x770] sm:$0xff]  ;;  %v2194_v62 = vld [vmem:[%s4769_s23 + $0xcb8] sm:$0xff] }
 0x3e7   : > { %2881 = vmatpush.msrb.mxu2 %v2334_v31  ;;  %2900 = vmatpush.msrb.mxu3 %v2419_v32 }
 0x3e8   : > { %2841 = vmatpush.msrb.mxu0 %v2174_v33  ;;  %2860 = vmatpush.msrb.mxu1 %v2259_v3  ;;  %v2349_v33 = vld [vmem:[%s4769_s23 + $0x1190] sm:$0xff]  ;;  %v5303_v3 = vld [vmem:[#allocation2 + $0x18] sm:$0xff] }
 0x3e9   : > { %2882 = vmatpush.msrb.mxu2 %v2329_v34  ;;  %2901 = vmatpush.msrb.mxu3 %v2414_v4  ;;  %v1865_v34 = vld [vmem:[%s4769_s23 + $0x270] sm:$0xff] }
 0x3ea   : > { %2842 = vmatpush.msrb.mxu0 %v2169_v35  ;;  %2861 = vmatpush.msrb.mxu1 %v2254_v36  ;;  %v2020_v35 = vld [vmem:[%s4769_s23 + $0x748] sm:$0xff]  ;;  %v2105_v36 = vld [vmem:[%s4769_s23 + $0x9f0] sm:$0xff] }
 0x3eb   : > { %2883 = vmatpush.msrb.mxu2 %v2324_v37  ;;  %2902 = vmatpush.msrb.mxu3 %v2409_v38  ;;  %v5309_v38 = vld [vmem:[#allocation2 + $0x30] sm:$0xff] }
 0x3ec   : > { %2843 = vmatpush.msrb.mxu0 %v2164_v10  ;;  %2862 = vmatpush.msrb.mxu1 %v2249_v39  ;;  %v2189_v10 = vld [vmem:[%s4769_s23 + $0xc90] sm:$0xff]  ;;  %v1860_v39 = vld [vmem:[%s4769_s23 + $0x248] sm:$0xff] }
 0x3ed   : > { %2884 = vmatpush.msrb.mxu2 %v2319_v40  ;;  %2903 = vmatpush.msrb.mxu3 %v2404_v41  ;;  %v5314_v41 = vld [vmem:[#allocation2 + $0x10] sm:$0xff] }
 0x3ee   : > { %2844 = vmatpush.msrb.mxu0 %v2159_v18  ;;  %2863 = vmatpush.msrb.mxu1 %v2244_v42  ;;  %v2015_v18 = vld [vmem:[%s4769_s23 + $0x720] sm:$0xff]  ;;  %v1945_v42 = vld [vmem:[%s4769_s23 + $0x4f0] sm:$0xff] }
 0x3ef   : > { %2885 = vmatpush.msrb.mxu2 %v2314_v43  ;;  %2904 = vmatpush.msrb.mxu3 %v2399_v44  ;;  %v2100_v43 = vld [vmem:[%s4769_s23 + $0x9c8] sm:$0xff] }
 0x3f0   : > { %2845 = vmatpush.msrb.mxu0 %v2154_v23  ;;  %2864 = vmatpush.msrb.mxu1 %v2239_v45  ;;  %v1855_v23 = vld [vmem:[%s4769_s23 + $0x220] sm:$0xff]  ;;  %v2010_v45 = vld [vmem:[%s4769_s23 + $0x6f8] sm:$0xff] }
 0x3f1   : > { %2886 = vmatpush.msrb.mxu2 %v2309_v24  ;;  %2905 = vmatpush.msrb.mxu3 %v2394_v46 }
 0x3f2   : > { %2846 = vmatpush.msrb.mxu0 %v2149_v47  ;;  %2865 = vmatpush.msrb.mxu1 %v2234_v48  ;;  %v5322_v47 = vld [vmem:[#allocation2] sm:$0xff]  ;;  %v1940_v48 = vld [vmem:[%s4769_s23 + $0x4c8] sm:$0xff] }
 0x3f3   : > { %2887 = vmatpush.msrb.mxu2 %v2304_v49  ;;  %2906 = vmatpush.msrb.mxu3 %v2389_v29  ;;  %v2095_v49 = vld [vmem:[%s4769_s23 + $0x9a0] sm:$0xff]  ;;  %v1850_v29 = vld [vmem:[%s4769_s23 + $0x1f8] sm:$0xff] }
 0x3f4   : > { %2847 = vmatpush.msrb.mxu0 %v2144_v50  ;;  %2866 = vmatpush.msrb.mxu1 %v2229_v51  ;;  %v1935_v51 = vld [vmem:[%s4769_s23 + $0x4a0] sm:$0xff] }
 0x3f5   : > { %2888 = vmatpush.msrb.mxu2 %v2299_v52  ;;  %2907 = vmatpush.msrb.mxu3 %v2384_v53  ;;  %v2005_v52 = vld [vmem:[%s4769_s23 + $0x6d0] sm:$0xff] }
 0x3f6   : > { %2848 = vmatpush.msrb.mxu0 %v2139_v54  ;;  %2867 = vmatpush.msrb.mxu1 %v2224_v55  ;;  %v2090_v54 = vld [vmem:[%s4769_s23 + $0x978] sm:$0xff] }
 0x3f7   : > { %2889 = vmatpush.msrb.mxu2 %v2294_v57  ;;  %2908 = vmatpush.msrb.mxu3 %v2379_v58  ;;  %v5331_v57 = vld [vmem:[#allocation2 + $0x28] sm:$0xff]  ;;  %v1845_v58 = vld [vmem:[%s4769_s23 + $0x1d0] sm:$0xff] }
 0x3f8   : > { %2849 = vmatpush.msrb.mxu0 %v2134_v59  ;;  %2868 = vmatpush.msrb.mxu1 %v2219_v60  ;;  %v1930_v59 = vld [vmem:[%s4769_s23 + $0x478] sm:$0xff]  ;;  %v2000_v60 = vld [vmem:[%s4769_s23 + $0x6a8] sm:$0xff] }
 0x3f9   : > { %2890 = vmatpush.msrb.mxu2 %v2289_v61  ;;  %2909 = vmatpush.msrb.mxu3 %v2374_v63  ;;  %v2456_v9 = vpop.f32.mrf.mxu0  ;;  %v5337_v63 = vld [vmem:[#allocation2 + $0x8] sm:$0xff] }
 0x3fa   : > { %2850 = vmatpush.msrb.mxu0 %v2129_v1  ;;  %2869 = vmatpush.msrb.mxu1 %v2214_v2  ;;  %v2457_v13 = vadd.f32 %v2456_v9, %v2429_v0  ;;  %v2085_v0 = vld [vmem:[%s4769_s23 + $0x950] sm:$0xff]  ;;  %v5341_v1 = vld [vmem:[#allocation2 + $0x38] sm:$0xff]  ;;  %v1840_v2 = vld [vmem:[%s4769_s23 + $0x1a8] sm:$0xff] }
 0x3fb   : > { %2891 = vmatpush.msrb.mxu2 %v2284_v5  ;;  %2910 = vmatpush.msrb.mxu3 %v2369_v6  ;;  %v1925_v5 = vld [vmem:[%s4769_s23 + $0x450] sm:$0xff]  ;;  %v1995_v6 = vld [vmem:[%s4769_s23 + $0x680] sm:$0xff] }
 0x3fc   : > { %2851 = vmatpush.msrb.mxu0 %v2124_v7  ;;  %2870 = vmatpush.msrb.mxu1 %v2209_v8  ;;  %v2080_v7 = vld [vmem:[%s4769_s23 + $0x928] sm:$0xff]  ;;  %v5349_v8 = vld [vmem:[#allocation2 + $0x20] sm:$0xff] }
 0x3fd   : > { %2892 = vmatpush.msrb.mxu2 %v2279_v11  ;;  %2911 = vmatpush.msrb.mxu3 %v2364_v12  ;;  %v2476_v21 = vpop.f32.mrf.mxu1  ;;  %v2496_v22 = vpop.f32.mrf.mxu2  ;;  %v1835_v9 = vld [vmem:[%s4769_s23 + $0x180] sm:$0xff]  ;;  %v1920_v11 = vld [vmem:[%s4769_s23 + $0x428] sm:$0xff]  ;;  %v1990_v12 = vld [vmem:[%s4769_s23 + $0x658] sm:$0xff] }
 0x3fe   : > { %2852 = vmatpush.msrb.mxu0 %v2119_v14  ;;  %2871 = vmatpush.msrb.mxu1 %v2204_v15  ;;  %v2477_v27 = vadd.f32 %v2476_v21, %v2457_v13  ;;  %v2075_v13 = vld [vmem:[%s4769_s23 + $0x900] sm:$0xff]  ;;  %v1830_v14 = vld [vmem:[%s4769_s23 + $0x158] sm:$0xff]  ;;  %v1980_v21 = vld [vmem:[%s4769_s23 + $0x608] sm:$0xff] }
 0x3ff   : > { %2893 = vmatpush.msrb.mxu2 %v2274_v16  ;;  %2912 = vmatpush.msrb.mxu3 %v2359_v17  ;;  %v1915_v15 = vld [vmem:[%s4769_s23 + $0x400] sm:$0xff]  ;;  %v1985_v16 = vld [vmem:[%s4769_s23 + $0x630] sm:$0xff]  ;;  %v2070_v17 = vld [vmem:[%s4769_s23 + $0x8d8] sm:$0xff] }
 0x400   : > { %2853 = vmatpush.msrb.mxu0 %v2114_v19  ;;  %2872 = vmatpush.msrb.mxu1 %v2199_v20  ;;  %v2497_v31 = vadd.f32 %v2496_v22, %v2477_v27  ;;  %v2516_v32 = vpop.f32.mrf.mxu3  ;;  %v1825_v19 = vld [vmem:[%s4769_s23 + $0x130] sm:$0xff]  ;;  %v1910_v20 = vld [vmem:[%s4769_s23 + $0x3d8] sm:$0xff]  ;;  %v1975_v27 = vld [vmem:[%s4769_s23 + $0x5e0] sm:$0xff] }
 0x401   : > { %2894 = vmatpush.msrb.mxu2 %v2269_v25  ;;  %2913 = vmatpush.msrb.mxu3 %v2354_v26  ;;  %v2065_v22 = vld [vmem:[%s4769_s23 + $0x8b0] sm:$0xff]  ;;  %v1820_v25 = vld [vmem:[%s4769_s23 + $0x108] sm:$0xff] }
 0x402   : > { %2815 = vmatmul.f32.vlgmr.msra.gmra.mxu2 %v5303_v3  ;;  %2854 = vmatpush.msrb.mxu0 %v2109_v28  ;;  %v2517_v4 = vadd.f32 %v2516_v32, %v2497_v31  ;;  %v1905_v26 = vld [vmem:[%s4769_s23 + $0x3b0] sm:$0xff]  ;;  %v2060_v28 = vld [vmem:[%s4769_s23 + $0x888] sm:$0xff]  ;;  %v1970_v31 = vld [vmem:[%s4769_s23 + $0x5b8] sm:$0xff] }
 0x403   : > { %2959 = vmatpush.msra.mxu2 %v2025_v30  ;;  %2873 = vmatpush.msrb.mxu1 %v2194_v62  ;;  %v2536_v37 = vpop.f32.mrf.mxu0  ;;  %v1815_v30 = vld [vmem:[%s4769_s23 + $0xe0] sm:$0xff]  ;;  %v1900_v62 = vld [vmem:[%s4769_s23 + $0x388] sm:$0xff] }
 0x404   : > { %2914 = vmatpush.msrb.mxu3 %v2349_v33  ;;  %2775 = vmatmul.f32.vlgmr.msra.gmra.mxu0 %v5309_v38  ;;  %v2537_v40 = vadd.f32 %v2536_v37, %v2517_v4  ;;  %v2055_v32 = vld [vmem:[%s4769_s23 + $0x860] sm:$0xff]  ;;  %v1810_v33 = vld [vmem:[%s4769_s23 + $0xb8] sm:$0xff]  ;;  %v1965_v4 = vld [vmem:[%s4769_s23 + $0x590] sm:$0xff] }
 0x405   : > { %2835 = vmatmul.f32.vlgmr.msra.gmra.mxu3 %v5314_v41  ;;  %2919 = vmatpush.msra.mxu0 %v1865_v34  ;;  %v1895_v34 = vld [vmem:[%s4769_s23 + $0x360] sm:$0xff]  ;;  %v1890_v37 = vld [vmem:[%s4769_s23 + $0x338] sm:$0xff] }
 0x406   : > { %2960 = vmatpush.msra.mxu2 %v2020_v35  ;;  %2979 = vmatpush.msra.mxu3 %v2105_v36  ;;  %v2556_v44 = vpop.f32.mrf.mxu1  ;;  %v2050_v35 = vld [vmem:[%s4769_s23 + $0x838] sm:$0xff]  ;;  %v1805_v36 = vld [vmem:[%s4769_s23 + $0x90] sm:$0xff] }
 0x407   : > { %2874 = vmatpush.msrb.mxu1 %v2189_v10  ;;  %2920 = vmatpush.msra.mxu0 %v1860_v39  ;;  %v2557_v24 = vadd.f32 %v2556_v44, %v2537_v40  ;;  %v2576_v46 = vpop.f32.mrf.mxu2  ;;  %v1960_v10 = vld [vmem:[%s4769_s23 + $0x568] sm:$0xff]  ;;  %v2045_v39 = vld [vmem:[%s4769_s23 + $0x810] sm:$0xff]  ;;  %v1795_v44 = vld [vmem:[%s4769_s23 + $0x40] sm:$0xff] }
 0x408   : > { %2795 = vmatmul.f32.vlgmr.msra.gmra.mxu1 %v5322_v47  ;;  %2961 = vmatpush.msra.mxu2 %v2015_v18  ;;  %v1800_v40 = vld [vmem:[%s4769_s23 + $0x68] sm:$0xff]  ;;  %v1885_v18 = vld [vmem:[%s4769_s23 + $0x310] sm:$0xff] }
 0x409   : > { %2939 = vmatpush.msra.mxu1 %v1945_v42  ;;  %2980 = vmatpush.msra.mxu3 %v2100_v43  ;;  %v2577_v50 = vadd.f32 %v2576_v46, %v2557_v24  ;;  %v1955_v42 = vld [vmem:[%s4769_s23 + $0x540] sm:$0xff]  ;;  %v2040_v43 = vld [vmem:[%s4769_s23 + $0x7e8] sm:$0xff]  ;;  %v2345_v46 = vld [vmem:[%s4769_s23 + $0x1170] sm:$0xff] }
 0x40a   : > { %2921 = vmatpush.msra.mxu0 %v1855_v23  ;;  %2962 = vmatpush.msra.mxu2 %v2010_v45  ;;  %v2596_v53 = vpop.f32.mrf.mxu3  ;;  %v1880_v23 = vld [vmem:[%s4769_s23 + $0x2e8] sm:$0xff]  ;;  %v1950_v45 = vld [vmem:[%s4769_s23 + $0x518] sm:$0xff]  ;;  %v2035_v24 = vld [vmem:[%s4769_s23 + $0x7c0] sm:$0xff] }
 0x40b   : > { %2940 = vmatpush.msra.mxu1 %v1940_v48  ;;  %2981 = vmatpush.msra.mxu3 %v2095_v49  ;;  %v2597_v55 = vadd.f32 %v2596_v53, %v2577_v50  ;;  %v1790_v48 = vld [vmem:[%s4769_s23 + $0x18] sm:$0xff]  ;;  %v1875_v49 = vld [vmem:[%s4769_s23 + $0x2c0] sm:$0xff]  ;;  %v2185_v50 = vld [vmem:[%s4769_s23 + $0xc70] sm:$0xff] }
 0x40c   : > { %2895 = vmatmul.f32.vlgmr.msrb.gmra.mxu2 %v5331_v57  ;;  %2922 = vmatpush.msra.mxu0 %v1850_v29  ;;  %v2030_v29 = vld [vmem:[%s4769_s23 + $0x798] sm:$0xff] }
 0x40d   : > { %2941 = vmatpush.msra.mxu1 %v1935_v51  ;;  %2963 = vmatpush.msra.mxu2 %v2005_v52  ;;  %v3239_v61 = vmax.f32 %v2597_v55, 0.0  ;;  %v2340_v51 = vld [vmem:[%s4769_s23 + $0x1148] sm:$0xff]  ;;  %v2425_v52 = vld [vmem:[%s4769_s23 + $0x13f0] sm:$0xff]  ;;  %v1870_v53 = vld [vmem:[%s4769_s23 + $0x298] sm:$0xff] }
 0x40e   : > { %2982 = vmatpush.msra.mxu3 %v2090_v54  ;;  %2855 = vmatmul.f32.vlgmr.msrb.gmra.mxu0 %v5337_v63  ;;  %v2180_v54 = vld [vmem:[%s4769_s23 + $0xc48] sm:$0xff]  ;;  %v2265_v55 = vld [vmem:[%s4769_s23 + $0xef0] sm:$0xff] }
 0x40f   : > { %2915 = vmatmul.f32.vlgmr.msrb.gmra.mxu3 %v5341_v1  ;;  %2923 = vmatpush.msra.mxu0 %v1845_v58  ;;  %3244 = vst [vmem:[%s4767_s17] sm:$0xff] %v3239_v61  ;;  %v2335_v58 = vld [vmem:[%s4769_s23 + $0x1120] sm:$0xff]  ;;  %v2260_v61 = vld [vmem:[%s4769_s23 + $0xec8] sm:$0xff] }
 0x410   : > { %2942 = vmatpush.msra.mxu1 %v1930_v59  ;;  %2964 = vmatpush.msra.mxu2 %v2000_v60  ;;  %v2420_v59 = vld [vmem:[%s4769_s23 + $0x13c8] sm:$0xff]  ;;  %v2175_v60 = vld [vmem:[%s4769_s23 + $0xc20] sm:$0xff] }
 0x411   : > { %2983 = vmatpush.msra.mxu3 %v2085_v0  ;;  %2875 = vmatmul.f32.vlgmr.msrb.gmra.mxu1 %v5349_v8  ;;  %v2330_v0 = vld [vmem:[%s4769_s23 + $0x10f8] sm:$0xff] }
 0x412   : > { %2924 = vmatpush.msra.mxu0 %v1840_v2  ;;  %2943 = vmatpush.msra.mxu1 %v1925_v5  ;;  %v2415_v2 = vld [vmem:[%s4769_s23 + $0x13a0] sm:$0xff]  ;;  %v2170_v5 = vld [vmem:[%s4769_s23 + $0xbf8] sm:$0xff] }
 0x413   : > { %2965 = vmatpush.msra.mxu2 %v1995_v6  ;;  %2984 = vmatpush.msra.mxu3 %v2080_v7  ;;  %v2255_v6 = vld [vmem:[%s4769_s23 + $0xea0] sm:$0xff]  ;;  %v2325_v7 = vld [vmem:[%s4769_s23 + $0x10d0] sm:$0xff] }
 0x414   : > { %2925 = vmatpush.msra.mxu0 %v1835_v9  ;;  %2944 = vmatpush.msra.mxu1 %v1920_v11  ;;  %v2410_v9 = vld [vmem:[%s4769_s23 + $0x1378] sm:$0xff]  ;;  %v2165_v11 = vld [vmem:[%s4769_s23 + $0xbd0] sm:$0xff] }
 0x415   : > { %2966 = vmatpush.msra.mxu2 %v1990_v12  ;;  %2985 = vmatpush.msra.mxu3 %v2075_v13  ;;  %v2250_v12 = vld [vmem:[%s4769_s23 + $0xe78] sm:$0xff]  ;;  %v2320_v13 = vld [vmem:[%s4769_s23 + $0x10a8] sm:$0xff] }
 0x416   : > { %2926 = vmatpush.msra.mxu0 %v1830_v14  ;;  %2945 = vmatpush.msra.mxu1 %v1915_v15  ;;  %v2405_v14 = vld [vmem:[%s4769_s23 + $0x1350] sm:$0xff]  ;;  %v2160_v15 = vld [vmem:[%s4769_s23 + $0xba8] sm:$0xff] }
 0x417   : > { %2967 = vmatpush.msra.mxu2 %v1985_v16  ;;  %2986 = vmatpush.msra.mxu3 %v2070_v17  ;;  %v2245_v16 = vld [vmem:[%s4769_s23 + $0xe50] sm:$0xff]  ;;  %v2315_v17 = vld [vmem:[%s4769_s23 + $0x1080] sm:$0xff] }
 0x418   : > { %2927 = vmatpush.msra.mxu0 %v1825_v19  ;;  %2946 = vmatpush.msra.mxu1 %v1910_v20  ;;  %v2400_v19 = vld [vmem:[%s4769_s23 + $0x1328] sm:$0xff]  ;;  %v2155_v20 = vld [vmem:[%s4769_s23 + $0xb80] sm:$0xff] }
 0x419   : > { %2968 = vmatpush.msra.mxu2 %v1980_v21  ;;  %2987 = vmatpush.msra.mxu3 %v2065_v22  ;;  %v2240_v21 = vld [vmem:[%s4769_s23 + $0xe28] sm:$0xff]  ;;  %v2310_v22 = vld [vmem:[%s4769_s23 + $0x1058] sm:$0xff] }
 0x41a   : > { %2928 = vmatpush.msra.mxu0 %v1820_v25  ;;  %2947 = vmatpush.msra.mxu1 %v1905_v26  ;;  %v2395_v25 = vld [vmem:[%s4769_s23 + $0x1300] sm:$0xff]  ;;  %v2150_v26 = vld [vmem:[%s4769_s23 + $0xb58] sm:$0xff] }
 0x41b   : > { %2969 = vmatpush.msra.mxu2 %v1975_v27  ;;  %2988 = vmatpush.msra.mxu3 %v2060_v28  ;;  %v2235_v27 = vld [vmem:[%s4769_s23 + $0xe00] sm:$0xff]  ;;  %v2305_v28 = vld [vmem:[%s4769_s23 + $0x1030] sm:$0xff] }
 0x41c   : > { %2929 = vmatpush.msra.mxu0 %v1815_v30  ;;  %2948 = vmatpush.msra.mxu1 %v1900_v62  ;;  %v2390_v30 = vld [vmem:[%s4769_s23 + $0x12d8] sm:$0xff]  ;;  %v2145_v62 = vld [vmem:[%s4769_s23 + $0xb30] sm:$0xff] }
 0x41d   : > { %2970 = vmatpush.msra.mxu2 %v1970_v31  ;;  %2989 = vmatpush.msra.mxu3 %v2055_v32  ;;  %v2230_v31 = vld [vmem:[%s4769_s23 + $0xdd8] sm:$0xff]  ;;  %v2300_v32 = vld [vmem:[%s4769_s23 + $0x1008] sm:$0xff] }
 0x41e   : > { %2930 = vmatpush.msra.mxu0 %v1810_v33  ;;  %2949 = vmatpush.msra.mxu1 %v1895_v34  ;;  %v2385_v33 = vld [vmem:[%s4769_s23 + $0x12b0] sm:$0xff]  ;;  %v2140_v34 = vld [vmem:[%s4769_s23 + $0xb08] sm:$0xff] }
 0x41f   : > { %2971 = vmatpush.msra.mxu2 %v1965_v4  ;;  %2990 = vmatpush.msra.mxu3 %v2050_v35  ;;  %v2225_v4 = vld [vmem:[%s4769_s23 + $0xdb0] sm:$0xff]  ;;  %v2295_v35 = vld [vmem:[%s4769_s23 + $0xfe0] sm:$0xff] }
 0x420   : > { %2931 = vmatpush.msra.mxu0 %v1805_v36  ;;  %2950 = vmatpush.msra.mxu1 %v1890_v37  ;;  %v2380_v36 = vld [vmem:[%s4769_s23 + $0x1288] sm:$0xff]  ;;  %v2135_v37 = vld [vmem:[%s4769_s23 + $0xae0] sm:$0xff] }
 0x421   : > { %2972 = vmatpush.msra.mxu2 %v1960_v10  ;;  %2991 = vmatpush.msra.mxu3 %v2045_v39  ;;  %v2220_v10 = vld [vmem:[%s4769_s23 + $0xd88] sm:$0xff]  ;;  %v2290_v39 = vld [vmem:[%s4769_s23 + $0xfb8] sm:$0xff] }
 0x422   : > { %2932 = vmatpush.msra.mxu0 %v1800_v40  ;;  %2951 = vmatpush.msra.mxu1 %v1885_v18  ;;  %v2375_v40 = vld [vmem:[%s4769_s23 + $0x1260] sm:$0xff]  ;;  %v2430_v18 = vperm.slane %v5274_v56, 1  ;;  %v2280_v56 = vld [vmem:[%s4769_s23 + $0xf68] sm:$0xff] }
 0x423   : > { %2973 = vmatpush.msra.mxu2 %v1955_v42  ;;  %2992 = vmatpush.msra.mxu3 %v2040_v43  ;;  %v2130_v42 = vld [vmem:[%s4769_s23 + $0xab8] sm:$0xff]  ;;  %v2215_v43 = vld [vmem:[%s4769_s23 + $0xd60] sm:$0xff] }
 0x424   : > { %2933 = vmatpush.msra.mxu0 %v1795_v44  ;;  %2952 = vmatpush.msra.mxu1 %v1880_v23  ;;  %v2285_v44 = vld [vmem:[%s4769_s23 + $0xf90] sm:$0xff]  ;;  %v2370_v23 = vld [vmem:[%s4769_s23 + $0x1238] sm:$0xff] }
 0x425   : > { %2974 = vmatpush.msra.mxu2 %v1950_v45  ;;  %2993 = vmatpush.msra.mxu3 %v2035_v24  ;;  %v2125_v45 = vld [vmem:[%s4769_s23 + $0xa90] sm:$0xff]  ;;  %v2210_v24 = vld [vmem:[%s4769_s23 + $0xd38] sm:$0xff] }
 0x426   : > { %2934 = vmatpush.msra.mxu0 %v1790_v48  ;;  %2953 = vmatpush.msra.mxu1 %v1875_v49  ;;  %v2365_v48 = vld [vmem:[%s4769_s23 + $0x1210] sm:$0xff] }
 0x427   : > { %3039 = vmatpush.msrb.mxu2 %v2345_v46  ;;  %2994 = vmatpush.msra.mxu3 %v2030_v29  ;;  %v2120_v29 = vld [vmem:[%s4769_s23 + $0xa68] sm:$0xff] }
 0x428   : > { %2999 = vmatpush.msrb.mxu0 %v2185_v50  ;;  %2954 = vmatpush.msra.mxu1 %v1870_v53  ;;  %v2205_v50 = vld [vmem:[%s4769_s23 + $0xd10] sm:$0xff]  ;;  %v2115_v53 = vld [vmem:[%s4769_s23 + $0xa40] sm:$0xff] }
 0x429   : > { %3040 = vmatpush.msrb.mxu2 %v2340_v51  ;;  %3059 = vmatpush.msrb.mxu3 %v2425_v52  ;;  %v2275_v51 = vld [vmem:[%s4769_s23 + $0xf40] sm:$0xff]  ;;  %v2360_v52 = vld [vmem:[%s4769_s23 + $0x11e8] sm:$0xff] }
 0x42a   : > { %3000 = vmatpush.msrb.mxu0 %v2180_v54  ;;  %3019 = vmatpush.msrb.mxu1 %v2265_v55  ;;  %v2200_v54 = vld [vmem:[%s4769_s23 + $0xce8] sm:$0xff] }
 0x42b   : > { %3041 = vmatpush.msrb.mxu2 %v2335_v58  ;;  %3060 = vmatpush.msrb.mxu3 %v2420_v59  ;;  %v2270_v59 = vld [vmem:[%s4769_s23 + $0xf18] sm:$0xff] }
 0x42c   : > { %3001 = vmatpush.msrb.mxu0 %v2175_v60  ;;  %3020 = vmatpush.msrb.mxu1 %v2260_v61  ;;  %v2355_v60 = vld [vmem:[%s4769_s23 + $0x11c0] sm:$0xff] }
 0x42d   : > { %3042 = vmatpush.msrb.mxu2 %v2330_v0  ;;  %3061 = vmatpush.msrb.mxu3 %v2415_v2  ;;  %v2110_v0 = vld [vmem:[%s4769_s23 + $0xa18] sm:$0xff] }
 0x42e   : > { %3002 = vmatpush.msrb.mxu0 %v2170_v5  ;;  %3021 = vmatpush.msrb.mxu1 %v2255_v6  ;;  %v2026_v2 = vld [vmem:[%s4769_s23 + $0x778] sm:$0xff]  ;;  %v2195_v5 = vld [vmem:[%s4769_s23 + $0xcc0] sm:$0xff] }
 0x42f   : > { %3043 = vmatpush.msrb.mxu2 %v2325_v7  ;;  %3062 = vmatpush.msrb.mxu3 %v2410_v9  ;;  %v2350_v9 = vld [vmem:[%s4769_s23 + $0x1198] sm:$0xff] }
 0x430   : > { %3003 = vmatpush.msrb.mxu0 %v2165_v11  ;;  %3022 = vmatpush.msrb.mxu1 %v2250_v12  ;;  %v1866_v11 = vld [vmem:[%s4769_s23 + $0x278] sm:$0xff] }
 0x431   : > { %3044 = vmatpush.msrb.mxu2 %v2320_v13  ;;  %3063 = vmatpush.msrb.mxu3 %v2405_v14  ;;  %v2021_v13 = vld [vmem:[%s4769_s23 + $0x750] sm:$0xff]  ;;  %v2106_v14 = vld [vmem:[%s4769_s23 + $0x9f8] sm:$0xff] }
 0x432   : > { %3004 = vmatpush.msrb.mxu0 %v2160_v15  ;;  %3023 = vmatpush.msrb.mxu1 %v2245_v16  ;;  %v2190_v16 = vld [vmem:[%s4769_s23 + $0xc98] sm:$0xff] }
 0x433   : > { %3045 = vmatpush.msrb.mxu2 %v2315_v17  ;;  %3064 = vmatpush.msrb.mxu3 %v2400_v19  ;;  %v1861_v17 = vld [vmem:[%s4769_s23 + $0x250] sm:$0xff] }
 0x434   : > { %3005 = vmatpush.msrb.mxu0 %v2155_v20  ;;  %3024 = vmatpush.msrb.mxu1 %v2240_v21  ;;  %v1946_v20 = vld [vmem:[%s4769_s23 + $0x4f8] sm:$0xff]  ;;  %v2101_v21 = vld [vmem:[%s4769_s23 + $0x9d0] sm:$0xff] }
 0x435   : > { %3046 = vmatpush.msrb.mxu2 %v2310_v22  ;;  %3065 = vmatpush.msrb.mxu3 %v2395_v25  ;;  %v2011_v25 = vld [vmem:[%s4769_s23 + $0x700] sm:$0xff] }
 0x436   : > { %3006 = vmatpush.msrb.mxu0 %v2150_v26  ;;  %3025 = vmatpush.msrb.mxu1 %v2235_v27 }
 0x437   : > { %3047 = vmatpush.msrb.mxu2 %v2305_v28  ;;  %3066 = vmatpush.msrb.mxu3 %v2390_v30  ;;  %v2096_v28 = vld [vmem:[%s4769_s23 + $0x9a8] sm:$0xff]  ;;  %v1851_v30 = vld [vmem:[%s4769_s23 + $0x200] sm:$0xff] }
 0x438   : > { %3007 = vmatpush.msrb.mxu0 %v2145_v62  ;;  %3026 = vmatpush.msrb.mxu1 %v2230_v31  ;;  %v1936_v31 = vld [vmem:[%s4769_s23 + $0x4a8] sm:$0xff] }
 0x439   : > { %3048 = vmatpush.msrb.mxu2 %v2300_v32  ;;  %3067 = vmatpush.msrb.mxu3 %v2385_v33  ;;  %v2006_v32 = vld [vmem:[%s4769_s23 + $0x6d8] sm:$0xff] }
 0x43a   : > { %3008 = vmatpush.msrb.mxu0 %v2140_v34  ;;  %3027 = vmatpush.msrb.mxu1 %v2225_v4  ;;  %v1846_v4 = vld [vmem:[%s4769_s23 + $0x1d8] sm:$0xff] }
 0x43b   : > { %3049 = vmatpush.msrb.mxu2 %v2295_v35  ;;  %3068 = vmatpush.msrb.mxu3 %v2380_v36  ;;  %v1931_v35 = vld [vmem:[%s4769_s23 + $0x480] sm:$0xff]  ;;  %v2001_v36 = vld [vmem:[%s4769_s23 + $0x6b0] sm:$0xff] }
 0x43c   : > { %3009 = vmatpush.msrb.mxu0 %v2135_v37  ;;  %3028 = vmatpush.msrb.mxu1 %v2220_v10  ;;  %v2086_v10 = vld [vmem:[%s4769_s23 + $0x958] sm:$0xff] }
 0x43d   : > { %3050 = vmatpush.msrb.mxu2 %v2290_v39  ;;  %3069 = vmatpush.msrb.mxu3 %v2375_v40  ;;  %v2616_v46 = vpop.f32.mrf.mxu0  ;;  %v1926_v39 = vld [vmem:[%s4769_s23 + $0x458] sm:$0xff]  ;;  %v1996_v40 = vld [vmem:[%s4769_s23 + $0x688] sm:$0xff] }
 0x43e   : > { %3010 = vmatpush.msrb.mxu0 %v2130_v42  ;;  %3029 = vmatpush.msrb.mxu1 %v2215_v43  ;;  %v2617_v49 = vadd.f32 %v2616_v46, %v2430_v18  ;;  %v2081_v18 = vld [vmem:[%s4769_s23 + $0x930] sm:$0xff]  ;;  %v2076_v43 = vld [vmem:[%s4769_s23 + $0x908] sm:$0xff]  ;;  %v1911_v46 = vld [vmem:[%s4769_s23 + $0x3e0] sm:$0xff] }
 0x43f   : > { %3051 = vmatpush.msrb.mxu2 %v2285_v44  ;;  %3070 = vmatpush.msrb.mxu3 %v2370_v23  ;;  %v1921_v42 = vld [vmem:[%s4769_s23 + $0x430] sm:$0xff]  ;;  %v1831_v44 = vld [vmem:[%s4769_s23 + $0x160] sm:$0xff]  ;;  %v1916_v23 = vld [vmem:[%s4769_s23 + $0x408] sm:$0xff] }
 0x440   : > { %3011 = vmatpush.msrb.mxu0 %v2125_v45  ;;  %3030 = vmatpush.msrb.mxu1 %v2210_v24  ;;  %v1986_v45 = vld [vmem:[%s4769_s23 + $0x638] sm:$0xff] }
 0x441   : > { %3052 = vmatpush.msrb.mxu2 %v2280_v56  ;;  %3071 = vmatpush.msrb.mxu3 %v2365_v48  ;;  %v2636_v55 = vpop.f32.mrf.mxu1  ;;  %v2656_v58 = vpop.f32.mrf.mxu2  ;;  %v1826_v24 = vld [vmem:[%s4769_s23 + $0x138] sm:$0xff]  ;;  %v1981_v56 = vld [vmem:[%s4769_s23 + $0x610] sm:$0xff] }
 0x442   : > { %3012 = vmatpush.msrb.mxu0 %v2120_v29  ;;  %3031 = vmatpush.msrb.mxu1 %v2205_v50  ;;  %v2637_v61 = vadd.f32 %v2636_v55, %v2617_v49  ;;  %v2066_v48 = vld [vmem:[%s4769_s23 + $0x8b8] sm:$0xff]  ;;  %v1821_v49 = vld [vmem:[%s4769_s23 + $0x110] sm:$0xff]  ;;  %v1976_v50 = vld [vmem:[%s4769_s23 + $0x5e8] sm:$0xff] }
 0x443   : > { %3053 = vmatpush.msrb.mxu2 %v2275_v51  ;;  %3072 = vmatpush.msrb.mxu3 %v2360_v52  ;;  %v1906_v29 = vld [vmem:[%s4769_s23 + $0x3b8] sm:$0xff]  ;;  %v2061_v51 = vld [vmem:[%s4769_s23 + $0x890] sm:$0xff]  ;;  %v1816_v52 = vld [vmem:[%s4769_s23 + $0xe8] sm:$0xff] }
 0x444   : > { %3013 = vmatpush.msrb.mxu0 %v2115_v53  ;;  %3032 = vmatpush.msrb.mxu1 %v2200_v54  ;;  %v2657_v6 = vadd.f32 %v2656_v58, %v2637_v61  ;;  %v2676_v7 = vpop.f32.mrf.mxu3  ;;  %v1901_v53 = vld [vmem:[%s4769_s23 + $0x390] sm:$0xff]  ;;  %v1971_v54 = vld [vmem:[%s4769_s23 + $0x5c0] sm:$0xff]  ;;  %v2056_v55 = vld [vmem:[%s4769_s23 + $0x868] sm:$0xff] }
 0x445   : > { %3054 = vmatpush.msrb.mxu2 %v2270_v59  ;;  %3073 = vmatpush.msrb.mxu3 %v2355_v60  ;;  %v1811_v58 = vld [vmem:[%s4769_s23 + $0xc0] sm:$0xff]  ;;  %v1896_v59 = vld [vmem:[%s4769_s23 + $0x368] sm:$0xff]  ;;  %v1966_v60 = vld [vmem:[%s4769_s23 + $0x598] sm:$0xff] }
 0x446   : > { %2975 = vmatmul.f32.vlgmr.msra.gmra.mxu2 %v5303_v3  ;;  %3014 = vmatpush.msrb.mxu0 %v2110_v0  ;;  %v2677_v12 = vadd.f32 %v2676_v7, %v2657_v6  ;;  %v2016_v3 = vld [vmem:[%s4769_s23 + $0x728] sm:$0xff]  ;;  %v2051_v61 = vld [vmem:[%s4769_s23 + $0x840] sm:$0xff]  ;;  %v1806_v0 = vld [vmem:[%s4769_s23 + $0x98] sm:$0xff] }
 0x447   : > { %3119 = vmatpush.msra.mxu2 %v2026_v2  ;;  %3033 = vmatpush.msrb.mxu1 %v2195_v5  ;;  %v2696_v15 = vpop.f32.mrf.mxu0  ;;  %v1891_v2 = vld [vmem:[%s4769_s23 + $0x340] sm:$0xff]  ;;  %v1961_v5 = vld [vmem:[%s4769_s23 + $0x570] sm:$0xff]  ;;  %v2046_v6 = vld [vmem:[%s4769_s23 + $0x818] sm:$0xff] }
 0x448   : > { %3074 = vmatpush.msrb.mxu3 %v2350_v9  ;;  %2935 = vmatmul.f32.vlgmr.msra.gmra.mxu0 %v5309_v38  ;;  %v2697_v19 = vadd.f32 %v2696_v15, %v2677_v12  ;;  %v1856_v38 = vld [vmem:[%s4769_s23 + $0x228] sm:$0xff]  ;;  %v1801_v7 = vld [vmem:[%s4769_s23 + $0x70] sm:$0xff]  ;;  %v1886_v9 = vld [vmem:[%s4769_s23 + $0x318] sm:$0xff] }
 0x449   : > { %2995 = vmatmul.f32.vlgmr.msra.gmra.mxu3 %v5314_v41  ;;  %3079 = vmatpush.msra.mxu0 %v1866_v11  ;;  %v1941_v41 = vld [vmem:[%s4769_s23 + $0x4d0] sm:$0xff]  ;;  %v1956_v11 = vld [vmem:[%s4769_s23 + $0x548] sm:$0xff]  ;;  %v1951_v15 = vld [vmem:[%s4769_s23 + $0x520] sm:$0xff] }
 0x44a   : > { %3120 = vmatpush.msra.mxu2 %v2021_v13  ;;  %3139 = vmatpush.msra.mxu3 %v2106_v14  ;;  %v2716_v22 = vpop.f32.mrf.mxu1  ;;  %v2041_v12 = vld [vmem:[%s4769_s23 + $0x7f0] sm:$0xff]  ;;  %v1796_v13 = vld [vmem:[%s4769_s23 + $0x48] sm:$0xff] }
 0x44b   : > { %3034 = vmatpush.msrb.mxu1 %v2190_v16  ;;  %3080 = vmatpush.msra.mxu0 %v1861_v17  ;;  %v2717_v26 = vadd.f32 %v2716_v22, %v2697_v19  ;;  %v2736_v27 = vpop.f32.mrf.mxu2  ;;  %v1881_v14 = vld [vmem:[%s4769_s23 + $0x2f0] sm:$0xff]  ;;  %v2036_v16 = vld [vmem:[%s4769_s23 + $0x7c8] sm:$0xff]  ;;  %v2346_v17 = vld [vmem:[%s4769_s23 + $0x1178] sm:$0xff] }
 0x44c   : > { %2955 = vmatmul.f32.vlgmr.msra.gmra.mxu1 %v5322_v47  ;;  %3121 = vmatpush.msra.mxu2 %v2016_v3  ;;  %v2091_v47 = vld [vmem:[%s4769_s23 + $0x980] sm:$0xff]  ;;  %v1876_v3 = vld [vmem:[%s4769_s23 + $0x2c8] sm:$0xff]  ;;  %v2341_v22 = vld [vmem:[%s4769_s23 + $0x1150] sm:$0xff] }
 0x44d   : > { %3099 = vmatpush.msra.mxu1 %v1946_v20  ;;  %3140 = vmatpush.msra.mxu3 %v2101_v21  ;;  %v2737_v62 = vadd.f32 %v2736_v27, %v2717_v26  ;;  %v1791_v19 = vld [vmem:[%s4769_s23 + $0x20] sm:$0xff]  ;;  %v2186_v21 = vld [vmem:[%s4769_s23 + $0xc78] sm:$0xff]  ;;  %v2181_v26 = vld [vmem:[%s4769_s23 + $0xc50] sm:$0xff] }
 0x44e   : > { %3081 = vmatpush.msra.mxu0 %v1856_v38  ;;  %3122 = vmatpush.msra.mxu2 %v2011_v25  ;;  %v2756_v33 = vpop.f32.mrf.mxu3  ;;  %v2031_v20 = vld [vmem:[%s4769_s23 + $0x7a0] sm:$0xff]  ;;  %v2426_v38 = vld [vmem:[%s4769_s23 + $0x13f8] sm:$0xff] }
 0x44f   : > { %3100 = vmatpush.msra.mxu1 %v1941_v41  ;;  %3141 = vmatpush.msra.mxu3 %v2096_v28  ;;  %v2757_v34 = vadd.f32 %v2756_v33, %v2737_v62  ;;  %v1871_v25 = vld [vmem:[%s4769_s23 + $0x2a0] sm:$0xff]  ;;  %v2266_v27 = vld [vmem:[%s4769_s23 + $0xef8] sm:$0xff]  ;;  %v2336_v41 = vld [vmem:[%s4769_s23 + $0x1128] sm:$0xff] }
 0x450   : > { %3055 = vmatmul.f32.vlgmr.msrb.gmra.mxu2 %v5331_v57  ;;  %3082 = vmatpush.msra.mxu0 %v1851_v30  ;;  %v1841_v57 = vld [vmem:[%s4769_s23 + $0x1b0] sm:$0xff]  ;;  %v2176_v30 = vld [vmem:[%s4769_s23 + $0xc28] sm:$0xff]  ;;  %v2171_v33 = vld [vmem:[%s4769_s23 + $0xc00] sm:$0xff] }
 0x451   : > { %3101 = vmatpush.msra.mxu1 %v1936_v31  ;;  %3123 = vmatpush.msra.mxu2 %v2006_v32  ;;  %v3240_v37 = vmax.f32 %v2757_v34, 0.0  ;;  %v2421_v28 = vld [vmem:[%s4769_s23 + $0x13d0] sm:$0xff]  ;;  %v2331_v31 = vld [vmem:[%s4769_s23 + $0x1100] sm:$0xff]  ;;  %v2416_v32 = vld [vmem:[%s4769_s23 + $0x13a8] sm:$0xff] }
 0x452   : > { %3142 = vmatpush.msra.mxu3 %v2091_v47  ;;  %3015 = vmatmul.f32.vlgmr.msrb.gmra.mxu0 %v5337_v63  ;;  %v1836_v63 = vld [vmem:[%s4769_s23 + $0x188] sm:$0xff]  ;;  %v2261_v62 = vld [vmem:[%s4769_s23 + $0xed0] sm:$0xff]  ;;  %v2326_v34 = vld [vmem:[%s4769_s23 + $0x10d8] sm:$0xff] }
 0x453   : > { %3075 = vmatmul.f32.vlgmr.msrb.gmra.mxu3 %v5341_v1  ;;  %3083 = vmatpush.msra.mxu0 %v1846_v4  ;;  %3245 = vst [vmem:[%s4767_s17 + $0x8] sm:$0xff] %v3240_v37  ;;  %v1991_v1 = vld [vmem:[%s4769_s23 + $0x660] sm:$0xff]  ;;  %v2256_v47 = vld [vmem:[%s4769_s23 + $0xea8] sm:$0xff]  ;;  %v2321_v37 = vld [vmem:[%s4769_s23 + $0x10b0] sm:$0xff] }
 0x454   : > { %3102 = vmatpush.msra.mxu1 %v1931_v35  ;;  %3124 = vmatpush.msra.mxu2 %v2001_v36  ;;  %v2411_v4 = vld [vmem:[%s4769_s23 + $0x1380] sm:$0xff]  ;;  %v2166_v35 = vld [vmem:[%s4769_s23 + $0xbd8] sm:$0xff] }
 0x455   : > { %3143 = vmatpush.msra.mxu3 %v2086_v10  ;;  %3035 = vmatmul.f32.vlgmr.msrb.gmra.mxu1 %v5349_v8  ;;  %v2071_v8 = vld [vmem:[%s4769_s23 + $0x8e0] sm:$0xff]  ;;  %v2406_v10 = vld [vmem:[%s4769_s23 + $0x1358] sm:$0xff] }
 0x456   : > { %3084 = vmatpush.msra.mxu0 %v1841_v57  ;;  %3103 = vmatpush.msra.mxu1 %v1926_v39  ;;  %v2251_v36 = vld [vmem:[%s4769_s23 + $0xe80] sm:$0xff]  ;;  %v2161_v57 = vld [vmem:[%s4769_s23 + $0xbb0] sm:$0xff]  ;;  %v2246_v39 = vld [vmem:[%s4769_s23 + $0xe58] sm:$0xff] }
 0x457   : > { %3125 = vmatpush.msra.mxu2 %v1996_v40  ;;  %3144 = vmatpush.msra.mxu3 %v2081_v18  ;;  %v2316_v40 = vld [vmem:[%s4769_s23 + $0x1088] sm:$0xff]  ;;  %v2401_v18 = vld [vmem:[%s4769_s23 + $0x1330] sm:$0xff] }
 0x458   : > { %3085 = vmatpush.msra.mxu0 %v1836_v63  ;;  %3104 = vmatpush.msra.mxu1 %v1921_v42  ;;  %v2156_v63 = vld [vmem:[%s4769_s23 + $0xb88] sm:$0xff]  ;;  %v2241_v42 = vld [vmem:[%s4769_s23 + $0xe30] sm:$0xff] }
 0x459   : > { %3126 = vmatpush.msra.mxu2 %v1991_v1  ;;  %3145 = vmatpush.msra.mxu3 %v2076_v43  ;;  %v2311_v1 = vld [vmem:[%s4769_s23 + $0x1060] sm:$0xff]  ;;  %v2396_v43 = vld [vmem:[%s4769_s23 + $0x1308] sm:$0xff] }
 0x45a   : > { %3086 = vmatpush.msra.mxu0 %v1831_v44  ;;  %3105 = vmatpush.msra.mxu1 %v1916_v23  ;;  %v2151_v44 = vld [vmem:[%s4769_s23 + $0xb60] sm:$0xff]  ;;  %v2236_v23 = vld [vmem:[%s4769_s23 + $0xe08] sm:$0xff] }
 0x45b   : > { %3127 = vmatpush.msra.mxu2 %v1986_v45  ;;  %3146 = vmatpush.msra.mxu3 %v2071_v8  ;;  %v2306_v45 = vld [vmem:[%s4769_s23 + $0x1038] sm:$0xff]  ;;  %v2391_v8 = vld [vmem:[%s4769_s23 + $0x12e0] sm:$0xff] }
 0x45c   : > { %3087 = vmatpush.msra.mxu0 %v1826_v24  ;;  %3106 = vmatpush.msra.mxu1 %v1911_v46  ;;  %v2146_v24 = vld [vmem:[%s4769_s23 + $0xb38] sm:$0xff]  ;;  %v2231_v46 = vld [vmem:[%s4769_s23 + $0xde0] sm:$0xff] }
 0x45d   : > { %3128 = vmatpush.msra.mxu2 %v1981_v56  ;;  %3147 = vmatpush.msra.mxu3 %v2066_v48  ;;  %v2301_v56 = vld [vmem:[%s4769_s23 + $0x1010] sm:$0xff]  ;;  %v2386_v48 = vld [vmem:[%s4769_s23 + $0x12b8] sm:$0xff] }
 0x45e   : > { %3088 = vmatpush.msra.mxu0 %v1821_v49  ;;  %3107 = vmatpush.msra.mxu1 %v1906_v29  ;;  %v2141_v49 = vld [vmem:[%s4769_s23 + $0xb10] sm:$0xff]  ;;  %v2226_v29 = vld [vmem:[%s4769_s23 + $0xdb8] sm:$0xff] }
 0x45f   : > { %3129 = vmatpush.msra.mxu2 %v1976_v50  ;;  %3148 = vmatpush.msra.mxu3 %v2061_v51  ;;  %v2296_v50 = vld [vmem:[%s4769_s23 + $0xfe8] sm:$0xff]  ;;  %v2381_v51 = vld [vmem:[%s4769_s23 + $0x1290] sm:$0xff] }
 0x460   : > { %3089 = vmatpush.msra.mxu0 %v1816_v52  ;;  %3108 = vmatpush.msra.mxu1 %v1901_v53  ;;  %v2136_v52 = vld [vmem:[%s4769_s23 + $0xae8] sm:$0xff]  ;;  %v2221_v53 = vld [vmem:[%s4769_s23 + $0xd90] sm:$0xff] }
 0x461   : > { %3130 = vmatpush.msra.mxu2 %v1971_v54  ;;  %3149 = vmatpush.msra.mxu3 %v2056_v55  ;;  %v2291_v54 = vld [vmem:[%s4769_s23 + $0xfc0] sm:$0xff]  ;;  %v2376_v55 = vld [vmem:[%s4769_s23 + $0x1268] sm:$0xff] }
 0x462   : > { %3090 = vmatpush.msra.mxu0 %v1811_v58  ;;  %3109 = vmatpush.msra.mxu1 %v1896_v59  ;;  %v5575_v58 = vld [vmem:[%s4762_s13] sm:$0x1f] }
 0x463   : > { %3131 = vmatpush.msra.mxu2 %v1966_v60  ;;  %3150 = vmatpush.msra.mxu3 %v2051_v61  ;;  %v2431_v59 = vperm.slane %v5575_v58, 2  ;;  %v2131_v60 = vld [vmem:[%s4769_s23 + $0xac0] sm:$0xff]  ;;  %v2216_v61 = vld [vmem:[%s4769_s23 + $0xd68] sm:$0xff] }
 0x464   : > { %3091 = vmatpush.msra.mxu0 %v1806_v0  ;;  %3110 = vmatpush.msra.mxu1 %v1891_v2  ;;  %v2286_v0 = vld [vmem:[%s4769_s23 + $0xf98] sm:$0xff]  ;;  %v2371_v2 = vld [vmem:[%s4769_s23 + $0x1240] sm:$0xff] }
 0x465   : > { %3132 = vmatpush.msra.mxu2 %v1961_v5  ;;  %3151 = vmatpush.msra.mxu3 %v2046_v6  ;;  %v3374_v6 = vld [vmem:[#allocation2 + $0x18] sm:$0xff] }
 0x466   : > { %3092 = vmatpush.msra.mxu0 %v1801_v7  ;;  %3111 = vmatpush.msra.mxu1 %v1886_v9  ;;  %v2126_v7 = vld [vmem:[%s4769_s23 + $0xa98] sm:$0xff] }
 0x467   : > { %3133 = vmatpush.msra.mxu2 %v1956_v11  ;;  %3152 = vmatpush.msra.mxu3 %v2041_v12  ;;  %v2211_v11 = vld [vmem:[%s4769_s23 + $0xd40] sm:$0xff]  ;;  %v2281_v12 = vld [vmem:[%s4769_s23 + $0xf70] sm:$0xff] }
 0x468   : > { %3093 = vmatpush.msra.mxu0 %v1796_v13  ;;  %3112 = vmatpush.msra.mxu1 %v1881_v14  ;;  %v3375_v13 = vld [vmem:[#allocation2 + $0x30] sm:$0xff]  ;;  %v2366_v14 = vld [vmem:[%s4769_s23 + $0x1218] sm:$0xff] }
 0x469   : > { %3134 = vmatpush.msra.mxu2 %v1951_v15  ;;  %3153 = vmatpush.msra.mxu3 %v2036_v16  ;;  %v3376_v15 = vld [vmem:[#allocation2 + $0x10] sm:$0xff] }
 0x46a   : > { %3094 = vmatpush.msra.mxu0 %v1791_v19  ;;  %3113 = vmatpush.msra.mxu1 %v1876_v3  ;;  %v2121_v16 = vld [vmem:[%s4769_s23 + $0xa70] sm:$0xff] }
 0x46b   : > { %3199 = vmatpush.msrb.mxu2 %v2346_v17  ;;  %3154 = vmatpush.msra.mxu3 %v2031_v20  ;;  %v2206_v17 = vld [vmem:[%s4769_s23 + $0xd18] sm:$0xff]  ;;  %v2276_v20 = vld [vmem:[%s4769_s23 + $0xf48] sm:$0xff] }
 0x46c   : > { %3159 = vmatpush.msrb.mxu0 %v2186_v21  ;;  %3114 = vmatpush.msra.mxu1 %v1871_v25  ;;  %v2361_v21 = vld [vmem:[%s4769_s23 + $0x11f0] sm:$0xff]  ;;  %v2116_v25 = vld [vmem:[%s4769_s23 + $0xa48] sm:$0xff] }
 0x46d   : > { %3200 = vmatpush.msrb.mxu2 %v2341_v22  ;;  %3219 = vmatpush.msrb.mxu3 %v2426_v38  ;;  %v3377_v38 = vld [vmem:[#allocation2] sm:$0xff] }
 0x46e   : > { %3160 = vmatpush.msrb.mxu0 %v2181_v26  ;;  %3179 = vmatpush.msrb.mxu1 %v2266_v27  ;;  %v2201_v26 = vld [vmem:[%s4769_s23 + $0xcf0] sm:$0xff]  ;;  %v2271_v27 = vld [vmem:[%s4769_s23 + $0xf20] sm:$0xff] }
 0x46f   : > { %3201 = vmatpush.msrb.mxu2 %v2336_v41  ;;  %3220 = vmatpush.msrb.mxu3 %v2421_v28  ;;  %v2356_v41 = vld [vmem:[%s4769_s23 + $0x11c8] sm:$0xff] }
 0x470   : > { %3161 = vmatpush.msrb.mxu0 %v2176_v30  ;;  %3180 = vmatpush.msrb.mxu1 %v2261_v62  ;;  %v2111_v62 = vld [vmem:[%s4769_s23 + $0xa20] sm:$0xff] }
 0x471   : > { %3202 = vmatpush.msrb.mxu2 %v2331_v31  ;;  %3221 = vmatpush.msrb.mxu3 %v2416_v32  ;;  %v2196_v31 = vld [vmem:[%s4769_s23 + $0xcc8] sm:$0xff]  ;;  %v2351_v32 = vld [vmem:[%s4769_s23 + $0x11a0] sm:$0xff] }
 0x472   : > { %3162 = vmatpush.msrb.mxu0 %v2171_v33  ;;  %3181 = vmatpush.msrb.mxu1 %v2256_v47 }
 0x473   : > { %3203 = vmatpush.msrb.mxu2 %v2326_v34  ;;  %3222 = vmatpush.msrb.mxu3 %v2411_v4  ;;  %v3378_v34 = vld [vmem:[#allocation2 + $0x28] sm:$0xff]  ;;  %v2191_v4 = vld [vmem:[%s4769_s23 + $0xca0] sm:$0xff] }
 0x474   : > { %3163 = vmatpush.msrb.mxu0 %v2166_v35  ;;  %3182 = vmatpush.msrb.mxu1 %v2251_v36  ;;  %v3379_v36 = vld [vmem:[#allocation2 + $0x8] sm:$0xff] }
 0x475   : > { %3204 = vmatpush.msrb.mxu2 %v2321_v37  ;;  %3223 = vmatpush.msrb.mxu3 %v2406_v10  ;;  %v3380_v37 = vld [vmem:[#allocation2 + $0x38] sm:$0xff] }
 0x476   : > { %3164 = vmatpush.msrb.mxu0 %v2161_v57  ;;  %3183 = vmatpush.msrb.mxu1 %v2246_v39 }
 0x477   : > { %3205 = vmatpush.msrb.mxu2 %v2316_v40  ;;  %3224 = vmatpush.msrb.mxu3 %v2401_v18  ;;  %v3381_v40 = vld [vmem:[#allocation2 + $0x20] sm:$0xff] }
 0x478   : > { %3165 = vmatpush.msrb.mxu0 %v2156_v63  ;;  %3184 = vmatpush.msrb.mxu1 %v2241_v42 }
 0x479   : > { %3206 = vmatpush.msrb.mxu2 %v2311_v1  ;;  %3225 = vmatpush.msrb.mxu3 %v2396_v43  ;;  %v2432_v43 = vperm.slane %v5575_v58, 3 }
 0x47a   : > { %3166 = vmatpush.msrb.mxu0 %v2151_v44  ;;  %3185 = vmatpush.msrb.mxu1 %v2236_v23 }
 0x47b   : > { %3207 = vmatpush.msrb.mxu2 %v2306_v45  ;;  %3226 = vmatpush.msrb.mxu3 %v2391_v8 }
 0x47c   : > { %3167 = vmatpush.msrb.mxu0 %v2146_v24  ;;  %3186 = vmatpush.msrb.mxu1 %v2231_v46 }
 0x47d   : > { %3208 = vmatpush.msrb.mxu2 %v2301_v56  ;;  %3227 = vmatpush.msrb.mxu3 %v2386_v48 }
 0x47e   : > { %3168 = vmatpush.msrb.mxu0 %v2141_v49  ;;  %3187 = vmatpush.msrb.mxu1 %v2226_v29 }
 0x47f   : > { %3209 = vmatpush.msrb.mxu2 %v2296_v50  ;;  %3228 = vmatpush.msrb.mxu3 %v2381_v51 }
 0x480   : > { %3169 = vmatpush.msrb.mxu0 %v2136_v52  ;;  %3188 = vmatpush.msrb.mxu1 %v2221_v53 }
 0x481   : > { %3210 = vmatpush.msrb.mxu2 %v2291_v54  ;;  %3229 = vmatpush.msrb.mxu3 %v2376_v55  ;;  %v2776_v5 = vpop.f32.mrf.mxu0 }
 0x482   : > { %3135 = vmatmul.f32.vlgmr.msra.gmra.mxu2 %v3374_v6  ;;  %3170 = vmatpush.msrb.mxu0 %v2131_v60  ;;  %v2777_v9 = vadd.f32 %v2776_v5, %v2431_v59  ;;  %v2433_v60 = vperm.slane %v5575_v58, 4 }
 0x483   : > { %3189 = vmatpush.msrb.mxu1 %v2216_v61  ;;  %3211 = vmatpush.msrb.mxu2 %v2286_v0 }
 0x484   : > { %3230 = vmatpush.msrb.mxu3 %v2371_v2  ;;  %3095 = vmatmul.f32.vlgmr.msra.gmra.mxu0 %v3375_v13 }
 0x485   : > { %3155 = vmatmul.f32.vlgmr.msra.gmra.mxu3 %v3376_v15  ;;  %3171 = vmatpush.msrb.mxu0 %v2126_v7  ;;  %v2796_v19 = vpop.f32.mrf.mxu1  ;;  %v2816_v3 = vpop.f32.mrf.mxu2 }
 0x486   : > { %3190 = vmatpush.msrb.mxu1 %v2211_v11  ;;  %3212 = vmatpush.msrb.mxu2 %v2281_v12  ;;  %v2797_v22 = vadd.f32 %v2796_v19, %v2777_v9 }
 0x487   : > { %3231 = vmatpush.msrb.mxu3 %v2366_v14  ;;  %3115 = vmatmul.f32.vlgmr.msra.gmra.mxu1 %v3377_v38 }
 0x488   : > { %3172 = vmatpush.msrb.mxu0 %v2121_v16  ;;  %3191 = vmatpush.msrb.mxu1 %v2206_v17  ;;  %v2817_v28 = vadd.f32 %v2816_v3, %v2797_v22  ;;  %v2836_v30 = vpop.f32.mrf.mxu3 }
 0x489   : > { %3213 = vmatpush.msrb.mxu2 %v2276_v20  ;;  %3232 = vmatpush.msrb.mxu3 %v2361_v21 }
 0x48a   : > { %3173 = vmatpush.msrb.mxu0 %v2116_v25  ;;  %3192 = vmatpush.msrb.mxu1 %v2201_v26  ;;  %v2837_v33 = vadd.f32 %v2836_v30, %v2817_v28 }
 0x48b   : > { %3214 = vmatpush.msrb.mxu2 %v2271_v27  ;;  %3233 = vmatpush.msrb.mxu3 %v2356_v41  ;;  %v2856_v47 = vpop.f32.mrf.mxu0 }
 0x48c   : > { %3215 = vmatmul.f32.vlgmr.msrb.gmra.mxu2 %v3378_v34  ;;  %3174 = vmatpush.msrb.mxu0 %v2111_v62  ;;  %v2857_v35 = vadd.f32 %v2856_v47, %v2837_v33 }
 0x48d   : > { %3193 = vmatpush.msrb.mxu1 %v2196_v31  ;;  %3234 = vmatpush.msrb.mxu3 %v2351_v32 }
 0x48e   : > { %3175 = vmatmul.f32.vlgmr.msrb.gmra.mxu0 %v3379_v36  ;;  %3235 = vmatmul.f32.vlgmr.msrb.gmra.mxu3 %v3380_v37  ;;  %v2876_v10 = vpop.f32.mrf.mxu1 }
 0x48f   : > { %3194 = vmatpush.msrb.mxu1 %v2191_v4  ;;  %v2877_v57 = vadd.f32 %v2876_v10, %v2857_v35  ;;  %v2896_v39 = vpop.f32.mrf.mxu2 }
 0x490   : > { %3195 = vmatmul.f32.vlgmr.msrb.gmra.mxu1 %v3381_v40 }
 0x491   : > { %v2897_v18 = vadd.f32 %v2896_v39, %v2877_v57 }
 0x492   : > { %v2916_v63 = vpop.f32.mrf.mxu3 }
 0x493   : > { %v2917_v42 = vadd.f32 %v2916_v63, %v2897_v18 }
 0x495   : > { %v3241_v1 = vmax.f32 %v2917_v42, 0.0 }
 0x497   : > { %3246 = vst [vmem:[%s4767_s17 + $0x10] sm:$0xff] %v3241_v1 }
 0x4c5   : > { %v2936_v44 = vpop.f32.mrf.mxu0 }
 0x4c6   : > { %v2937_v23 = vadd.f32 %v2936_v44, %v2432_v43 }
 0x4c9   : > { %v2956_v45 = vpop.f32.mrf.mxu1  ;;  %v2976_v8 = vpop.f32.mrf.mxu2 }
 0x4ca   : > { %v2957_v24 = vadd.f32 %v2956_v45, %v2937_v23 }
 0x4cc   : > { %v2977_v46 = vadd.f32 %v2976_v8, %v2957_v24  ;;  %v2996_v56 = vpop.f32.mrf.mxu3 }
 0x4ce   : > { %v2997_v48 = vadd.f32 %v2996_v56, %v2977_v46 }
 0x4cf   : > { %v3016_v49 = vpop.f32.mrf.mxu0 }
 0x4d0   : > { %v3017_v29 = vadd.f32 %v3016_v49, %v2997_v48 }
 0x4d2   : > { %v3036_v50 = vpop.f32.mrf.mxu1 }
 0x4d3   : > { %v3037_v51 = vadd.f32 %v3036_v50, %v3017_v29  ;;  %v3056_v52 = vpop.f32.mrf.mxu2 }
 0x4d5   : > { %v3057_v53 = vadd.f32 %v3056_v52, %v3037_v51 }
 0x4d6   : > { %v3076_v54 = vpop.f32.mrf.mxu3 }
 0x4d7   : > { %v3077_v55 = vadd.f32 %v3076_v54, %v3057_v53 }
 0x4d9   : > { %v3242_v59 = vmax.f32 %v3077_v55, 0.0 }
 0x4db   : > { %3247 = vst [vmem:[%s4767_s17 + $0x18] sm:$0xff] %v3242_v59 }
 0x501   : > { %v3096_v61 = vpop.f32.mrf.mxu0 }
 0x502   : > { %v3097_v0 = vadd.f32 %v3096_v61, %v2433_v60 }
 0x504   : > { %v3116_v2 = vpop.f32.mrf.mxu1 }
 0x505   : > { %v3117_v5 = vadd.f32 %v3116_v2, %v3097_v0  ;;  %v3136_v6 = vpop.f32.mrf.mxu2 }
 0x507   : > { %v3137_v7 = vadd.f32 %v3136_v6, %v3117_v5 }
 0x508   : > { %v3156_v9 = vpop.f32.mrf.mxu3 }
 0x509   : > { %v3157_v11 = vadd.f32 %v3156_v9, %v3137_v7 }
 0x50b   : > { %v3176_v12 = vpop.f32.mrf.mxu0 }
 0x50c   : > { %v3177_v13 = vadd.f32 %v3176_v12, %v3157_v11 }
 0x50d   : > { %v3196_v14 = vpop.f32.mrf.mxu1 }
 0x50e   : > { %v3197_v15 = vadd.f32 %v3196_v14, %v3177_v13 }
 0x50f   : > { %v3216_v16 = vpop.f32.mrf.mxu2 }
 0x510   : > { %v3217_v17 = vadd.f32 %v3216_v16, %v3197_v15 }
 0x511   : > { %v3236_v19 = vpop.f32.mrf.mxu3 }
 0x512   : > { %v3237_v3 = vadd.f32 %v3236_v19, %v3217_v17 }
 0x514   : > { %v3243_v20 = vmax.f32 %v3237_v3, 0.0 }
 0x516   : > { %3248 = vst [vmem:[%s4767_s17 + $0x20] sm:$0xff] %v3243_v20 }
 0x517 PF: > { %p12_p10 = scmp.ge.s32.totalorder %s3453_s22, 7   ;;  %s5619_s18 = smov %s3400_s19 }
 0x518   : > { %s5620_s19 = smov %s3462_s25  ;;  %s5621_s20 = smov %s3453_s22 }
 0x519   :  { %14 = sbr.rel (!%p12_p10) target bundleno = 2 (0x2), region = 105 }

// kernel: decoder_forward_pallas.5
= control target key start
LH: loop header
LB: loop body
LE: loop exit
PB: predicated region body
PF: predicated region fallthrough
CT: control target
= control target key end

     0   :  { %vm732_vm0 = vcmask 523264   ;;  %s1893_s1 = inlined_call_operand.vmem [shape: f32[128,1600], index: 1, kind: input, shape index: {}]   ;;  %s1894_s0 = inlined_call_operand.vmem [shape: f32[56,128], index: 0, kind: input, shape index: {}]   ;;  %s1895_s2 = inlined_call_operand.vmem [shape: f32[56,1600], index: 2, kind: output, shape index: {}]  }
   0x1   :  { %v213_v0 = vld [vmem:[%s1893_s1 + $0x618] sm:$0xff]  ;;  %v200_v1 = vld [vmem:[%s1893_s1 + $0x5b0] sm:$0xff]  ;;  %v215_v2 = vld [vmem:[%s1893_s1 + $0x628] sm:$0xff] }
   0x2   :  { %816 = vmatpush.msra.mxu1 %v213_v0  ;;  %226 = vmatpush.msra.mxu0 %v213_v0  ;;  %v187_v3 = vld [vmem:[%s1893_s1 + $0x548] sm:$0xff]  ;;  %v202_v4 = vld [vmem:[%s1893_s1 + $0x5c0] sm:$0xff]  ;;  %v189_v5 = vld [vmem:[%s1893_s1 + $0x558] sm:$0xff] }
   0x3   :  { %302 = vmatpush.msra.mxu2 %v215_v2  ;;  %v174_v6 = vld [vmem:[%s1893_s1 + $0x4e0] sm:$0xff]  ;;  %v176_v7 = vld [vmem:[%s1893_s1 + $0x4f0] sm:$0xff]  ;;  %v161_v8 = vld [vmem:[%s1893_s1 + $0x478] sm:$0xff] }
   0x4   :  { %817 = vmatpush.msra.mxu1 %v200_v1  ;;  %227 = vmatpush.msra.mxu0 %v200_v1  ;;  %v163_v9 = vld [vmem:[%s1893_s1 + $0x488] sm:$0xff]  ;;  %v216_v10 = vld [vmem:[%s1893_s1 + $0x630] sm:$0xff]  ;;  %v150_v13 = vld [vmem:[%s1893_s1 + $0x420] sm:$0xff] }
   0x5   :  { %303 = vmatpush.msra.mxu2 %v202_v4  ;;  %v148_v11 = vld [vmem:[%s1893_s1 + $0x410] sm:$0xff]  ;;  %340 = vmatpush.msra.mxu3 %v216_v10  ;;  %v203_v12 = vld [vmem:[%s1893_s1 + $0x5c8] sm:$0xff]  ;;  %v190_v14 = vld [vmem:[%s1893_s1 + $0x560] sm:$0xff] }
   0x6   :  { %818 = vmatpush.msra.mxu1 %v187_v3  ;;  %228 = vmatpush.msra.mxu0 %v187_v3  ;;  %v135_v15 = vld [vmem:[%s1893_s1 + $0x3a8] sm:$0xff]  ;;  %v137_v16 = vld [vmem:[%s1893_s1 + $0x3b8] sm:$0xff]  ;;  %v122_v18 = vld [vmem:[%s1893_s1 + $0x340] sm:$0xff] }
   0x7   :  { %304 = vmatpush.msra.mxu2 %v189_v5  ;;  %341 = vmatpush.msra.mxu3 %v203_v12  ;;  %v177_v17 = vld [vmem:[%s1893_s1 + $0x4f8] sm:$0xff]  ;;  %v124_v19 = vld [vmem:[%s1893_s1 + $0x350] sm:$0xff]  ;;  %v111_v22 = vld [vmem:[%s1893_s1 + $0x2e8] sm:$0xff] }
   0x8   :  { %819 = vmatpush.msra.mxu1 %v174_v6  ;;  %229 = vmatpush.msra.mxu0 %v174_v6  ;;  %v164_v20 = vld [vmem:[%s1893_s1 + $0x490] sm:$0xff]  ;;  %v109_v21 = vld [vmem:[%s1893_s1 + $0x2d8] sm:$0xff]  ;;  %v151_v23 = vld [vmem:[%s1893_s1 + $0x428] sm:$0xff] }
   0x9   :  { %305 = vmatpush.msra.mxu2 %v176_v7  ;;  %342 = vmatpush.msra.mxu3 %v190_v14  ;;  %v96_v24 = vld [vmem:[%s1893_s1 + $0x270] sm:$0xff]  ;;  %v98_v25 = vld [vmem:[%s1893_s1 + $0x280] sm:$0xff]  ;;  %v83_v27 = vld [vmem:[%s1893_s1 + $0x208] sm:$0xff] }
   0xa   :  { %820 = vmatpush.msra.mxu1 %v161_v8  ;;  %230 = vmatpush.msra.mxu0 %v161_v8  ;;  %v138_v26 = vld [vmem:[%s1893_s1 + $0x3c0] sm:$0xff]  ;;  %v85_v28 = vld [vmem:[%s1893_s1 + $0x218] sm:$0xff]  ;;  %v72_v31 = vld [vmem:[%s1893_s1 + $0x1b0] sm:$0xff] }
   0xb   :  { %306 = vmatpush.msra.mxu2 %v163_v9  ;;  %343 = vmatpush.msra.mxu3 %v177_v17  ;;  %v125_v29 = vld [vmem:[%s1893_s1 + $0x358] sm:$0xff]  ;;  %v70_v30 = vld [vmem:[%s1893_s1 + $0x1a0] sm:$0xff]  ;;  %v112_v32 = vld [vmem:[%s1893_s1 + $0x2f0] sm:$0xff] }
   0xc   :  { %821 = vmatpush.msra.mxu1 %v148_v11  ;;  %231 = vmatpush.msra.mxu0 %v148_v11  ;;  %v57_v33 = vld [vmem:[%s1893_s1 + $0x138] sm:$0xff]  ;;  %v59_v34 = vld [vmem:[%s1893_s1 + $0x148] sm:$0xff]  ;;  %v44_v36 = vld [vmem:[%s1893_s1 + $0xd0] sm:$0xff] }
   0xd   :  { %307 = vmatpush.msra.mxu2 %v150_v13  ;;  %344 = vmatpush.msra.mxu3 %v164_v20  ;;  %v99_v35 = vld [vmem:[%s1893_s1 + $0x288] sm:$0xff]  ;;  %v46_v37 = vld [vmem:[%s1893_s1 + $0xe0] sm:$0xff]  ;;  %v33_v40 = vld [vmem:[%s1893_s1 + $0x78] sm:$0xff] }
   0xe   :  { %822 = vmatpush.msra.mxu1 %v135_v15  ;;  %232 = vmatpush.msra.mxu0 %v135_v15  ;;  %v86_v38 = vld [vmem:[%s1893_s1 + $0x220] sm:$0xff]  ;;  %v31_v39 = vld [vmem:[%s1893_s1 + $0x68] sm:$0xff]  ;;  %v73_v41 = vld [vmem:[%s1893_s1 + $0x1b8] sm:$0xff] }
   0xf   :  { %308 = vmatpush.msra.mxu2 %v137_v16  ;;  %345 = vmatpush.msra.mxu3 %v151_v23  ;;  %v18_v42 = vld [vmem:[%s1893_s1] sm:$0xff]  ;;  %v20_v44 = vld [vmem:[%s1893_s1 + $0x10] sm:$0xff]  ;;  %v201_v47 = vld [vmem:[%s1893_s1 + $0x5b8] sm:$0xff] }
  0x10   :  { %823 = vmatpush.msra.mxu1 %v122_v18  ;;  %233 = vmatpush.msra.mxu0 %v122_v18  ;;  %v214_v43 = vld [vmem:[%s1893_s1 + $0x620] sm:$0xff]  ;;  %v219_v48 = vld [vmem:[%s1893_s1 + $0x648] sm:$0xff]  ;;  %v60_v49 = vld [vmem:[%s1893_s1 + $0x150] sm:$0xff] }
  0x11   :  { %309 = vmatpush.msra.mxu2 %v124_v19  ;;  %346 = vmatpush.msra.mxu3 %v138_v26  ;;  %v1001_v45 = vld [vmem:[%s1894_s0 + $0x20] sm:$0xff]  ;;  %v188_v50 = vld [vmem:[%s1893_s1 + $0x550] sm:$0xff]  ;;  %v217_v52 = vld [vmem:[%s1893_s1 + $0x638] sm:$0xff] }
  0x12   :  { %824 = vmatpush.msra.mxu1 %v109_v21  ;;  %234 = vmatpush.msra.mxu0 %v109_v21  ;;  %v1006_v46 = vld [vmem:[%s1894_s0] sm:$0xff]  ;;  %v47_v53 = vld [vmem:[%s1893_s1 + $0xe8] sm:$0xff]  ;;  %v193_v55 = vld [vmem:[%s1893_s1 + $0x578] sm:$0xff] }
  0x13   :  { %310 = vmatpush.msra.mxu2 %v111_v22  ;;  %347 = vmatpush.msra.mxu3 %v125_v29  ;;  %v206_v51 = vld [vmem:[%s1893_s1 + $0x5e0] sm:$0xff]  ;;  %v175_v54 = vld [vmem:[%s1893_s1 + $0x4e8] sm:$0xff]  ;;  %v204_v56 = vld [vmem:[%s1893_s1 + $0x5d0] sm:$0xff] }
  0x14   :  { %825 = vmatpush.msra.mxu1 %v96_v24  ;;  %235 = vmatpush.msra.mxu0 %v96_v24  ;;  %v34_v57 = vld [vmem:[%s1893_s1 + $0x80] sm:$0xff]  ;;  %v180_v59 = vld [vmem:[%s1893_s1 + $0x510] sm:$0xff]  ;;  %v1053_v60 = vld [vmem:[%s1894_s0 + $0x28] sm:$0xff] }
  0x15   :  { %311 = vmatpush.msra.mxu2 %v98_v25  ;;  %348 = vmatpush.msra.mxu3 %v112_v32  ;;  %v162_v58 = vld [vmem:[%s1893_s1 + $0x480] sm:$0xff]  ;;  %v1058_v61 = vld [vmem:[%s1894_s0 + $0x8] sm:$0xff]  ;;  %v149_v62 = vld [vmem:[%s1893_s1 + $0x418] sm:$0xff] }
  0x16   :  { %826 = vmatpush.msra.mxu1 %v83_v27  ;;  %236 = vmatpush.msra.mxu0 %v83_v27  ;;  %v191_v63 = vld [vmem:[%s1893_s1 + $0x568] sm:$0xff]  ;;  %v136_v1 = vld [vmem:[%s1893_s1 + $0x3b0] sm:$0xff]  ;;  %v178_v2 = vld [vmem:[%s1893_s1 + $0x500] sm:$0xff] }
  0x17   :  { %312 = vmatpush.msra.mxu2 %v85_v28  ;;  %349 = vmatpush.msra.mxu3 %v99_v35  ;;  %v167_v0 = vld [vmem:[%s1893_s1 + $0x4a8] sm:$0xff]  ;;  %v21_v3 = vld [vmem:[%s1893_s1 + $0x18] sm:$0xff]  ;;  %v154_v4 = vld [vmem:[%s1893_s1 + $0x440] sm:$0xff] }
  0x18   :  { %827 = vmatpush.msra.mxu1 %v70_v30  ;;  %237 = vmatpush.msra.mxu0 %v70_v30  ;;  %v123_v5 = vld [vmem:[%s1893_s1 + $0x348] sm:$0xff]  ;;  %v165_v6 = vld [vmem:[%s1893_s1 + $0x498] sm:$0xff]  ;;  %v110_v8 = vld [vmem:[%s1893_s1 + $0x2e0] sm:$0xff] }
  0x19   :  { %313 = vmatpush.msra.mxu2 %v72_v31  ;;  %350 = vmatpush.msra.mxu3 %v86_v38  ;;  %v141_v7 = vld [vmem:[%s1893_s1 + $0x3d8] sm:$0xff]  ;;  %v152_v9 = vld [vmem:[%s1893_s1 + $0x430] sm:$0xff]  ;;  %v139_v14 = vld [vmem:[%s1893_s1 + $0x3c8] sm:$0xff] }
  0x1a   :  { %828 = vmatpush.msra.mxu1 %v57_v33  ;;  %238 = vmatpush.msra.mxu0 %v57_v33  ;;  %v1102_v10 = vld [vmem:[%s1894_s0 + $0x30] sm:$0xff]  ;;  %v97_v12 = vld [vmem:[%s1893_s1 + $0x278] sm:$0xff]  ;;  %v207_v17 = vld [vmem:[%s1893_s1 + $0x5e8] sm:$0xff] }
  0x1b   :  { %314 = vmatpush.msra.mxu2 %v59_v34  ;;  %351 = vmatpush.msra.mxu3 %v73_v41  ;;  %v1107_v11 = vld [vmem:[%s1894_s0 + $0x10] sm:$0xff]  ;;  %v126_v18 = vld [vmem:[%s1893_s1 + $0x360] sm:$0xff]  ;;  %v115_v19 = vld [vmem:[%s1893_s1 + $0x308] sm:$0xff] }
  0x1c   :  { %829 = vmatpush.msra.mxu1 %v44_v36  ;;  %239 = vmatpush.msra.mxu0 %v44_v36  ;;  %v220_v13 = vld [vmem:[%s1893_s1 + $0x650] sm:$0xff]  ;;  %v71_v20 = vld [vmem:[%s1893_s1 + $0x1a8] sm:$0xff]  ;;  %v113_v21 = vld [vmem:[%s1893_s1 + $0x2f8] sm:$0xff] }
  0x1d   :  { %315 = vmatpush.msra.mxu2 %v46_v37  ;;  %352 = vmatpush.msra.mxu3 %v60_v49  ;;  %v128_v15 = vld [vmem:[%s1893_s1 + $0x370] sm:$0xff]  ;;  %v194_v22 = vld [vmem:[%s1893_s1 + $0x580] sm:$0xff]  ;;  %v1152_v24 = vld [vmem:[%s1894_s0 + $0x18] sm:$0xff] }
  0x1e   :  { %830 = vmatpush.msra.mxu1 %v31_v39  ;;  %240 = vmatpush.msra.mxu0 %v31_v39  ;;  %v84_v16 = vld [vmem:[%s1893_s1 + $0x210] sm:$0xff]  ;;  %v58_v23 = vld [vmem:[%s1893_s1 + $0x140] sm:$0xff]  ;;  %v45_v26 = vld [vmem:[%s1893_s1 + $0xd8] sm:$0xff] }
  0x1f   :  { %316 = vmatpush.msra.mxu2 %v33_v40  ;;  %353 = vmatpush.msra.mxu3 %v47_v53  ;;  %v100_v25 = vld [vmem:[%s1893_s1 + $0x290] sm:$0xff]  ;;  %v181_v27 = vld [vmem:[%s1893_s1 + $0x518] sm:$0xff]  ;;  %v87_v28 = vld [vmem:[%s1893_s1 + $0x228] sm:$0xff] }
  0x20   :  { %831 = vmatpush.msra.mxu1 %v18_v42  ;;  %241 = vmatpush.msra.mxu0 %v18_v42  ;;  %v102_v29 = vld [vmem:[%s1893_s1 + $0x2a0] sm:$0xff]  ;;  %v32_v30 = vld [vmem:[%s1893_s1 + $0x70] sm:$0xff]  ;;  %v89_v33 = vld [vmem:[%s1893_s1 + $0x238] sm:$0xff] }
  0x21   :  { %317 = vmatpush.msra.mxu2 %v20_v44  ;;  %254 = vmatmul.f32.vlgmr.msra.gmra.mxu1 %v1001_v45  ;;  %v168_v31 = vld [vmem:[%s1893_s1 + $0x4b0] sm:$0xff]  ;;  %v74_v32 = vld [vmem:[%s1893_s1 + $0x1c0] sm:$0xff]  ;;  %v19_v34 = vld [vmem:[%s1893_s1 + $0x8] sm:$0xff] }
  0x22   :  { %264 = vmatpush.msrb.mxu1 %v214_v43  ;;  %318 = vmatmul.f32.vlgmr.msra.gmra.mxu2 %v1006_v46  ;;  %v61_v35 = vld [vmem:[%s1893_s1 + $0x158] sm:$0xff]  ;;  %v218_v36 = vld [vmem:[%s1893_s1 + $0x640] sm:$0xff]  ;;  %v48_v37 = vld [vmem:[%s1893_s1 + $0xf0] sm:$0xff] }
  0x23   :  { %454 = vmatpush.msrb.mxu2 %v219_v48  ;;  %242 = vmatmul.f32.vlgmr.msra.gmra.mxu0 %v1006_v46  ;;  %v205_v38 = vld [vmem:[%s1893_s1 + $0x5d8] sm:$0xff]  ;;  %v155_v39 = vld [vmem:[%s1893_s1 + $0x448] sm:$0xff]  ;;  %v76_v41 = vld [vmem:[%s1893_s1 + $0x1d0] sm:$0xff] }
  0x24   :  { %265 = vmatpush.msrb.mxu1 %v201_v47  ;;  %378 = vmatpush.msrb.mxu0 %v217_v52  ;;  %v35_v40 = vld [vmem:[%s1893_s1 + $0x88] sm:$0xff]  ;;  %v192_v42 = vld [vmem:[%s1893_s1 + $0x570] sm:$0xff]  ;;  %v142_v43 = vld [vmem:[%s1893_s1 + $0x3e0] sm:$0xff] }
  0x25   :  { %455 = vmatpush.msrb.mxu2 %v206_v51  ;;  %354 = vmatpush.msra.mxu3 %v34_v57  ;;  %v22_v44 = vld [vmem:[%s1893_s1 + $0x20] sm:$0xff]  ;;  %v63_v47 = vld [vmem:[%s1893_s1 + $0x168] sm:$0xff]  ;;  %v221_v49 = vld [vmem:[%s1893_s1 + $0x658] sm:$0xff] }
  0x26   :  { %266 = vmatpush.msrb.mxu1 %v188_v50  ;;  %379 = vmatpush.msrb.mxu0 %v204_v56  ;;  %v179_v48 = vld [vmem:[%s1893_s1 + $0x508] sm:$0xff]  ;;  %v166_v50 = vld [vmem:[%s1893_s1 + $0x4a0] sm:$0xff]  ;;  %v129_v51 = vld [vmem:[%s1893_s1 + $0x378] sm:$0xff] }
  0x27   :  { %456 = vmatpush.msrb.mxu2 %v193_v55  ;;  %355 = vmatpush.msra.mxu3 %v21_v3  ;;  %v153_v52 = vld [vmem:[%s1893_s1 + $0x438] sm:$0xff]  ;;  %v208_v53 = vld [vmem:[%s1893_s1 + $0x5f0] sm:$0xff]  ;;  %v50_v55 = vld [vmem:[%s1893_s1 + $0x100] sm:$0xff] }
  0x28   :  { %267 = vmatpush.msrb.mxu1 %v175_v54  ;;  %380 = vmatpush.msrb.mxu0 %v191_v63  ;;  %v116_v54 = vld [vmem:[%s1893_s1 + $0x310] sm:$0xff]  ;;  %v195_v57 = vld [vmem:[%s1893_s1 + $0x588] sm:$0xff]  ;;  %v182_v63 = vld [vmem:[%s1893_s1 + $0x520] sm:$0xff] }
  0x29   :  { %457 = vmatpush.msrb.mxu2 %v180_v59  ;;  %257 = vmatmul.f32.gmra.mxu1 %v1053_v60  ;;  %v140_v56 = vld [vmem:[%s1893_s1 + $0x3d0] sm:$0xff]  ;;  %v37_v59 = vld [vmem:[%s1893_s1 + $0x98] sm:$0xff] }
  0x2a   :  { %268 = vmatpush.msrb.mxu1 %v162_v58  ;;  %321 = vmatmul.f32.gmra.mxu2 %v1058_v61  ;;  %v103_v58 = vld [vmem:[%s1893_s1 + $0x2a8] sm:$0xff]  ;;  %v24_v3 = vld [vmem:[%s1893_s1 + $0x30] sm:$0xff] }
  0x2b   :  { %245 = vmatmul.f32.gmra.mxu0 %v1058_v61  ;;  %458 = vmatpush.msrb.mxu2 %v167_v0  ;;  %v114_v0 = vld [vmem:[%s1893_s1 + $0x300] sm:$0xff] }
  0x2c   :  { %269 = vmatpush.msrb.mxu1 %v149_v62  ;;  %381 = vmatpush.msrb.mxu0 %v178_v2  ;;  %v127_v62 = vld [vmem:[%s1893_s1 + $0x368] sm:$0xff]  ;;  %v169_v2 = vld [vmem:[%s1893_s1 + $0x4b8] sm:$0xff] }
  0x2d   :  { %459 = vmatpush.msrb.mxu2 %v154_v4  ;;  %356 = vmatmul.f32.vlgmr.msra.gmra.mxu3 %v1006_v46  ;;  %v101_v4 = vld [vmem:[%s1893_s1 + $0x298] sm:$0xff] }
  0x2e   :  { %270 = vmatpush.msrb.mxu1 %v136_v1  ;;  %382 = vmatpush.msrb.mxu0 %v165_v6  ;;  %v90_v1 = vld [vmem:[%s1893_s1 + $0x240] sm:$0xff]  ;;  %v156_v6 = vld [vmem:[%s1893_s1 + $0x450] sm:$0xff] }
  0x2f   :  { %460 = vmatpush.msrb.mxu2 %v141_v7  ;;  %492 = vmatpush.msrb.mxu3 %v220_v13  ;;  %v223_v7 = vld [vmem:[%s1893_s1 + $0x668] sm:$0xff] }
  0x30   :  { %271 = vmatpush.msrb.mxu1 %v123_v5  ;;  %383 = vmatpush.msrb.mxu0 %v152_v9  ;;  %v77_v5 = vld [vmem:[%s1893_s1 + $0x1d8] sm:$0xff]  ;;  %v64_v9 = vld [vmem:[%s1893_s1 + $0x170] sm:$0xff]  ;;  %v143_v13 = vld [vmem:[%s1893_s1 + $0x3e8] sm:$0xff] }
  0x31   :  { %260 = vmatmul.f32.gmra.mxu1 %v1102_v10  ;;  %461 = vmatpush.msrb.mxu2 %v128_v15  ;;  %v51_v15 = vld [vmem:[%s1893_s1 + $0x108] sm:$0xff] }
  0x32   :  { %272 = vmatpush.msrb.mxu1 %v110_v8  ;;  %324 = vmatmul.f32.gmra.mxu2 %v1107_v11  ;;  %v88_v8 = vld [vmem:[%s1893_s1 + $0x230] sm:$0xff] }
  0x33   :  { %384 = vmatpush.msrb.mxu0 %v139_v14  ;;  %493 = vmatpush.msrb.mxu3 %v207_v17  ;;  %v75_v14 = vld [vmem:[%s1893_s1 + $0x1c8] sm:$0xff]  ;;  %v197_v17 = vld [vmem:[%s1893_s1 + $0x598] sm:$0xff] }
  0x34   :  { %273 = vmatpush.msrb.mxu1 %v97_v12  ;;  %462 = vmatpush.msrb.mxu2 %v115_v19  ;;  %v210_v12 = vld [vmem:[%s1893_s1 + $0x600] sm:$0xff] }
  0x35   :  { %385 = vmatpush.msrb.mxu0 %v126_v18  ;;  %494 = vmatpush.msrb.mxu3 %v194_v22  ;;  %v62_v18 = vld [vmem:[%s1893_s1 + $0x160] sm:$0xff]  ;;  %v49_v22 = vld [vmem:[%s1893_s1 + $0xf8] sm:$0xff] }
  0x36   :  { %274 = vmatpush.msrb.mxu1 %v84_v16  ;;  %248 = vmatmul.f32.gmra.mxu0 %v1107_v11  ;;  %v130_v16 = vld [vmem:[%s1893_s1 + $0x380] sm:$0xff] }
  0x37   :  { %386 = vmatpush.msrb.mxu0 %v113_v21  ;;  %359 = vmatmul.f32.gmra.mxu3 %v1058_v61  ;;  %v38_v19 = vld [vmem:[%s1893_s1 + $0xa0] sm:$0xff]  ;;  %v184_v21 = vld [vmem:[%s1893_s1 + $0x530] sm:$0xff] }
  0x38   :  { %275 = vmatpush.msrb.mxu1 %v71_v20  ;;  %495 = vmatpush.msrb.mxu3 %v181_v27  ;;  %v117_v20 = vld [vmem:[%s1893_s1 + $0x318] sm:$0xff]  ;;  %v36_v27 = vld [vmem:[%s1893_s1 + $0x90] sm:$0xff] }
  0x39   :  { %387 = vmatpush.msrb.mxu0 %v100_v25  ;;  %463 = vmatpush.msrb.mxu2 %v102_v29  ;;  %v171_v25 = vld [vmem:[%s1893_s1 + $0x4c8] sm:$0xff] }
  0x3a   :  { %276 = vmatpush.msrb.mxu1 %v58_v23  ;;  %327 = vmatmul.f32.gmra.mxu2 %v1152_v24  ;;  %v25_v23 = vld [vmem:[%s1893_s1 + $0x38] sm:$0xff]  ;;  %v91_v29 = vld [vmem:[%s1893_s1 + $0x248] sm:$0xff] }
  0x3b   :  { %388 = vmatpush.msrb.mxu0 %v87_v28  ;;  %496 = vmatpush.msrb.mxu3 %v168_v31  ;;  %v224_v28 = vld [vmem:[%s1893_s1 + $0x670] sm:$0xff]  ;;  %v23_v31 = vld [vmem:[%s1893_s1 + $0x28] sm:$0xff] }
  0x3c   :  { %277 = vmatpush.msrb.mxu1 %v45_v26  ;;  %464 = vmatpush.msrb.mxu2 %v89_v33  ;;  %v104_v26 = vld [vmem:[%s1893_s1 + $0x2b0] sm:$0xff]  ;;  %v78_v33 = vld [vmem:[%s1893_s1 + $0x1e0] sm:$0xff] }
  0x3d   :  { %389 = vmatpush.msrb.mxu0 %v74_v32  ;;  %497 = vmatpush.msrb.mxu3 %v155_v39  ;;  %v211_v32 = vld [vmem:[%s1893_s1 + $0x608] sm:$0xff]  ;;  %v209_v39 = vld [vmem:[%s1893_s1 + $0x5f8] sm:$0xff] }
  0x3e   :  { %278 = vmatpush.msrb.mxu1 %v32_v30  ;;  %251 = vmatmul.f32.gmra.mxu0 %v1152_v24  ;;  %v158_v30 = vld [vmem:[%s1893_s1 + $0x460] sm:$0xff] }
  0x3f   :  { %390 = vmatpush.msrb.mxu0 %v61_v35  ;;  %362 = vmatmul.f32.gmra.mxu3 %v1107_v11  ;;  %v222_v35 = vld [vmem:[%s1893_s1 + $0x660] sm:$0xff] }
  0x40   :  { %279 = vmatpush.msrb.mxu1 %v19_v34  ;;  %465 = vmatpush.msrb.mxu2 %v76_v41  ;;  %v145_v34 = vld [vmem:[%s1893_s1 + $0x3f8] sm:$0xff]  ;;  %v52_v41 = vld [vmem:[%s1893_s1 + $0x110] sm:$0xff] }
  0x41   :  { %280 = vmatmul.f32.vlgmr.msrb.gmra.mxu1 %v1006_v46  ;;  %391 = vmatpush.msrb.mxu0 %v48_v37  ;;  %v132_v37 = vld [vmem:[%s1893_s1 + $0x390] sm:$0xff] }
  0x42   :  { %416 = vmatpush.msra.mxu1 %v218_v36  ;;  %330 = vmatmul.f32.gmra.mxu2 %v1001_v45  ;;  %v198_v36 = vld [vmem:[%s1893_s1 + $0x5a0] sm:$0xff] }
  0x43   :  { %392 = vmatpush.msrb.mxu0 %v35_v40  ;;  %498 = vmatpush.msrb.mxu3 %v142_v43  ;;  %v185_v40 = vld [vmem:[%s1893_s1 + $0x538] sm:$0xff]  ;;  %v196_v43 = vld [vmem:[%s1893_s1 + $0x590] sm:$0xff] }
  0x44   :  { %417 = vmatpush.msra.mxu1 %v205_v38  ;;  %466 = vmatpush.msrb.mxu2 %v63_v47  ;;  %v65_v38 = vld [vmem:[%s1893_s1 + $0x178] sm:$0xff]  ;;  %v39_v47 = vld [vmem:[%s1893_s1 + $0xa8] sm:$0xff] }
  0x45   :  { %393 = vmatpush.msrb.mxu0 %v22_v44  ;;  %499 = vmatpush.msrb.mxu3 %v129_v51  ;;  %v172_v44 = vld [vmem:[%s1893_s1 + $0x4d0] sm:$0xff]  ;;  %v93_v51 = vld [vmem:[%s1893_s1 + $0x258] sm:$0xff] }
  0x46   :  { %418 = vmatpush.msra.mxu1 %v192_v42  ;;  %394 = vmatmul.f32.vlgmr.msrb.gmra.mxu0 %v1006_v46  ;;  %v119_v42 = vld [vmem:[%s1893_s1 + $0x328] sm:$0xff] }
  0x47   :  { %530 = vmatpush.msra.mxu0 %v221_v49  ;;  %365 = vmatmul.f32.gmra.mxu3 %v1152_v24  ;;  %v183_v49 = vld [vmem:[%s1893_s1 + $0x528] sm:$0xff] }
  0x48   :  { %419 = vmatpush.msra.mxu1 %v179_v48  ;;  %500 = vmatpush.msrb.mxu3 %v116_v54  ;;  %v106_v48 = vld [vmem:[%s1893_s1 + $0x2c0] sm:$0xff] }
  0x49   :  { %283 = vmatmul.f32.gmra.mxu1 %v1058_v61  ;;  %531 = vmatpush.msra.mxu0 %v208_v53  ;;  %v170_v53 = vld [vmem:[%s1893_s1 + $0x4c0] sm:$0xff] }
  0x4a   :  { %420 = vmatpush.msra.mxu1 %v166_v50  ;;  %333 = vmatmul.f32.gmra.mxu2 %v1053_v60  ;;  %v159_v50 = vld [vmem:[%s1893_s1 + $0x468] sm:$0xff]  ;;  %v146_v54 = vld [vmem:[%s1893_s1 + $0x400] sm:$0xff] }
  0x4b   :  { %467 = vmatpush.msrb.mxu2 %v50_v55  ;;  %532 = vmatpush.msra.mxu0 %v195_v57  ;;  %v225_v55 = vld [vmem:[%s1893_s1 + $0x678] sm:$0xff] }
  0x4c   :  { %421 = vmatpush.msra.mxu1 %v153_v52  ;;  %501 = vmatpush.msrb.mxu3 %v103_v58  ;;  %v26_v52 = vld [vmem:[%s1893_s1 + $0x40] sm:$0xff]  ;;  %v157_v57 = vld [vmem:[%s1893_s1 + $0x458] sm:$0xff] }
  0x4d   :  { %468 = vmatpush.msrb.mxu2 %v37_v59  ;;  %533 = vmatpush.msra.mxu0 %v182_v63  ;;  %v133_v58 = vld [vmem:[%s1893_s1 + $0x398] sm:$0xff]  ;;  %v67_v59 = vld [vmem:[%s1893_s1 + $0x188] sm:$0xff]  ;;  %v144_v63 = vld [vmem:[%s1893_s1 + $0x3f0] sm:$0xff] }
  0x4e   :  { %422 = vmatpush.msra.mxu1 %v140_v56  ;;  %397 = vmatmul.f32.gmra.mxu0 %v1058_v61  ;;  %v80_v56 = vld [vmem:[%s1893_s1 + $0x1f0] sm:$0xff] }
  0x4f   :  { %368 = vmatmul.f32.gmra.mxu3 %v1001_v45  ;;  %534 = vmatpush.msra.mxu0 %v169_v2  ;;  %v199_v2 = vld [vmem:[%s1893_s1 + $0x5a8] sm:$0xff] }
  0x50   :  { %423 = vmatpush.msra.mxu1 %v127_v62  ;;  %502 = vmatpush.msrb.mxu3 %v90_v1  ;;  %v212_v62 = vld [vmem:[%s1893_s1 + $0x610] sm:$0xff]  ;;  %v54_v1 = vld [vmem:[%s1893_s1 + $0x120] sm:$0xff] }
  0x51   :  { %286 = vmatmul.f32.gmra.mxu1 %v1107_v11  ;;  %469 = vmatpush.msrb.mxu2 %v24_v3  ;;  %v131_v3 = vld [vmem:[%s1893_s1 + $0x388] sm:$0xff] }
  0x52   :  { %424 = vmatpush.msra.mxu1 %v114_v0  ;;  %336 = vmatmul.f32.gmra.mxu2 %v1102_v10  ;;  %v120_v0 = vld [vmem:[%s1893_s1 + $0x330] sm:$0xff] }
  0x53   :  { %503 = vmatpush.msrb.mxu3 %v77_v5  ;;  %535 = vmatpush.msra.mxu0 %v156_v6  ;;  %v41_v5 = vld [vmem:[%s1893_s1 + $0xb8] sm:$0xff]  ;;  %v186_v6 = vld [vmem:[%s1893_s1 + $0x540] sm:$0xff] }
  0x54   :  { %425 = vmatpush.msra.mxu1 %v101_v4  ;;  %606 = vmatpush.msra.mxu2 %v223_v7  ;;  %v107_v4 = vld [vmem:[%s1893_s1 + $0x2c8] sm:$0xff]  ;;  %v118_v7 = vld [vmem:[%s1893_s1 + $0x320] sm:$0xff] }
  0x55   :  { %504 = vmatpush.msrb.mxu3 %v64_v9  ;;  %536 = vmatpush.msra.mxu0 %v143_v13  ;;  %v173_v9 = vld [vmem:[%s1893_s1 + $0x4d8] sm:$0xff] }
  0x56   :  { %426 = vmatpush.msra.mxu1 %v88_v8  ;;  %400 = vmatmul.f32.gmra.mxu0 %v1107_v11  ;;  %v94_v8 = vld [vmem:[%s1893_s1 + $0x260] sm:$0xff]  ;;  %v105_v13 = vld [vmem:[%s1893_s1 + $0x2b8] sm:$0xff] }
  0x57   :  { %607 = vmatpush.msra.mxu2 %v210_v12  ;;  %371 = vmatmul.f32.gmra.mxu3 %v1053_v60  ;;  %v28_v12 = vld [vmem:[%s1893_s1 + $0x50] sm:$0xff] }
  0x58   :  { %427 = vmatpush.msra.mxu1 %v75_v14  ;;  %505 = vmatpush.msrb.mxu3 %v51_v15  ;;  %v81_v14 = vld [vmem:[%s1893_s1 + $0x1f8] sm:$0xff]  ;;  %v160_v15 = vld [vmem:[%s1893_s1 + $0x470] sm:$0xff] }
  0x59   :  { %289 = vmatmul.f32.gmra.mxu1 %v1152_v24  ;;  %537 = vmatpush.msra.mxu0 %v130_v16  ;;  %v92_v16 = vld [vmem:[%s1893_s1 + $0x250] sm:$0xff] }
  0x5a   :  { %470 = vmatmul.f32.vlgmr.msrb.gmra.mxu2 %v1006_v46  ;;  %428 = vmatpush.msra.mxu1 %v62_v18  ;;  %v147_v18 = vld [vmem:[%s1893_s1 + $0x408] sm:$0xff] }
  0x5b   :  { %608 = vmatpush.msra.mxu2 %v197_v17  ;;  %506 = vmatpush.msrb.mxu3 %v38_v19  ;;  %v68_v17 = vld [vmem:[%s1893_s1 + $0x190] sm:$0xff]  ;;  %v79_v19 = vld [vmem:[%s1893_s1 + $0x1e8] sm:$0xff] }
  0x5c   :  { %538 = vmatpush.msra.mxu0 %v117_v20  ;;  %429 = vmatpush.msra.mxu1 %v49_v22  ;;  %v55_v20 = vld [vmem:[%s1893_s1 + $0x128] sm:$0xff]  ;;  %v66_v22 = vld [vmem:[%s1893_s1 + $0x180] sm:$0xff] }
  0x5d   :  { %609 = vmatpush.msra.mxu2 %v184_v21  ;;  %507 = vmatpush.msrb.mxu3 %v25_v23  ;;  %v134_v21 = vld [vmem:[%s1893_s1 + $0x3a0] sm:$0xff] }
  0x5e   :  { %403 = vmatmul.f32.gmra.mxu0 %v1152_v24  ;;  %430 = vmatpush.msra.mxu1 %v36_v27  ;;  %v42_v23 = vld [vmem:[%s1893_s1 + $0xc0] sm:$0xff]  ;;  %v29_v27 = vld [vmem:[%s1893_s1 + $0x58] sm:$0xff] }
  0x5f   :  { %610 = vmatpush.msra.mxu2 %v171_v25  ;;  %539 = vmatpush.msra.mxu0 %v104_v26  ;;  %v121_v25 = vld [vmem:[%s1893_s1 + $0x338] sm:$0xff] }
  0x60   :  { %374 = vmatmul.f32.gmra.mxu3 %v1102_v10  ;;  %431 = vmatpush.msra.mxu1 %v23_v31  ;;  %v53_v26 = vld [vmem:[%s1893_s1 + $0x118] sm:$0xff]  ;;  %v27_v31 = vld [vmem:[%s1893_s1 + $0x48] sm:$0xff] }
  0x61   :  { %292 = vmatmul.f32.gmra.mxu1 %v1001_v45  ;;  %644 = vmatpush.msra.mxu3 %v224_v28  ;;  %v108_v28 = vld [vmem:[%s1893_s1 + $0x2d0] sm:$0xff] }
  0x62   :  { %473 = vmatmul.f32.gmra.mxu2 %v1058_v61  ;;  %540 = vmatpush.msra.mxu0 %v91_v29  ;;  %v40_v29 = vld [vmem:[%s1893_s1 + $0xb0] sm:$0xff] }
  0x63   :  { %611 = vmatpush.msra.mxu2 %v158_v30  ;;  %645 = vmatpush.msra.mxu3 %v211_v32  ;;  %v95_v30 = vld [vmem:[%s1893_s1 + $0x268] sm:$0xff]  ;;  %v82_v32 = vld [vmem:[%s1893_s1 + $0x200] sm:$0xff] }
  0x64   :  { %541 = vmatpush.msra.mxu0 %v78_v33  ;;  %568 = vmatpush.msrb.mxu1 %v222_v35  ;;  %v69_v33 = vld [vmem:[%s1893_s1 + $0x198] sm:$0xff]  ;;  %v43_v35 = vld [vmem:[%s1893_s1 + $0xc8] sm:$0xff] }
  0x65   :  { %612 = vmatpush.msra.mxu2 %v145_v34  ;;  %646 = vmatpush.msra.mxu3 %v198_v36  ;;  %v56_v34 = vld [vmem:[%s1893_s1 + $0x130] sm:$0xff]  ;;  %v30_v36 = vld [vmem:[%s1893_s1 + $0x60] sm:$0xff] }
  0x66   :  { %406 = vmatmul.f32.gmra.mxu0 %v1001_v45  ;;  %569 = vmatpush.msrb.mxu1 %v209_v39 }
  0x67   :  { %613 = vmatpush.msra.mxu2 %v132_v37  ;;  %542 = vmatpush.msra.mxu0 %v65_v38 }
  0x68   :  { %508 = vmatmul.f32.vlgmr.msrb.gmra.mxu3 %v1006_v46  ;;  %570 = vmatpush.msrb.mxu1 %v196_v43 }
  0x69   :  { %295 = vmatmul.f32.gmra.mxu1 %v1053_v60  ;;  %647 = vmatpush.msra.mxu3 %v185_v40 }
  0x6a   :  { %476 = vmatmul.f32.gmra.mxu2 %v1107_v11  ;;  %543 = vmatpush.msra.mxu0 %v52_v41 }
  0x6b   :  { %614 = vmatpush.msra.mxu2 %v119_v42  ;;  %648 = vmatpush.msra.mxu3 %v172_v44 }
  0x6c   :  { %544 = vmatpush.msra.mxu0 %v39_v47  ;;  %571 = vmatpush.msrb.mxu1 %v183_v49 }
  0x6d   :  { %615 = vmatpush.msra.mxu2 %v106_v48  ;;  %649 = vmatpush.msra.mxu3 %v159_v50 }
  0x6e   :  { %409 = vmatmul.f32.gmra.mxu0 %v1053_v60  ;;  %572 = vmatpush.msrb.mxu1 %v170_v53 }
  0x6f   :  { %616 = vmatpush.msra.mxu2 %v93_v51  ;;  %545 = vmatpush.msra.mxu0 %v26_v52 }
  0x70   :  { %511 = vmatmul.f32.gmra.mxu3 %v1058_v61  ;;  %573 = vmatpush.msrb.mxu1 %v157_v57 }
  0x71   :  { %298 = vmatmul.f32.gmra.mxu1 %v1102_v10  ;;  %650 = vmatpush.msra.mxu3 %v146_v54 }
  0x72   :  { %479 = vmatmul.f32.gmra.mxu2 %v1152_v24  ;;  %682 = vmatpush.msrb.mxu0 %v225_v55 }
  0x73   :  { %617 = vmatpush.msra.mxu2 %v80_v56  ;;  %651 = vmatpush.msra.mxu3 %v133_v58 }
  0x74   :  { %683 = vmatpush.msrb.mxu0 %v212_v62  ;;  %574 = vmatpush.msrb.mxu1 %v144_v63 }
  0x75   :  { %618 = vmatpush.msra.mxu2 %v67_v59  ;;  %652 = vmatpush.msra.mxu3 %v120_v0 }
  0x76   :  { %412 = vmatmul.f32.gmra.mxu0 %v1102_v10  ;;  %575 = vmatpush.msrb.mxu1 %v131_v3 }
  0x77   :  { %619 = vmatpush.msra.mxu2 %v54_v1  ;;  %684 = vmatpush.msrb.mxu0 %v199_v2 }
  0x78   :  { %514 = vmatmul.f32.gmra.mxu3 %v1107_v11  ;;  %576 = vmatpush.msrb.mxu1 %v118_v7 }
  0x79   :  { %432 = vmatmul.f32.vlgmr.msra.gmra.mxu1 %v1006_v46  ;;  %653 = vmatpush.msra.mxu3 %v107_v4 }
  0x7a   :  { %482 = vmatmul.f32.gmra.mxu2 %v1001_v45  ;;  %685 = vmatpush.msrb.mxu0 %v186_v6 }
  0x7b   :  { %620 = vmatpush.msra.mxu2 %v41_v5  ;;  %654 = vmatpush.msra.mxu3 %v94_v8 }
  0x7c   :  { %686 = vmatpush.msrb.mxu0 %v173_v9  ;;  %577 = vmatpush.msrb.mxu1 %v105_v13 }
  0x7d   :  { %621 = vmatpush.msra.mxu2 %v28_v12  ;;  %655 = vmatpush.msra.mxu3 %v81_v14 }
  0x7e   :  { %546 = vmatmul.f32.vlgmr.msra.gmra.mxu0 %v1006_v46  ;;  %578 = vmatpush.msrb.mxu1 %v92_v16 }
  0x7f   :  { %832 = vmatpush.msrb.mxu2 %v225_v55  ;;  %687 = vmatpush.msrb.mxu0 %v160_v15 }
  0x80   :  { %517 = vmatmul.f32.gmra.mxu3 %v1152_v24  ;;  %579 = vmatpush.msrb.mxu1 %v79_v19 }
  0x81   :  { %435 = vmatmul.f32.gmra.mxu1 %v1058_v61  ;;  %656 = vmatpush.msra.mxu3 %v68_v17 }
  0x82   :  { %485 = vmatmul.f32.gmra.mxu2 %v1053_v60  ;;  %688 = vmatpush.msrb.mxu0 %v147_v18 }
  0x83   :  { %833 = vmatpush.msrb.mxu2 %v212_v62  ;;  %657 = vmatpush.msra.mxu3 %v55_v20 }
  0x84   :  { %689 = vmatpush.msrb.mxu0 %v134_v21  ;;  %580 = vmatpush.msrb.mxu1 %v66_v22 }
  0x85   :  { %834 = vmatpush.msrb.mxu2 %v199_v2  ;;  %658 = vmatpush.msra.mxu3 %v42_v23 }
  0x86   :  { %549 = vmatmul.f32.gmra.mxu0 %v1058_v61  ;;  %581 = vmatpush.msrb.mxu1 %v53_v26 }
  0x87   :  { %835 = vmatpush.msrb.mxu2 %v186_v6  ;;  %690 = vmatpush.msrb.mxu0 %v121_v25 }
  0x88   :  { %520 = vmatmul.f32.gmra.mxu3 %v1001_v45  ;;  %582 = vmatpush.msrb.mxu1 %v40_v29 }
  0x89   :  { %438 = vmatmul.f32.gmra.mxu1 %v1107_v11  ;;  %659 = vmatpush.msra.mxu3 %v29_v27 }
  0x8a   :  { %488 = vmatmul.f32.gmra.mxu2 %v1102_v10  ;;  %691 = vmatpush.msrb.mxu0 %v108_v28 }
  0x8b   :  { %836 = vmatpush.msrb.mxu2 %v173_v9  ;;  %583 = vmatpush.msrb.mxu1 %v27_v31 }
  0x8c   :  { %692 = vmatpush.msrb.mxu0 %v95_v30 }
  0x8d   :  { %837 = vmatpush.msrb.mxu2 %v160_v15 }
  0x8e   :  { %552 = vmatmul.f32.gmra.mxu0 %v1107_v11 }
  0x8f   :  { %838 = vmatpush.msrb.mxu2 %v147_v18  ;;  %693 = vmatpush.msrb.mxu0 %v82_v32 }
  0x90   :  { %523 = vmatmul.f32.gmra.mxu3 %v1053_v60 }
  0x91   :  { %441 = vmatmul.f32.gmra.mxu1 %v1152_v24  ;;  %839 = vmatpush.msrb.mxu2 %v134_v21 }
  0x92   :  { %622 = vmatmul.f32.vlgmr.msra.gmra.mxu2 %v1006_v46  ;;  %694 = vmatpush.msrb.mxu0 %v69_v33 }
  0x93   :  { %840 = vmatpush.msrb.mxu2 %v121_v25 }
  0x94   :  { %695 = vmatpush.msrb.mxu0 %v56_v34 }
  0x95   :  { %841 = vmatpush.msrb.mxu2 %v108_v28 }
  0x96   :  { %555 = vmatmul.f32.gmra.mxu0 %v1152_v24 }
  0x97   :  { %842 = vmatpush.msrb.mxu2 %v95_v30  ;;  %696 = vmatpush.msrb.mxu0 %v43_v35 }
  0x98   :  { %526 = vmatmul.f32.gmra.mxu3 %v1102_v10 }
  0x99   :  { %444 = vmatmul.f32.gmra.mxu1 %v1001_v45  ;;  %843 = vmatpush.msrb.mxu2 %v82_v32 }
  0x9a   :  { %625 = vmatmul.f32.gmra.mxu2 %v1058_v61  ;;  %697 = vmatpush.msrb.mxu0 %v30_v36 }
  0x9b   :  { %844 = vmatpush.msrb.mxu2 %v69_v33 }
  0x9d   :  { %845 = vmatpush.msrb.mxu2 %v56_v34 }
  0x9e   :  { %v255_v37 = vpop.f32.mrf.mxu1  ;;  %558 = vmatmul.f32.gmra.mxu0 %v1001_v45 }
  0x9f   :  { %773 = vst [vmem:[%s1895_s2 + $0x1a0] sm:$0xff] %v255_v37  ;;  %846 = vmatpush.msrb.mxu2 %v43_v35 }
  0xa0   :  { %660 = vmatmul.f32.vlgmr.msra.gmra.mxu3 %v1006_v46  ;;  %v243_v38 = vpop.f32.mrf.mxu0 }
  0xa1   :  { %447 = vmatmul.f32.gmra.mxu1 %v1053_v60  ;;  %720 = vst [vmem:[%s1895_s2] sm:$0xff] %v243_v38  ;;  %847 = vmatpush.msrb.mxu2 %v30_v36 }
  0xa2   :  { %628 = vmatmul.f32.gmra.mxu2 %v1107_v11 }
  0xa5   :  { %v319_v39 = vpop.f32.mrf.mxu2 }
  0xa6   :  { %722 = vst [vmem:[%s1895_s2 + $0x10] sm:$0xff] %v319_v39  ;;  %v258_v40 = vpop.f32.mrf.mxu1  ;;  %561 = vmatmul.f32.gmra.mxu0 %v1053_v60 }
  0xa7   :  { %786 = vst [vmem:[%s1895_s2 + $0x208] sm:$0xff] %v258_v40 }
  0xa8   :  { %663 = vmatmul.f32.gmra.mxu3 %v1058_v61  ;;  %v246_v41 = vpop.f32.mrf.mxu0 }
  0xa9   :  { %450 = vmatmul.f32.gmra.mxu1 %v1102_v10  ;;  %734 = vst [vmem:[%s1895_s2 + $0x68] sm:$0xff] %v246_v41 }
  0xaa   :  { %631 = vmatmul.f32.gmra.mxu2 %v1152_v24 }
  0xad   :  { %v322_v42 = vpop.f32.mrf.mxu2 }
  0xae   :  { %736 = vst [vmem:[%s1895_s2 + $0x78] sm:$0xff] %v322_v42  ;;  %v261_v43 = vpop.f32.mrf.mxu1  ;;  %564 = vmatmul.f32.gmra.mxu0 %v1102_v10 }
  0xaf   :  { %799 = vst [vmem:[%s1895_s2 + $0x270] sm:$0xff] %v261_v43 }
  0xb0   :  { %666 = vmatmul.f32.gmra.mxu3 %v1107_v11  ;;  %v357_v44 = vpop.f32.mrf.mxu3 }
  0xb1   :  { %584 = vmatmul.f32.vlgmr.msrb.gmra.mxu1 %v1006_v46  ;;  %723 = vst [vmem:[%s1895_s2 + $0x18] sm:$0xff] %v357_v44 }
  0xb2   :  { %634 = vmatmul.f32.gmra.mxu2 %v1001_v45 }
  0xb3   :  { %v249_v47 = vpop.f32.mrf.mxu0 }
  0xb4   :  { %747 = vst [vmem:[%s1895_s2 + $0xd0] sm:$0xff] %v249_v47 }
  0xb5   :  { %v325_v48 = vpop.f32.mrf.mxu2 }
  0xb6   :  { %749 = vst [vmem:[%s1895_s2 + $0xe0] sm:$0xff] %v325_v48  ;;  %698 = vmatmul.f32.vlgmr.msrb.gmra.mxu0 %v1006_v46 }
  0xb8   :  { %669 = vmatmul.f32.gmra.mxu3 %v1152_v24 }
  0xb9   :  { %587 = vmatmul.f32.gmra.mxu1 %v1058_v61 }
  0xba   :  { %637 = vmatmul.f32.gmra.mxu2 %v1053_v60  ;;  %v360_v50 = vpop.f32.mrf.mxu3 }
  0xbb   :  { %v252_v49 = vpop.f32.mrf.mxu0  ;;  %737 = vst [vmem:[%s1895_s2 + $0x80] sm:$0xff] %v360_v50 }
  0xbc   :  { %760 = vst [vmem:[%s1895_s2 + $0x138] sm:$0xff] %v252_v49 }
  0xbd   :  { %v328_v52 = vpop.f32.mrf.mxu2 }
  0xbe   :  { %v281_v51 = vpop.f32.mrf.mxu1  ;;  %762 = vst [vmem:[%s1895_s2 + $0x148] sm:$0xff] %v328_v52  ;;  %701 = vmatmul.f32.gmra.mxu0 %v1058_v61 }
  0xbf   :  { %721 = vst [vmem:[%s1895_s2 + $0x8] sm:$0xff] %v281_v51 }
  0xc0   :  { %672 = vmatmul.f32.gmra.mxu3 %v1001_v45 }
  0xc1   :  { %590 = vmatmul.f32.gmra.mxu1 %v1107_v11 }
  0xc2   :  { %640 = vmatmul.f32.gmra.mxu2 %v1102_v10  ;;  %v363_v46 = vpop.f32.mrf.mxu3 }
  0xc3   :  { %v395_v53 = vpop.f32.mrf.mxu0  ;;  %750 = vst [vmem:[%s1895_s2 + $0xe8] sm:$0xff] %v363_v46 }
  0xc4   :  { %724 = vst [vmem:[%s1895_s2 + $0x20] sm:$0xff] %v395_v53 }
  0xc5   :  { %v331_v55 = vpop.f32.mrf.mxu2 }
  0xc6   :  { %v284_v54 = vpop.f32.mrf.mxu1  ;;  %775 = vst [vmem:[%s1895_s2 + $0x1b0] sm:$0xff] %v331_v55  ;;  %704 = vmatmul.f32.gmra.mxu0 %v1107_v11 }
  0xc7   :  { %735 = vst [vmem:[%s1895_s2 + $0x70] sm:$0xff] %v284_v54 }
  0xc8   :  { %675 = vmatmul.f32.gmra.mxu3 %v1053_v60 }
  0xc9   :  { %593 = vmatmul.f32.gmra.mxu1 %v1152_v24 }
  0xca   :  { %713 = vmatmul.f32.vlgmr.msrb.gmra.mxu2 %v1053_v60  ;;  %v366_v61 = vpop.f32.mrf.mxu3 }
  0xcb   :  { %v398_v56 = vpop.f32.mrf.mxu0  ;;  %763 = vst [vmem:[%s1895_s2 + $0x150] sm:$0xff] %v366_v61 }
  0xcc   :  { %738 = vst [vmem:[%s1895_s2 + $0x88] sm:$0xff] %v398_v56 }
  0xcd   :  { %v334_v58 = vpop.f32.mrf.mxu2 }
  0xce   :  { %v287_v57 = vpop.f32.mrf.mxu1  ;;  %788 = vst [vmem:[%s1895_s2 + $0x218] sm:$0xff] %v334_v58  ;;  %707 = vmatmul.f32.gmra.mxu0 %v1152_v24 }
  0xcf   :  { %748 = vst [vmem:[%s1895_s2 + $0xd8] sm:$0xff] %v287_v57 }
  0xd0   :  { %678 = vmatmul.f32.gmra.mxu3 %v1102_v10 }
  0xd1   :  { %596 = vmatmul.f32.gmra.mxu1 %v1001_v45 }
  0xd2   :  { %716 = vmatmul.f32.gmra.mxu2 %v1102_v10  ;;  %v369_v11 = vpop.f32.mrf.mxu3 }
  0xd3   :  { %v401_v59 = vpop.f32.mrf.mxu0  ;;  %776 = vst [vmem:[%s1895_s2 + $0x1b8] sm:$0xff] %v369_v11 }
  0xd4   :  { %751 = vst [vmem:[%s1895_s2 + $0xf0] sm:$0xff] %v401_v59 }
  0xd5   :  { %v337_v63 = vpop.f32.mrf.mxu2 }
  0xd6   :  { %v290_v62 = vpop.f32.mrf.mxu1  ;;  %801 = vst [vmem:[%s1895_s2 + $0x280] sm:$0xff] %v337_v63  ;;  %710 = vmatmul.f32.gmra.mxu0 %v1001_v45 }
  0xd7   :  { %761 = vst [vmem:[%s1895_s2 + $0x140] sm:$0xff] %v290_v62 }
  0xd9   :  { %599 = vmatmul.f32.gmra.mxu1 %v1053_v60 }
  0xda   :  { %v372_v24 = vpop.f32.mrf.mxu3 }
  0xdb   :  { %v404_v0 = vpop.f32.mrf.mxu0  ;;  %789 = vst [vmem:[%s1895_s2 + $0x220] sm:$0xff] %v372_v24 }
  0xdc   :  { %764 = vst [vmem:[%s1895_s2 + $0x158] sm:$0xff] %v404_v0 }
  0xdd   :  { %v471_v2 = vpop.f32.mrf.mxu2 }
  0xde   :  { %v293_v1 = vpop.f32.mrf.mxu1  ;;  %726 = vst [vmem:[%s1895_s2 + $0x30] sm:$0xff] %v471_v2 }
  0xdf   :  { %774 = vst [vmem:[%s1895_s2 + $0x1a8] sm:$0xff] %v293_v1 }
  0xe1   :  { %602 = vmatmul.f32.gmra.mxu1 %v1102_v10 }
  0xe3   :  { %v375_v45 = vpop.f32.mrf.mxu3  ;;  %v407_v60 = vpop.f32.mrf.mxu0 }
  0xe4   :  { %802 = vst [vmem:[%s1895_s2 + $0x288] sm:$0xff] %v375_v45 }
  0xe5   :  { %v474_v4 = vpop.f32.mrf.mxu2  ;;  %777 = vst [vmem:[%s1895_s2 + $0x1c0] sm:$0xff] %v407_v60 }
  0xe6   :  { %v296_v3 = vpop.f32.mrf.mxu1  ;;  %740 = vst [vmem:[%s1895_s2 + $0x98] sm:$0xff] %v474_v4 }
  0xe7   :  { %787 = vst [vmem:[%s1895_s2 + $0x210] sm:$0xff] %v296_v3 }
  0xeb   :  { %v410_v10 = vpop.f32.mrf.mxu0  ;;  %v509_v5 = vpop.f32.mrf.mxu3 }
  0xec   :  { %790 = vst [vmem:[%s1895_s2 + $0x228] sm:$0xff] %v410_v10 }
  0xed   :  { %v477_v7 = vpop.f32.mrf.mxu2  ;;  %727 = vst [vmem:[%s1895_s2 + $0x38] sm:$0xff] %v509_v5 }
  0xee   :  { %v299_v6 = vpop.f32.mrf.mxu1  ;;  %753 = vst [vmem:[%s1895_s2 + $0x100] sm:$0xff] %v477_v7 }
  0xef   :  { %800 = vst [vmem:[%s1895_s2 + $0x278] sm:$0xff] %v299_v6 }
  0xf3   :  { %v413_v8 = vpop.f32.mrf.mxu0  ;;  %v512_v9 = vpop.f32.mrf.mxu3 }
  0xf4   :  { %803 = vst [vmem:[%s1895_s2 + $0x290] sm:$0xff] %v413_v8 }
  0xf5   :  { %v480_v13 = vpop.f32.mrf.mxu2  ;;  %741 = vst [vmem:[%s1895_s2 + $0xa0] sm:$0xff] %v512_v9 }
  0xf6   :  { %v433_v12 = vpop.f32.mrf.mxu1  ;;  %766 = vst [vmem:[%s1895_s2 + $0x168] sm:$0xff] %v480_v13 }
  0xf7   :  { %725 = vst [vmem:[%s1895_s2 + $0x28] sm:$0xff] %v433_v12 }
  0xfb   :  { %v515_v14 = vpop.f32.mrf.mxu3  ;;  %v547_v15 = vpop.f32.mrf.mxu0 }
  0xfc   :  { %754 = vst [vmem:[%s1895_s2 + $0x108] sm:$0xff] %v515_v14 }
  0xfd   :  { %v483_v17 = vpop.f32.mrf.mxu2  ;;  %728 = vst [vmem:[%s1895_s2 + $0x40] sm:$0xff] %v547_v15 }
  0xfe   :  { %v436_v16 = vpop.f32.mrf.mxu1  ;;  %779 = vst [vmem:[%s1895_s2 + $0x1d0] sm:$0xff] %v483_v17 }
  0xff   :  { %739 = vst [vmem:[%s1895_s2 + $0x90] sm:$0xff] %v436_v16 }
 0x103   :  { %v518_v18 = vpop.f32.mrf.mxu3  ;;  %v550_v19 = vpop.f32.mrf.mxu0 }
 0x104   :  { %767 = vst [vmem:[%s1895_s2 + $0x170] sm:$0xff] %v518_v18 }
 0x105   :  { %v486_v21 = vpop.f32.mrf.mxu2  ;;  %742 = vst [vmem:[%s1895_s2 + $0xa8] sm:$0xff] %v550_v19 }
 0x106   :  { %v439_v20 = vpop.f32.mrf.mxu1  ;;  %792 = vst [vmem:[%s1895_s2 + $0x238] sm:$0xff] %v486_v21 }
 0x107   :  { %752 = vst [vmem:[%s1895_s2 + $0xf8] sm:$0xff] %v439_v20 }
 0x10b   :  { %v521_v22 = vpop.f32.mrf.mxu3  ;;  %v553_v23 = vpop.f32.mrf.mxu0 }
 0x10c   :  { %780 = vst [vmem:[%s1895_s2 + $0x1d8] sm:$0xff] %v521_v22 }
 0x10d   :  { %v489_v26 = vpop.f32.mrf.mxu2  ;;  %755 = vst [vmem:[%s1895_s2 + $0x110] sm:$0xff] %v553_v23 }
 0x10e   :  { %v442_v25 = vpop.f32.mrf.mxu1  ;;  %805 = vst [vmem:[%s1895_s2 + $0x2a0] sm:$0xff] %v489_v26 }
 0x10f   :  { %765 = vst [vmem:[%s1895_s2 + $0x160] sm:$0xff] %v442_v25 }
 0x113   :  { %v524_v27 = vpop.f32.mrf.mxu3  ;;  %v556_v28 = vpop.f32.mrf.mxu0 }
 0x114   :  { %793 = vst [vmem:[%s1895_s2 + $0x240] sm:$0xff] %v524_v27 }
 0x115   :  { %v623_v30 = vpop.f32.mrf.mxu2  ;;  %768 = vst [vmem:[%s1895_s2 + $0x178] sm:$0xff] %v556_v28 }
 0x116   :  { %v445_v29 = vpop.f32.mrf.mxu1  ;;  %730 = vst [vmem:[%s1895_s2 + $0x50] sm:$0xff] %v623_v30 }
 0x117   :  { %778 = vst [vmem:[%s1895_s2 + $0x1c8] sm:$0xff] %v445_v29 }
 0x11b   :  { %v527_v31 = vpop.f32.mrf.mxu3  ;;  %v559_v32 = vpop.f32.mrf.mxu0 }
 0x11c   :  { %806 = vst [vmem:[%s1895_s2 + $0x2a8] sm:$0xff] %v527_v31 }
 0x11d   :  { %v626_v34 = vpop.f32.mrf.mxu2  ;;  %781 = vst [vmem:[%s1895_s2 + $0x1e0] sm:$0xff] %v559_v32 }
 0x11e   :  { %v448_v33 = vpop.f32.mrf.mxu1  ;;  %744 = vst [vmem:[%s1895_s2 + $0xb8] sm:$0xff] %v626_v34 }
 0x11f   :  { %791 = vst [vmem:[%s1895_s2 + $0x230] sm:$0xff] %v448_v33 }
 0x123   :  { %v562_v35 = vpop.f32.mrf.mxu0  ;;  %v661_v36 = vpop.f32.mrf.mxu3 }
 0x124   :  { %794 = vst [vmem:[%s1895_s2 + $0x248] sm:$0xff] %v562_v35 }
 0x125   :  { %v629_v38 = vpop.f32.mrf.mxu2  ;;  %731 = vst [vmem:[%s1895_s2 + $0x58] sm:$0xff] %v661_v36 }
 0x126   :  { %v451_v37 = vpop.f32.mrf.mxu1  ;;  %757 = vst [vmem:[%s1895_s2 + $0x120] sm:$0xff] %v629_v38 }
 0x127   :  { %804 = vst [vmem:[%s1895_s2 + $0x298] sm:$0xff] %v451_v37 }
 0x12b   :  { %v565_v39 = vpop.f32.mrf.mxu0  ;;  %v664_v40 = vpop.f32.mrf.mxu3 }
 0x12c   :  { %807 = vst [vmem:[%s1895_s2 + $0x2b0] sm:$0xff] %v565_v39 }
 0x12d   :  { %v632_v42 = vpop.f32.mrf.mxu2  ;;  %745 = vst [vmem:[%s1895_s2 + $0xc0] sm:$0xff] %v664_v40 }
 0x12e   :  { %v585_v41 = vpop.f32.mrf.mxu1  ;;  %770 = vst [vmem:[%s1895_s2 + $0x188] sm:$0xff] %v632_v42 }
 0x12f   :  { %729 = vst [vmem:[%s1895_s2 + $0x48] sm:$0xff] %v585_v41 }
 0x133   :  { %v667_v43 = vpop.f32.mrf.mxu3  ;;  %v699_v44 = vpop.f32.mrf.mxu0 }
 0x134   :  { %758 = vst [vmem:[%s1895_s2 + $0x128] sm:$0xff] %v667_v43 }
 0x135   :  { %v635_v48 = vpop.f32.mrf.mxu2  ;;  %733 = vst.msk [vmem:[%s1895_s2 + $0x60] sm:$0xff] %vm732_vm0, %v699_v44 }
 0x136   :  { %v588_v47 = vpop.f32.mrf.mxu1  ;;  %783 = vst [vmem:[%s1895_s2 + $0x1f0] sm:$0xff] %v635_v48 }
 0x137   :  { %743 = vst [vmem:[%s1895_s2 + $0xb0] sm:$0xff] %v588_v47 }
 0x13b   :  { %v670_v49 = vpop.f32.mrf.mxu3  ;;  %v702_v50 = vpop.f32.mrf.mxu0 }
 0x13c   :  { %771 = vst [vmem:[%s1895_s2 + $0x190] sm:$0xff] %v670_v49 }
 0x13d   :  { %v638_v52 = vpop.f32.mrf.mxu2  ;;  %746 = vst.msk [vmem:[%s1895_s2 + $0xc8] sm:$0xff] %vm732_vm0, %v702_v50 }
 0x13e   :  { %v591_v51 = vpop.f32.mrf.mxu1  ;;  %796 = vst [vmem:[%s1895_s2 + $0x258] sm:$0xff] %v638_v52 }
 0x13f   :  { %756 = vst [vmem:[%s1895_s2 + $0x118] sm:$0xff] %v591_v51 }
 0x143   :  { %v673_v46 = vpop.f32.mrf.mxu3  ;;  %v705_v53 = vpop.f32.mrf.mxu0 }
 0x144   :  { %784 = vst [vmem:[%s1895_s2 + $0x1f8] sm:$0xff] %v673_v46 }
 0x145   :  { %v641_v55 = vpop.f32.mrf.mxu2  ;;  %759 = vst.msk [vmem:[%s1895_s2 + $0x130] sm:$0xff] %vm732_vm0, %v705_v53 }
 0x146   :  { %v594_v54 = vpop.f32.mrf.mxu1  ;;  %809 = vst [vmem:[%s1895_s2 + $0x2c0] sm:$0xff] %v641_v55 }
 0x147   :  { %769 = vst [vmem:[%s1895_s2 + $0x180] sm:$0xff] %v594_v54 }
 0x14b   :  { %v676_v61 = vpop.f32.mrf.mxu3  ;;  %v708_v56 = vpop.f32.mrf.mxu0 }
 0x14c   :  { %797 = vst [vmem:[%s1895_s2 + $0x260] sm:$0xff] %v676_v61 }
 0x14d   :  { %v714_v58 = vpop.f32.mrf.mxu2  ;;  %772 = vst.msk [vmem:[%s1895_s2 + $0x198] sm:$0xff] %vm732_vm0, %v708_v56 }
 0x14e   :  { %v597_v57 = vpop.f32.mrf.mxu1  ;;  %798 = vst.msk [vmem:[%s1895_s2 + $0x268] sm:$0xff] %vm732_vm0, %v714_v58 }
 0x14f   :  { %782 = vst [vmem:[%s1895_s2 + $0x1e8] sm:$0xff] %v597_v57 }
 0x153   :  { %v679_v11 = vpop.f32.mrf.mxu3  ;;  %v711_v59 = vpop.f32.mrf.mxu0 }
 0x154   :  { %810 = vst [vmem:[%s1895_s2 + $0x2c8] sm:$0xff] %v679_v11 }
 0x155   :  { %v717_v63 = vpop.f32.mrf.mxu2  ;;  %785 = vst.msk [vmem:[%s1895_s2 + $0x200] sm:$0xff] %vm732_vm0, %v711_v59 }
 0x156   :  { %v600_v62 = vpop.f32.mrf.mxu1  ;;  %811 = vst.msk [vmem:[%s1895_s2 + $0x2d0] sm:$0xff] %vm732_vm0, %v717_v63 }
 0x157   :  { %795 = vst [vmem:[%s1895_s2 + $0x250] sm:$0xff] %v600_v62 }
 0x15e   :  { %v603_v24 = vpop.f32.mrf.mxu1 }
 0x15f   :  { %808 = vst [vmem:[%s1895_s2 + $0x2b8] sm:$0xff] %v603_v24 }

// kernel: decoder_forward_pallas.6
= control target key start
LH: loop header
LB: loop body
LE: loop exit
PB: predicated region body
PF: predicated region fallthrough
CT: control target
= control target key end

     0   :  { %vm126_vm0 = vcmask 523264   ;;  %s4723_s1 = inlined_call_operand.vmem [shape: f32[64,1152], index: 1, kind: input, shape index: {}]   ;;  %s4724_s0 = inlined_call_operand.vmem [shape: f32[344,64], index: 0, kind: input, shape index: {}]   ;;  %s4725_s2 = inlined_call_operand.vmem [shape: f32[344,1152], index: 2, kind: output, shape index: {}]  }
   0x1   :  { %v117_v0 = vld [vmem:[%s4723_s1 + $0x1f8] sm:$0xff]  ;;  %v108_v1 = vld [vmem:[%s4723_s1 + $0x1b0] sm:$0xff]  ;;  %v99_v2 = vld [vmem:[%s4723_s1 + $0x168] sm:$0xff] }
   0x2   :  { %2349 = vmatpush.msra.mxu2 %v117_v0  ;;  %264 = vmatpush.msra.mxu0 %v117_v0  ;;  %v90_v3 = vld [vmem:[%s4723_s1 + $0x120] sm:$0xff]  ;;  %v81_v4 = vld [vmem:[%s4723_s1 + $0xd8] sm:$0xff]  ;;  %v72_v5 = vld [vmem:[%s4723_s1 + $0x90] sm:$0xff] }
   0x3   :  { %2348 = vmatpush.msra.mxu1 %v117_v0  ;;  %2350 = vmatpush.msra.mxu3 %v117_v0  ;;  %v63_v6 = vld [vmem:[%s4723_s1 + $0x48] sm:$0xff]  ;;  %v54_v7 = vld [vmem:[%s4723_s1] sm:$0xff]  ;;  %v2467_v8 = vld [vmem:[%s4724_s0 + $0xb0] sm:$0xff] }
   0x4   :  { %2352 = vmatpush.msra.mxu2 %v108_v1  ;;  %265 = vmatpush.msra.mxu0 %v108_v1  ;;  %v119_v9 = vld [vmem:[%s4723_s1 + $0x208] sm:$0xff]  ;;  %v2475_v10 = vld [vmem:[%s4724_s0] sm:$0xff]  ;;  %v2480_v11 = vld [vmem:[%s4724_s0 + $0x58] sm:$0xff] }
   0x5   :  { %2351 = vmatpush.msra.mxu1 %v108_v1  ;;  %2353 = vmatpush.msra.mxu3 %v108_v1  ;;  %v121_v12 = vld [vmem:[%s4723_s1 + $0x218] sm:$0xff]  ;;  %v118_v13 = vld [vmem:[%s4723_s1 + $0x200] sm:$0xff]  ;;  %v44_v14 = vld [vmem:[%s4724_s0 + $0x108] sm:$0xff] }
   0x6   :  { %2355 = vmatpush.msra.mxu2 %v99_v2  ;;  %266 = vmatpush.msra.mxu0 %v99_v2  ;;  %v110_v15 = vld [vmem:[%s4723_s1 + $0x1c0] sm:$0xff]  ;;  %v120_v16 = vld [vmem:[%s4723_s1 + $0x210] sm:$0xff]  ;;  %v109_v17 = vld [vmem:[%s4723_s1 + $0x1b8] sm:$0xff] }
   0x7   :  { %2354 = vmatpush.msra.mxu1 %v99_v2  ;;  %2356 = vmatpush.msra.mxu3 %v99_v2  ;;  %v112_v18 = vld [vmem:[%s4723_s1 + $0x1d0] sm:$0xff]  ;;  %v101_v19 = vld [vmem:[%s4723_s1 + $0x178] sm:$0xff]  ;;  %v111_v20 = vld [vmem:[%s4723_s1 + $0x1c8] sm:$0xff] }
   0x8   :  { %2358 = vmatpush.msra.mxu2 %v90_v3  ;;  %267 = vmatpush.msra.mxu0 %v90_v3  ;;  %v100_v21 = vld [vmem:[%s4723_s1 + $0x170] sm:$0xff]  ;;  %v2522_v22 = vld [vmem:[%s4724_s0 + $0xb8] sm:$0xff]  ;;  %v103_v23 = vld [vmem:[%s4723_s1 + $0x188] sm:$0xff] }
   0x9   :  { %2357 = vmatpush.msra.mxu1 %v90_v3  ;;  %2359 = vmatpush.msra.mxu3 %v90_v3  ;;  %v2530_v24 = vld [vmem:[%s4724_s0 + $0x8] sm:$0xff]  ;;  %v102_v25 = vld [vmem:[%s4723_s1 + $0x180] sm:$0xff]  ;;  %v92_v27 = vld [vmem:[%s4723_s1 + $0x130] sm:$0xff] }
   0xa   :  { %2361 = vmatpush.msra.mxu2 %v81_v4  ;;  %268 = vmatpush.msra.mxu0 %v81_v4  ;;  %v2538_v26 = vld [vmem:[%s4724_s0 + $0x60] sm:$0xff]  ;;  %v93_v28 = vld [vmem:[%s4723_s1 + $0x138] sm:$0xff]  ;;  %v91_v29 = vld [vmem:[%s4723_s1 + $0x128] sm:$0xff] }
   0xb   :  { %2360 = vmatpush.msra.mxu1 %v81_v4  ;;  %2362 = vmatpush.msra.mxu3 %v81_v4  ;;  %v45_v30 = vld [vmem:[%s4724_s0 + $0x110] sm:$0xff]  ;;  %v94_v31 = vld [vmem:[%s4723_s1 + $0x140] sm:$0xff]  ;;  %v83_v32 = vld [vmem:[%s4723_s1 + $0xe8] sm:$0xff] }
   0xc   :  { %2364 = vmatpush.msra.mxu2 %v72_v5  ;;  %269 = vmatpush.msra.mxu0 %v72_v5  ;;  %v2568_v33 = vld [vmem:[%s4724_s0 + $0xc0] sm:$0xff]  ;;  %v2573_v34 = vld [vmem:[%s4724_s0 + $0x10] sm:$0xff]  ;;  %v2578_v35 = vld [vmem:[%s4724_s0 + $0x68] sm:$0xff] }
   0xd   :  { %2363 = vmatpush.msra.mxu1 %v72_v5  ;;  %2365 = vmatpush.msra.mxu3 %v72_v5  ;;  %v84_v36 = vld [vmem:[%s4723_s1 + $0xf0] sm:$0xff]  ;;  %v82_v37 = vld [vmem:[%s4723_s1 + $0xe0] sm:$0xff]  ;;  %v85_v38 = vld [vmem:[%s4723_s1 + $0xf8] sm:$0xff] }
   0xe   :  { %2367 = vmatpush.msra.mxu2 %v63_v6  ;;  %270 = vmatpush.msra.mxu0 %v63_v6  ;;  %v46_v39 = vld [vmem:[%s4724_s0 + $0x118] sm:$0xff]  ;;  %v74_v40 = vld [vmem:[%s4723_s1 + $0xa0] sm:$0xff]  ;;  %v2605_v41 = vld [vmem:[%s4724_s0 + $0xc8] sm:$0xff] }
   0xf   :  { %2366 = vmatpush.msra.mxu1 %v63_v6  ;;  %2368 = vmatpush.msra.mxu3 %v63_v6  ;;  %v2610_v42 = vld [vmem:[%s4724_s0 + $0x18] sm:$0xff]  ;;  %v2615_v43 = vld [vmem:[%s4724_s0 + $0x70] sm:$0xff]  ;;  %v75_v44 = vld [vmem:[%s4723_s1 + $0xa8] sm:$0xff] }
  0x10   :  { %2370 = vmatpush.msra.mxu2 %v54_v7  ;;  %271 = vmatpush.msra.mxu0 %v54_v7  ;;  %v73_v45 = vld [vmem:[%s4723_s1 + $0x98] sm:$0xff]  ;;  %v76_v46 = vld [vmem:[%s4723_s1 + $0xb0] sm:$0xff]  ;;  %v47_v47 = vld [vmem:[%s4724_s0 + $0x120] sm:$0xff] }
  0x11   :  { %1983 = vmatmul.msk.f32.vlgmr.msra.gmra.mxu2 %vm126_vm0, %v2467_v8  ;;  %2369 = vmatpush.msra.mxu1 %v54_v7  ;;  %v2639_v48 = vld [vmem:[%s4724_s0 + $0xd0] sm:$0xff]  ;;  %v2644_v49 = vld [vmem:[%s4724_s0 + $0x20] sm:$0xff]  ;;  %v2649_v50 = vld [vmem:[%s4724_s0 + $0x78] sm:$0xff] }
  0x12   :  { %556 = vmatpush.msrb.mxu2 %v119_v9  ;;  %1961 = vmatmul.msk.f32.vlgmr.msra.gmra.mxu0 %vm126_vm0, %v2475_v10  ;;  %v65_v51 = vld [vmem:[%s4723_s1 + $0x58] sm:$0xff]  ;;  %v66_v52 = vld [vmem:[%s4723_s1 + $0x60] sm:$0xff]  ;;  %v48_v53 = vld [vmem:[%s4724_s0 + $0x128] sm:$0xff] }
  0x13   :  { %1972 = vmatmul.msk.f32.vlgmr.msra.gmra.mxu1 %vm126_vm0, %v2480_v11  ;;  %848 = vmatpush.msrb.mxu0 %v121_v12  ;;  %v2670_v54 = vld [vmem:[%s4724_s0 + $0xd8] sm:$0xff]  ;;  %v2675_v55 = vld [vmem:[%s4724_s0 + $0x28] sm:$0xff]  ;;  %v2680_v56 = vld [vmem:[%s4724_s0 + $0x80] sm:$0xff] }
  0x14   :  { %410 = vmatpush.msrb.mxu1 %v118_v13  ;;  %2371 = vmatpush.msra.mxu3 %v54_v7  ;;  %v64_v57 = vld [vmem:[%s4723_s1 + $0x50] sm:$0xff]  ;;  %v67_v58 = vld [vmem:[%s4723_s1 + $0x68] sm:$0xff]  ;;  %v57_v61 = vld [vmem:[%s4723_s1 + $0x18] sm:$0xff] }
  0x15   :  { %1994 = vmatmul.msk.f32.vlgmr.msra.gmra.mxu3 %vm126_vm0, %v44_v14  ;;  %557 = vmatpush.msrb.mxu2 %v110_v15  ;;  %v56_v59 = vld [vmem:[%s4723_s1 + $0x10] sm:$0xff]  ;;  %v2707_v62 = vld [vmem:[%s4724_s0 + $0xe0] sm:$0xff]  ;;  %v2717_v0 = vld [vmem:[%s4724_s0 + $0x88] sm:$0xff] }
  0x16   :  { %702 = vmatpush.msrb.mxu3 %v120_v16  ;;  %411 = vmatpush.msrb.mxu1 %v109_v17  ;;  %v49_v60 = vld [vmem:[%s4724_s0 + $0x130] sm:$0xff]  ;;  %v55_v1 = vld [vmem:[%s4723_s1 + $0x8] sm:$0xff]  ;;  %v58_v2 = vld [vmem:[%s4723_s1 + $0x20] sm:$0xff] }
  0x17   :  { %849 = vmatpush.msrb.mxu0 %v112_v18  ;;  %558 = vmatpush.msrb.mxu2 %v101_v19  ;;  %v2712_v63 = vld [vmem:[%s4724_s0 + $0x30] sm:$0xff]  ;;  %v50_v3 = vld [vmem:[%s4724_s0 + $0x138] sm:$0xff]  ;;  %v2738_v4 = vld [vmem:[%s4724_s0 + $0xe8] sm:$0xff] }
  0x18   :  { %703 = vmatpush.msrb.mxu3 %v111_v20  ;;  %412 = vmatpush.msrb.mxu1 %v100_v21  ;;  %v2743_v5 = vld [vmem:[%s4724_s0 + $0x38] sm:$0xff]  ;;  %v2748_v6 = vld [vmem:[%s4724_s0 + $0x90] sm:$0xff]  ;;  %v123_v7 = vld [vmem:[%s4723_s1 + $0x228] sm:$0xff] }
  0x19   :  { %1984 = vmatmul.msk.f32.gmra.mxu2 %vm126_vm0, %v2522_v22  ;;  %850 = vmatpush.msrb.mxu0 %v103_v23  ;;  %v124_v9 = vld [vmem:[%s4723_s1 + $0x230] sm:$0xff]  ;;  %v51_v12 = vld [vmem:[%s4724_s0 + $0x140] sm:$0xff]  ;;  %v125_v14 = vld [vmem:[%s4723_s1 + $0x238] sm:$0xff] }
  0x1a   :  { %1962 = vmatmul.msk.f32.gmra.mxu0 %vm126_vm0, %v2530_v24  ;;  %704 = vmatpush.msrb.mxu3 %v102_v25  ;;  %v122_v13 = vld [vmem:[%s4723_s1 + $0x220] sm:$0xff]  ;;  %v2775_v15 = vld [vmem:[%s4724_s0 + $0xf0] sm:$0xff]  ;;  %v2785_v17 = vld [vmem:[%s4724_s0 + $0x98] sm:$0xff] }
  0x1b   :  { %1973 = vmatmul.msk.f32.gmra.mxu1 %vm126_vm0, %v2538_v26  ;;  %559 = vmatpush.msrb.mxu2 %v92_v27  ;;  %v2780_v16 = vld [vmem:[%s4724_s0 + $0x40] sm:$0xff]  ;;  %v52_v18 = vld [vmem:[%s4724_s0 + $0x148] sm:$0xff]  ;;  %v2800_v19 = vld [vmem:[%s4724_s0 + $0xf8] sm:$0xff] }
  0x1c   :  { %705 = vmatpush.msrb.mxu3 %v93_v28  ;;  %413 = vmatpush.msrb.mxu1 %v91_v29  ;;  %v2805_v20 = vld [vmem:[%s4724_s0 + $0x48] sm:$0xff]  ;;  %v2810_v21 = vld [vmem:[%s4724_s0 + $0xa0] sm:$0xff]  ;;  %v53_v23 = vld [vmem:[%s4724_s0 + $0x150] sm:$0xff] }
  0x1d   :  { %1995 = vmatmul.msk.f32.gmra.mxu3 %vm126_vm0, %v45_v30  ;;  %851 = vmatpush.msrb.mxu0 %v94_v31  ;;  %v2825_v25 = vld [vmem:[%s4724_s0 + $0x100] sm:$0xff]  ;;  %v2830_v27 = vld [vmem:[%s4724_s0 + $0x50] sm:$0xff]  ;;  %v2835_v28 = vld [vmem:[%s4724_s0 + $0xa8] sm:$0xff] }
  0x1e   :  { %560 = vmatpush.msrb.mxu2 %v83_v32  ;;  %706 = vmatpush.msrb.mxu3 %v84_v36  ;;  %v114_v29 = vld [vmem:[%s4723_s1 + $0x1e0] sm:$0xff]  ;;  %v116_v30 = vld [vmem:[%s4723_s1 + $0x1f0] sm:$0xff] }
  0x1f   :  { %852 = vmatpush.msrb.mxu0 %v85_v38  ;;  %414 = vmatpush.msrb.mxu1 %v82_v37 }
  0x20   :  { %561 = vmatpush.msrb.mxu2 %v74_v40  ;;  %707 = vmatpush.msrb.mxu3 %v75_v44  ;;  %v105_v40 = vld [vmem:[%s4723_s1 + $0x198] sm:$0xff] }
  0x21   :  { %1985 = vmatmul.msk.f32.gmra.mxu2 %vm126_vm0, %v2568_v33  ;;  %853 = vmatpush.msrb.mxu0 %v76_v46 }
  0x22   :  { %1963 = vmatmul.msk.f32.gmra.mxu0 %vm126_vm0, %v2573_v34  ;;  %415 = vmatpush.msrb.mxu1 %v73_v45 }
  0x23   :  { %1974 = vmatmul.msk.f32.gmra.mxu1 %vm126_vm0, %v2578_v35  ;;  %562 = vmatpush.msrb.mxu2 %v65_v51  ;;  %v107_v51 = vld [vmem:[%s4723_s1 + $0x1a8] sm:$0xff] }
  0x24   :  { %708 = vmatpush.msrb.mxu3 %v66_v52  ;;  %416 = vmatpush.msrb.mxu1 %v64_v57 }
  0x25   :  { %1996 = vmatmul.msk.f32.gmra.mxu3 %vm126_vm0, %v46_v39  ;;  %854 = vmatpush.msrb.mxu0 %v67_v58 }
  0x26   :  { %563 = vmatpush.msrb.mxu2 %v56_v59  ;;  %709 = vmatpush.msrb.mxu3 %v57_v61 }
  0x27   :  { %417 = vmatpush.msrb.mxu1 %v55_v1  ;;  %855 = vmatpush.msrb.mxu0 %v58_v2 }
  0x28   :  { %1140 = vmatpush.msra.mxu2 %v123_v7  ;;  %1286 = vmatpush.msra.mxu3 %v124_v9 }
  0x29   :  { %1986 = vmatmul.msk.f32.gmra.mxu2 %vm126_vm0, %v2605_v41  ;;  %994 = vmatpush.msra.mxu1 %v122_v13 }
  0x2a   :  { %1964 = vmatmul.msk.f32.gmra.mxu0 %vm126_vm0, %v2610_v42  ;;  %1141 = vmatpush.msra.mxu2 %v114_v29 }
  0x2b   :  { %1975 = vmatmul.msk.f32.gmra.mxu1 %vm126_vm0, %v2615_v43  ;;  %1432 = vmatpush.msra.mxu0 %v125_v14 }
  0x2c   :  { %1142 = vmatpush.msra.mxu2 %v105_v40 }
  0x2d   :  { %1997 = vmatmul.msk.f32.gmra.mxu3 %vm126_vm0, %v47_v47  ;;  %1433 = vmatpush.msra.mxu0 %v116_v30 }
  0x2f   :  { %1434 = vmatpush.msra.mxu0 %v107_v51 }
  0x31   :  { %1987 = vmatmul.msk.f32.gmra.mxu2 %vm126_vm0, %v2639_v48 }
  0x32   :  { %1965 = vmatmul.msk.f32.gmra.mxu0 %vm126_vm0, %v2644_v49 }
  0x33   :  { %1976 = vmatmul.msk.f32.gmra.mxu1 %vm126_vm0, %v2649_v50 }
  0x35   :  { %1998 = vmatmul.msk.f32.gmra.mxu3 %vm126_vm0, %v48_v53 }
  0x39   :  { %1988 = vmatmul.msk.f32.gmra.mxu2 %vm126_vm0, %v2670_v54 }
  0x3a   :  { %1966 = vmatmul.msk.f32.gmra.mxu0 %vm126_vm0, %v2675_v55 }
  0x3b   :  { %1977 = vmatmul.msk.f32.gmra.mxu1 %vm126_vm0, %v2680_v56 }
  0x3d   :  { %1999 = vmatmul.msk.f32.gmra.mxu3 %vm126_vm0, %v49_v60 }
  0x41   :  { %1989 = vmatmul.msk.f32.gmra.mxu2 %vm126_vm0, %v2707_v62 }
  0x42   :  { %1967 = vmatmul.msk.f32.gmra.mxu0 %vm126_vm0, %v2712_v63 }
  0x43   :  { %1978 = vmatmul.msk.f32.gmra.mxu1 %vm126_vm0, %v2717_v0 }
  0x45   :  { %2000 = vmatmul.msk.f32.gmra.mxu3 %vm126_vm0, %v50_v3 }
  0x49   :  { %1990 = vmatmul.msk.f32.gmra.mxu2 %vm126_vm0, %v2738_v4 }
  0x4a   :  { %1968 = vmatmul.msk.f32.gmra.mxu0 %vm126_vm0, %v2743_v5 }
  0x4b   :  { %1979 = vmatmul.msk.f32.gmra.mxu1 %vm126_vm0, %v2748_v6 }
  0x4d   :  { %2001 = vmatmul.msk.f32.gmra.mxu3 %vm126_vm0, %v51_v12 }
  0x51   :  { %1991 = vmatmul.msk.f32.gmra.mxu2 %vm126_vm0, %v2775_v15 }
  0x52   :  { %1969 = vmatmul.msk.f32.gmra.mxu0 %vm126_vm0, %v2780_v16 }
  0x53   :  { %1980 = vmatmul.msk.f32.gmra.mxu1 %vm126_vm0, %v2785_v17 }
  0x55   :  { %2002 = vmatmul.msk.f32.gmra.mxu3 %vm126_vm0, %v52_v18  ;;  %v97_v18 = vld [vmem:[%s4723_s1 + $0x158] sm:$0xff] }
  0x59   :  { %1992 = vmatmul.msk.f32.gmra.mxu2 %vm126_vm0, %v2800_v19 }
  0x5a   :  { %1970 = vmatmul.msk.f32.gmra.mxu0 %vm126_vm0, %v2805_v20 }
  0x5b   :  { %1981 = vmatmul.msk.f32.gmra.mxu1 %vm126_vm0, %v2810_v21 }
  0x5d   :  { %2003 = vmatmul.msk.f32.gmra.mxu3 %vm126_vm0, %v53_v23  ;;  %v95_v23 = vld [vmem:[%s4723_s1 + $0x148] sm:$0xff] }
  0x61   :  { %1993 = vmatmul.msk.f32.gmra.mxu2 %vm126_vm0, %v2825_v25 }
  0x62   :  { %1971 = vmatmul.msk.f32.gmra.mxu0 %vm126_vm0, %v2830_v27 }
  0x63   :  { %1982 = vmatmul.msk.f32.gmra.mxu1 %vm126_vm0, %v2835_v28 }
  0x65   :  { %2090 = vmatmul.msk.f32.vlgmr.msrb.gmra.mxu3 %vm126_vm0, %v2475_v10 }
  0x69   :  { %2047 = vmatmul.msk.f32.vlgmr.msrb.gmra.mxu2 %vm126_vm0, %v2475_v10 }
  0x6a   :  { %2133 = vmatmul.msk.f32.vlgmr.msrb.gmra.mxu0 %vm126_vm0, %v2475_v10 }
  0x6b   :  { %2004 = vmatmul.msk.f32.vlgmr.msrb.gmra.mxu1 %vm126_vm0, %v2475_v10  ;;  %v115_v10 = vld [vmem:[%s4723_s1 + $0x1e8] sm:$0xff] }
  0x6c   :  { %1287 = vmatpush.msra.mxu3 %v115_v10 }
  0x6d   :  { %2091 = vmatmul.msk.f32.gmra.mxu3 %vm126_vm0, %v2530_v24 }
  0x71   :  { %2048 = vmatmul.msk.f32.gmra.mxu2 %vm126_vm0, %v2530_v24 }
  0x72   :  { %2134 = vmatmul.msk.f32.gmra.mxu0 %vm126_vm0, %v2530_v24 }
  0x73   :  { %2005 = vmatmul.msk.f32.gmra.mxu1 %vm126_vm0, %v2530_v24  ;;  %v113_v24 = vld [vmem:[%s4723_s1 + $0x1d8] sm:$0xff] }
  0x74   :  { %995 = vmatpush.msra.mxu1 %v113_v24 }
  0x75   :  { %2092 = vmatmul.msk.f32.gmra.mxu3 %vm126_vm0, %v2573_v34 }
  0x79   :  { %2049 = vmatmul.msk.f32.gmra.mxu2 %vm126_vm0, %v2573_v34 }
  0x7a   :  { %2135 = vmatmul.msk.f32.gmra.mxu0 %vm126_vm0, %v2573_v34 }
  0x7b   :  { %2006 = vmatmul.msk.f32.gmra.mxu1 %vm126_vm0, %v2573_v34 }
  0x7d   :  { %2093 = vmatmul.msk.f32.gmra.mxu3 %vm126_vm0, %v2610_v42 }
  0x81   :  { %2050 = vmatmul.msk.f32.gmra.mxu2 %vm126_vm0, %v2610_v42 }
  0x82   :  { %2136 = vmatmul.msk.f32.gmra.mxu0 %vm126_vm0, %v2610_v42 }
  0x83   :  { %2007 = vmatmul.msk.f32.gmra.mxu1 %vm126_vm0, %v2610_v42  ;;  %v106_v42 = vld [vmem:[%s4723_s1 + $0x1a0] sm:$0xff] }
  0x84   :  { %1288 = vmatpush.msra.mxu3 %v106_v42 }
  0x85   :  { %2094 = vmatmul.msk.f32.gmra.mxu3 %vm126_vm0, %v2644_v49 }
  0x86   :  { %1289 = vmatpush.msra.mxu3 %v97_v18  ;;  %v77_v18 = vld [vmem:[%s4723_s1 + $0xb8] sm:$0xff] }
  0x89   :  { %2051 = vmatmul.msk.f32.gmra.mxu2 %vm126_vm0, %v2644_v49 }
  0x8a   :  { %2137 = vmatmul.msk.f32.gmra.mxu0 %vm126_vm0, %v2644_v49 }
  0x8b   :  { %2008 = vmatmul.msk.f32.gmra.mxu1 %vm126_vm0, %v2644_v49  ;;  %v104_v49 = vld [vmem:[%s4723_s1 + $0x190] sm:$0xff] }
  0x8c   :  { %996 = vmatpush.msra.mxu1 %v104_v49 }
  0x8d   :  { %2095 = vmatmul.msk.f32.gmra.mxu3 %vm126_vm0, %v2675_v55 }
  0x8e   :  { %997 = vmatpush.msra.mxu1 %v95_v23 }
  0x8f   :  { %v273_v31 = vpop.f32.mrf.mxu0 }
  0x90   :  { %1570 = vst [vmem:[%s4725_s2] sm:$0xff] %v273_v31  ;;  %v306_v32 = vpop.f32.mrf.mxu1 }
  0x91   :  { %2052 = vmatmul.msk.f32.gmra.mxu2 %vm126_vm0, %v2675_v55  ;;  %1669 = vst [vmem:[%s4725_s2 + $0x318] sm:$0xff] %v306_v32 }
  0x92   :  { %2138 = vmatmul.msk.f32.gmra.mxu0 %vm126_vm0, %v2675_v55 }
  0x93   :  { %2009 = vmatmul.msk.f32.gmra.mxu1 %vm126_vm0, %v2675_v55 }
  0x94   :  { %v339_v34 = vpop.f32.mrf.mxu2 }
  0x95   :  { %1768 = vst [vmem:[%s4725_s2 + $0x630] sm:$0xff] %v339_v34  ;;  %2096 = vmatmul.msk.f32.gmra.mxu3 %vm126_vm0, %v2712_v63 }
  0x97   :  { %v276_v36 = vpop.f32.mrf.mxu0 }
  0x98   :  { %1579 = vst [vmem:[%s4725_s2 + $0x48] sm:$0xff] %v276_v36  ;;  %v309_v37 = vpop.f32.mrf.mxu1  ;;  %v372_v38 = vpop.f32.mrf.mxu3 }
  0x99   :  { %2053 = vmatmul.msk.f32.gmra.mxu2 %vm126_vm0, %v2712_v63  ;;  %1678 = vst [vmem:[%s4725_s2 + $0x360] sm:$0xff] %v309_v37 }
  0x9a   :  { %1867 = vst [vmem:[%s4725_s2 + $0x948] sm:$0xff] %v372_v38  ;;  %2139 = vmatmul.msk.f32.gmra.mxu0 %vm126_vm0, %v2712_v63 }
  0x9b   :  { %2010 = vmatmul.msk.f32.gmra.mxu1 %vm126_vm0, %v2712_v63 }
  0x9c   :  { %v342_v39 = vpop.f32.mrf.mxu2 }
  0x9d   :  { %1777 = vst [vmem:[%s4725_s2 + $0x678] sm:$0xff] %v342_v39  ;;  %2097 = vmatmul.msk.f32.gmra.mxu3 %vm126_vm0, %v2743_v5 }
  0x9f   :  { %v279_v44 = vpop.f32.mrf.mxu0 }
  0xa0   :  { %1588 = vst [vmem:[%s4725_s2 + $0x90] sm:$0xff] %v279_v44  ;;  %v312_v45 = vpop.f32.mrf.mxu1  ;;  %v375_v46 = vpop.f32.mrf.mxu3 }
  0xa1   :  { %2054 = vmatmul.msk.f32.gmra.mxu2 %vm126_vm0, %v2743_v5  ;;  %1687 = vst [vmem:[%s4725_s2 + $0x3a8] sm:$0xff] %v312_v45 }
  0xa2   :  { %1876 = vst [vmem:[%s4725_s2 + $0x990] sm:$0xff] %v375_v46  ;;  %2140 = vmatmul.msk.f32.gmra.mxu0 %vm126_vm0, %v2743_v5  ;;  %v87_v46 = vld [vmem:[%s4723_s1 + $0x108] sm:$0xff] }
  0xa3   :  { %2011 = vmatmul.msk.f32.gmra.mxu1 %vm126_vm0, %v2743_v5 }
  0xa4   :  { %v345_v47 = vpop.f32.mrf.mxu2 }
  0xa5   :  { %1786 = vst [vmem:[%s4725_s2 + $0x6c0] sm:$0xff] %v345_v47  ;;  %2098 = vmatmul.msk.f32.gmra.mxu3 %vm126_vm0, %v2780_v16  ;;  %v88_v47 = vld [vmem:[%s4723_s1 + $0x110] sm:$0xff] }
  0xa6   :  { %1290 = vmatpush.msra.mxu3 %v88_v47 }
  0xa7   :  { %v282_v52 = vpop.f32.mrf.mxu0 }
  0xa8   :  { %1597 = vst [vmem:[%s4725_s2 + $0xd8] sm:$0xff] %v282_v52  ;;  %v315_v53 = vpop.f32.mrf.mxu1  ;;  %v378_v55 = vpop.f32.mrf.mxu3  ;;  %v86_v52 = vld [vmem:[%s4723_s1 + $0x100] sm:$0xff] }
  0xa9   :  { %2055 = vmatmul.msk.f32.gmra.mxu2 %vm126_vm0, %v2780_v16  ;;  %1696 = vst [vmem:[%s4725_s2 + $0x3f0] sm:$0xff] %v315_v53  ;;  %v89_v53 = vld [vmem:[%s4723_s1 + $0x118] sm:$0xff]  ;;  %998 = vmatpush.msra.mxu1 %v86_v52 }
  0xaa   :  { %1885 = vst [vmem:[%s4725_s2 + $0x9d8] sm:$0xff] %v378_v55  ;;  %2141 = vmatmul.msk.f32.gmra.mxu0 %vm126_vm0, %v2780_v16 }
  0xab   :  { %2012 = vmatmul.msk.f32.gmra.mxu1 %vm126_vm0, %v2780_v16 }
  0xac   :  { %v348_v57 = vpop.f32.mrf.mxu2  ;;  %999 = vmatpush.msra.mxu1 %v77_v18 }
  0xad   :  { %1795 = vst [vmem:[%s4725_s2 + $0x708] sm:$0xff] %v348_v57  ;;  %2099 = vmatmul.msk.f32.gmra.mxu3 %vm126_vm0, %v2805_v20 }
  0xaf   :  { %v285_v58 = vpop.f32.mrf.mxu0 }
  0xb0   :  { %1606 = vst [vmem:[%s4725_s2 + $0x120] sm:$0xff] %v285_v58  ;;  %v318_v59 = vpop.f32.mrf.mxu1  ;;  %v381_v60 = vpop.f32.mrf.mxu3 }
  0xb1   :  { %2056 = vmatmul.msk.f32.gmra.mxu2 %vm126_vm0, %v2805_v20  ;;  %1705 = vst [vmem:[%s4725_s2 + $0x438] sm:$0xff] %v318_v59 }
  0xb2   :  { %1894 = vst [vmem:[%s4725_s2 + $0xa20] sm:$0xff] %v381_v60  ;;  %2142 = vmatmul.msk.f32.gmra.mxu0 %vm126_vm0, %v2805_v20 }
  0xb3   :  { %2013 = vmatmul.msk.f32.gmra.mxu1 %vm126_vm0, %v2805_v20 }
  0xb4   :  { %v351_v61 = vpop.f32.mrf.mxu2 }
  0xb5   :  { %1804 = vst [vmem:[%s4725_s2 + $0x750] sm:$0xff] %v351_v61  ;;  %2100 = vmatmul.msk.f32.gmra.mxu3 %vm126_vm0, %v2830_v27 }
  0xb7   :  { %v288_v63 = vpop.f32.mrf.mxu0 }
  0xb8   :  { %1615 = vst [vmem:[%s4725_s2 + $0x168] sm:$0xff] %v288_v63  ;;  %v321_v1 = vpop.f32.mrf.mxu1  ;;  %v384_v2 = vpop.f32.mrf.mxu3 }
  0xb9   :  { %2057 = vmatmul.msk.f32.gmra.mxu2 %vm126_vm0, %v2830_v27  ;;  %1714 = vst [vmem:[%s4725_s2 + $0x480] sm:$0xff] %v321_v1 }
  0xba   :  { %1903 = vst [vmem:[%s4725_s2 + $0xa68] sm:$0xff] %v384_v2  ;;  %2143 = vmatmul.msk.f32.gmra.mxu0 %vm126_vm0, %v2830_v27 }
  0xbb   :  { %2014 = vmatmul.msk.f32.gmra.mxu1 %vm126_vm0, %v2830_v27  ;;  %v98_v27 = vld [vmem:[%s4723_s1 + $0x160] sm:$0xff] }
  0xbc   :  { %v354_v3 = vpop.f32.mrf.mxu2  ;;  %1435 = vmatpush.msra.mxu0 %v98_v27 }
  0xbd   :  { %1813 = vst [vmem:[%s4725_s2 + $0x798] sm:$0xff] %v354_v3  ;;  %2101 = vmatmul.msk.f32.gmra.mxu3 %vm126_vm0, %v2480_v11 }
  0xbe   :  { %1436 = vmatpush.msra.mxu0 %v89_v53 }
  0xbf   :  { %v291_v5 = vpop.f32.mrf.mxu0 }
  0xc0   :  { %1624 = vst [vmem:[%s4725_s2 + $0x1b0] sm:$0xff] %v291_v5  ;;  %v324_v7 = vpop.f32.mrf.mxu1  ;;  %v387_v9 = vpop.f32.mrf.mxu3 }
  0xc1   :  { %2058 = vmatmul.msk.f32.gmra.mxu2 %vm126_vm0, %v2480_v11  ;;  %1723 = vst [vmem:[%s4725_s2 + $0x4c8] sm:$0xff] %v324_v7 }
  0xc2   :  { %1912 = vst [vmem:[%s4725_s2 + $0xab0] sm:$0xff] %v387_v9  ;;  %2144 = vmatmul.msk.f32.gmra.mxu0 %vm126_vm0, %v2480_v11 }
  0xc3   :  { %2015 = vmatmul.msk.f32.gmra.mxu1 %vm126_vm0, %v2480_v11  ;;  %v96_v11 = vld [vmem:[%s4723_s1 + $0x150] sm:$0xff] }
  0xc4   :  { %v357_v12 = vpop.f32.mrf.mxu2  ;;  %1143 = vmatpush.msra.mxu2 %v96_v11 }
  0xc5   :  { %1822 = vst [vmem:[%s4725_s2 + $0x7e0] sm:$0xff] %v357_v12  ;;  %2102 = vmatmul.msk.f32.gmra.mxu3 %vm126_vm0, %v2538_v26  ;;  %v78_v12 = vld [vmem:[%s4723_s1 + $0xc0] sm:$0xff] }
  0xc6   :  { %1144 = vmatpush.msra.mxu2 %v87_v46 }
  0xc7   :  { %v294_v13 = vpop.f32.mrf.mxu0 }
  0xc8   :  { %1633 = vst [vmem:[%s4725_s2 + $0x1f8] sm:$0xff] %v294_v13  ;;  %v327_v14 = vpop.f32.mrf.mxu1  ;;  %v390_v16 = vpop.f32.mrf.mxu3  ;;  %v79_v13 = vld [vmem:[%s4723_s1 + $0xc8] sm:$0xff]  ;;  %1145 = vmatpush.msra.mxu2 %v78_v12 }
  0xc9   :  { %2059 = vmatmul.msk.f32.gmra.mxu2 %vm126_vm0, %v2538_v26  ;;  %1732 = vst [vmem:[%s4725_s2 + $0x510] sm:$0xff] %v327_v14  ;;  %1291 = vmatpush.msra.mxu3 %v79_v13 }
  0xca   :  { %1921 = vst [vmem:[%s4725_s2 + $0xaf8] sm:$0xff] %v390_v16  ;;  %2145 = vmatmul.msk.f32.gmra.mxu0 %vm126_vm0, %v2538_v26 }
  0xcb   :  { %2016 = vmatmul.msk.f32.gmra.mxu1 %vm126_vm0, %v2538_v26 }
  0xcc   :  { %v360_v20 = vpop.f32.mrf.mxu2 }
  0xcd   :  { %1831 = vst [vmem:[%s4725_s2 + $0x828] sm:$0xff] %v360_v20  ;;  %2103 = vmatmul.msk.f32.gmra.mxu3 %vm126_vm0, %v2578_v35  ;;  %v80_v20 = vld [vmem:[%s4723_s1 + $0xd0] sm:$0xff] }
  0xce   :  { %1437 = vmatpush.msra.mxu0 %v80_v20 }
  0xcf   :  { %v297_v26 = vpop.f32.mrf.mxu0 }
  0xd0   :  { %1642 = vst [vmem:[%s4725_s2 + $0x240] sm:$0xff] %v297_v26  ;;  %v330_v29 = vpop.f32.mrf.mxu1  ;;  %v393_v10 = vpop.f32.mrf.mxu3 }
  0xd1   :  { %2060 = vmatmul.msk.f32.gmra.mxu2 %vm126_vm0, %v2578_v35  ;;  %1741 = vst [vmem:[%s4725_s2 + $0x558] sm:$0xff] %v330_v29 }
  0xd2   :  { %1930 = vst [vmem:[%s4725_s2 + $0xb40] sm:$0xff] %v393_v10  ;;  %2146 = vmatmul.msk.f32.gmra.mxu0 %vm126_vm0, %v2578_v35 }
  0xd3   :  { %2017 = vmatmul.msk.f32.gmra.mxu1 %vm126_vm0, %v2578_v35 }
  0xd4   :  { %v363_v24 = vpop.f32.mrf.mxu2 }
  0xd5   :  { %1840 = vst [vmem:[%s4725_s2 + $0x870] sm:$0xff] %v363_v24  ;;  %2104 = vmatmul.msk.f32.gmra.mxu3 %vm126_vm0, %v2615_v43 }
  0xd7   :  { %v300_v30 = vpop.f32.mrf.mxu0 }
  0xd8   :  { %1651 = vst [vmem:[%s4725_s2 + $0x288] sm:$0xff] %v300_v30  ;;  %v333_v31 = vpop.f32.mrf.mxu1  ;;  %v396_v32 = vpop.f32.mrf.mxu3 }
  0xd9   :  { %2061 = vmatmul.msk.f32.gmra.mxu2 %vm126_vm0, %v2615_v43  ;;  %1750 = vst [vmem:[%s4725_s2 + $0x5a0] sm:$0xff] %v333_v31 }
  0xda   :  { %1939 = vst [vmem:[%s4725_s2 + $0xb88] sm:$0xff] %v396_v32  ;;  %2147 = vmatmul.msk.f32.gmra.mxu0 %vm126_vm0, %v2615_v43 }
  0xdb   :  { %2018 = vmatmul.msk.f32.gmra.mxu1 %vm126_vm0, %v2615_v43 }
  0xdc   :  { %v366_v35 = vpop.f32.mrf.mxu2 }
  0xdd   :  { %1849 = vst [vmem:[%s4725_s2 + $0x8b8] sm:$0xff] %v366_v35  ;;  %2105 = vmatmul.msk.f32.gmra.mxu3 %vm126_vm0, %v2649_v50 }
  0xdf   :  { %v303_v34 = vpop.f32.mrf.mxu0 }
  0xe0   :  { %1660 = vst [vmem:[%s4725_s2 + $0x2d0] sm:$0xff] %v303_v34  ;;  %v336_v36 = vpop.f32.mrf.mxu1  ;;  %v399_v37 = vpop.f32.mrf.mxu3 }
  0xe1   :  { %2062 = vmatmul.msk.f32.gmra.mxu2 %vm126_vm0, %v2649_v50  ;;  %1759 = vst [vmem:[%s4725_s2 + $0x5e8] sm:$0xff] %v336_v36 }
  0xe2   :  { %1948 = vst [vmem:[%s4725_s2 + $0xbd0] sm:$0xff] %v399_v37  ;;  %2148 = vmatmul.msk.f32.gmra.mxu0 %vm126_vm0, %v2649_v50 }
  0xe3   :  { %2019 = vmatmul.msk.f32.gmra.mxu1 %vm126_vm0, %v2649_v50 }
  0xe4   :  { %v369_v43 = vpop.f32.mrf.mxu2 }
  0xe5   :  { %1858 = vst [vmem:[%s4725_s2 + $0x900] sm:$0xff] %v369_v43  ;;  %2106 = vmatmul.msk.f32.gmra.mxu3 %vm126_vm0, %v2680_v56 }
  0xe7   :  { %v857_v38 = vpop.f32.mrf.mxu0 }
  0xe8   :  { %v419_v39 = vpop.f32.mrf.mxu1  ;;  %v711_v40 = vpop.f32.mrf.mxu3  ;;  %1574 = vst [vmem:[%s4725_s2 + $0x20] sm:$0xff] %v857_v38 }
  0xe9   :  { %2063 = vmatmul.msk.f32.gmra.mxu2 %vm126_vm0, %v2680_v56  ;;  %1571 = vst [vmem:[%s4725_s2 + $0x8] sm:$0xff] %v419_v39  ;;  %v70_v39 = vld [vmem:[%s4723_s1 + $0x80] sm:$0xff] }
  0xea   :  { %1573 = vst [vmem:[%s4725_s2 + $0x18] sm:$0xff] %v711_v40  ;;  %2149 = vmatmul.msk.f32.gmra.mxu0 %vm126_vm0, %v2680_v56  ;;  %1292 = vmatpush.msra.mxu3 %v70_v39  ;;  %v2380_v39 = vld [vmem:[%s4724_s0 + $0x148] sm:$0xff] }
  0xeb   :  { %2020 = vmatmul.msk.f32.gmra.mxu1 %vm126_vm0, %v2680_v56 }
  0xec   :  { %v565_v50 = vpop.f32.mrf.mxu2 }
  0xed   :  { %1572 = vst [vmem:[%s4725_s2 + $0x10] sm:$0xff] %v565_v50  ;;  %2107 = vmatmul.msk.f32.gmra.mxu3 %vm126_vm0, %v2717_v0 }
  0xef   :  { %v860_v42 = vpop.f32.mrf.mxu0 }
  0xf0   :  { %v422_v44 = vpop.f32.mrf.mxu1  ;;  %v714_v45 = vpop.f32.mrf.mxu3  ;;  %1583 = vst [vmem:[%s4725_s2 + $0x68] sm:$0xff] %v860_v42 }
  0xf1   :  { %2064 = vmatmul.msk.f32.gmra.mxu2 %vm126_vm0, %v2717_v0  ;;  %1580 = vst [vmem:[%s4725_s2 + $0x50] sm:$0xff] %v422_v44 }
  0xf2   :  { %1582 = vst [vmem:[%s4725_s2 + $0x60] sm:$0xff] %v714_v45  ;;  %2150 = vmatmul.msk.f32.gmra.mxu0 %vm126_vm0, %v2717_v0  ;;  %v71_v45 = vld [vmem:[%s4723_s1 + $0x88] sm:$0xff] }
  0xf3   :  { %2021 = vmatmul.msk.f32.gmra.mxu1 %vm126_vm0, %v2717_v0  ;;  %1438 = vmatpush.msra.mxu0 %v71_v45 }
  0xf4   :  { %v568_v56 = vpop.f32.mrf.mxu2 }
  0xf5   :  { %1581 = vst [vmem:[%s4725_s2 + $0x58] sm:$0xff] %v568_v56  ;;  %2108 = vmatmul.msk.f32.gmra.mxu3 %vm126_vm0, %v2748_v6 }
  0xf7   :  { %v863_v49 = vpop.f32.mrf.mxu0 }
  0xf8   :  { %v425_v0 = vpop.f32.mrf.mxu1  ;;  %v717_v51 = vpop.f32.mrf.mxu3  ;;  %1592 = vst [vmem:[%s4725_s2 + $0xb0] sm:$0xff] %v863_v49 }
  0xf9   :  { %2065 = vmatmul.msk.f32.gmra.mxu2 %vm126_vm0, %v2748_v6  ;;  %1589 = vst [vmem:[%s4725_s2 + $0x98] sm:$0xff] %v425_v0 }
  0xfa   :  { %1591 = vst [vmem:[%s4725_s2 + $0xa8] sm:$0xff] %v717_v51  ;;  %2151 = vmatmul.msk.f32.gmra.mxu0 %vm126_vm0, %v2748_v6 }
  0xfb   :  { %2022 = vmatmul.msk.f32.gmra.mxu1 %vm126_vm0, %v2748_v6 }
  0xfc   :  { %v571_v55 = vpop.f32.mrf.mxu2 }
  0xfd   :  { %1590 = vst [vmem:[%s4725_s2 + $0xa0] sm:$0xff] %v571_v55  ;;  %2109 = vmatmul.msk.f32.gmra.mxu3 %vm126_vm0, %v2785_v17 }
  0xff   :  { %v866_v57 = vpop.f32.mrf.mxu0 }
 0x100   :  { %v428_v58 = vpop.f32.mrf.mxu1  ;;  %v720_v59 = vpop.f32.mrf.mxu3  ;;  %1601 = vst [vmem:[%s4725_s2 + $0xf8] sm:$0xff] %v866_v57 }
 0x101   :  { %2066 = vmatmul.msk.f32.gmra.mxu2 %vm126_vm0, %v2785_v17  ;;  %1598 = vst [vmem:[%s4725_s2 + $0xe0] sm:$0xff] %v428_v58  ;;  %v2372_v58 = vld [vmem:[%s4724_s0 + $0x108] sm:$0xff] }
 0x102   :  { %1600 = vst [vmem:[%s4725_s2 + $0xf0] sm:$0xff] %v720_v59  ;;  %2152 = vmatmul.msk.f32.gmra.mxu0 %vm126_vm0, %v2785_v17 }
 0x103   :  { %2023 = vmatmul.msk.f32.gmra.mxu1 %vm126_vm0, %v2785_v17 }
 0x104   :  { %v574_v6 = vpop.f32.mrf.mxu2 }
 0x105   :  { %1599 = vst [vmem:[%s4725_s2 + $0xe8] sm:$0xff] %v574_v6  ;;  %2110 = vmatmul.msk.f32.gmra.mxu3 %vm126_vm0, %v2810_v21 }
 0x107   :  { %v869_v60 = vpop.f32.mrf.mxu0 }
 0x108   :  { %v431_v61 = vpop.f32.mrf.mxu1  ;;  %v723_v63 = vpop.f32.mrf.mxu3  ;;  %1610 = vst [vmem:[%s4725_s2 + $0x140] sm:$0xff] %v869_v60 }
 0x109   :  { %2067 = vmatmul.msk.f32.gmra.mxu2 %vm126_vm0, %v2810_v21  ;;  %1607 = vst [vmem:[%s4725_s2 + $0x128] sm:$0xff] %v431_v61  ;;  %v2373_v61 = vld [vmem:[%s4724_s0 + $0x110] sm:$0xff] }
 0x10a   :  { %1609 = vst [vmem:[%s4725_s2 + $0x138] sm:$0xff] %v723_v63  ;;  %2153 = vmatmul.msk.f32.gmra.mxu0 %vm126_vm0, %v2810_v21  ;;  %v60_v63 = vld [vmem:[%s4723_s1 + $0x30] sm:$0xff] }
 0x10b   :  { %2024 = vmatmul.msk.f32.gmra.mxu1 %vm126_vm0, %v2810_v21 }
 0x10c   :  { %v577_v17 = vpop.f32.mrf.mxu2 }
 0x10d   :  { %1608 = vst [vmem:[%s4725_s2 + $0x130] sm:$0xff] %v577_v17  ;;  %2111 = vmatmul.msk.f32.gmra.mxu3 %vm126_vm0, %v2835_v28  ;;  %v61_v17 = vld [vmem:[%s4723_s1 + $0x38] sm:$0xff] }
 0x10e   :  { %1293 = vmatpush.msra.mxu3 %v61_v17 }
 0x10f   :  { %v872_v1 = vpop.f32.mrf.mxu0 }
 0x110   :  { %v434_v2 = vpop.f32.mrf.mxu1  ;;  %v726_v3 = vpop.f32.mrf.mxu3  ;;  %1619 = vst [vmem:[%s4725_s2 + $0x188] sm:$0xff] %v872_v1 }
 0x111   :  { %2068 = vmatmul.msk.f32.gmra.mxu2 %vm126_vm0, %v2835_v28  ;;  %1616 = vst [vmem:[%s4725_s2 + $0x170] sm:$0xff] %v434_v2 }
 0x112   :  { %1618 = vst [vmem:[%s4725_s2 + $0x180] sm:$0xff] %v726_v3  ;;  %2154 = vmatmul.msk.f32.gmra.mxu0 %vm126_vm0, %v2835_v28 }
 0x113   :  { %2025 = vmatmul.msk.f32.gmra.mxu1 %vm126_vm0, %v2835_v28 }
 0x114   :  { %v580_v21 = vpop.f32.mrf.mxu2 }
 0x115   :  { %1617 = vst [vmem:[%s4725_s2 + $0x178] sm:$0xff] %v580_v21  ;;  %2112 = vmatmul.msk.f32.gmra.mxu3 %vm126_vm0, %v2467_v8 }
 0x117   :  { %v875_v5 = vpop.f32.mrf.mxu0 }
 0x118   :  { %v437_v7 = vpop.f32.mrf.mxu1  ;;  %v729_v9 = vpop.f32.mrf.mxu3  ;;  %1628 = vst [vmem:[%s4725_s2 + $0x1d0] sm:$0xff] %v875_v5  ;;  %v2374_v5 = vld [vmem:[%s4724_s0 + $0x118] sm:$0xff] }
 0x119   :  { %2069 = vmatmul.msk.f32.gmra.mxu2 %vm126_vm0, %v2467_v8  ;;  %1625 = vst [vmem:[%s4725_s2 + $0x1b8] sm:$0xff] %v437_v7  ;;  %v59_v7 = vld [vmem:[%s4723_s1 + $0x28] sm:$0xff] }
 0x11a   :  { %1627 = vst [vmem:[%s4725_s2 + $0x1c8] sm:$0xff] %v729_v9  ;;  %2155 = vmatmul.msk.f32.gmra.mxu0 %vm126_vm0, %v2467_v8  ;;  %v62_v9 = vld [vmem:[%s4723_s1 + $0x40] sm:$0xff] }
 0x11b   :  { %2026 = vmatmul.msk.f32.gmra.mxu1 %vm126_vm0, %v2467_v8  ;;  %1439 = vmatpush.msra.mxu0 %v62_v9 }
 0x11c   :  { %v583_v28 = vpop.f32.mrf.mxu2 }
 0x11d   :  { %1626 = vst [vmem:[%s4725_s2 + $0x1c0] sm:$0xff] %v583_v28  ;;  %2113 = vmatmul.msk.f32.gmra.mxu3 %vm126_vm0, %v2522_v22 }
 0x11f   :  { %v878_v14 = vpop.f32.mrf.mxu0 }
 0x120   :  { %v440_v8 = vpop.f32.mrf.mxu1  ;;  %v732_v16 = vpop.f32.mrf.mxu3  ;;  %1637 = vst [vmem:[%s4725_s2 + $0x218] sm:$0xff] %v878_v14 }
 0x121   :  { %2070 = vmatmul.msk.f32.gmra.mxu2 %vm126_vm0, %v2522_v22  ;;  %1634 = vst [vmem:[%s4725_s2 + $0x200] sm:$0xff] %v440_v8  ;;  %v2375_v8 = vld [vmem:[%s4724_s0 + $0x120] sm:$0xff] }
 0x122   :  { %1636 = vst [vmem:[%s4725_s2 + $0x210] sm:$0xff] %v732_v16  ;;  %2156 = vmatmul.msk.f32.gmra.mxu0 %vm126_vm0, %v2522_v22 }
 0x123   :  { %2027 = vmatmul.msk.f32.gmra.mxu1 %vm126_vm0, %v2522_v22 }
 0x124   :  { %v586_v11 = vpop.f32.mrf.mxu2 }
 0x125   :  { %1635 = vst [vmem:[%s4725_s2 + $0x208] sm:$0xff] %v586_v11  ;;  %2114 = vmatmul.msk.f32.gmra.mxu3 %vm126_vm0, %v2568_v33 }
 0x127   :  { %v881_v23 = vpop.f32.mrf.mxu0 }
 0x128   :  { %v443_v22 = vpop.f32.mrf.mxu1  ;;  %v735_v27 = vpop.f32.mrf.mxu3  ;;  %1646 = vst [vmem:[%s4725_s2 + $0x260] sm:$0xff] %v881_v23  ;;  %v2376_v23 = vld [vmem:[%s4724_s0 + $0x128] sm:$0xff] }
 0x129   :  { %2071 = vmatmul.msk.f32.gmra.mxu2 %vm126_vm0, %v2568_v33  ;;  %1643 = vst [vmem:[%s4725_s2 + $0x248] sm:$0xff] %v443_v22 }
 0x12a   :  { %1645 = vst [vmem:[%s4725_s2 + $0x258] sm:$0xff] %v735_v27  ;;  %2157 = vmatmul.msk.f32.gmra.mxu0 %vm126_vm0, %v2568_v33 }
 0x12b   :  { %2028 = vmatmul.msk.f32.gmra.mxu1 %vm126_vm0, %v2568_v33 }
 0x12c   :  { %v589_v26 = vpop.f32.mrf.mxu2 }
 0x12d   :  { %1644 = vst [vmem:[%s4725_s2 + $0x250] sm:$0xff] %v589_v26  ;;  %2115 = vmatmul.msk.f32.gmra.mxu3 %vm126_vm0, %v2605_v41 }
 0x12f   :  { %v884_v29 = vpop.f32.mrf.mxu0 }
 0x130   :  { %v446_v10 = vpop.f32.mrf.mxu1  ;;  %v738_v24 = vpop.f32.mrf.mxu3  ;;  %1655 = vst [vmem:[%s4725_s2 + $0x2a8] sm:$0xff] %v884_v29 }
 0x131   :  { %2072 = vmatmul.msk.f32.gmra.mxu2 %vm126_vm0, %v2605_v41  ;;  %1652 = vst [vmem:[%s4725_s2 + $0x290] sm:$0xff] %v446_v10  ;;  %v2377_v10 = vld [vmem:[%s4724_s0 + $0x130] sm:$0xff] }
 0x132   :  { %1654 = vst [vmem:[%s4725_s2 + $0x2a0] sm:$0xff] %v738_v24  ;;  %2158 = vmatmul.msk.f32.gmra.mxu0 %vm126_vm0, %v2605_v41 }
 0x133   :  { %2029 = vmatmul.msk.f32.gmra.mxu1 %vm126_vm0, %v2605_v41 }
 0x134   :  { %v592_v33 = vpop.f32.mrf.mxu2 }
 0x135   :  { %1653 = vst [vmem:[%s4725_s2 + $0x298] sm:$0xff] %v592_v33  ;;  %2116 = vmatmul.msk.f32.gmra.mxu3 %vm126_vm0, %v2639_v48 }
 0x137   :  { %v887_v30 = vpop.f32.mrf.mxu0 }
 0x138   :  { %v449_v31 = vpop.f32.mrf.mxu1  ;;  %v741_v32 = vpop.f32.mrf.mxu3  ;;  %1664 = vst [vmem:[%s4725_s2 + $0x2f0] sm:$0xff] %v887_v30 }
 0x139   :  { %2073 = vmatmul.msk.f32.gmra.mxu2 %vm126_vm0, %v2639_v48  ;;  %1661 = vst [vmem:[%s4725_s2 + $0x2d8] sm:$0xff] %v449_v31 }
 0x13a   :  { %1663 = vst [vmem:[%s4725_s2 + $0x2e8] sm:$0xff] %v741_v32  ;;  %2159 = vmatmul.msk.f32.gmra.mxu0 %vm126_vm0, %v2639_v48  ;;  %v2378_v32 = vld [vmem:[%s4724_s0 + $0x138] sm:$0xff] }
 0x13b   :  { %2030 = vmatmul.msk.f32.gmra.mxu1 %vm126_vm0, %v2639_v48 }
 0x13c   :  { %v595_v41 = vpop.f32.mrf.mxu2 }
 0x13d   :  { %1662 = vst [vmem:[%s4725_s2 + $0x2e0] sm:$0xff] %v595_v41  ;;  %2117 = vmatmul.msk.f32.gmra.mxu3 %vm126_vm0, %v2670_v54 }
 0x13f   :  { %v890_v35 = vpop.f32.mrf.mxu0 }
 0x140   :  { %v452_v34 = vpop.f32.mrf.mxu1  ;;  %v744_v36 = vpop.f32.mrf.mxu3  ;;  %1673 = vst [vmem:[%s4725_s2 + $0x338] sm:$0xff] %v890_v35 }
 0x141   :  { %2074 = vmatmul.msk.f32.gmra.mxu2 %vm126_vm0, %v2670_v54  ;;  %1670 = vst [vmem:[%s4725_s2 + $0x320] sm:$0xff] %v452_v34 }
 0x142   :  { %1672 = vst [vmem:[%s4725_s2 + $0x330] sm:$0xff] %v744_v36  ;;  %2160 = vmatmul.msk.f32.gmra.mxu0 %vm126_vm0, %v2670_v54 }
 0x143   :  { %2031 = vmatmul.msk.f32.gmra.mxu1 %vm126_vm0, %v2670_v54  ;;  %v69_v54 = vld [vmem:[%s4723_s1 + $0x78] sm:$0xff] }
 0x144   :  { %v598_v48 = vpop.f32.mrf.mxu2  ;;  %1146 = vmatpush.msra.mxu2 %v69_v54 }
 0x145   :  { %1671 = vst [vmem:[%s4725_s2 + $0x328] sm:$0xff] %v598_v48  ;;  %2118 = vmatmul.msk.f32.gmra.mxu3 %vm126_vm0, %v2707_v62  ;;  %v2379_v48 = vld [vmem:[%s4724_s0 + $0x140] sm:$0xff] }
 0x146   :  { %1147 = vmatpush.msra.mxu2 %v60_v63 }
 0x147   :  { %v893_v37 = vpop.f32.mrf.mxu0 }
 0x148   :  { %v455_v43 = vpop.f32.mrf.mxu1  ;;  %v747_v38 = vpop.f32.mrf.mxu3  ;;  %1682 = vst [vmem:[%s4725_s2 + $0x380] sm:$0xff] %v893_v37 }
 0x149   :  { %2075 = vmatmul.msk.f32.gmra.mxu2 %vm126_vm0, %v2707_v62  ;;  %1679 = vst [vmem:[%s4725_s2 + $0x368] sm:$0xff] %v455_v43 }
 0x14a   :  { %1681 = vst [vmem:[%s4725_s2 + $0x378] sm:$0xff] %v747_v38  ;;  %2161 = vmatmul.msk.f32.gmra.mxu0 %vm126_vm0, %v2707_v62 }
 0x14b   :  { %2032 = vmatmul.msk.f32.gmra.mxu1 %vm126_vm0, %v2707_v62  ;;  %v68_v62 = vld [vmem:[%s4723_s1 + $0x70] sm:$0xff] }
 0x14c   :  { %v601_v40 = vpop.f32.mrf.mxu2  ;;  %1000 = vmatpush.msra.mxu1 %v68_v62  ;;  %v2381_v62 = vld [vmem:[%s4724_s0 + $0x150] sm:$0xff] }
 0x14d   :  { %1680 = vst [vmem:[%s4725_s2 + $0x370] sm:$0xff] %v601_v40  ;;  %2119 = vmatmul.msk.f32.gmra.mxu3 %vm126_vm0, %v2738_v4 }
 0x14e   :  { %1001 = vmatpush.msra.mxu1 %v59_v7 }
 0x14f   :  { %v896_v50 = vpop.f32.mrf.mxu0 }
 0x150   :  { %v458_v42 = vpop.f32.mrf.mxu1  ;;  %v750_v44 = vpop.f32.mrf.mxu3  ;;  %1691 = vst [vmem:[%s4725_s2 + $0x3c8] sm:$0xff] %v896_v50 }
 0x151   :  { %2076 = vmatmul.msk.f32.gmra.mxu2 %vm126_vm0, %v2738_v4  ;;  %1688 = vst [vmem:[%s4725_s2 + $0x3b0] sm:$0xff] %v458_v42 }
 0x152   :  { %1690 = vst [vmem:[%s4725_s2 + $0x3c0] sm:$0xff] %v750_v44  ;;  %2162 = vmatmul.msk.f32.gmra.mxu0 %vm126_vm0, %v2738_v4 }
 0x153   :  { %2033 = vmatmul.msk.f32.gmra.mxu1 %vm126_vm0, %v2738_v4 }
 0x154   :  { %v604_v56 = vpop.f32.mrf.mxu2 }
 0x155   :  { %1689 = vst [vmem:[%s4725_s2 + $0x3b8] sm:$0xff] %v604_v56  ;;  %2120 = vmatmul.msk.f32.gmra.mxu3 %vm126_vm0, %v2775_v15 }
 0x157   :  { %v899_v46 = vpop.f32.mrf.mxu0 }
 0x158   :  { %v461_v47 = vpop.f32.mrf.mxu1  ;;  %v753_v49 = vpop.f32.mrf.mxu3  ;;  %1700 = vst [vmem:[%s4725_s2 + $0x410] sm:$0xff] %v899_v46 }
 0x159   :  { %2077 = vmatmul.msk.f32.gmra.mxu2 %vm126_vm0, %v2775_v15  ;;  %1697 = vst [vmem:[%s4725_s2 + $0x3f8] sm:$0xff] %v461_v47 }
 0x15a   :  { %1699 = vst [vmem:[%s4725_s2 + $0x408] sm:$0xff] %v753_v49  ;;  %2163 = vmatmul.msk.f32.gmra.mxu0 %vm126_vm0, %v2775_v15  ;;  %v2382_v49 = vld [vmem:[%s4724_s0] sm:$0xff] }
 0x15b   :  { %2034 = vmatmul.msk.f32.gmra.mxu1 %vm126_vm0, %v2775_v15 }
 0x15c   :  { %v607_v4 = vpop.f32.mrf.mxu2 }
 0x15d   :  { %1698 = vst [vmem:[%s4725_s2 + $0x400] sm:$0xff] %v607_v4  ;;  %2121 = vmatmul.msk.f32.gmra.mxu3 %vm126_vm0, %v2800_v19 }
 0x15f   :  { %v902_v0 = vpop.f32.mrf.mxu0 }
 0x160   :  { %v464_v51 = vpop.f32.mrf.mxu1  ;;  %v756_v52 = vpop.f32.mrf.mxu3  ;;  %1709 = vst [vmem:[%s4725_s2 + $0x458] sm:$0xff] %v902_v0 }
 0x161   :  { %2078 = vmatmul.msk.f32.gmra.mxu2 %vm126_vm0, %v2800_v19  ;;  %1706 = vst [vmem:[%s4725_s2 + $0x440] sm:$0xff] %v464_v51 }
 0x162   :  { %1708 = vst [vmem:[%s4725_s2 + $0x450] sm:$0xff] %v756_v52  ;;  %2164 = vmatmul.msk.f32.gmra.mxu0 %vm126_vm0, %v2800_v19 }
 0x163   :  { %2035 = vmatmul.msk.f32.gmra.mxu1 %vm126_vm0, %v2800_v19 }
 0x164   :  { %v610_v15 = vpop.f32.mrf.mxu2 }
 0x165   :  { %1707 = vst [vmem:[%s4725_s2 + $0x448] sm:$0xff] %v610_v15  ;;  %2122 = vmatmul.msk.f32.gmra.mxu3 %vm126_vm0, %v2825_v25  ;;  %v2383_v15 = vld [vmem:[%s4724_s0 + $0x8] sm:$0xff] }
 0x167   :  { %v905_v53 = vpop.f32.mrf.mxu0 }
 0x168   :  { %v467_v55 = vpop.f32.mrf.mxu1  ;;  %v759_v57 = vpop.f32.mrf.mxu3  ;;  %1718 = vst [vmem:[%s4725_s2 + $0x4a0] sm:$0xff] %v905_v53 }
 0x169   :  { %2079 = vmatmul.msk.f32.gmra.mxu2 %vm126_vm0, %v2825_v25  ;;  %1715 = vst [vmem:[%s4725_s2 + $0x488] sm:$0xff] %v467_v55 }
 0x16a   :  { %1717 = vst [vmem:[%s4725_s2 + $0x498] sm:$0xff] %v759_v57  ;;  %2165 = vmatmul.msk.f32.gmra.mxu0 %vm126_vm0, %v2825_v25 }
 0x16b   :  { %2036 = vmatmul.msk.f32.gmra.mxu1 %vm126_vm0, %v2825_v25 }
 0x16c   :  { %v613_v19 = vpop.f32.mrf.mxu2 }
 0x16d   :  { %1716 = vst [vmem:[%s4725_s2 + $0x490] sm:$0xff] %v613_v19  ;;  %2123 = vmatmul.msk.f32.gmra.mxu3 %vm126_vm0, %v2372_v58 }
 0x16f   :  { %v908_v59 = vpop.f32.mrf.mxu0 }
 0x170   :  { %v470_v6 = vpop.f32.mrf.mxu1  ;;  %v762_v60 = vpop.f32.mrf.mxu3  ;;  %1727 = vst [vmem:[%s4725_s2 + $0x4e8] sm:$0xff] %v908_v59 }
 0x171   :  { %2080 = vmatmul.msk.f32.gmra.mxu2 %vm126_vm0, %v2372_v58  ;;  %1724 = vst [vmem:[%s4725_s2 + $0x4d0] sm:$0xff] %v470_v6 }
 0x172   :  { %1726 = vst [vmem:[%s4725_s2 + $0x4e0] sm:$0xff] %v762_v60  ;;  %2166 = vmatmul.msk.f32.gmra.mxu0 %vm126_vm0, %v2372_v58 }
 0x173   :  { %2037 = vmatmul.msk.f32.gmra.mxu1 %vm126_vm0, %v2372_v58  ;;  %v2384_v58 = vld [vmem:[%s4724_s0 + $0x10] sm:$0xff] }
 0x174   :  { %v616_v25 = vpop.f32.mrf.mxu2 }
 0x175   :  { %1725 = vst [vmem:[%s4725_s2 + $0x4d8] sm:$0xff] %v616_v25  ;;  %2124 = vmatmul.msk.f32.gmra.mxu3 %vm126_vm0, %v2373_v61 }
 0x177   :  { %v911_v1 = vpop.f32.mrf.mxu0 }
 0x178   :  { %v473_v2 = vpop.f32.mrf.mxu1  ;;  %v765_v3 = vpop.f32.mrf.mxu3  ;;  %1736 = vst [vmem:[%s4725_s2 + $0x530] sm:$0xff] %v911_v1 }
 0x179   :  { %2081 = vmatmul.msk.f32.gmra.mxu2 %vm126_vm0, %v2373_v61  ;;  %1733 = vst [vmem:[%s4725_s2 + $0x518] sm:$0xff] %v473_v2 }
 0x17a   :  { %1735 = vst [vmem:[%s4725_s2 + $0x528] sm:$0xff] %v765_v3  ;;  %2167 = vmatmul.msk.f32.gmra.mxu0 %vm126_vm0, %v2373_v61  ;;  %v2386_v3 = vld [vmem:[%s4724_s0 + $0x20] sm:$0xff] }
 0x17b   :  { %2038 = vmatmul.msk.f32.gmra.mxu1 %vm126_vm0, %v2373_v61  ;;  %v2385_v61 = vld [vmem:[%s4724_s0 + $0x18] sm:$0xff] }
 0x17c   :  { %v619_v21 = vpop.f32.mrf.mxu2 }
 0x17d   :  { %1734 = vst [vmem:[%s4725_s2 + $0x520] sm:$0xff] %v619_v21  ;;  %2125 = vmatmul.msk.f32.gmra.mxu3 %vm126_vm0, %v2374_v5 }
 0x17f   :  { %v914_v28 = vpop.f32.mrf.mxu0 }
 0x180   :  { %v476_v12 = vpop.f32.mrf.mxu1  ;;  %v768_v13 = vpop.f32.mrf.mxu3  ;;  %1745 = vst [vmem:[%s4725_s2 + $0x578] sm:$0xff] %v914_v28  ;;  %v2387_v28 = vld [vmem:[%s4724_s0 + $0x28] sm:$0xff] }
 0x181   :  { %2082 = vmatmul.msk.f32.gmra.mxu2 %vm126_vm0, %v2374_v5  ;;  %1742 = vst [vmem:[%s4725_s2 + $0x560] sm:$0xff] %v476_v12 }
 0x182   :  { %1744 = vst [vmem:[%s4725_s2 + $0x570] sm:$0xff] %v768_v13  ;;  %2168 = vmatmul.msk.f32.gmra.mxu0 %vm126_vm0, %v2374_v5 }
 0x183   :  { %2039 = vmatmul.msk.f32.gmra.mxu1 %vm126_vm0, %v2374_v5 }
 0x184   :  { %v622_v14 = vpop.f32.mrf.mxu2 }
 0x185   :  { %1743 = vst [vmem:[%s4725_s2 + $0x568] sm:$0xff] %v622_v14  ;;  %2126 = vmatmul.msk.f32.gmra.mxu3 %vm126_vm0, %v2375_v8 }
 0x187   :  { %v917_v16 = vpop.f32.mrf.mxu0 }
 0x188   :  { %v479_v11 = vpop.f32.mrf.mxu1  ;;  %v771_v18 = vpop.f32.mrf.mxu3  ;;  %1754 = vst [vmem:[%s4725_s2 + $0x5c0] sm:$0xff] %v917_v16  ;;  %v2388_v16 = vld [vmem:[%s4724_s0 + $0x30] sm:$0xff] }
 0x189   :  { %2083 = vmatmul.msk.f32.gmra.mxu2 %vm126_vm0, %v2375_v8  ;;  %1751 = vst [vmem:[%s4725_s2 + $0x5a8] sm:$0xff] %v479_v11 }
 0x18a   :  { %1753 = vst [vmem:[%s4725_s2 + $0x5b8] sm:$0xff] %v771_v18  ;;  %2169 = vmatmul.msk.f32.gmra.mxu0 %vm126_vm0, %v2375_v8 }
 0x18b   :  { %2040 = vmatmul.msk.f32.gmra.mxu1 %vm126_vm0, %v2375_v8 }
 0x18c   :  { %v625_v20 = vpop.f32.mrf.mxu2 }
 0x18d   :  { %1752 = vst [vmem:[%s4725_s2 + $0x5b0] sm:$0xff] %v625_v20  ;;  %2127 = vmatmul.msk.f32.gmra.mxu3 %vm126_vm0, %v2376_v23 }
 0x18f   :  { %v920_v22 = vpop.f32.mrf.mxu0 }
 0x190   :  { %v482_v27 = vpop.f32.mrf.mxu1  ;;  %v774_v26 = vpop.f32.mrf.mxu3  ;;  %1763 = vst [vmem:[%s4725_s2 + $0x608] sm:$0xff] %v920_v22  ;;  %v2389_v22 = vld [vmem:[%s4724_s0 + $0x38] sm:$0xff] }
 0x191   :  { %2084 = vmatmul.msk.f32.gmra.mxu2 %vm126_vm0, %v2376_v23  ;;  %1760 = vst [vmem:[%s4725_s2 + $0x5f0] sm:$0xff] %v482_v27 }
 0x192   :  { %1762 = vst [vmem:[%s4725_s2 + $0x600] sm:$0xff] %v774_v26  ;;  %2170 = vmatmul.msk.f32.gmra.mxu0 %vm126_vm0, %v2376_v23 }
 0x193   :  { %2041 = vmatmul.msk.f32.gmra.mxu1 %vm126_vm0, %v2376_v23 }
 0x194   :  { %v628_v29 = vpop.f32.mrf.mxu2 }
 0x195   :  { %1761 = vst [vmem:[%s4725_s2 + $0x5f8] sm:$0xff] %v628_v29  ;;  %2128 = vmatmul.msk.f32.gmra.mxu3 %vm126_vm0, %v2377_v10 }
 0x197   :  { %v923_v24 = vpop.f32.mrf.mxu0 }
 0x198   :  { %v485_v33 = vpop.f32.mrf.mxu1  ;;  %v777_v30 = vpop.f32.mrf.mxu3  ;;  %1772 = vst [vmem:[%s4725_s2 + $0x650] sm:$0xff] %v923_v24  ;;  %v2390_v24 = vld [vmem:[%s4724_s0 + $0x40] sm:$0xff] }
 0x199   :  { %2085 = vmatmul.msk.f32.gmra.mxu2 %vm126_vm0, %v2377_v10  ;;  %1769 = vst [vmem:[%s4725_s2 + $0x638] sm:$0xff] %v485_v33 }
 0x19a   :  { %1771 = vst [vmem:[%s4725_s2 + $0x648] sm:$0xff] %v777_v30  ;;  %2171 = vmatmul.msk.f32.gmra.mxu0 %vm126_vm0, %v2377_v10 }
 0x19b   :  { %2042 = vmatmul.msk.f32.gmra.mxu1 %vm126_vm0, %v2377_v10 }
 0x19c   :  { %v631_v31 = vpop.f32.mrf.mxu2 }
 0x19d   :  { %1770 = vst [vmem:[%s4725_s2 + $0x640] sm:$0xff] %v631_v31  ;;  %2129 = vmatmul.msk.f32.gmra.mxu3 %vm126_vm0, %v2378_v32 }
 0x19f   :  { %v926_v41 = vpop.f32.mrf.mxu0 }
 0x1a0   :  { %v488_v35 = vpop.f32.mrf.mxu1  ;;  %v780_v34 = vpop.f32.mrf.mxu3  ;;  %1781 = vst [vmem:[%s4725_s2 + $0x698] sm:$0xff] %v926_v41  ;;  %v2391_v41 = vld [vmem:[%s4724_s0 + $0x48] sm:$0xff] }
 0x1a1   :  { %2086 = vmatmul.msk.f32.gmra.mxu2 %vm126_vm0, %v2378_v32  ;;  %1778 = vst [vmem:[%s4725_s2 + $0x680] sm:$0xff] %v488_v35 }
 0x1a2   :  { %1780 = vst [vmem:[%s4725_s2 + $0x690] sm:$0xff] %v780_v34  ;;  %2172 = vmatmul.msk.f32.gmra.mxu0 %vm126_vm0, %v2378_v32 }
 0x1a3   :  { %2043 = vmatmul.msk.f32.gmra.mxu1 %vm126_vm0, %v2378_v32 }
 0x1a4   :  { %v634_v36 = vpop.f32.mrf.mxu2 }
 0x1a5   :  { %1779 = vst [vmem:[%s4725_s2 + $0x688] sm:$0xff] %v634_v36  ;;  %2130 = vmatmul.msk.f32.gmra.mxu3 %vm126_vm0, %v2379_v48 }
 0x1a7   :  { %v929_v37 = vpop.f32.mrf.mxu0 }
 0x1a8   :  { %v491_v43 = vpop.f32.mrf.mxu1  ;;  %v783_v38 = vpop.f32.mrf.mxu3  ;;  %1790 = vst [vmem:[%s4725_s2 + $0x6e0] sm:$0xff] %v929_v37  ;;  %v2392_v37 = vld [vmem:[%s4724_s0 + $0x50] sm:$0xff] }
 0x1a9   :  { %2087 = vmatmul.msk.f32.gmra.mxu2 %vm126_vm0, %v2379_v48  ;;  %1787 = vst [vmem:[%s4725_s2 + $0x6c8] sm:$0xff] %v491_v43 }
 0x1aa   :  { %1789 = vst [vmem:[%s4725_s2 + $0x6d8] sm:$0xff] %v783_v38  ;;  %2173 = vmatmul.msk.f32.gmra.mxu0 %vm126_vm0, %v2379_v48 }
 0x1ab   :  { %2044 = vmatmul.msk.f32.gmra.mxu1 %vm126_vm0, %v2379_v48 }
 0x1ac   :  { %v637_v54 = vpop.f32.mrf.mxu2 }
 0x1ad   :  { %1788 = vst [vmem:[%s4725_s2 + $0x6d0] sm:$0xff] %v637_v54  ;;  %2131 = vmatmul.msk.f32.gmra.mxu3 %vm126_vm0, %v2380_v39 }
 0x1af   :  { %v932_v40 = vpop.f32.mrf.mxu0 }
 0x1b0   :  { %v494_v50 = vpop.f32.mrf.mxu1  ;;  %v786_v42 = vpop.f32.mrf.mxu3  ;;  %1799 = vst [vmem:[%s4725_s2 + $0x728] sm:$0xff] %v932_v40  ;;  %v2393_v40 = vld [vmem:[%s4724_s0 + $0x58] sm:$0xff] }
 0x1b1   :  { %2088 = vmatmul.msk.f32.gmra.mxu2 %vm126_vm0, %v2380_v39  ;;  %1796 = vst [vmem:[%s4725_s2 + $0x710] sm:$0xff] %v494_v50 }
 0x1b2   :  { %1798 = vst [vmem:[%s4725_s2 + $0x720] sm:$0xff] %v786_v42  ;;  %2174 = vmatmul.msk.f32.gmra.mxu0 %vm126_vm0, %v2380_v39 }
 0x1b3   :  { %2045 = vmatmul.msk.f32.gmra.mxu1 %vm126_vm0, %v2380_v39 }
 0x1b4   :  { %v640_v44 = vpop.f32.mrf.mxu2 }
 0x1b5   :  { %1797 = vst [vmem:[%s4725_s2 + $0x718] sm:$0xff] %v640_v44  ;;  %2132 = vmatmul.msk.f32.gmra.mxu3 %vm126_vm0, %v2381_v62 }
 0x1b7   :  { %v935_v45 = vpop.f32.mrf.mxu0 }
 0x1b8   :  { %v497_v56 = vpop.f32.mrf.mxu1  ;;  %v789_v46 = vpop.f32.mrf.mxu3  ;;  %1808 = vst [vmem:[%s4725_s2 + $0x770] sm:$0xff] %v935_v45  ;;  %v2394_v45 = vld [vmem:[%s4724_s0 + $0x60] sm:$0xff] }
 0x1b9   :  { %2089 = vmatmul.msk.f32.gmra.mxu2 %vm126_vm0, %v2381_v62  ;;  %1805 = vst [vmem:[%s4725_s2 + $0x758] sm:$0xff] %v497_v56 }
 0x1ba   :  { %1807 = vst [vmem:[%s4725_s2 + $0x768] sm:$0xff] %v789_v46  ;;  %2175 = vmatmul.msk.f32.gmra.mxu0 %vm126_vm0, %v2381_v62 }
 0x1bb   :  { %2046 = vmatmul.msk.f32.gmra.mxu1 %vm126_vm0, %v2381_v62 }
 0x1bc   :  { %v643_v47 = vpop.f32.mrf.mxu2 }
 0x1bd   :  { %1806 = vst [vmem:[%s4725_s2 + $0x760] sm:$0xff] %v643_v47  ;;  %2262 = vmatmul.msk.f32.vlgmr.msra.gmra.mxu3 %vm126_vm0, %v2382_v49 }
 0x1bf   :  { %v938_v4 = vpop.f32.mrf.mxu0 }
 0x1c0   :  { %v500_v0 = vpop.f32.mrf.mxu1  ;;  %v792_v51 = vpop.f32.mrf.mxu3  ;;  %1817 = vst [vmem:[%s4725_s2 + $0x7b8] sm:$0xff] %v938_v4  ;;  %v2395_v4 = vld [vmem:[%s4724_s0 + $0x68] sm:$0xff] }
 0x1c1   :  { %2219 = vmatmul.msk.f32.vlgmr.msra.gmra.mxu2 %vm126_vm0, %v2382_v49  ;;  %1814 = vst [vmem:[%s4725_s2 + $0x7a0] sm:$0xff] %v500_v0 }
 0x1c2   :  { %1816 = vst [vmem:[%s4725_s2 + $0x7b0] sm:$0xff] %v792_v51  ;;  %2305 = vmatmul.msk.f32.vlgmr.msra.gmra.mxu0 %vm126_vm0, %v2382_v49 }
 0x1c3   :  { %2176 = vmatmul.msk.f32.vlgmr.msra.gmra.mxu1 %vm126_vm0, %v2382_v49 }
 0x1c4   :  { %v646_v52 = vpop.f32.mrf.mxu2 }
 0x1c5   :  { %1815 = vst [vmem:[%s4725_s2 + $0x7a8] sm:$0xff] %v646_v52  ;;  %2263 = vmatmul.msk.f32.gmra.mxu3 %vm126_vm0, %v2383_v15 }
 0x1c7   :  { %v941_v53 = vpop.f32.mrf.mxu0 }
 0x1c8   :  { %v503_v55 = vpop.f32.mrf.mxu1  ;;  %v795_v57 = vpop.f32.mrf.mxu3  ;;  %1826 = vst [vmem:[%s4725_s2 + $0x800] sm:$0xff] %v941_v53  ;;  %v2396_v53 = vld [vmem:[%s4724_s0 + $0x70] sm:$0xff] }
 0x1c9   :  { %2220 = vmatmul.msk.f32.gmra.mxu2 %vm126_vm0, %v2383_v15  ;;  %1823 = vst [vmem:[%s4725_s2 + $0x7e8] sm:$0xff] %v503_v55 }
 0x1ca   :  { %1825 = vst [vmem:[%s4725_s2 + $0x7f8] sm:$0xff] %v795_v57  ;;  %2306 = vmatmul.msk.f32.gmra.mxu0 %vm126_vm0, %v2383_v15 }
 0x1cb   :  { %2177 = vmatmul.msk.f32.gmra.mxu1 %vm126_vm0, %v2383_v15 }
 0x1cc   :  { %v649_v19 = vpop.f32.mrf.mxu2 }
 0x1cd   :  { %1824 = vst [vmem:[%s4725_s2 + $0x7f0] sm:$0xff] %v649_v19  ;;  %2264 = vmatmul.msk.f32.gmra.mxu3 %vm126_vm0, %v2384_v58 }
 0x1cf   :  { %v944_v59 = vpop.f32.mrf.mxu0 }
 0x1d0   :  { %v506_v6 = vpop.f32.mrf.mxu1  ;;  %v798_v60 = vpop.f32.mrf.mxu3  ;;  %1835 = vst [vmem:[%s4725_s2 + $0x848] sm:$0xff] %v944_v59  ;;  %v2397_v59 = vld [vmem:[%s4724_s0 + $0x78] sm:$0xff] }
 0x1d1   :  { %2221 = vmatmul.msk.f32.gmra.mxu2 %vm126_vm0, %v2384_v58  ;;  %1832 = vst [vmem:[%s4725_s2 + $0x830] sm:$0xff] %v506_v6 }
 0x1d2   :  { %1834 = vst [vmem:[%s4725_s2 + $0x840] sm:$0xff] %v798_v60  ;;  %2307 = vmatmul.msk.f32.gmra.mxu0 %vm126_vm0, %v2384_v58 }
 0x1d3   :  { %2178 = vmatmul.msk.f32.gmra.mxu1 %vm126_vm0, %v2384_v58 }
 0x1d4   :  { %v652_v25 = vpop.f32.mrf.mxu2 }
 0x1d5   :  { %1833 = vst [vmem:[%s4725_s2 + $0x838] sm:$0xff] %v652_v25  ;;  %2265 = vmatmul.msk.f32.gmra.mxu3 %vm126_vm0, %v2385_v61 }
 0x1d7   :  { %v947_v63 = vpop.f32.mrf.mxu0 }
 0x1d8   :  { %v509_v17 = vpop.f32.mrf.mxu1  ;;  %v801_v1 = vpop.f32.mrf.mxu3  ;;  %1844 = vst [vmem:[%s4725_s2 + $0x890] sm:$0xff] %v947_v63  ;;  %v2398_v63 = vld [vmem:[%s4724_s0 + $0x80] sm:$0xff] }
 0x1d9   :  { %2222 = vmatmul.msk.f32.gmra.mxu2 %vm126_vm0, %v2385_v61  ;;  %1841 = vst [vmem:[%s4725_s2 + $0x878] sm:$0xff] %v509_v17 }
 0x1da   :  { %1843 = vst [vmem:[%s4725_s2 + $0x888] sm:$0xff] %v801_v1  ;;  %2308 = vmatmul.msk.f32.gmra.mxu0 %vm126_vm0, %v2385_v61 }
 0x1db   :  { %2179 = vmatmul.msk.f32.gmra.mxu1 %vm126_vm0, %v2385_v61 }
 0x1dc   :  { %v655_v2 = vpop.f32.mrf.mxu2 }
 0x1dd   :  { %1842 = vst [vmem:[%s4725_s2 + $0x880] sm:$0xff] %v655_v2  ;;  %2266 = vmatmul.msk.f32.gmra.mxu3 %vm126_vm0, %v2386_v3 }
 0x1df   :  { %v950_v21 = vpop.f32.mrf.mxu0 }
 0x1e0   :  { %v512_v5 = vpop.f32.mrf.mxu1  ;;  %v804_v7 = vpop.f32.mrf.mxu3  ;;  %1853 = vst [vmem:[%s4725_s2 + $0x8d8] sm:$0xff] %v950_v21  ;;  %v2399_v21 = vld [vmem:[%s4724_s0 + $0x88] sm:$0xff] }
 0x1e1   :  { %2223 = vmatmul.msk.f32.gmra.mxu2 %vm126_vm0, %v2386_v3  ;;  %1850 = vst [vmem:[%s4725_s2 + $0x8c0] sm:$0xff] %v512_v5 }
 0x1e2   :  { %1852 = vst [vmem:[%s4725_s2 + $0x8d0] sm:$0xff] %v804_v7  ;;  %2309 = vmatmul.msk.f32.gmra.mxu0 %vm126_vm0, %v2386_v3 }
 0x1e3   :  { %2180 = vmatmul.msk.f32.gmra.mxu1 %vm126_vm0, %v2386_v3 }
 0x1e4   :  { %v658_v9 = vpop.f32.mrf.mxu2 }
 0x1e5   :  { %1851 = vst [vmem:[%s4725_s2 + $0x8c8] sm:$0xff] %v658_v9  ;;  %2267 = vmatmul.msk.f32.gmra.mxu3 %vm126_vm0, %v2387_v28 }
 0x1e7   :  { %v953_v12 = vpop.f32.mrf.mxu0 }
 0x1e8   :  { %v515_v13 = vpop.f32.mrf.mxu1  ;;  %v807_v14 = vpop.f32.mrf.mxu3  ;;  %1862 = vst [vmem:[%s4725_s2 + $0x920] sm:$0xff] %v953_v12  ;;  %v2400_v12 = vld [vmem:[%s4724_s0 + $0x90] sm:$0xff] }
 0x1e9   :  { %2224 = vmatmul.msk.f32.gmra.mxu2 %vm126_vm0, %v2387_v28  ;;  %1859 = vst [vmem:[%s4725_s2 + $0x908] sm:$0xff] %v515_v13 }
 0x1ea   :  { %1861 = vst [vmem:[%s4725_s2 + $0x918] sm:$0xff] %v807_v14  ;;  %2310 = vmatmul.msk.f32.gmra.mxu0 %vm126_vm0, %v2387_v28 }
 0x1eb   :  { %2181 = vmatmul.msk.f32.gmra.mxu1 %vm126_vm0, %v2387_v28 }
 0x1ec   :  { %v661_v8 = vpop.f32.mrf.mxu2 }
 0x1ed   :  { %1860 = vst [vmem:[%s4725_s2 + $0x910] sm:$0xff] %v661_v8  ;;  %2268 = vmatmul.msk.f32.gmra.mxu3 %vm126_vm0, %v2388_v16 }
 0x1ef   :  { %v956_v11 = vpop.f32.mrf.mxu0 }
 0x1f0   :  { %v518_v18 = vpop.f32.mrf.mxu1  ;;  %v810_v20 = vpop.f32.mrf.mxu3  ;;  %1871 = vst [vmem:[%s4725_s2 + $0x968] sm:$0xff] %v956_v11  ;;  %v2401_v11 = vld [vmem:[%s4724_s0 + $0x98] sm:$0xff] }
 0x1f1   :  { %2225 = vmatmul.msk.f32.gmra.mxu2 %vm126_vm0, %v2388_v16  ;;  %1868 = vst [vmem:[%s4725_s2 + $0x950] sm:$0xff] %v518_v18 }
 0x1f2   :  { %1870 = vst [vmem:[%s4725_s2 + $0x960] sm:$0xff] %v810_v20  ;;  %2311 = vmatmul.msk.f32.gmra.mxu0 %vm126_vm0, %v2388_v16 }
 0x1f3   :  { %2182 = vmatmul.msk.f32.gmra.mxu1 %vm126_vm0, %v2388_v16 }
 0x1f4   :  { %v664_v23 = vpop.f32.mrf.mxu2 }
 0x1f5   :  { %1869 = vst [vmem:[%s4725_s2 + $0x958] sm:$0xff] %v664_v23  ;;  %2269 = vmatmul.msk.f32.gmra.mxu3 %vm126_vm0, %v2389_v22 }
 0x1f7   :  { %v959_v27 = vpop.f32.mrf.mxu0 }
 0x1f8   :  { %v521_v26 = vpop.f32.mrf.mxu1  ;;  %v813_v29 = vpop.f32.mrf.mxu3  ;;  %1880 = vst [vmem:[%s4725_s2 + $0x9b0] sm:$0xff] %v959_v27  ;;  %v2402_v27 = vld [vmem:[%s4724_s0 + $0xa0] sm:$0xff] }
 0x1f9   :  { %2226 = vmatmul.msk.f32.gmra.mxu2 %vm126_vm0, %v2389_v22  ;;  %1877 = vst [vmem:[%s4725_s2 + $0x998] sm:$0xff] %v521_v26 }
 0x1fa   :  { %1879 = vst [vmem:[%s4725_s2 + $0x9a8] sm:$0xff] %v813_v29  ;;  %2312 = vmatmul.msk.f32.gmra.mxu0 %vm126_vm0, %v2389_v22 }
 0x1fb   :  { %2183 = vmatmul.msk.f32.gmra.mxu1 %vm126_vm0, %v2389_v22 }
 0x1fc   :  { %v667_v10 = vpop.f32.mrf.mxu2 }
 0x1fd   :  { %1878 = vst [vmem:[%s4725_s2 + $0x9a0] sm:$0xff] %v667_v10  ;;  %2270 = vmatmul.msk.f32.gmra.mxu3 %vm126_vm0, %v2390_v24 }
 0x1ff   :  { %v962_v33 = vpop.f32.mrf.mxu0 }
 0x200   :  { %v524_v30 = vpop.f32.mrf.mxu1  ;;  %v816_v31 = vpop.f32.mrf.mxu3  ;;  %1889 = vst [vmem:[%s4725_s2 + $0x9f8] sm:$0xff] %v962_v33  ;;  %v2403_v33 = vld [vmem:[%s4724_s0 + $0xa8] sm:$0xff] }
 0x201   :  { %2227 = vmatmul.msk.f32.gmra.mxu2 %vm126_vm0, %v2390_v24  ;;  %1886 = vst [vmem:[%s4725_s2 + $0x9e0] sm:$0xff] %v524_v30 }
 0x202   :  { %1888 = vst [vmem:[%s4725_s2 + $0x9f0] sm:$0xff] %v816_v31  ;;  %2313 = vmatmul.msk.f32.gmra.mxu0 %vm126_vm0, %v2390_v24 }
 0x203   :  { %2184 = vmatmul.msk.f32.gmra.mxu1 %vm126_vm0, %v2390_v24 }
 0x204   :  { %v670_v32 = vpop.f32.mrf.mxu2 }
 0x205   :  { %1887 = vst [vmem:[%s4725_s2 + $0x9e8] sm:$0xff] %v670_v32  ;;  %2271 = vmatmul.msk.f32.gmra.mxu3 %vm126_vm0, %v2391_v41 }
 0x207   :  { %v965_v35 = vpop.f32.mrf.mxu0 }
 0x208   :  { %v527_v34 = vpop.f32.mrf.mxu1  ;;  %v819_v36 = vpop.f32.mrf.mxu3  ;;  %1898 = vst [vmem:[%s4725_s2 + $0xa40] sm:$0xff] %v965_v35  ;;  %v2404_v35 = vld [vmem:[%s4724_s0 + $0xb0] sm:$0xff] }
 0x209   :  { %2228 = vmatmul.msk.f32.gmra.mxu2 %vm126_vm0, %v2391_v41  ;;  %1895 = vst [vmem:[%s4725_s2 + $0xa28] sm:$0xff] %v527_v34 }
 0x20a   :  { %1897 = vst [vmem:[%s4725_s2 + $0xa38] sm:$0xff] %v819_v36  ;;  %2314 = vmatmul.msk.f32.gmra.mxu0 %vm126_vm0, %v2391_v41 }
 0x20b   :  { %2185 = vmatmul.msk.f32.gmra.mxu1 %vm126_vm0, %v2391_v41 }
 0x20c   :  { %v673_v48 = vpop.f32.mrf.mxu2 }
 0x20d   :  { %1896 = vst [vmem:[%s4725_s2 + $0xa30] sm:$0xff] %v673_v48  ;;  %2272 = vmatmul.msk.f32.gmra.mxu3 %vm126_vm0, %v2392_v37 }
 0x20f   :  { %v968_v43 = vpop.f32.mrf.mxu0 }
 0x210   :  { %v530_v38 = vpop.f32.mrf.mxu1  ;;  %v822_v54 = vpop.f32.mrf.mxu3  ;;  %1907 = vst [vmem:[%s4725_s2 + $0xa88] sm:$0xff] %v968_v43  ;;  %v2405_v43 = vld [vmem:[%s4724_s0 + $0xb8] sm:$0xff] }
 0x211   :  { %2229 = vmatmul.msk.f32.gmra.mxu2 %vm126_vm0, %v2392_v37  ;;  %1904 = vst [vmem:[%s4725_s2 + $0xa70] sm:$0xff] %v530_v38 }
 0x212   :  { %1906 = vst [vmem:[%s4725_s2 + $0xa80] sm:$0xff] %v822_v54  ;;  %2315 = vmatmul.msk.f32.gmra.mxu0 %vm126_vm0, %v2392_v37 }
 0x213   :  { %2186 = vmatmul.msk.f32.gmra.mxu1 %vm126_vm0, %v2392_v37 }
 0x214   :  { %v676_v39 = vpop.f32.mrf.mxu2 }
 0x215   :  { %1905 = vst [vmem:[%s4725_s2 + $0xa78] sm:$0xff] %v676_v39  ;;  %2273 = vmatmul.msk.f32.gmra.mxu3 %vm126_vm0, %v2393_v40 }
 0x217   :  { %v971_v50 = vpop.f32.mrf.mxu0 }
 0x218   :  { %v533_v42 = vpop.f32.mrf.mxu1  ;;  %v825_v44 = vpop.f32.mrf.mxu3  ;;  %1916 = vst [vmem:[%s4725_s2 + $0xad0] sm:$0xff] %v971_v50  ;;  %v2406_v50 = vld [vmem:[%s4724_s0 + $0xc0] sm:$0xff] }
 0x219   :  { %2230 = vmatmul.msk.f32.gmra.mxu2 %vm126_vm0, %v2393_v40  ;;  %1913 = vst [vmem:[%s4725_s2 + $0xab8] sm:$0xff] %v533_v42 }
 0x21a   :  { %1915 = vst [vmem:[%s4725_s2 + $0xac8] sm:$0xff] %v825_v44  ;;  %2316 = vmatmul.msk.f32.gmra.mxu0 %vm126_vm0, %v2393_v40 }
 0x21b   :  { %2187 = vmatmul.msk.f32.gmra.mxu1 %vm126_vm0, %v2393_v40 }
 0x21c   :  { %v679_v62 = vpop.f32.mrf.mxu2 }
 0x21d   :  { %1914 = vst [vmem:[%s4725_s2 + $0xac0] sm:$0xff] %v679_v62  ;;  %2274 = vmatmul.msk.f32.gmra.mxu3 %vm126_vm0, %v2394_v45 }
 0x21f   :  { %v974_v56 = vpop.f32.mrf.mxu0 }
 0x220   :  { %v536_v46 = vpop.f32.mrf.mxu1  ;;  %v828_v47 = vpop.f32.mrf.mxu3  ;;  %1925 = vst [vmem:[%s4725_s2 + $0xb18] sm:$0xff] %v974_v56  ;;  %v2407_v56 = vld [vmem:[%s4724_s0 + $0xc8] sm:$0xff] }
 0x221   :  { %2231 = vmatmul.msk.f32.gmra.mxu2 %vm126_vm0, %v2394_v45  ;;  %1922 = vst [vmem:[%s4725_s2 + $0xb00] sm:$0xff] %v536_v46 }
 0x222   :  { %1924 = vst [vmem:[%s4725_s2 + $0xb10] sm:$0xff] %v828_v47  ;;  %2317 = vmatmul.msk.f32.gmra.mxu0 %vm126_vm0, %v2394_v45 }
 0x223   :  { %2188 = vmatmul.msk.f32.gmra.mxu1 %vm126_vm0, %v2394_v45 }
 0x224   :  { %v682_v49 = vpop.f32.mrf.mxu2 }
 0x225   :  { %1923 = vst [vmem:[%s4725_s2 + $0xb08] sm:$0xff] %v682_v49  ;;  %2275 = vmatmul.msk.f32.gmra.mxu3 %vm126_vm0, %v2395_v4 }
 0x227   :  { %v977_v0 = vpop.f32.mrf.mxu0 }
 0x228   :  { %v539_v51 = vpop.f32.mrf.mxu1  ;;  %v831_v52 = vpop.f32.mrf.mxu3  ;;  %1934 = vst [vmem:[%s4725_s2 + $0xb60] sm:$0xff] %v977_v0  ;;  %v2408_v0 = vld [vmem:[%s4724_s0 + $0xd0] sm:$0xff] }
 0x229   :  { %2232 = vmatmul.msk.f32.gmra.mxu2 %vm126_vm0, %v2395_v4  ;;  %1931 = vst [vmem:[%s4725_s2 + $0xb48] sm:$0xff] %v539_v51 }
 0x22a   :  { %1933 = vst [vmem:[%s4725_s2 + $0xb58] sm:$0xff] %v831_v52  ;;  %2318 = vmatmul.msk.f32.gmra.mxu0 %vm126_vm0, %v2395_v4 }
 0x22b   :  { %2189 = vmatmul.msk.f32.gmra.mxu1 %vm126_vm0, %v2395_v4 }
 0x22c   :  { %v685_v15 = vpop.f32.mrf.mxu2 }
 0x22d   :  { %1932 = vst [vmem:[%s4725_s2 + $0xb50] sm:$0xff] %v685_v15  ;;  %2276 = vmatmul.msk.f32.gmra.mxu3 %vm126_vm0, %v2396_v53 }
 0x22f   :  { %v980_v55 = vpop.f32.mrf.mxu0 }
 0x230   :  { %v542_v57 = vpop.f32.mrf.mxu1  ;;  %v834_v19 = vpop.f32.mrf.mxu3  ;;  %1943 = vst [vmem:[%s4725_s2 + $0xba8] sm:$0xff] %v980_v55  ;;  %v2409_v55 = vld [vmem:[%s4724_s0 + $0xd8] sm:$0xff] }
 0x231   :  { %2233 = vmatmul.msk.f32.gmra.mxu2 %vm126_vm0, %v2396_v53  ;;  %1940 = vst [vmem:[%s4725_s2 + $0xb90] sm:$0xff] %v542_v57 }
 0x232   :  { %1942 = vst [vmem:[%s4725_s2 + $0xba0] sm:$0xff] %v834_v19  ;;  %2319 = vmatmul.msk.f32.gmra.mxu0 %vm126_vm0, %v2396_v53 }
 0x233   :  { %2190 = vmatmul.msk.f32.gmra.mxu1 %vm126_vm0, %v2396_v53 }
 0x234   :  { %v688_v58 = vpop.f32.mrf.mxu2 }
 0x235   :  { %1941 = vst [vmem:[%s4725_s2 + $0xb98] sm:$0xff] %v688_v58  ;;  %2277 = vmatmul.msk.f32.gmra.mxu3 %vm126_vm0, %v2397_v59 }
 0x237   :  { %v983_v6 = vpop.f32.mrf.mxu0 }
 0x238   :  { %v545_v60 = vpop.f32.mrf.mxu1  ;;  %v837_v25 = vpop.f32.mrf.mxu3  ;;  %1952 = vst [vmem:[%s4725_s2 + $0xbf0] sm:$0xff] %v983_v6  ;;  %v2410_v6 = vld [vmem:[%s4724_s0 + $0xe0] sm:$0xff] }
 0x239   :  { %2234 = vmatmul.msk.f32.gmra.mxu2 %vm126_vm0, %v2397_v59  ;;  %1949 = vst [vmem:[%s4725_s2 + $0xbd8] sm:$0xff] %v545_v60 }
 0x23a   :  { %1951 = vst [vmem:[%s4725_s2 + $0xbe8] sm:$0xff] %v837_v25  ;;  %2320 = vmatmul.msk.f32.gmra.mxu0 %vm126_vm0, %v2397_v59 }
 0x23b   :  { %2191 = vmatmul.msk.f32.gmra.mxu1 %vm126_vm0, %v2397_v59 }
 0x23c   :  { %v691_v61 = vpop.f32.mrf.mxu2 }
 0x23d   :  { %1950 = vst [vmem:[%s4725_s2 + $0xbe0] sm:$0xff] %v691_v61  ;;  %2278 = vmatmul.msk.f32.gmra.mxu3 %vm126_vm0, %v2398_v63 }
 0x23f   :  { %v1441_v17 = vpop.f32.mrf.mxu0 }
 0x240   :  { %v1003_v1 = vpop.f32.mrf.mxu1  ;;  %v1295_v2 = vpop.f32.mrf.mxu3  ;;  %1578 = vst [vmem:[%s4725_s2 + $0x40] sm:$0xff] %v1441_v17  ;;  %v2411_v17 = vld [vmem:[%s4724_s0 + $0xe8] sm:$0xff] }
 0x241   :  { %2235 = vmatmul.msk.f32.gmra.mxu2 %vm126_vm0, %v2398_v63  ;;  %1575 = vst [vmem:[%s4725_s2 + $0x28] sm:$0xff] %v1003_v1 }
 0x242   :  { %1577 = vst [vmem:[%s4725_s2 + $0x38] sm:$0xff] %v1295_v2  ;;  %2321 = vmatmul.msk.f32.gmra.mxu0 %vm126_vm0, %v2398_v63 }
 0x243   :  { %2192 = vmatmul.msk.f32.gmra.mxu1 %vm126_vm0, %v2398_v63 }
 0x244   :  { %v1149_v3 = vpop.f32.mrf.mxu2 }
 0x245   :  { %1576 = vst [vmem:[%s4725_s2 + $0x30] sm:$0xff] %v1149_v3  ;;  %2279 = vmatmul.msk.f32.gmra.mxu3 %vm126_vm0, %v2399_v21 }
 0x247   :  { %v1444_v5 = vpop.f32.mrf.mxu0 }
 0x248   :  { %v1006_v7 = vpop.f32.mrf.mxu1  ;;  %v1298_v9 = vpop.f32.mrf.mxu3  ;;  %1587 = vst [vmem:[%s4725_s2 + $0x88] sm:$0xff] %v1444_v5  ;;  %v2412_v5 = vld [vmem:[%s4724_s0 + $0xf0] sm:$0xff] }
 0x249   :  { %2236 = vmatmul.msk.f32.gmra.mxu2 %vm126_vm0, %v2399_v21  ;;  %1584 = vst [vmem:[%s4725_s2 + $0x70] sm:$0xff] %v1006_v7 }
 0x24a   :  { %1586 = vst [vmem:[%s4725_s2 + $0x80] sm:$0xff] %v1298_v9  ;;  %2322 = vmatmul.msk.f32.gmra.mxu0 %vm126_vm0, %v2399_v21 }
 0x24b   :  { %2193 = vmatmul.msk.f32.gmra.mxu1 %vm126_vm0, %v2399_v21 }
 0x24c   :  { %v1152_v28 = vpop.f32.mrf.mxu2 }
 0x24d   :  { %1585 = vst [vmem:[%s4725_s2 + $0x78] sm:$0xff] %v1152_v28  ;;  %2280 = vmatmul.msk.f32.gmra.mxu3 %vm126_vm0, %v2400_v12 }
 0x24f   :  { %v1447_v13 = vpop.f32.mrf.mxu0 }
 0x250   :  { %v1009_v14 = vpop.f32.mrf.mxu1  ;;  %v1301_v8 = vpop.f32.mrf.mxu3  ;;  %1596 = vst [vmem:[%s4725_s2 + $0xd0] sm:$0xff] %v1447_v13  ;;  %v2413_v13 = vld [vmem:[%s4724_s0 + $0xf8] sm:$0xff] }
 0x251   :  { %2237 = vmatmul.msk.f32.gmra.mxu2 %vm126_vm0, %v2400_v12  ;;  %1593 = vst [vmem:[%s4725_s2 + $0xb8] sm:$0xff] %v1009_v14 }
 0x252   :  { %1595 = vst [vmem:[%s4725_s2 + $0xc8] sm:$0xff] %v1301_v8  ;;  %2323 = vmatmul.msk.f32.gmra.mxu0 %vm126_vm0, %v2400_v12 }
 0x253   :  { %2194 = vmatmul.msk.f32.gmra.mxu1 %vm126_vm0, %v2400_v12 }
 0x254   :  { %v1155_v16 = vpop.f32.mrf.mxu2 }
 0x255   :  { %1594 = vst [vmem:[%s4725_s2 + $0xc0] sm:$0xff] %v1155_v16  ;;  %2281 = vmatmul.msk.f32.gmra.mxu3 %vm126_vm0, %v2401_v11 }
 0x257   :  { %v1450_v18 = vpop.f32.mrf.mxu0 }
 0x258   :  { %v1012_v20 = vpop.f32.mrf.mxu1  ;;  %v1304_v23 = vpop.f32.mrf.mxu3  ;;  %1605 = vst [vmem:[%s4725_s2 + $0x118] sm:$0xff] %v1450_v18  ;;  %v2414_v18 = vld [vmem:[%s4724_s0 + $0x100] sm:$0xff] }
 0x259   :  { %2238 = vmatmul.msk.f32.gmra.mxu2 %vm126_vm0, %v2401_v11  ;;  %1602 = vst [vmem:[%s4725_s2 + $0x100] sm:$0xff] %v1012_v20 }
 0x25a   :  { %1604 = vst [vmem:[%s4725_s2 + $0x110] sm:$0xff] %v1304_v23  ;;  %2324 = vmatmul.msk.f32.gmra.mxu0 %vm126_vm0, %v2401_v11 }
 0x25b   :  { %2195 = vmatmul.msk.f32.gmra.mxu1 %vm126_vm0, %v2401_v11 }
 0x25c   :  { %v1158_v22 = vpop.f32.mrf.mxu2 }
 0x25d   :  { %1603 = vst [vmem:[%s4725_s2 + $0x108] sm:$0xff] %v1158_v22  ;;  %2282 = vmatmul.msk.f32.gmra.mxu3 %vm126_vm0, %v2402_v27 }
 0x25f   :  { %v1453_v26 = vpop.f32.mrf.mxu0 }
 0x260   :  { %v1015_v29 = vpop.f32.mrf.mxu1  ;;  %v1307_v10 = vpop.f32.mrf.mxu3  ;;  %1614 = vst [vmem:[%s4725_s2 + $0x160] sm:$0xff] %v1453_v26  ;;  %v2415_v26 = vld [vmem:[%s4724_s0 + $0x108] sm:$0xff] }
 0x261   :  { %2239 = vmatmul.msk.f32.gmra.mxu2 %vm126_vm0, %v2402_v27  ;;  %1611 = vst [vmem:[%s4725_s2 + $0x148] sm:$0xff] %v1015_v29 }
 0x262   :  { %1613 = vst [vmem:[%s4725_s2 + $0x158] sm:$0xff] %v1307_v10  ;;  %2325 = vmatmul.msk.f32.gmra.mxu0 %vm126_vm0, %v2402_v27 }
 0x263   :  { %2196 = vmatmul.msk.f32.gmra.mxu1 %vm126_vm0, %v2402_v27 }
 0x264   :  { %v1161_v24 = vpop.f32.mrf.mxu2 }
 0x265   :  { %1612 = vst [vmem:[%s4725_s2 + $0x150] sm:$0xff] %v1161_v24  ;;  %2283 = vmatmul.msk.f32.gmra.mxu3 %vm126_vm0, %v2403_v33 }
 0x267   :  { %v1456_v30 = vpop.f32.mrf.mxu0 }
 0x268   :  { %v1018_v31 = vpop.f32.mrf.mxu1  ;;  %v1310_v32 = vpop.f32.mrf.mxu3  ;;  %1623 = vst [vmem:[%s4725_s2 + $0x1a8] sm:$0xff] %v1456_v30  ;;  %v2416_v30 = vld [vmem:[%s4724_s0 + $0x110] sm:$0xff] }
 0x269   :  { %2240 = vmatmul.msk.f32.gmra.mxu2 %vm126_vm0, %v2403_v33  ;;  %1620 = vst [vmem:[%s4725_s2 + $0x190] sm:$0xff] %v1018_v31 }
 0x26a   :  { %1622 = vst [vmem:[%s4725_s2 + $0x1a0] sm:$0xff] %v1310_v32  ;;  %2326 = vmatmul.msk.f32.gmra.mxu0 %vm126_vm0, %v2403_v33 }
 0x26b   :  { %2197 = vmatmul.msk.f32.gmra.mxu1 %vm126_vm0, %v2403_v33 }
 0x26c   :  { %v1164_v41 = vpop.f32.mrf.mxu2 }
 0x26d   :  { %1621 = vst [vmem:[%s4725_s2 + $0x198] sm:$0xff] %v1164_v41  ;;  %2284 = vmatmul.msk.f32.gmra.mxu3 %vm126_vm0, %v2404_v35 }
 0x26f   :  { %v1459_v34 = vpop.f32.mrf.mxu0 }
 0x270   :  { %v1021_v36 = vpop.f32.mrf.mxu1  ;;  %v1313_v48 = vpop.f32.mrf.mxu3  ;;  %1632 = vst [vmem:[%s4725_s2 + $0x1f0] sm:$0xff] %v1459_v34  ;;  %v2417_v34 = vld [vmem:[%s4724_s0 + $0x118] sm:$0xff] }
 0x271   :  { %2241 = vmatmul.msk.f32.gmra.mxu2 %vm126_vm0, %v2404_v35  ;;  %1629 = vst [vmem:[%s4725_s2 + $0x1d8] sm:$0xff] %v1021_v36 }
 0x272   :  { %1631 = vst [vmem:[%s4725_s2 + $0x1e8] sm:$0xff] %v1313_v48  ;;  %2327 = vmatmul.msk.f32.gmra.mxu0 %vm126_vm0, %v2404_v35 }
 0x273   :  { %2198 = vmatmul.msk.f32.gmra.mxu1 %vm126_vm0, %v2404_v35 }
 0x274   :  { %v1167_v37 = vpop.f32.mrf.mxu2 }
 0x275   :  { %1630 = vst [vmem:[%s4725_s2 + $0x1e0] sm:$0xff] %v1167_v37  ;;  %2285 = vmatmul.msk.f32.gmra.mxu3 %vm126_vm0, %v2405_v43 }
 0x277   :  { %v1462_v38 = vpop.f32.mrf.mxu0 }
 0x278   :  { %v1024_v54 = vpop.f32.mrf.mxu1  ;;  %v1316_v39 = vpop.f32.mrf.mxu3  ;;  %1641 = vst [vmem:[%s4725_s2 + $0x238] sm:$0xff] %v1462_v38  ;;  %v2418_v38 = vld [vmem:[%s4724_s0 + $0x120] sm:$0xff] }
 0x279   :  { %2242 = vmatmul.msk.f32.gmra.mxu2 %vm126_vm0, %v2405_v43  ;;  %1638 = vst [vmem:[%s4725_s2 + $0x220] sm:$0xff] %v1024_v54 }
 0x27a   :  { %1640 = vst [vmem:[%s4725_s2 + $0x230] sm:$0xff] %v1316_v39  ;;  %2328 = vmatmul.msk.f32.gmra.mxu0 %vm126_vm0, %v2405_v43 }
 0x27b   :  { %2199 = vmatmul.msk.f32.gmra.mxu1 %vm126_vm0, %v2405_v43 }
 0x27c   :  { %v1170_v40 = vpop.f32.mrf.mxu2 }
 0x27d   :  { %1639 = vst [vmem:[%s4725_s2 + $0x228] sm:$0xff] %v1170_v40  ;;  %2286 = vmatmul.msk.f32.gmra.mxu3 %vm126_vm0, %v2406_v50 }
 0x27f   :  { %v1465_v42 = vpop.f32.mrf.mxu0 }
 0x280   :  { %v1027_v44 = vpop.f32.mrf.mxu1  ;;  %v1319_v62 = vpop.f32.mrf.mxu3  ;;  %1650 = vst [vmem:[%s4725_s2 + $0x280] sm:$0xff] %v1465_v42  ;;  %v2419_v42 = vld [vmem:[%s4724_s0 + $0x128] sm:$0xff] }
 0x281   :  { %2243 = vmatmul.msk.f32.gmra.mxu2 %vm126_vm0, %v2406_v50  ;;  %1647 = vst [vmem:[%s4725_s2 + $0x268] sm:$0xff] %v1027_v44 }
 0x282   :  { %1649 = vst [vmem:[%s4725_s2 + $0x278] sm:$0xff] %v1319_v62  ;;  %2329 = vmatmul.msk.f32.gmra.mxu0 %vm126_vm0, %v2406_v50 }
 0x283   :  { %2200 = vmatmul.msk.f32.gmra.mxu1 %vm126_vm0, %v2406_v50 }
 0x284   :  { %v1173_v45 = vpop.f32.mrf.mxu2 }
 0x285   :  { %1648 = vst [vmem:[%s4725_s2 + $0x270] sm:$0xff] %v1173_v45  ;;  %2287 = vmatmul.msk.f32.gmra.mxu3 %vm126_vm0, %v2407_v56 }
 0x287   :  { %v1468_v46 = vpop.f32.mrf.mxu0 }
 0x288   :  { %v1030_v47 = vpop.f32.mrf.mxu1  ;;  %v1322_v49 = vpop.f32.mrf.mxu3  ;;  %1659 = vst [vmem:[%s4725_s2 + $0x2c8] sm:$0xff] %v1468_v46  ;;  %v2420_v46 = vld [vmem:[%s4724_s0 + $0x130] sm:$0xff] }
 0x289   :  { %2244 = vmatmul.msk.f32.gmra.mxu2 %vm126_vm0, %v2407_v56  ;;  %1656 = vst [vmem:[%s4725_s2 + $0x2b0] sm:$0xff] %v1030_v47 }
 0x28a   :  { %1658 = vst [vmem:[%s4725_s2 + $0x2c0] sm:$0xff] %v1322_v49  ;;  %2330 = vmatmul.msk.f32.gmra.mxu0 %vm126_vm0, %v2407_v56 }
 0x28b   :  { %2201 = vmatmul.msk.f32.gmra.mxu1 %vm126_vm0, %v2407_v56 }
 0x28c   :  { %v1176_v4 = vpop.f32.mrf.mxu2 }
 0x28d   :  { %1657 = vst [vmem:[%s4725_s2 + $0x2b8] sm:$0xff] %v1176_v4  ;;  %2288 = vmatmul.msk.f32.gmra.mxu3 %vm126_vm0, %v2408_v0 }
 0x28f   :  { %v1471_v51 = vpop.f32.mrf.mxu0 }
 0x290   :  { %v1033_v52 = vpop.f32.mrf.mxu1  ;;  %v1325_v15 = vpop.f32.mrf.mxu3  ;;  %1668 = vst [vmem:[%s4725_s2 + $0x310] sm:$0xff] %v1471_v51  ;;  %v2421_v51 = vld [vmem:[%s4724_s0 + $0x138] sm:$0xff] }
 0x291   :  { %2245 = vmatmul.msk.f32.gmra.mxu2 %vm126_vm0, %v2408_v0  ;;  %1665 = vst [vmem:[%s4725_s2 + $0x2f8] sm:$0xff] %v1033_v52 }
 0x292   :  { %1667 = vst [vmem:[%s4725_s2 + $0x308] sm:$0xff] %v1325_v15  ;;  %2331 = vmatmul.msk.f32.gmra.mxu0 %vm126_vm0, %v2408_v0 }
 0x293   :  { %2202 = vmatmul.msk.f32.gmra.mxu1 %vm126_vm0, %v2408_v0 }
 0x294   :  { %v1179_v53 = vpop.f32.mrf.mxu2 }
 0x295   :  { %1666 = vst [vmem:[%s4725_s2 + $0x300] sm:$0xff] %v1179_v53  ;;  %2289 = vmatmul.msk.f32.gmra.mxu3 %vm126_vm0, %v2409_v55 }
 0x297   :  { %v1474_v57 = vpop.f32.mrf.mxu0 }
 0x298   :  { %v1036_v19 = vpop.f32.mrf.mxu1  ;;  %v1328_v58 = vpop.f32.mrf.mxu3  ;;  %1677 = vst [vmem:[%s4725_s2 + $0x358] sm:$0xff] %v1474_v57  ;;  %v2422_v57 = vld [vmem:[%s4724_s0 + $0x140] sm:$0xff] }
 0x299   :  { %2246 = vmatmul.msk.f32.gmra.mxu2 %vm126_vm0, %v2409_v55  ;;  %1674 = vst [vmem:[%s4725_s2 + $0x340] sm:$0xff] %v1036_v19 }
 0x29a   :  { %1676 = vst [vmem:[%s4725_s2 + $0x350] sm:$0xff] %v1328_v58  ;;  %2332 = vmatmul.msk.f32.gmra.mxu0 %vm126_vm0, %v2409_v55 }
 0x29b   :  { %2203 = vmatmul.msk.f32.gmra.mxu1 %vm126_vm0, %v2409_v55 }
 0x29c   :  { %v1182_v59 = vpop.f32.mrf.mxu2 }
 0x29d   :  { %1675 = vst [vmem:[%s4725_s2 + $0x348] sm:$0xff] %v1182_v59  ;;  %2290 = vmatmul.msk.f32.gmra.mxu3 %vm126_vm0, %v2410_v6 }
 0x29f   :  { %v1477_v60 = vpop.f32.mrf.mxu0 }
 0x2a0   :  { %v1039_v25 = vpop.f32.mrf.mxu1  ;;  %v1331_v61 = vpop.f32.mrf.mxu3  ;;  %1686 = vst [vmem:[%s4725_s2 + $0x3a0] sm:$0xff] %v1477_v60  ;;  %v2423_v60 = vld [vmem:[%s4724_s0 + $0x148] sm:$0xff] }
 0x2a1   :  { %2247 = vmatmul.msk.f32.gmra.mxu2 %vm126_vm0, %v2410_v6  ;;  %1683 = vst [vmem:[%s4725_s2 + $0x388] sm:$0xff] %v1039_v25 }
 0x2a2   :  { %1685 = vst [vmem:[%s4725_s2 + $0x398] sm:$0xff] %v1331_v61  ;;  %2333 = vmatmul.msk.f32.gmra.mxu0 %vm126_vm0, %v2410_v6 }
 0x2a3   :  { %2204 = vmatmul.msk.f32.gmra.mxu1 %vm126_vm0, %v2410_v6 }
 0x2a4   :  { %v1185_v63 = vpop.f32.mrf.mxu2 }
 0x2a5   :  { %1684 = vst [vmem:[%s4725_s2 + $0x390] sm:$0xff] %v1185_v63  ;;  %2291 = vmatmul.msk.f32.gmra.mxu3 %vm126_vm0, %v2411_v17 }
 0x2a7   :  { %v1480_v1 = vpop.f32.mrf.mxu0 }
 0x2a8   :  { %v1042_v2 = vpop.f32.mrf.mxu1  ;;  %v1334_v3 = vpop.f32.mrf.mxu3  ;;  %1695 = vst [vmem:[%s4725_s2 + $0x3e8] sm:$0xff] %v1480_v1  ;;  %v2424_v1 = vld [vmem:[%s4724_s0 + $0x150] sm:$0xff] }
 0x2a9   :  { %2248 = vmatmul.msk.f32.gmra.mxu2 %vm126_vm0, %v2411_v17  ;;  %1692 = vst [vmem:[%s4725_s2 + $0x3d0] sm:$0xff] %v1042_v2 }
 0x2aa   :  { %1694 = vst [vmem:[%s4725_s2 + $0x3e0] sm:$0xff] %v1334_v3  ;;  %2334 = vmatmul.msk.f32.gmra.mxu0 %vm126_vm0, %v2411_v17 }
 0x2ab   :  { %2205 = vmatmul.msk.f32.gmra.mxu1 %vm126_vm0, %v2411_v17 }
 0x2ac   :  { %v1188_v21 = vpop.f32.mrf.mxu2 }
 0x2ad   :  { %1693 = vst [vmem:[%s4725_s2 + $0x3d8] sm:$0xff] %v1188_v21  ;;  %2292 = vmatmul.msk.f32.gmra.mxu3 %vm126_vm0, %v2412_v5 }
 0x2af   :  { %v1483_v7 = vpop.f32.mrf.mxu0 }
 0x2b0   :  { %v1045_v9 = vpop.f32.mrf.mxu1  ;;  %v1337_v28 = vpop.f32.mrf.mxu3  ;;  %1704 = vst [vmem:[%s4725_s2 + $0x430] sm:$0xff] %v1483_v7 }
 0x2b1   :  { %2249 = vmatmul.msk.f32.gmra.mxu2 %vm126_vm0, %v2412_v5  ;;  %1701 = vst [vmem:[%s4725_s2 + $0x418] sm:$0xff] %v1045_v9 }
 0x2b2   :  { %1703 = vst [vmem:[%s4725_s2 + $0x428] sm:$0xff] %v1337_v28  ;;  %2335 = vmatmul.msk.f32.gmra.mxu0 %vm126_vm0, %v2412_v5 }
 0x2b3   :  { %2206 = vmatmul.msk.f32.gmra.mxu1 %vm126_vm0, %v2412_v5 }
 0x2b4   :  { %v1191_v12 = vpop.f32.mrf.mxu2 }
 0x2b5   :  { %1702 = vst [vmem:[%s4725_s2 + $0x420] sm:$0xff] %v1191_v12  ;;  %2293 = vmatmul.msk.f32.gmra.mxu3 %vm126_vm0, %v2413_v13 }
 0x2b7   :  { %v1486_v14 = vpop.f32.mrf.mxu0 }
 0x2b8   :  { %v1048_v8 = vpop.f32.mrf.mxu1  ;;  %v1340_v16 = vpop.f32.mrf.mxu3  ;;  %1713 = vst [vmem:[%s4725_s2 + $0x478] sm:$0xff] %v1486_v14 }
 0x2b9   :  { %2250 = vmatmul.msk.f32.gmra.mxu2 %vm126_vm0, %v2413_v13  ;;  %1710 = vst [vmem:[%s4725_s2 + $0x460] sm:$0xff] %v1048_v8 }
 0x2ba   :  { %1712 = vst [vmem:[%s4725_s2 + $0x470] sm:$0xff] %v1340_v16  ;;  %2336 = vmatmul.msk.f32.gmra.mxu0 %vm126_vm0, %v2413_v13 }
 0x2bb   :  { %2207 = vmatmul.msk.f32.gmra.mxu1 %vm126_vm0, %v2413_v13 }
 0x2bc   :  { %v1194_v11 = vpop.f32.mrf.mxu2 }
 0x2bd   :  { %1711 = vst [vmem:[%s4725_s2 + $0x468] sm:$0xff] %v1194_v11  ;;  %2294 = vmatmul.msk.f32.gmra.mxu3 %vm126_vm0, %v2414_v18 }
 0x2bf   :  { %v1489_v20 = vpop.f32.mrf.mxu0 }
 0x2c0   :  { %v1051_v23 = vpop.f32.mrf.mxu1  ;;  %v1343_v22 = vpop.f32.mrf.mxu3  ;;  %1722 = vst [vmem:[%s4725_s2 + $0x4c0] sm:$0xff] %v1489_v20 }
 0x2c1   :  { %2251 = vmatmul.msk.f32.gmra.mxu2 %vm126_vm0, %v2414_v18  ;;  %1719 = vst [vmem:[%s4725_s2 + $0x4a8] sm:$0xff] %v1051_v23 }
 0x2c2   :  { %1721 = vst [vmem:[%s4725_s2 + $0x4b8] sm:$0xff] %v1343_v22  ;;  %2337 = vmatmul.msk.f32.gmra.mxu0 %vm126_vm0, %v2414_v18 }
 0x2c3   :  { %2208 = vmatmul.msk.f32.gmra.mxu1 %vm126_vm0, %v2414_v18 }
 0x2c4   :  { %v1197_v27 = vpop.f32.mrf.mxu2 }
 0x2c5   :  { %1720 = vst [vmem:[%s4725_s2 + $0x4b0] sm:$0xff] %v1197_v27  ;;  %2295 = vmatmul.msk.f32.gmra.mxu3 %vm126_vm0, %v2415_v26 }
 0x2c7   :  { %v1492_v29 = vpop.f32.mrf.mxu0 }
 0x2c8   :  { %v1054_v10 = vpop.f32.mrf.mxu1  ;;  %v1346_v24 = vpop.f32.mrf.mxu3  ;;  %1731 = vst [vmem:[%s4725_s2 + $0x508] sm:$0xff] %v1492_v29 }
 0x2c9   :  { %2252 = vmatmul.msk.f32.gmra.mxu2 %vm126_vm0, %v2415_v26  ;;  %1728 = vst [vmem:[%s4725_s2 + $0x4f0] sm:$0xff] %v1054_v10 }
 0x2ca   :  { %1730 = vst [vmem:[%s4725_s2 + $0x500] sm:$0xff] %v1346_v24  ;;  %2338 = vmatmul.msk.f32.gmra.mxu0 %vm126_vm0, %v2415_v26 }
 0x2cb   :  { %2209 = vmatmul.msk.f32.gmra.mxu1 %vm126_vm0, %v2415_v26 }
 0x2cc   :  { %v1200_v33 = vpop.f32.mrf.mxu2 }
 0x2cd   :  { %1729 = vst [vmem:[%s4725_s2 + $0x4f8] sm:$0xff] %v1200_v33  ;;  %2296 = vmatmul.msk.f32.gmra.mxu3 %vm126_vm0, %v2416_v30 }
 0x2cf   :  { %v1495_v31 = vpop.f32.mrf.mxu0 }
 0x2d0   :  { %v1057_v32 = vpop.f32.mrf.mxu1  ;;  %v1349_v41 = vpop.f32.mrf.mxu3  ;;  %1740 = vst [vmem:[%s4725_s2 + $0x550] sm:$0xff] %v1495_v31 }
 0x2d1   :  { %2253 = vmatmul.msk.f32.gmra.mxu2 %vm126_vm0, %v2416_v30  ;;  %1737 = vst [vmem:[%s4725_s2 + $0x538] sm:$0xff] %v1057_v32 }
 0x2d2   :  { %1739 = vst [vmem:[%s4725_s2 + $0x548] sm:$0xff] %v1349_v41  ;;  %2339 = vmatmul.msk.f32.gmra.mxu0 %vm126_vm0, %v2416_v30 }
 0x2d3   :  { %2210 = vmatmul.msk.f32.gmra.mxu1 %vm126_vm0, %v2416_v30 }
 0x2d4   :  { %v1203_v35 = vpop.f32.mrf.mxu2 }
 0x2d5   :  { %1738 = vst [vmem:[%s4725_s2 + $0x540] sm:$0xff] %v1203_v35  ;;  %2297 = vmatmul.msk.f32.gmra.mxu3 %vm126_vm0, %v2417_v34 }
 0x2d7   :  { %v1498_v36 = vpop.f32.mrf.mxu0 }
 0x2d8   :  { %v1060_v48 = vpop.f32.mrf.mxu1  ;;  %v1352_v37 = vpop.f32.mrf.mxu3  ;;  %1749 = vst [vmem:[%s4725_s2 + $0x598] sm:$0xff] %v1498_v36 }
 0x2d9   :  { %2254 = vmatmul.msk.f32.gmra.mxu2 %vm126_vm0, %v2417_v34  ;;  %1746 = vst [vmem:[%s4725_s2 + $0x580] sm:$0xff] %v1060_v48 }
 0x2da   :  { %1748 = vst [vmem:[%s4725_s2 + $0x590] sm:$0xff] %v1352_v37  ;;  %2340 = vmatmul.msk.f32.gmra.mxu0 %vm126_vm0, %v2417_v34 }
 0x2db   :  { %2211 = vmatmul.msk.f32.gmra.mxu1 %vm126_vm0, %v2417_v34 }
 0x2dc   :  { %v1206_v43 = vpop.f32.mrf.mxu2 }
 0x2dd   :  { %1747 = vst [vmem:[%s4725_s2 + $0x588] sm:$0xff] %v1206_v43  ;;  %2298 = vmatmul.msk.f32.gmra.mxu3 %vm126_vm0, %v2418_v38 }
 0x2df   :  { %v1501_v54 = vpop.f32.mrf.mxu0 }
 0x2e0   :  { %v1063_v39 = vpop.f32.mrf.mxu1  ;;  %v1355_v40 = vpop.f32.mrf.mxu3  ;;  %1758 = vst [vmem:[%s4725_s2 + $0x5e0] sm:$0xff] %v1501_v54 }
 0x2e1   :  { %2255 = vmatmul.msk.f32.gmra.mxu2 %vm126_vm0, %v2418_v38  ;;  %1755 = vst [vmem:[%s4725_s2 + $0x5c8] sm:$0xff] %v1063_v39 }
 0x2e2   :  { %1757 = vst [vmem:[%s4725_s2 + $0x5d8] sm:$0xff] %v1355_v40  ;;  %2341 = vmatmul.msk.f32.gmra.mxu0 %vm126_vm0, %v2418_v38 }
 0x2e3   :  { %2212 = vmatmul.msk.f32.gmra.mxu1 %vm126_vm0, %v2418_v38 }
 0x2e4   :  { %v1209_v50 = vpop.f32.mrf.mxu2 }
 0x2e5   :  { %1756 = vst [vmem:[%s4725_s2 + $0x5d0] sm:$0xff] %v1209_v50  ;;  %2299 = vmatmul.msk.f32.gmra.mxu3 %vm126_vm0, %v2419_v42 }
 0x2e7   :  { %v1504_v44 = vpop.f32.mrf.mxu0 }
 0x2e8   :  { %v1066_v62 = vpop.f32.mrf.mxu1  ;;  %v1358_v45 = vpop.f32.mrf.mxu3  ;;  %1767 = vst [vmem:[%s4725_s2 + $0x628] sm:$0xff] %v1504_v44 }
 0x2e9   :  { %2256 = vmatmul.msk.f32.gmra.mxu2 %vm126_vm0, %v2419_v42  ;;  %1764 = vst [vmem:[%s4725_s2 + $0x610] sm:$0xff] %v1066_v62 }
 0x2ea   :  { %1766 = vst [vmem:[%s4725_s2 + $0x620] sm:$0xff] %v1358_v45  ;;  %2342 = vmatmul.msk.f32.gmra.mxu0 %vm126_vm0, %v2419_v42 }
 0x2eb   :  { %2213 = vmatmul.msk.f32.gmra.mxu1 %vm126_vm0, %v2419_v42 }
 0x2ec   :  { %v1212_v56 = vpop.f32.mrf.mxu2 }
 0x2ed   :  { %1765 = vst [vmem:[%s4725_s2 + $0x618] sm:$0xff] %v1212_v56  ;;  %2300 = vmatmul.msk.f32.gmra.mxu3 %vm126_vm0, %v2420_v46 }
 0x2ef   :  { %v1507_v47 = vpop.f32.mrf.mxu0 }
 0x2f0   :  { %v1069_v49 = vpop.f32.mrf.mxu1  ;;  %v1361_v4 = vpop.f32.mrf.mxu3  ;;  %1776 = vst [vmem:[%s4725_s2 + $0x670] sm:$0xff] %v1507_v47 }
 0x2f1   :  { %2257 = vmatmul.msk.f32.gmra.mxu2 %vm126_vm0, %v2420_v46  ;;  %1773 = vst [vmem:[%s4725_s2 + $0x658] sm:$0xff] %v1069_v49 }
 0x2f2   :  { %1775 = vst [vmem:[%s4725_s2 + $0x668] sm:$0xff] %v1361_v4  ;;  %2343 = vmatmul.msk.f32.gmra.mxu0 %vm126_vm0, %v2420_v46 }
 0x2f3   :  { %2214 = vmatmul.msk.f32.gmra.mxu1 %vm126_vm0, %v2420_v46 }
 0x2f4   :  { %v1215_v0 = vpop.f32.mrf.mxu2 }
 0x2f5   :  { %1774 = vst [vmem:[%s4725_s2 + $0x660] sm:$0xff] %v1215_v0  ;;  %2301 = vmatmul.msk.f32.gmra.mxu3 %vm126_vm0, %v2421_v51 }
 0x2f7   :  { %v1510_v52 = vpop.f32.mrf.mxu0 }
 0x2f8   :  { %v1072_v15 = vpop.f32.mrf.mxu1  ;;  %v1364_v53 = vpop.f32.mrf.mxu3  ;;  %1785 = vst [vmem:[%s4725_s2 + $0x6b8] sm:$0xff] %v1510_v52 }
 0x2f9   :  { %2258 = vmatmul.msk.f32.gmra.mxu2 %vm126_vm0, %v2421_v51  ;;  %1782 = vst [vmem:[%s4725_s2 + $0x6a0] sm:$0xff] %v1072_v15 }
 0x2fa   :  { %1784 = vst [vmem:[%s4725_s2 + $0x6b0] sm:$0xff] %v1364_v53  ;;  %2344 = vmatmul.msk.f32.gmra.mxu0 %vm126_vm0, %v2421_v51 }
 0x2fb   :  { %2215 = vmatmul.msk.f32.gmra.mxu1 %vm126_vm0, %v2421_v51 }
 0x2fc   :  { %v1218_v55 = vpop.f32.mrf.mxu2 }
 0x2fd   :  { %1783 = vst [vmem:[%s4725_s2 + $0x6a8] sm:$0xff] %v1218_v55  ;;  %2302 = vmatmul.msk.f32.gmra.mxu3 %vm126_vm0, %v2422_v57 }
 0x2ff   :  { %v1513_v19 = vpop.f32.mrf.mxu0 }
 0x300   :  { %v1075_v58 = vpop.f32.mrf.mxu1  ;;  %v1367_v59 = vpop.f32.mrf.mxu3  ;;  %1794 = vst [vmem:[%s4725_s2 + $0x700] sm:$0xff] %v1513_v19 }
 0x301   :  { %2259 = vmatmul.msk.f32.gmra.mxu2 %vm126_vm0, %v2422_v57  ;;  %1791 = vst [vmem:[%s4725_s2 + $0x6e8] sm:$0xff] %v1075_v58 }
 0x302   :  { %1793 = vst [vmem:[%s4725_s2 + $0x6f8] sm:$0xff] %v1367_v59  ;;  %2345 = vmatmul.msk.f32.gmra.mxu0 %vm126_vm0, %v2422_v57 }
 0x303   :  { %2216 = vmatmul.msk.f32.gmra.mxu1 %vm126_vm0, %v2422_v57 }
 0x304   :  { %v1221_v6 = vpop.f32.mrf.mxu2 }
 0x305   :  { %1792 = vst [vmem:[%s4725_s2 + $0x6f0] sm:$0xff] %v1221_v6  ;;  %2303 = vmatmul.msk.f32.gmra.mxu3 %vm126_vm0, %v2423_v60 }
 0x307   :  { %v1516_v25 = vpop.f32.mrf.mxu0 }
 0x308   :  { %v1078_v61 = vpop.f32.mrf.mxu1  ;;  %v1370_v63 = vpop.f32.mrf.mxu3  ;;  %1803 = vst [vmem:[%s4725_s2 + $0x748] sm:$0xff] %v1516_v25 }
 0x309   :  { %2260 = vmatmul.msk.f32.gmra.mxu2 %vm126_vm0, %v2423_v60  ;;  %1800 = vst [vmem:[%s4725_s2 + $0x730] sm:$0xff] %v1078_v61 }
 0x30a   :  { %1802 = vst [vmem:[%s4725_s2 + $0x740] sm:$0xff] %v1370_v63  ;;  %2346 = vmatmul.msk.f32.gmra.mxu0 %vm126_vm0, %v2423_v60 }
 0x30b   :  { %2217 = vmatmul.msk.f32.gmra.mxu1 %vm126_vm0, %v2423_v60 }
 0x30c   :  { %v1224_v17 = vpop.f32.mrf.mxu2 }
 0x30d   :  { %1801 = vst [vmem:[%s4725_s2 + $0x738] sm:$0xff] %v1224_v17  ;;  %2304 = vmatmul.msk.f32.gmra.mxu3 %vm126_vm0, %v2424_v1 }
 0x30f   :  { %v1519_v2 = vpop.f32.mrf.mxu0 }
 0x310   :  { %v1081_v3 = vpop.f32.mrf.mxu1  ;;  %v1373_v21 = vpop.f32.mrf.mxu3  ;;  %1812 = vst [vmem:[%s4725_s2 + $0x790] sm:$0xff] %v1519_v2 }
 0x311   :  { %2261 = vmatmul.msk.f32.gmra.mxu2 %vm126_vm0, %v2424_v1  ;;  %1809 = vst [vmem:[%s4725_s2 + $0x778] sm:$0xff] %v1081_v3 }
 0x312   :  { %1811 = vst [vmem:[%s4725_s2 + $0x788] sm:$0xff] %v1373_v21  ;;  %2347 = vmatmul.msk.f32.gmra.mxu0 %vm126_vm0, %v2424_v1 }
 0x313   :  { %2218 = vmatmul.msk.f32.gmra.mxu1 %vm126_vm0, %v2424_v1 }
 0x314   :  { %v1227_v5 = vpop.f32.mrf.mxu2 }
 0x315   :  { %1810 = vst [vmem:[%s4725_s2 + $0x780] sm:$0xff] %v1227_v5 }
 0x317   :  { %v1522_v7 = vpop.f32.mrf.mxu0 }
 0x318   :  { %v1084_v9 = vpop.f32.mrf.mxu1  ;;  %v1376_v28 = vpop.f32.mrf.mxu3  ;;  %1821 = vst [vmem:[%s4725_s2 + $0x7d8] sm:$0xff] %v1522_v7 }
 0x319   :  { %1818 = vst [vmem:[%s4725_s2 + $0x7c0] sm:$0xff] %v1084_v9 }
 0x31a   :  { %1820 = vst [vmem:[%s4725_s2 + $0x7d0] sm:$0xff] %v1376_v28 }
 0x31c   :  { %v1230_v12 = vpop.f32.mrf.mxu2 }
 0x31d   :  { %1819 = vst [vmem:[%s4725_s2 + $0x7c8] sm:$0xff] %v1230_v12 }
 0x31f   :  { %v1525_v13 = vpop.f32.mrf.mxu0 }
 0x320   :  { %v1087_v14 = vpop.f32.mrf.mxu1  ;;  %v1379_v8 = vpop.f32.mrf.mxu3  ;;  %1830 = vst [vmem:[%s4725_s2 + $0x820] sm:$0xff] %v1525_v13 }
 0x321   :  { %1827 = vst [vmem:[%s4725_s2 + $0x808] sm:$0xff] %v1087_v14 }
 0x322   :  { %1829 = vst [vmem:[%s4725_s2 + $0x818] sm:$0xff] %v1379_v8 }
 0x324   :  { %v1233_v16 = vpop.f32.mrf.mxu2 }
 0x325   :  { %1828 = vst [vmem:[%s4725_s2 + $0x810] sm:$0xff] %v1233_v16 }
 0x327   :  { %v1528_v11 = vpop.f32.mrf.mxu0 }
 0x328   :  { %v1090_v18 = vpop.f32.mrf.mxu1  ;;  %v1382_v20 = vpop.f32.mrf.mxu3  ;;  %1839 = vst [vmem:[%s4725_s2 + $0x868] sm:$0xff] %v1528_v11 }
 0x329   :  { %1836 = vst [vmem:[%s4725_s2 + $0x850] sm:$0xff] %v1090_v18 }
 0x32a   :  { %1838 = vst [vmem:[%s4725_s2 + $0x860] sm:$0xff] %v1382_v20 }
 0x32c   :  { %v1236_v23 = vpop.f32.mrf.mxu2 }
 0x32d   :  { %1837 = vst [vmem:[%s4725_s2 + $0x858] sm:$0xff] %v1236_v23 }
 0x32f   :  { %v1531_v22 = vpop.f32.mrf.mxu0 }
 0x330   :  { %v1093_v27 = vpop.f32.mrf.mxu1  ;;  %v1385_v26 = vpop.f32.mrf.mxu3  ;;  %1848 = vst [vmem:[%s4725_s2 + $0x8b0] sm:$0xff] %v1531_v22 }
 0x331   :  { %1845 = vst [vmem:[%s4725_s2 + $0x898] sm:$0xff] %v1093_v27 }
 0x332   :  { %1847 = vst [vmem:[%s4725_s2 + $0x8a8] sm:$0xff] %v1385_v26 }
 0x334   :  { %v1239_v29 = vpop.f32.mrf.mxu2 }
 0x335   :  { %1846 = vst [vmem:[%s4725_s2 + $0x8a0] sm:$0xff] %v1239_v29 }
 0x337   :  { %v1534_v10 = vpop.f32.mrf.mxu0 }
 0x338   :  { %v1096_v24 = vpop.f32.mrf.mxu1  ;;  %v1388_v33 = vpop.f32.mrf.mxu3  ;;  %1857 = vst [vmem:[%s4725_s2 + $0x8f8] sm:$0xff] %v1534_v10 }
 0x339   :  { %1854 = vst [vmem:[%s4725_s2 + $0x8e0] sm:$0xff] %v1096_v24 }
 0x33a   :  { %1856 = vst [vmem:[%s4725_s2 + $0x8f0] sm:$0xff] %v1388_v33 }
 0x33c   :  { %v1242_v30 = vpop.f32.mrf.mxu2 }
 0x33d   :  { %1855 = vst [vmem:[%s4725_s2 + $0x8e8] sm:$0xff] %v1242_v30 }
 0x33f   :  { %v1537_v31 = vpop.f32.mrf.mxu0 }
 0x340   :  { %v1099_v32 = vpop.f32.mrf.mxu1  ;;  %v1391_v41 = vpop.f32.mrf.mxu3  ;;  %1866 = vst [vmem:[%s4725_s2 + $0x940] sm:$0xff] %v1537_v31 }
 0x341   :  { %1863 = vst [vmem:[%s4725_s2 + $0x928] sm:$0xff] %v1099_v32 }
 0x342   :  { %1865 = vst [vmem:[%s4725_s2 + $0x938] sm:$0xff] %v1391_v41 }
 0x344   :  { %v1245_v35 = vpop.f32.mrf.mxu2 }
 0x345   :  { %1864 = vst [vmem:[%s4725_s2 + $0x930] sm:$0xff] %v1245_v35 }
 0x347   :  { %v1540_v34 = vpop.f32.mrf.mxu0 }
 0x348   :  { %v1102_v36 = vpop.f32.mrf.mxu1  ;;  %v1394_v48 = vpop.f32.mrf.mxu3  ;;  %1875 = vst [vmem:[%s4725_s2 + $0x988] sm:$0xff] %v1540_v34 }
 0x349   :  { %1872 = vst [vmem:[%s4725_s2 + $0x970] sm:$0xff] %v1102_v36 }
 0x34a   :  { %1874 = vst [vmem:[%s4725_s2 + $0x980] sm:$0xff] %v1394_v48 }
 0x34c   :  { %v1248_v37 = vpop.f32.mrf.mxu2 }
 0x34d   :  { %1873 = vst [vmem:[%s4725_s2 + $0x978] sm:$0xff] %v1248_v37 }
 0x34f   :  { %v1543_v43 = vpop.f32.mrf.mxu0 }
 0x350   :  { %v1105_v38 = vpop.f32.mrf.mxu1  ;;  %v1397_v54 = vpop.f32.mrf.mxu3  ;;  %1884 = vst [vmem:[%s4725_s2 + $0x9d0] sm:$0xff] %v1543_v43 }
 0x351   :  { %1881 = vst [vmem:[%s4725_s2 + $0x9b8] sm:$0xff] %v1105_v38 }
 0x352   :  { %1883 = vst [vmem:[%s4725_s2 + $0x9c8] sm:$0xff] %v1397_v54 }
 0x354   :  { %v1251_v39 = vpop.f32.mrf.mxu2 }
 0x355   :  { %1882 = vst [vmem:[%s4725_s2 + $0x9c0] sm:$0xff] %v1251_v39 }
 0x357   :  { %v1546_v40 = vpop.f32.mrf.mxu0 }
 0x358   :  { %v1108_v50 = vpop.f32.mrf.mxu1  ;;  %v1400_v42 = vpop.f32.mrf.mxu3  ;;  %1893 = vst [vmem:[%s4725_s2 + $0xa18] sm:$0xff] %v1546_v40 }
 0x359   :  { %1890 = vst [vmem:[%s4725_s2 + $0xa00] sm:$0xff] %v1108_v50 }
 0x35a   :  { %1892 = vst [vmem:[%s4725_s2 + $0xa10] sm:$0xff] %v1400_v42 }
 0x35c   :  { %v1254_v44 = vpop.f32.mrf.mxu2 }
 0x35d   :  { %1891 = vst [vmem:[%s4725_s2 + $0xa08] sm:$0xff] %v1254_v44 }
 0x35f   :  { %v1549_v62 = vpop.f32.mrf.mxu0 }
 0x360   :  { %v1111_v45 = vpop.f32.mrf.mxu1  ;;  %v1403_v56 = vpop.f32.mrf.mxu3  ;;  %1902 = vst [vmem:[%s4725_s2 + $0xa60] sm:$0xff] %v1549_v62 }
 0x361   :  { %1899 = vst [vmem:[%s4725_s2 + $0xa48] sm:$0xff] %v1111_v45 }
 0x362   :  { %1901 = vst [vmem:[%s4725_s2 + $0xa58] sm:$0xff] %v1403_v56 }
 0x364   :  { %v1257_v46 = vpop.f32.mrf.mxu2 }
 0x365   :  { %1900 = vst [vmem:[%s4725_s2 + $0xa50] sm:$0xff] %v1257_v46 }
 0x367   :  { %v1552_v47 = vpop.f32.mrf.mxu0 }
 0x368   :  { %v1114_v49 = vpop.f32.mrf.mxu1  ;;  %v1406_v4 = vpop.f32.mrf.mxu3  ;;  %1911 = vst [vmem:[%s4725_s2 + $0xaa8] sm:$0xff] %v1552_v47 }
 0x369   :  { %1908 = vst [vmem:[%s4725_s2 + $0xa90] sm:$0xff] %v1114_v49 }
 0x36a   :  { %1910 = vst [vmem:[%s4725_s2 + $0xaa0] sm:$0xff] %v1406_v4 }
 0x36c   :  { %v1260_v0 = vpop.f32.mrf.mxu2 }
 0x36d   :  { %1909 = vst [vmem:[%s4725_s2 + $0xa98] sm:$0xff] %v1260_v0 }
 0x36f   :  { %v1555_v51 = vpop.f32.mrf.mxu0 }
 0x370   :  { %v1117_v52 = vpop.f32.mrf.mxu1  ;;  %v1409_v15 = vpop.f32.mrf.mxu3  ;;  %1920 = vst [vmem:[%s4725_s2 + $0xaf0] sm:$0xff] %v1555_v51 }
 0x371   :  { %1917 = vst [vmem:[%s4725_s2 + $0xad8] sm:$0xff] %v1117_v52 }
 0x372   :  { %1919 = vst [vmem:[%s4725_s2 + $0xae8] sm:$0xff] %v1409_v15 }
 0x374   :  { %v1263_v53 = vpop.f32.mrf.mxu2 }
 0x375   :  { %1918 = vst [vmem:[%s4725_s2 + $0xae0] sm:$0xff] %v1263_v53 }
 0x377   :  { %v1558_v55 = vpop.f32.mrf.mxu0 }
 0x378   :  { %v1120_v57 = vpop.f32.mrf.mxu1  ;;  %v1412_v19 = vpop.f32.mrf.mxu3  ;;  %1929 = vst [vmem:[%s4725_s2 + $0xb38] sm:$0xff] %v1558_v55 }
 0x379   :  { %1926 = vst [vmem:[%s4725_s2 + $0xb20] sm:$0xff] %v1120_v57 }
 0x37a   :  { %1928 = vst [vmem:[%s4725_s2 + $0xb30] sm:$0xff] %v1412_v19 }
 0x37c   :  { %v1266_v58 = vpop.f32.mrf.mxu2 }
 0x37d   :  { %1927 = vst [vmem:[%s4725_s2 + $0xb28] sm:$0xff] %v1266_v58 }
 0x37f   :  { %v1561_v59 = vpop.f32.mrf.mxu0 }
 0x380   :  { %v1123_v6 = vpop.f32.mrf.mxu1  ;;  %v1415_v60 = vpop.f32.mrf.mxu3  ;;  %1938 = vst [vmem:[%s4725_s2 + $0xb80] sm:$0xff] %v1561_v59 }
 0x381   :  { %1935 = vst [vmem:[%s4725_s2 + $0xb68] sm:$0xff] %v1123_v6 }
 0x382   :  { %1937 = vst [vmem:[%s4725_s2 + $0xb78] sm:$0xff] %v1415_v60 }
 0x384   :  { %v1269_v25 = vpop.f32.mrf.mxu2 }
 0x385   :  { %1936 = vst [vmem:[%s4725_s2 + $0xb70] sm:$0xff] %v1269_v25 }
 0x387   :  { %v1564_v61 = vpop.f32.mrf.mxu0 }
 0x388   :  { %v1126_v63 = vpop.f32.mrf.mxu1  ;;  %v1418_v17 = vpop.f32.mrf.mxu3  ;;  %1947 = vst [vmem:[%s4725_s2 + $0xbc8] sm:$0xff] %v1564_v61 }
 0x389   :  { %1944 = vst [vmem:[%s4725_s2 + $0xbb0] sm:$0xff] %v1126_v63 }
 0x38a   :  { %1946 = vst [vmem:[%s4725_s2 + $0xbc0] sm:$0xff] %v1418_v17 }
 0x38c   :  { %v1272_v1 = vpop.f32.mrf.mxu2 }
 0x38d   :  { %1945 = vst [vmem:[%s4725_s2 + $0xbb8] sm:$0xff] %v1272_v1 }
 0x38f   :  { %v1567_v2 = vpop.f32.mrf.mxu0 }
 0x390   :  { %v1129_v3 = vpop.f32.mrf.mxu1  ;;  %v1421_v21 = vpop.f32.mrf.mxu3  ;;  %1956 = vst [vmem:[%s4725_s2 + $0xc10] sm:$0xff] %v1567_v2 }
 0x391   :  { %1953 = vst [vmem:[%s4725_s2 + $0xbf8] sm:$0xff] %v1129_v3 }
 0x392   :  { %1955 = vst [vmem:[%s4725_s2 + $0xc08] sm:$0xff] %v1421_v21 }
 0x394   :  { %v1275_v5 = vpop.f32.mrf.mxu2 }
 0x395   :  { %1954 = vst [vmem:[%s4725_s2 + $0xc00] sm:$0xff] %v1275_v5 }

// kernel: decoder_forward_pallas.7
= control target key start
LH: loop header
LB: loop body
LE: loop exit
PB: predicated region body
PF: predicated region fallthrough
CT: control target
= control target key end

     0   :  { %s791_s9 = smov 0   ;;  %s1059_s0 = inlined_call_operand.vmem [shape: f32[1824,32], index: 0, kind: input, shape index: {}]   ;;  %s1060_s1 = inlined_call_operand.vmem [shape: f32[32,108], index: 1, kind: input, shape index: {}]   ;;  %s1061_s2 = inlined_call_operand.vmem [shape: f32[1824,108], index: 2, kind: output, shape index: {}]  }
   0x1 LB: > { %s682_s10 = sadd.s32 4294967295, %s774_s9   ;;  %p686_p0 = scmp.ge.s32.totalorder %s774_s9, 1  ;;  %s774_s9 = sphi %s791_s9, %s12_s9  }
   0x2   : > { %p113_p1 = scmp.lt.s32.totalorder %s774_s9, 5 }
   0x4   : > { %p114_p2 = pnand %p686_p0, %p113_p1 }
   0x5   : > { %s135_s15 = smul.u32 (!%p114_p2), 57, %s682_s10 }
   0x6   : > { %117 = sbr.rel (%p114_p2) target bundleno = 265 (0x109), region = 28 }
   0x7   : > { %p136_p3 = scmp.lt.s32.totalorder (!%p114_p2), %s135_s15, 227 }
   0xb   : > { %v207_v0 = vld [vmem:[%s1060_s1 + $0x18] sm:$0xff]  ;;  %v206_v1 = vld [vmem:[%s1060_s1 + $0x10] sm:$0xff]  ;;  %v205_v2 = vld [vmem:[%s1060_s1 + $0x8] sm:$0xff]  ;;  %s1063_s15 = smov (!%p136_p3, %s135_s15), 227  ;;  %vm208_vm0 = vcmask 261120   ;;  %vm568_vm1 = vcmask 883712  }
   0xc   : > { %749 = vmatpush.msra.mxu2 %v207_v0  ;;  %750 = vmatpush.msra.mxu3 %v207_v0  ;;  %v204_v3 = vld [vmem:[%s1060_s1] sm:$0xff]  ;;  %s687_s20 = sshll.u32 %s1063_s15, 3 }
   0xd   : > { %392 = vmatpush.msra.mxu0 %v207_v0  ;;  %748 = vmatpush.msra.mxu1 %v207_v0  ;;  %s819_s23 = scalar_lea.vmem %s1059_s0, %s687_s20  ;;  %s940_s26 = scalar_lea.vmem %s1061_s2, %s687_s20 }
   0xe   : > { %752 = vmatpush.msra.mxu2 %v206_v1  ;;  %753 = vmatpush.msra.mxu3 %v206_v1  ;;  %v175_v4 = vld [vmem:[%s819_s23 + $0xe0] sm:$0xff]  ;;  %v190_v5 = vld [vmem:[%s819_s23 + $0x158] sm:$0xff]  ;;  %v161_v7 = vld [vmem:[%s819_s23 + $0x70] sm:$0xff] }
   0xf   : > { %393 = vmatpush.msra.mxu0 %v206_v1  ;;  %751 = vmatpush.msra.mxu1 %v206_v1  ;;  %v147_v6 = vld [vmem:[%s819_s23] sm:$0xff]  ;;  %v176_v8 = vld [vmem:[%s819_s23 + $0xe8] sm:$0xff]  ;;  %v162_v11 = vld [vmem:[%s819_s23 + $0x78] sm:$0xff] }
  0x10   : > { %755 = vmatpush.msra.mxu2 %v205_v2  ;;  %756 = vmatpush.msra.mxu3 %v205_v2  ;;  %v191_v9 = vld [vmem:[%s819_s23 + $0x160] sm:$0xff]  ;;  %v148_v10 = vld [vmem:[%s819_s23 + $0x8] sm:$0xff]  ;;  %v177_v12 = vld [vmem:[%s819_s23 + $0xf0] sm:$0xff] }
  0x11   : > { %394 = vmatpush.msra.mxu0 %v205_v2  ;;  %754 = vmatpush.msra.mxu1 %v205_v2  ;;  %v192_v13 = vld [vmem:[%s819_s23 + $0x168] sm:$0xff]  ;;  %v149_v14 = vld [vmem:[%s819_s23 + $0x10] sm:$0xff]  ;;  %v163_v15 = vld [vmem:[%s819_s23 + $0x80] sm:$0xff] }
  0x12   : > { %758 = vmatpush.msra.mxu2 %v204_v3  ;;  %759 = vmatpush.msra.mxu3 %v204_v3  ;;  %v178_v16 = vld [vmem:[%s819_s23 + $0xf8] sm:$0xff]  ;;  %v193_v17 = vld [vmem:[%s819_s23 + $0x170] sm:$0xff]  ;;  %v164_v19 = vld [vmem:[%s819_s23 + $0x88] sm:$0xff] }
  0x13   : > { %395 = vmatpush.msra.mxu0 %v204_v3  ;;  %757 = vmatpush.msra.mxu1 %v204_v3  ;;  %v150_v18 = vld [vmem:[%s819_s23 + $0x18] sm:$0xff]  ;;  %v179_v20 = vld [vmem:[%s819_s23 + $0x100] sm:$0xff]  ;;  %v165_v23 = vld [vmem:[%s819_s23 + $0x90] sm:$0xff] }
  0x14   : > { %717 = vmatmul.msk.f32.vlgmr.msra.gmra.mxu2 %vm208_vm0, %v175_v4  ;;  %732 = vmatmul.msk.f32.vlgmr.msra.gmra.mxu3 %vm208_vm0, %v190_v5  ;;  %v194_v21 = vld [vmem:[%s819_s23 + $0x178] sm:$0xff]  ;;  %v151_v22 = vld [vmem:[%s819_s23 + $0x20] sm:$0xff]  ;;  %v180_v24 = vld [vmem:[%s819_s23 + $0x108] sm:$0xff] }
  0x15   : > { %689 = vmatmul.msk.f32.vlgmr.msra.gmra.mxu0 %vm208_vm0, %v147_v6  ;;  %703 = vmatmul.msk.f32.vlgmr.msra.gmra.mxu1 %vm208_vm0, %v161_v7  ;;  %v195_v25 = vld [vmem:[%s819_s23 + $0x180] sm:$0xff]  ;;  %v152_v26 = vld [vmem:[%s819_s23 + $0x28] sm:$0xff]  ;;  %v166_v27 = vld [vmem:[%s819_s23 + $0x98] sm:$0xff] }
  0x16   : > { %v181_v28 = vld [vmem:[%s819_s23 + $0x110] sm:$0xff]  ;;  %v196_v29 = vld [vmem:[%s819_s23 + $0x188] sm:$0xff]  ;;  %v167_v31 = vld [vmem:[%s819_s23 + $0xa0] sm:$0xff] }
  0x17   : > { %v153_v30 = vld [vmem:[%s819_s23 + $0x30] sm:$0xff]  ;;  %v182_v32 = vld [vmem:[%s819_s23 + $0x118] sm:$0xff]  ;;  %v168_v35 = vld [vmem:[%s819_s23 + $0xa8] sm:$0xff] }
  0x18   : > { %v197_v33 = vld [vmem:[%s819_s23 + $0x190] sm:$0xff]  ;;  %v154_v34 = vld [vmem:[%s819_s23 + $0x38] sm:$0xff]  ;;  %v183_v36 = vld [vmem:[%s819_s23 + $0x120] sm:$0xff] }
  0x19   : > { %v198_v37 = vld [vmem:[%s819_s23 + $0x198] sm:$0xff]  ;;  %v155_v38 = vld [vmem:[%s819_s23 + $0x40] sm:$0xff]  ;;  %v169_v39 = vld [vmem:[%s819_s23 + $0xb0] sm:$0xff] }
  0x1a   : > { %v184_v40 = vld [vmem:[%s819_s23 + $0x128] sm:$0xff]  ;;  %v199_v41 = vld [vmem:[%s819_s23 + $0x1a0] sm:$0xff]  ;;  %v170_v43 = vld [vmem:[%s819_s23 + $0xb8] sm:$0xff] }
  0x1b   : > { %v156_v42 = vld [vmem:[%s819_s23 + $0x48] sm:$0xff]  ;;  %v185_v44 = vld [vmem:[%s819_s23 + $0x130] sm:$0xff]  ;;  %v171_v47 = vld [vmem:[%s819_s23 + $0xc0] sm:$0xff] }
  0x1c   : > { %718 = vmatmul.msk.f32.gmra.mxu2 %vm208_vm0, %v176_v8  ;;  %733 = vmatmul.msk.f32.gmra.mxu3 %vm208_vm0, %v191_v9  ;;  %v200_v45 = vld [vmem:[%s819_s23 + $0x1a8] sm:$0xff]  ;;  %v157_v46 = vld [vmem:[%s819_s23 + $0x50] sm:$0xff]  ;;  %v186_v48 = vld [vmem:[%s819_s23 + $0x138] sm:$0xff] }
  0x1d   : > { %690 = vmatmul.msk.f32.gmra.mxu0 %vm208_vm0, %v148_v10  ;;  %704 = vmatmul.msk.f32.gmra.mxu1 %vm208_vm0, %v162_v11  ;;  %v201_v49 = vld [vmem:[%s819_s23 + $0x1b0] sm:$0xff]  ;;  %v158_v50 = vld [vmem:[%s819_s23 + $0x58] sm:$0xff]  ;;  %v172_v51 = vld [vmem:[%s819_s23 + $0xc8] sm:$0xff] }
  0x1e   : > { %v187_v52 = vld [vmem:[%s819_s23 + $0x140] sm:$0xff]  ;;  %v202_v53 = vld [vmem:[%s819_s23 + $0x1b8] sm:$0xff]  ;;  %v173_v55 = vld [vmem:[%s819_s23 + $0xd0] sm:$0xff] }
  0x1f   : > { %v159_v54 = vld [vmem:[%s819_s23 + $0x60] sm:$0xff]  ;;  %v188_v56 = vld [vmem:[%s819_s23 + $0x148] sm:$0xff]  ;;  %v174_v59 = vld [vmem:[%s819_s23 + $0xd8] sm:$0xff] }
  0x20   : > { %v203_v57 = vld [vmem:[%s819_s23 + $0x1c0] sm:$0xff]  ;;  %v160_v58 = vld [vmem:[%s819_s23 + $0x68] sm:$0xff]  ;;  %v189_v60 = vld [vmem:[%s819_s23 + $0x150] sm:$0xff] }
  0x24   : > { %719 = vmatmul.msk.f32.gmra.mxu2 %vm208_vm0, %v177_v12  ;;  %734 = vmatmul.msk.f32.gmra.mxu3 %vm208_vm0, %v192_v13 }
  0x25   : > { %691 = vmatmul.msk.f32.gmra.mxu0 %vm208_vm0, %v149_v14  ;;  %705 = vmatmul.msk.f32.gmra.mxu1 %vm208_vm0, %v163_v15 }
  0x2c   : > { %720 = vmatmul.msk.f32.gmra.mxu2 %vm208_vm0, %v178_v16  ;;  %735 = vmatmul.msk.f32.gmra.mxu3 %vm208_vm0, %v193_v17 }
  0x2d   : > { %692 = vmatmul.msk.f32.gmra.mxu0 %vm208_vm0, %v150_v18  ;;  %706 = vmatmul.msk.f32.gmra.mxu1 %vm208_vm0, %v164_v19 }
  0x34   : > { %721 = vmatmul.msk.f32.gmra.mxu2 %vm208_vm0, %v179_v20  ;;  %736 = vmatmul.msk.f32.gmra.mxu3 %vm208_vm0, %v194_v21 }
  0x35   : > { %693 = vmatmul.msk.f32.gmra.mxu0 %vm208_vm0, %v151_v22  ;;  %707 = vmatmul.msk.f32.gmra.mxu1 %vm208_vm0, %v165_v23 }
  0x3c   : > { %722 = vmatmul.msk.f32.gmra.mxu2 %vm208_vm0, %v180_v24  ;;  %737 = vmatmul.msk.f32.gmra.mxu3 %vm208_vm0, %v195_v25 }
  0x3d   : > { %694 = vmatmul.msk.f32.gmra.mxu0 %vm208_vm0, %v152_v26  ;;  %708 = vmatmul.msk.f32.gmra.mxu1 %vm208_vm0, %v166_v27 }
  0x44   : > { %723 = vmatmul.msk.f32.gmra.mxu2 %vm208_vm0, %v181_v28  ;;  %738 = vmatmul.msk.f32.gmra.mxu3 %vm208_vm0, %v196_v29 }
  0x45   : > { %695 = vmatmul.msk.f32.gmra.mxu0 %vm208_vm0, %v153_v30  ;;  %709 = vmatmul.msk.f32.gmra.mxu1 %vm208_vm0, %v167_v31 }
  0x4c   : > { %724 = vmatmul.msk.f32.gmra.mxu2 %vm208_vm0, %v182_v32  ;;  %739 = vmatmul.msk.f32.gmra.mxu3 %vm208_vm0, %v197_v33 }
  0x4d   : > { %696 = vmatmul.msk.f32.gmra.mxu0 %vm208_vm0, %v154_v34  ;;  %710 = vmatmul.msk.f32.gmra.mxu1 %vm208_vm0, %v168_v35 }
  0x54   : > { %725 = vmatmul.msk.f32.gmra.mxu2 %vm208_vm0, %v183_v36  ;;  %740 = vmatmul.msk.f32.gmra.mxu3 %vm208_vm0, %v198_v37 }
  0x55   : > { %697 = vmatmul.msk.f32.gmra.mxu0 %vm208_vm0, %v155_v38  ;;  %711 = vmatmul.msk.f32.gmra.mxu1 %vm208_vm0, %v169_v39 }
  0x5c   : > { %726 = vmatmul.msk.f32.gmra.mxu2 %vm208_vm0, %v184_v40  ;;  %741 = vmatmul.msk.f32.gmra.mxu3 %vm208_vm0, %v199_v41 }
  0x5d   : > { %698 = vmatmul.msk.f32.gmra.mxu0 %vm208_vm0, %v156_v42  ;;  %712 = vmatmul.msk.f32.gmra.mxu1 %vm208_vm0, %v170_v43 }
  0x64   : > { %727 = vmatmul.msk.f32.gmra.mxu2 %vm208_vm0, %v185_v44  ;;  %742 = vmatmul.msk.f32.gmra.mxu3 %vm208_vm0, %v200_v45 }
  0x65   : > { %699 = vmatmul.msk.f32.gmra.mxu0 %vm208_vm0, %v157_v46  ;;  %713 = vmatmul.msk.f32.gmra.mxu1 %vm208_vm0, %v171_v47 }
  0x6c   : > { %728 = vmatmul.msk.f32.gmra.mxu2 %vm208_vm0, %v186_v48  ;;  %743 = vmatmul.msk.f32.gmra.mxu3 %vm208_vm0, %v201_v49 }
  0x6d   : > { %700 = vmatmul.msk.f32.gmra.mxu0 %vm208_vm0, %v158_v50  ;;  %714 = vmatmul.msk.f32.gmra.mxu1 %vm208_vm0, %v172_v51 }
  0x74   : > { %729 = vmatmul.msk.f32.gmra.mxu2 %vm208_vm0, %v187_v52  ;;  %744 = vmatmul.msk.f32.gmra.mxu3 %vm208_vm0, %v202_v53 }
  0x75   : > { %701 = vmatmul.msk.f32.gmra.mxu0 %vm208_vm0, %v159_v54  ;;  %715 = vmatmul.msk.f32.gmra.mxu1 %vm208_vm0, %v173_v55 }
  0x7c   : > { %730 = vmatmul.msk.f32.gmra.mxu2 %vm208_vm0, %v188_v56  ;;  %745 = vmatmul.msk.f32.gmra.mxu3 %vm208_vm0, %v203_v57 }
  0x7d   : > { %702 = vmatmul.msk.f32.gmra.mxu0 %vm208_vm0, %v160_v58  ;;  %716 = vmatmul.msk.f32.gmra.mxu1 %vm208_vm0, %v174_v59 }
  0x84   : > { %731 = vmatmul.msk.f32.gmra.mxu2 %vm208_vm0, %v189_v60 }
  0x92   : > { %v397_v61 = vpop.f32.mrf.mxu0  ;;  %v439_v62 = vpop.f32.mrf.mxu1 }
  0x93   : > { %569 = vst.msk [vmem:[%s940_s26] sm:$0xff] %vm568_vm1, %v397_v61 }
  0x94   : > { %583 = vst.msk [vmem:[%s940_s26 + $0x70] sm:$0xff] %vm568_vm1, %v439_v62 }
  0x97   : > { %v481_v63 = vpop.f32.mrf.mxu2  ;;  %v526_v0 = vpop.f32.mrf.mxu3 }
  0x98   : > { %597 = vst.msk [vmem:[%s940_s26 + $0xe0] sm:$0xff] %vm568_vm1, %v481_v63 }
  0x99   : > { %612 = vst.msk [vmem:[%s940_s26 + $0x158] sm:$0xff] %vm568_vm1, %v526_v0 }
  0x9a   : > { %v400_v1 = vpop.f32.mrf.mxu0  ;;  %v442_v2 = vpop.f32.mrf.mxu1 }
  0x9b   : > { %570 = vst.msk [vmem:[%s940_s26 + $0x8] sm:$0xff] %vm568_vm1, %v400_v1 }
  0x9c   : > { %584 = vst.msk [vmem:[%s940_s26 + $0x78] sm:$0xff] %vm568_vm1, %v442_v2 }
  0x9f   : > { %v484_v3 = vpop.f32.mrf.mxu2  ;;  %v529_v4 = vpop.f32.mrf.mxu3 }
  0xa0   : > { %598 = vst.msk [vmem:[%s940_s26 + $0xe8] sm:$0xff] %vm568_vm1, %v484_v3 }
  0xa1   : > { %613 = vst.msk [vmem:[%s940_s26 + $0x160] sm:$0xff] %vm568_vm1, %v529_v4 }
  0xa2   : > { %v403_v5 = vpop.f32.mrf.mxu0  ;;  %v445_v6 = vpop.f32.mrf.mxu1 }
  0xa3   : > { %571 = vst.msk [vmem:[%s940_s26 + $0x10] sm:$0xff] %vm568_vm1, %v403_v5 }
  0xa4   : > { %585 = vst.msk [vmem:[%s940_s26 + $0x80] sm:$0xff] %vm568_vm1, %v445_v6 }
  0xa7   : > { %v487_v7 = vpop.f32.mrf.mxu2  ;;  %v532_v8 = vpop.f32.mrf.mxu3 }
  0xa8   : > { %599 = vst.msk [vmem:[%s940_s26 + $0xf0] sm:$0xff] %vm568_vm1, %v487_v7 }
  0xa9   : > { %614 = vst.msk [vmem:[%s940_s26 + $0x168] sm:$0xff] %vm568_vm1, %v532_v8 }
  0xaa   : > { %v406_v9 = vpop.f32.mrf.mxu0  ;;  %v448_v10 = vpop.f32.mrf.mxu1 }
  0xab   : > { %572 = vst.msk [vmem:[%s940_s26 + $0x18] sm:$0xff] %vm568_vm1, %v406_v9 }
  0xac   : > { %586 = vst.msk [vmem:[%s940_s26 + $0x88] sm:$0xff] %vm568_vm1, %v448_v10 }
  0xaf   : > { %v490_v11 = vpop.f32.mrf.mxu2  ;;  %v535_v12 = vpop.f32.mrf.mxu3 }
  0xb0   : > { %600 = vst.msk [vmem:[%s940_s26 + $0xf8] sm:$0xff] %vm568_vm1, %v490_v11 }
  0xb1   : > { %615 = vst.msk [vmem:[%s940_s26 + $0x170] sm:$0xff] %vm568_vm1, %v535_v12 }
  0xb2   : > { %v409_v13 = vpop.f32.mrf.mxu0  ;;  %v451_v14 = vpop.f32.mrf.mxu1 }
  0xb3   : > { %573 = vst.msk [vmem:[%s940_s26 + $0x20] sm:$0xff] %vm568_vm1, %v409_v13 }
  0xb4   : > { %587 = vst.msk [vmem:[%s940_s26 + $0x90] sm:$0xff] %vm568_vm1, %v451_v14 }
  0xb7   : > { %v493_v15 = vpop.f32.mrf.mxu2  ;;  %v538_v16 = vpop.f32.mrf.mxu3 }
  0xb8   : > { %601 = vst.msk [vmem:[%s940_s26 + $0x100] sm:$0xff] %vm568_vm1, %v493_v15 }
  0xb9   : > { %616 = vst.msk [vmem:[%s940_s26 + $0x178] sm:$0xff] %vm568_vm1, %v538_v16 }
  0xba   : > { %v412_v17 = vpop.f32.mrf.mxu0  ;;  %v454_v18 = vpop.f32.mrf.mxu1 }
  0xbb   : > { %574 = vst.msk [vmem:[%s940_s26 + $0x28] sm:$0xff] %vm568_vm1, %v412_v17 }
  0xbc   : > { %588 = vst.msk [vmem:[%s940_s26 + $0x98] sm:$0xff] %vm568_vm1, %v454_v18 }
  0xbf   : > { %v496_v19 = vpop.f32.mrf.mxu2  ;;  %v541_v20 = vpop.f32.mrf.mxu3 }
  0xc0   : > { %602 = vst.msk [vmem:[%s940_s26 + $0x108] sm:$0xff] %vm568_vm1, %v496_v19 }
  0xc1   : > { %617 = vst.msk [vmem:[%s940_s26 + $0x180] sm:$0xff] %vm568_vm1, %v541_v20 }
  0xc2   : > { %v415_v21 = vpop.f32.mrf.mxu0  ;;  %v457_v22 = vpop.f32.mrf.mxu1 }
  0xc3   : > { %575 = vst.msk [vmem:[%s940_s26 + $0x30] sm:$0xff] %vm568_vm1, %v415_v21 }
  0xc4   : > { %589 = vst.msk [vmem:[%s940_s26 + $0xa0] sm:$0xff] %vm568_vm1, %v457_v22 }
  0xc7   : > { %v499_v23 = vpop.f32.mrf.mxu2  ;;  %v544_v24 = vpop.f32.mrf.mxu3 }
  0xc8   : > { %603 = vst.msk [vmem:[%s940_s26 + $0x110] sm:$0xff] %vm568_vm1, %v499_v23 }
  0xc9   : > { %618 = vst.msk [vmem:[%s940_s26 + $0x188] sm:$0xff] %vm568_vm1, %v544_v24 }
  0xca   : > { %v418_v25 = vpop.f32.mrf.mxu0  ;;  %v460_v26 = vpop.f32.mrf.mxu1 }
  0xcb   : > { %576 = vst.msk [vmem:[%s940_s26 + $0x38] sm:$0xff] %vm568_vm1, %v418_v25 }
  0xcc   : > { %590 = vst.msk [vmem:[%s940_s26 + $0xa8] sm:$0xff] %vm568_vm1, %v460_v26 }
  0xcf   : > { %v502_v27 = vpop.f32.mrf.mxu2  ;;  %v547_v28 = vpop.f32.mrf.mxu3 }
  0xd0   : > { %604 = vst.msk [vmem:[%s940_s26 + $0x118] sm:$0xff] %vm568_vm1, %v502_v27 }
  0xd1   : > { %619 = vst.msk [vmem:[%s940_s26 + $0x190] sm:$0xff] %vm568_vm1, %v547_v28 }
  0xd2   : > { %v421_v29 = vpop.f32.mrf.mxu0  ;;  %v463_v30 = vpop.f32.mrf.mxu1 }
  0xd3   : > { %577 = vst.msk [vmem:[%s940_s26 + $0x40] sm:$0xff] %vm568_vm1, %v421_v29 }
  0xd4   : > { %591 = vst.msk [vmem:[%s940_s26 + $0xb0] sm:$0xff] %vm568_vm1, %v463_v30 }
  0xd7   : > { %v505_v31 = vpop.f32.mrf.mxu2  ;;  %v550_v32 = vpop.f32.mrf.mxu3 }
  0xd8   : > { %605 = vst.msk [vmem:[%s940_s26 + $0x120] sm:$0xff] %vm568_vm1, %v505_v31 }
  0xd9   : > { %620 = vst.msk [vmem:[%s940_s26 + $0x198] sm:$0xff] %vm568_vm1, %v550_v32 }
  0xda   : > { %v424_v33 = vpop.f32.mrf.mxu0  ;;  %v466_v34 = vpop.f32.mrf.mxu1 }
  0xdb   : > { %578 = vst.msk [vmem:[%s940_s26 + $0x48] sm:$0xff] %vm568_vm1, %v424_v33 }
  0xdc   : > { %592 = vst.msk [vmem:[%s940_s26 + $0xb8] sm:$0xff] %vm568_vm1, %v466_v34 }
  0xdf   : > { %v508_v35 = vpop.f32.mrf.mxu2  ;;  %v553_v36 = vpop.f32.mrf.mxu3 }
  0xe0   : > { %606 = vst.msk [vmem:[%s940_s26 + $0x128] sm:$0xff] %vm568_vm1, %v508_v35 }
  0xe1   : > { %621 = vst.msk [vmem:[%s940_s26 + $0x1a0] sm:$0xff] %vm568_vm1, %v553_v36 }
  0xe2   : > { %v427_v37 = vpop.f32.mrf.mxu0  ;;  %v469_v38 = vpop.f32.mrf.mxu1 }
  0xe3   : > { %579 = vst.msk [vmem:[%s940_s26 + $0x50] sm:$0xff] %vm568_vm1, %v427_v37 }
  0xe4   : > { %593 = vst.msk [vmem:[%s940_s26 + $0xc0] sm:$0xff] %vm568_vm1, %v469_v38 }
  0xe7   : > { %v511_v39 = vpop.f32.mrf.mxu2  ;;  %v556_v40 = vpop.f32.mrf.mxu3 }
  0xe8   : > { %607 = vst.msk [vmem:[%s940_s26 + $0x130] sm:$0xff] %vm568_vm1, %v511_v39 }
  0xe9   : > { %622 = vst.msk [vmem:[%s940_s26 + $0x1a8] sm:$0xff] %vm568_vm1, %v556_v40 }
  0xea   : > { %v430_v41 = vpop.f32.mrf.mxu0  ;;  %v472_v42 = vpop.f32.mrf.mxu1 }
  0xeb   : > { %580 = vst.msk [vmem:[%s940_s26 + $0x58] sm:$0xff] %vm568_vm1, %v430_v41 }
  0xec   : > { %594 = vst.msk [vmem:[%s940_s26 + $0xc8] sm:$0xff] %vm568_vm1, %v472_v42 }
  0xef   : > { %v514_v43 = vpop.f32.mrf.mxu2  ;;  %v559_v44 = vpop.f32.mrf.mxu3 }
  0xf0   : > { %608 = vst.msk [vmem:[%s940_s26 + $0x138] sm:$0xff] %vm568_vm1, %v514_v43 }
  0xf1   : > { %623 = vst.msk [vmem:[%s940_s26 + $0x1b0] sm:$0xff] %vm568_vm1, %v559_v44 }
  0xf2   : > { %v433_v45 = vpop.f32.mrf.mxu0  ;;  %v475_v46 = vpop.f32.mrf.mxu1 }
  0xf3   : > { %581 = vst.msk [vmem:[%s940_s26 + $0x60] sm:$0xff] %vm568_vm1, %v433_v45 }
  0xf4   : > { %595 = vst.msk [vmem:[%s940_s26 + $0xd0] sm:$0xff] %vm568_vm1, %v475_v46 }
  0xf7   : > { %v517_v47 = vpop.f32.mrf.mxu2  ;;  %v562_v48 = vpop.f32.mrf.mxu3 }
  0xf8   : > { %609 = vst.msk [vmem:[%s940_s26 + $0x140] sm:$0xff] %vm568_vm1, %v517_v47 }
  0xf9   : > { %624 = vst.msk [vmem:[%s940_s26 + $0x1b8] sm:$0xff] %vm568_vm1, %v562_v48 }
  0xfa   : > { %v436_v49 = vpop.f32.mrf.mxu0  ;;  %v478_v50 = vpop.f32.mrf.mxu1 }
  0xfb   : > { %582 = vst.msk [vmem:[%s940_s26 + $0x68] sm:$0xff] %vm568_vm1, %v436_v49 }
  0xfc   : > { %596 = vst.msk [vmem:[%s940_s26 + $0xd8] sm:$0xff] %vm568_vm1, %v478_v50 }
  0xff   : > { %v520_v51 = vpop.f32.mrf.mxu2  ;;  %v565_v52 = vpop.f32.mrf.mxu3 }
 0x100   : > { %610 = vst.msk [vmem:[%s940_s26 + $0x148] sm:$0xff] %vm568_vm1, %v520_v51 }
 0x101   : > { %625 = vst.msk [vmem:[%s940_s26 + $0x1c0] sm:$0xff] %vm568_vm1, %v565_v52 }
 0x107   : > { %v523_v53 = vpop.f32.mrf.mxu2 }
 0x108   : > { %611 = vst.msk [vmem:[%s940_s26 + $0x150] sm:$0xff] %vm568_vm1, %v523_v53 }
 0x109 PF: > { %s12_s9 = sadd.s32 1, %s774_s9  }
 0x10a   : > { %p9_p4 = scmp.ge.s32.totalorder %s12_s9, 6  }
 0x10c   :  { %11 = sbr.rel (!%p9_p4) target bundleno = 1 (0x1), region = 58 }

</bundles_post_ra>
